<compile_context>
chip_gen: v7x
topology: tpu7x:2x2x1
jax: 0.10.0
libtpu: 0.0.40
codegen_flags: <defaults>
</compile_context>

<pallas_src>
import jax
import jax.numpy as jnp
from jax import lax
from jax.experimental import pallas as pl
from jax.experimental.pallas import tpu as pltpu

# ----------------------------- model dimensions -----------------------------
VOCAB = 20
EMB = 32          # encoder embedding / memory dim
ENC_H = 16        # per-direction encoder LSTM hidden
ATT_DIM = 16      # attention projection dim
ATT_RNN = 32      # attention RNN hidden
DEC_RNN = 32      # decoder RNN hidden
PRENET = 32
N_MELS = 80
LOC_FILT = 8      # location-feature conv filters
LOC_K = 7         # location-feature conv kernel
POST_CH = 32
ENC_K = 5         # encoder / postnet conv kernel
PROJ_PAD = 128    # padded width of the fused mel+gate(+alignment) projection output

VMEM_LIMIT = 32 * 1024 * 1024


def _const_spec(shape):
    """BlockSpec for an operand kept fully resident in VMEM across the grid."""
    return pl.BlockSpec(shape, lambda *_: (0,) * len(shape))


def _largest_divisor(n, cap):
    for d in range(min(n, cap), 0, -1):
        if n % d == 0:
            return d
    return 1


# ---------------------- fused conv1d (K shifted matmuls) --------------------

def _conv1d_kernel(xp_ref, w_ref, b_ref, o_ref):
    T = o_ref.shape[1]
    K = w_ref.shape[0]
    xp = xp_ref[0]                                           # (T+K-1, Cin)
    acc = jnp.dot(xp[0:T, :], w_ref[0], preferred_element_type=jnp.float32)
    for k in range(1, K):
        acc = acc + jnp.dot(xp[k:k + T, :], w_ref[k],
                            preferred_element_type=jnp.float32)
    o_ref[0] = acc + b_ref[...]


def conv1d_same(x, w, b=None):
    """x: (B, T, Cin), w: (Cout, Cin, K), b: (Cout,)|None -> (B, T, Cout)."""
    B, T, Cin = x.shape
    Cout, _, K = w.shape
    pad = K // 2
    xp = jnp.pad(x.astype(jnp.float32), ((0, 0), (pad, pad), (0, 0)))
    wk = jnp.transpose(w, (2, 1, 0)).astype(jnp.float32)     # (K, Cin, Cout)
    if b is None:
        b = jnp.zeros((Cout,), jnp.float32)
    b2 = b.reshape(1, Cout).astype(jnp.float32)
    Tp = T + 2 * pad
    return pl.pallas_call(
        _conv1d_kernel,
        grid_spec=pltpu.PrefetchScalarGridSpec(
            num_scalar_prefetch=0,
            grid=(B,),
            in_specs=[
                pl.BlockSpec((1, Tp, Cin), lambda bi: (bi, 0, 0)),
                _const_spec((K, Cin, Cout)),
                _const_spec((1, Cout)),
            ],
            out_specs=pl.BlockSpec((1, T, Cout), lambda bi: (bi, 0, 0)),
        ),
        out_shape=jax.ShapeDtypeStruct((B, T, Cout), jnp.float32),
        compiler_params=pltpu.CompilerParams(dimension_semantics=("parallel",)),
    )(xp, wk, b2)


def batchnorm_lastdim(x, gamma, beta, eps=1e-5):
    # training-mode batch statistics over (batch, time), per channel (last dim)
    # TODO(synk): eval-mode running stats (which would fold BN into the conv) not used.
    mean = jnp.mean(x, axis=(0, 1), keepdims=True)
    var = jnp.var(x, axis=(0, 1), keepdims=True)
    return gamma[None, None, :] * (x - mean) * lax.rsqrt(var + eps) + beta[None, None, :]


# ------------------ fused bidirectional encoder LSTM kernel -----------------

def _bilstm_kernel(x_ref, w_ref, b_ref, o_ref, h_sc, c_sc):
    d = pl.program_id(0)
    ci = pl.program_id(1)

    @pl.when(ci == 0)
    def _init():
        h_sc[...] = jnp.zeros_like(h_sc)
        c_sc[...] = jnp.zeros_like(c_sc)

    f32 = jnp.float32
    W = w_ref[...]                                           # (EMB+ENC_H, 4H)
    b = b_ref[...]                                           # (1, 4H)
    CH = x_ref.shape[0]

    def body(j, carry):
        h, c = carry
        # forward (d==0): local step j; backward (d==1): CH-1-j
        lj = j + d * (CH - 1 - 2 * j)
        x = x_ref[lj]                                        # (B, EMB)
        xh = jnp.concatenate([x, h], axis=-1)                # (B, EMB+ENC_H)
        g = jnp.dot(xh, W, preferred_element_type=f32) + b
        i_g = jax.nn.sigmoid(g[:, 0:ENC_H])
        f_g = jax.nn.sigmoid(g[:, ENC_H:2 * ENC_H])
        c_g = jnp.tanh(g[:, 2 * ENC_H:3 * ENC_H])
        o_g = jax.nn.sigmoid(g[:, 3 * ENC_H:4 * ENC_H])
        c_new = f_g * c + i_g * c_g
        h_new = o_g * jnp.tanh(c_new)
        o_ref[lj] = h_new
        return (h_new, c_new)

    h_fin, c_fin = lax.fori_loop(0, CH, body, (h_sc[...], c_sc[...]), unroll=True)
    h_sc[...] = h_fin
    c_sc[...] = c_fin


def bilstm(x_seq, W_stack, b_stack, chunk):
    """x_seq: (T, B, EMB); W_stack: (2, EMB+ENC_H, 4H); b_stack: (2, 1, 4H)
       -> (2, T, B, ENC_H): [forward, backward] hidden states (input-time order)."""
    T, B, _ = x_seq.shape
    Din, H4 = W_stack.shape[1], W_stack.shape[2]
    nc = T // chunk

    def chunk_idx(d, c):
        # forward direction walks chunks 0..nc-1, backward walks nc-1..0
        return c + d * (nc - 1 - 2 * c)

    hs = pl.pallas_call(
        _bilstm_kernel,
        grid_spec=pltpu.PrefetchScalarGridSpec(
            num_scalar_prefetch=0,
            grid=(2, nc),
            in_specs=[
                pl.BlockSpec((chunk, B, EMB), lambda d, c: (chunk_idx(d, c), 0, 0)),
                pl.BlockSpec((None, Din, H4), lambda d, c: (d, 0, 0)),
                pl.BlockSpec((None, 1, H4), lambda d, c: (d, 0, 0)),
            ],
            out_specs=pl.BlockSpec((None, chunk, B, ENC_H),
                                   lambda d, c: (d, chunk_idx(d, c), 0, 0)),
            scratch_shapes=[pltpu.VMEM((B, ENC_H), jnp.float32),
                            pltpu.VMEM((B, ENC_H), jnp.float32)],
        ),
        out_shape=jax.ShapeDtypeStruct((2, T, B, ENC_H), jnp.float32),
        compiler_params=pltpu.CompilerParams(
            dimension_semantics=("parallel", "arbitrary"),
            vmem_limit_bytes=VMEM_LIMIT),
    )(x_seq.astype(jnp.float32), W_stack.astype(jnp.float32),
      b_stack.astype(jnp.float32))
    return hs


# ------------------------- fused chunked decoder kernel ---------------------

def _decoder_chunk_kernel(melprev_ref, mem_ref, pm_ref, mask_ref,
                          p1_ref, p2_ref, aW_ref, ab_ref,
                          qT_ref, cS_ref, vM_ref,
                          dW_ref, db_ref, pW_ref, pb_ref, alP_ref,
                          out_ref,
                          ah, ac, dh, dcell, aw, awc, ctx):
    tc = pl.program_id(0)

    @pl.when(tc == 0)
    def _init():
        ah[...] = jnp.zeros_like(ah)
        ac[...] = jnp.zeros_like(ac)
        dh[...] = jnp.zeros_like(dh)
        dcell[...] = jnp.zeros_like(dcell)
        aw[...] = jnp.zeros_like(aw)
        awc[...] = jnp.zeros_like(awc)
        ctx[...] = jnp.zeros_like(ctx)

    f32 = jnp.float32
    CH = melprev_ref.shape[0]

    mem = mem_ref[...]            # (B, T_text, EMB)
    pm = pm_ref[...]              # (B, T_text*ATT_DIM)
    mask = mask_ref[...]          # (B, T_text)
    p1 = p1_ref[...]
    p2 = p2_ref[...]
    aW = aW_ref[...]
    ab = ab_ref[...]
    qT = qT_ref[...]
    cS = cS_ref[...]
    vM = vM_ref[...]
    dW = dW_ref[...]
    db = db_ref[...]
    pW = pW_ref[...]
    pb = pb_ref[...]
    alP = alP_ref[...]
    neg = jnp.float32(-1e9)

    def step(j, carry):
        attn_h, attn_c, dec_h, dec_c, w_prev, w_cum, ctx_prev = carry

        mel_prev = melprev_ref[j]                                  # (B, 80)
        # prenet   # TODO(synk): prenet dropout omitted for determinism
        pre = jax.nn.relu(jnp.dot(mel_prev, p1, preferred_element_type=f32))
        pre = jax.nn.relu(jnp.dot(pre, p2, preferred_element_type=f32))

        # attention LSTM: single fused gate matmul over [pre | ctx | h]
        xin = jnp.concatenate([pre, ctx_prev, attn_h], axis=-1)    # (B, 96)
        g = jnp.dot(xin, aW, preferred_element_type=f32) + ab
        i_g = jax.nn.sigmoid(g[:, 0:ATT_RNN])
        f_g = jax.nn.sigmoid(g[:, ATT_RNN:2 * ATT_RNN])
        c_g = jnp.tanh(g[:, 2 * ATT_RNN:3 * ATT_RNN])
        o_g = jax.nn.sigmoid(g[:, 3 * ATT_RNN:4 * ATT_RNN])
        attn_c_new = f_g * attn_c + i_g * c_g
        attn_h_new = o_g * jnp.tanh(attn_c_new)

        # location-sensitive attention: conv+dense folded host-side into cS,
        # query tiling into qT, v-reduction into vM.  Both location terms fused
        # into ONE matmul on the lane-concatenated [attn_w | attn_w_cum].
        q_flat = jnp.dot(attn_h_new, qT, preferred_element_type=f32)      # (B, T*A)
        loc_in = jnp.concatenate([w_prev, w_cum], axis=-1)                 # (B, 2T)
        loc_flat = jnp.dot(loc_in, cS, preferred_element_type=f32)        # (B, T*A)
        th = jnp.tanh(q_flat + pm + loc_flat)
        energies = jnp.dot(th, vM, preferred_element_type=f32)            # (B, T)
        energies = jnp.where(mask > 0.5, energies, neg)
        m = jnp.max(energies, axis=-1, keepdims=True)
        ex = jnp.exp(energies - m)
        denom = jnp.sum(ex, axis=-1, keepdims=True)
        w_new = ex * pl.reciprocal(denom, approx=True)                     # (B, T)

        # context = sum_t w[:, t] * memory[:, t, :]  (batched VPU mul + reduce)
        ctx_new = jnp.sum(w_new[:, :, None] * mem, axis=1)                 # (B, EMB)

        w_cum_new = w_cum + w_new

        # decoder LSTM: single fused gate matmul over [attn_h | ctx | dec_h]
        xin2 = jnp.concatenate([attn_h_new, ctx_new, dec_h], axis=-1)      # (B, 96)
        g2 = jnp.dot(xin2, dW, preferred_element_type=f32) + db
        i2 = jax.nn.sigmoid(g2[:, 0:DEC_RNN])
        f2 = jax.nn.sigmoid(g2[:, DEC_RNN:2 * DEC_RNN])
        c2 = jnp.tanh(g2[:, 2 * DEC_RNN:3 * DEC_RNN])
        o2 = jax.nn.sigmoid(g2[:, 3 * DEC_RNN:4 * DEC_RNN])
        dec_c_new = f2 * dec_c + i2 * c2
        dec_h_new = o2 * jnp.tanh(dec_c_new)

        # fused mel+gate projection (128 lanes); alignment packed into the spare
        # padded columns via a constant placement matmul -> one dense store.
        proj_in = jnp.concatenate([dec_h_new, ctx_new], axis=-1)           # (B, 64)
        out = (jnp.dot(proj_in, pW, preferred_element_type=f32) + pb
               + jnp.dot(w_new, alP, preferred_element_type=f32))
        out_ref[j] = out

        return (attn_h_new, attn_c_new, dec_h_new, dec_c_new,
                w_new, w_cum_new, ctx_new)

    carry0 = (ah[...], ac[...], dh[...], dcell[...], aw[...], awc[...], ctx[...])
    carry = lax.fori_loop(0, CH, step, carry0, unroll=True)
    ah[...] = carry[0]
    ac[...] = carry[1]
    dh[...] = carry[2]
    dcell[...] = carry[3]
    aw[...] = carry[4]
    awc[...] = carry[5]
    ctx[...] = carry[6]


def _build_attention_mats(params, T_text):
    """Fold location-conv + loc_dense, query tiling and the v-reduction into constants."""
    A = ATT_DIM
    Q_tiled = jnp.tile(params['query_layer'].astype(jnp.float32), (1, T_text))  # (ATT_RNN, T*A)
    w = params['loc_conv'].astype(jnp.float32)                                   # (F, 2, K)
    dense = params['loc_dense'].astype(jnp.float32)                              # (F, A)
    wd = jnp.einsum('fck,fa->cka', w, dense)                                     # (2, K, A)
    pad = LOC_K // 2
    s = jnp.arange(T_text)[:, None]
    t = jnp.arange(T_text)[None, :]
    k = s - t + pad
    valid = ((k >= 0) & (k < LOC_K)).astype(jnp.float32)
    kc = jnp.clip(k, 0, LOC_K - 1)
    Cm = wd[:, kc, :] * valid[None, :, :, None]                                  # (2, T, T, A)
    C_w = Cm[0].reshape(T_text, T_text * A)
    C_cum = Cm[1].reshape(T_text, T_text * A)
    v = params['att_v'].astype(jnp.float32)
    V_mat = (jnp.eye(T_text, dtype=jnp.float32)[:, None, :]
             * v[None, :, None]).reshape(T_text * A, T_text)
    return Q_tiled, C_w, C_cum, V_mat


# ------------------------------ parameter init ------------------------------

def init_params(key):
    keys = iter(jax.random.split(key, 64))
    n = lambda shape, s=0.1: s * jax.random.normal(next(keys), shape, jnp.float32)
    p = {}
    p['embedding'] = n((VOCAB, EMB), 0.3)
    p['enc_conv'] = [dict(w=n((EMB, EMB, ENC_K)), b=jnp.zeros((EMB,), jnp.float32),
                          gamma=jnp.ones((EMB,), jnp.float32),
                          beta=jnp.zeros((EMB,), jnp.float32)) for _ in range(3)]
    p['enc_lstm_fw'] = dict(W=n((EMB + ENC_H, 4 * ENC_H)), b=jnp.zeros((4 * ENC_H,), jnp.float32))
    p['enc_lstm_bw'] = dict(W=n((EMB + ENC_H, 4 * ENC_H)), b=jnp.zeros((4 * ENC_H,), jnp.float32))
    p['memory_layer'] = n((EMB, ATT_DIM))
    p['query_layer'] = n((ATT_RNN, ATT_DIM))
    p['loc_conv'] = n((LOC_FILT, 2, LOC_K))
    p['loc_dense'] = n((LOC_FILT, ATT_DIM))
    p['att_v'] = n((ATT_DIM,))
    p['prenet1'] = n((N_MELS, PRENET))
    p['prenet2'] = n((PRENET, PRENET))
    p['attn_rnn'] = dict(W=n((PRENET + EMB + ATT_RNN, 4 * ATT_RNN)),
                         b=jnp.zeros((4 * ATT_RNN,), jnp.float32))
    p['dec_rnn'] = dict(W=n((ATT_RNN + EMB + DEC_RNN, 4 * DEC_RNN)),
                        b=jnp.zeros((4 * DEC_RNN,), jnp.float32))
    p['proj'] = dict(W=n((DEC_RNN + EMB, N_MELS + 1)),
                     b=jnp.zeros((N_MELS + 1,), jnp.float32))
    chans = [N_MELS, POST_CH, POST_CH, POST_CH, POST_CH, N_MELS]
    p['postnet'] = [dict(w=n((chans[i + 1], chans[i], ENC_K)),
                         b=jnp.zeros((chans[i + 1],), jnp.float32),
                         gamma=jnp.ones((chans[i + 1],), jnp.float32),
                         beta=jnp.zeros((chans[i + 1],), jnp.float32)) for i in range(5)]
    return p


# --------------------------------- encoder ----------------------------------

def encoder(params, text, text_lens):
    # TODO(synk): pack_padded_sequence masking of padded text inside the BiLSTM is omitted.
    B, T = text.shape
    x = params['embedding'][text]                            # (B, T, EMB)
    for cp in params['enc_conv']:
        x = conv1d_same(x, cp['w'], cp['b'])
        x = batchnorm_lastdim(x, cp['gamma'], cp['beta'])    # TODO(synk): BN+act not fused into conv (training-mode batch stats need full conv output)
        x = jax.nn.relu(x)                                   # TODO(synk): conv dropout omitted
    x_seq = x.transpose(1, 0, 2)                             # (T, B, EMB)
    W_stack = jnp.stack([params['enc_lstm_fw']['W'], params['enc_lstm_bw']['W']], axis=0)
    b_stack = jnp.stack([params['enc_lstm_fw']['b'].reshape(1, -1),
                         params['enc_lstm_bw']['b'].reshape(1, -1)], axis=0)
    chunk = _largest_divisor(T, 16)
    hs = bilstm(x_seq, W_stack, b_stack, chunk)              # (2, T, B, ENC_H)
    memory = jnp.concatenate([hs[0], hs[1]], axis=-1).transpose(1, 0, 2)   # (B, T, EMB)
    processed_memory = jnp.dot(memory, params['memory_layer'])             # (B, T, ATT_DIM)
    return memory, processed_memory


# --------------------------------- decoder ----------------------------------

def decoder(params, memory, processed_memory, text_lens, mel):
    B, T_text, _ = memory.shape
    T_mel = mel.shape[2]
    # alignment is packed into the padded projection lanes
    assert N_MELS + 1 + T_text <= PROJ_PAD  # TODO(synk): separate padded align output for long text
    chunk = _largest_divisor(T_mel, 16)
    nc = T_mel // chunk

    valid_mask = (jnp.arange(T_text)[None, :] < text_lens[:, None]).astype(jnp.float32)

    # teacher forcing: <go> frame followed by shifted target mel, time-major
    go = jnp.zeros((B, N_MELS, 1), jnp.float32)
    dec_inputs = jnp.concatenate([go, mel[:, :, :-1]], axis=2).transpose(2, 0, 1)  # (T_mel,B,80)

    Q_tiled, C_w, C_cum, V_mat = _build_attention_mats(params, T_text)
    C_stacked = jnp.concatenate([C_w, C_cum], axis=0)        # (2*T_text, T_text*A)
    pm_flat = processed_memory.reshape(B, T_text * ATT_DIM).astype(jnp.float32)

    aW = params['attn_rnn']['W']
    ab = params['attn_rnn']['b'].reshape(1, -1)
    dW = params['dec_rnn']['W']
    db = params['dec_rnn']['b'].reshape(1, -1)
    pW = jnp.pad(params['proj']['W'], ((0, 0), (0, PROJ_PAD - (N_MELS + 1))))
    pb = jnp.pad(params['proj']['b'], (0, PROJ_PAD - (N_MELS + 1))).reshape(1, PROJ_PAD)
    # alignment placement matrix: routes w_new[:, t] to padded column N_MELS+1+t
    alP = jnp.zeros((T_text, PROJ_PAD), jnp.float32).at[
        jnp.arange(T_text), N_MELS + 1 + jnp.arange(T_text)].set(1.0)

    TA = T_text * ATT_DIM
    out = pl.pallas_call(
        _decoder_chunk_kernel,
        grid_spec=pltpu.PrefetchScalarGridSpec(
            num_scalar_prefetch=0,
            grid=(nc,),
            in_specs=[
                pl.BlockSpec((chunk, B, N_MELS), lambda t: (t, 0, 0)),  # prev mel frames
                _const_spec((B, T_text, EMB)),                       # memory
                _const_spec((B, TA)),                                # processed memory (flat)
                _const_spec((B, T_text)),                            # valid mask
                _const_spec((N_MELS, PRENET)),                       # prenet1
                _const_spec((PRENET, PRENET)),                       # prenet2
                _const_spec((PRENET + EMB + ATT_RNN, 4 * ATT_RNN)),  # attn-rnn W
                _const_spec((1, 4 * ATT_RNN)),                       # attn-rnn b
                _const_spec((ATT_RNN, TA)),                          # tiled query proj
                _const_spec((2 * T_text, TA)),                       # stacked loc conv+dense
                _const_spec((TA, T_text)),                           # v-reduction matrix
                _const_spec((ATT_RNN + EMB + DEC_RNN, 4 * DEC_RNN)), # dec-rnn W
                _const_spec((1, 4 * DEC_RNN)),                       # dec-rnn b
                _const_spec((DEC_RNN + EMB, PROJ_PAD)),              # proj W (padded)
                _const_spec((1, PROJ_PAD)),                          # proj b (padded)
                _const_spec((T_text, PROJ_PAD)),                     # alignment placement
            ],
            out_specs=pl.BlockSpec((chunk, B, PROJ_PAD), lambda t: (t, 0, 0)),
            scratch_shapes=[
                pltpu.VMEM((B, ATT_RNN), jnp.float32),   # attn_h
                pltpu.VMEM((B, ATT_RNN), jnp.float32),   # attn_c
                pltpu.VMEM((B, DEC_RNN), jnp.float32),   # dec_h
                pltpu.VMEM((B, DEC_RNN), jnp.float32),   # dec_c
                pltpu.VMEM((B, T_text), jnp.float32),    # attn_w
                pltpu.VMEM((B, T_text), jnp.float32),    # attn_w_cum
                pltpu.VMEM((B, EMB), jnp.float32),       # context
            ],
        ),
        out_shape=jax.ShapeDtypeStruct((T_mel, B, PROJ_PAD), jnp.float32),
        compiler_params=pltpu.CompilerParams(
            dimension_semantics=("arbitrary",),
            vmem_limit_bytes=VMEM_LIMIT),
    )(dec_inputs, memory.astype(jnp.float32), pm_flat, valid_mask,
      params['prenet1'], params['prenet2'], aW, ab,
      Q_tiled, C_stacked, V_mat, dW, db, pW, pb, alP)

    mel_pred = out[:, :, :N_MELS].transpose(1, 2, 0)                     # (B, 80, T_mel)
    gate_pred = out[:, :, N_MELS].transpose(1, 0)                        # (B, T_mel)
    alignment = out[:, :, N_MELS + 1:N_MELS + 1 + T_text].transpose(1, 0, 2)  # (B,T_mel,T_text)
    return mel_pred, gate_pred, alignment


# --------------------------------- postnet ----------------------------------

def postnet(params, mel_pred):
    x = mel_pred.transpose(0, 2, 1)                          # (B, T, 80)
    n_layers = len(params['postnet'])
    for i, cp in enumerate(params['postnet']):
        x = conv1d_same(x, cp['w'], cp['b'])
        x = batchnorm_lastdim(x, cp['gamma'], cp['beta'])
        if i < n_layers - 1:
            x = jnp.tanh(x)                                  # TODO(synk): postnet dropout omitted
    return x.transpose(0, 2, 1)                              # (B, 80, T)


# -------------------------------- full model --------------------------------

def my_model_forward(params, text, text_lens, mel, gate, mel_lens):
    # mirrors MyModel.forward: the masking block is commented out in the reference, so skipped
    memory, processed_memory = encoder(params, text, text_lens)
    mel_pred, gate_pred, alignment = decoder(params, memory, processed_memory, text_lens, mel)
    mel_pred_postnet = postnet(params, mel_pred) + mel_pred
    return mel_pred, mel_pred_postnet, gate_pred, alignment


if __name__ == "__main__":
    key = jax.random.PRNGKey(0)
    kp, kt, km = jax.random.split(key, 3)
    params = init_params(kp)

    B, T_text, T_mel = 2, 8, 8
    text = jax.random.randint(kt, (B, T_text), 0, VOCAB, dtype=jnp.int32)
    text_lens = jnp.array([T_text, T_text - 2], dtype=jnp.int32)
    mel = jax.random.normal(km, (B, N_MELS, T_mel), dtype=jnp.float32)
    gate = jnp.zeros((B, T_mel), jnp.float32)
    mel_lens = jnp.array([T_mel, T_mel - 1], dtype=jnp.int32)

    fwd = jax.jit(my_model_forward)
    outs = fwd(params, text, text_lens, mel, gate, mel_lens)
    jax.block_until_ready(outs)
    mel_pred, mel_pred_postnet, gate_pred, alignment = outs
    assert mel_pred.shape == (B, N_MELS, T_mel)
    assert mel_pred_postnet.shape == (B, N_MELS, T_mel)
    assert gate_pred.shape == (B, T_mel)
    assert alignment.shape == (B, T_mel, T_text)
    print("KERNEL_OK")
</pallas_src>

<mosaic_0001>
module attributes {stable_mosaic.version = 11 : i64} {
  func.func @_bilstm_kernel(%arg0: i32, %arg1: i32, %arg2: memref<8x2x32xf32, #tpu.memory_space<vmem>>, %arg3: memref<1x48x64xf32, #tpu.memory_space<vmem>>, %arg4: memref<1x1x64xf32, #tpu.memory_space<vmem>>, %arg5: memref<1x8x2x16xf32, #tpu.memory_space<vmem>>, %arg6: memref<2x16xf32, #tpu.memory_space<vmem>>, %arg7: memref<2x16xf32, #tpu.memory_space<vmem>>) attributes {dimension_semantics = [#tpu.dimension_semantics<parallel>, #tpu.dimension_semantics<arbitrary>], iteration_bounds = array<i64: 2, 1>, scalar_prefetch = 0 : i64, scratch_operands = 2 : i64, tpu.core_type = #tpu.core_type<tc>, window_params = [{transform_indices = @transform_0, window_bounds = array<i64: 8, 2, 32>}, {transform_indices = @transform_1, window_bounds = array<i64: 1, 48, 64>}, {transform_indices = @transform_2, window_bounds = array<i64: 1, 1, 64>}, {transform_indices = @transform_3, window_bounds = array<i64: 1, 8, 2, 16>}]} {
    %c0_i32 = arith.constant 0 : i32
    %0 = arith.cmpi eq, %arg1, %c0_i32 : i32
    %1 = arith.extui %0 : i1 to i32
    %c0_i32_0 = arith.constant 0 : i32
    %2 = arith.cmpi ne, %1, %c0_i32_0 : i32
    scf.if %2 {
      %cst_102 = arith.constant 0.000000e+00 : f32
      %331 = vector.broadcast %cst_102 : f32 to vector<2x16xf32>
      %c0_103 = arith.constant 0 : index
      %c0_104 = arith.constant 0 : index
      %332 = vector.load %arg6[%c0_103, %c0_104] : memref<2x16xf32, #tpu.memory_space<vmem>>, vector<2x16xf32>
      tpu.vector_store %arg6[%c0_103, %c0_104], %331 {strides = array<i32>} : memref<2x16xf32, #tpu.memory_space<vmem>>, vector<2x16xf32>,
      %cst_105 = arith.constant 0.000000e+00 : f32
      %333 = vector.broadcast %cst_105 : f32 to vector<2x16xf32>
      %c0_106 = arith.constant 0 : index
      %c0_107 = arith.constant 0 : index
      %334 = vector.load %arg7[%c0_106, %c0_107] : memref<2x16xf32, #tpu.memory_space<vmem>>, vector<2x16xf32>
      tpu.vector_store %arg7[%c0_106, %c0_107], %333 {strides = array<i32>} : memref<2x16xf32, #tpu.memory_space<vmem>>, vector<2x16xf32>,
    } else {
    }
    %c0 = arith.constant 0 : index
    %c0_1 = arith.constant 0 : index
    %c0_2 = arith.constant 0 : index
    %3 = vector.load %arg3[%c0, %c0_1, %c0_2] : memref<1x48x64xf32, #tpu.memory_space<vmem>>, vector<1x48x64xf32>
    %4 = vector.shape_cast %3 : vector<1x48x64xf32> to vector<48x64xf32>
    %c0_3 = arith.constant 0 : index
    %c0_4 = arith.constant 0 : index
    %c0_5 = arith.constant 0 : index
    %5 = vector.load %arg4[%c0_3, %c0_4, %c0_5] : memref<1x1x64xf32, #tpu.memory_space<vmem>>, vector<1x1x64xf32>
    %6 = vector.shape_cast %5 : vector<1x1x64xf32> to vector<1x64xf32>
    %c0_6 = arith.constant 0 : index
    %c0_7 = arith.constant 0 : index
    %7 = vector.load %arg6[%c0_6, %c0_7] : memref<2x16xf32, #tpu.memory_space<vmem>>, vector<2x16xf32>
    %c0_8 = arith.constant 0 : index
    %c0_9 = arith.constant 0 : index
    %8 = vector.load %arg7[%c0_8, %c0_9] : memref<2x16xf32, #tpu.memory_space<vmem>>, vector<2x16xf32>
    %c0_i32_10 = arith.constant 0 : i32
    %c2_i32 = arith.constant 2 : i32
    %9 = arith.muli %c2_i32, %c0_i32_10 : i32
    %c7_i32 = arith.constant 7 : i32
    %10 = arith.subi %c7_i32, %9 : i32
    %11 = arith.muli %arg0, %10 : i32
    %12 = arith.addi %c0_i32_10, %11 : i32
    %13 = arith.index_cast %12 : i32 to index
    %c0_11 = arith.constant 0 : index
    %c0_12 = arith.constant 0 : index
    %14 = vector.load %arg2[%13, %c0_11, %c0_12] : memref<8x2x32xf32, #tpu.memory_space<vmem>>, vector<1x2x32xf32>
    %15 = vector.shape_cast %14 : vector<1x2x32xf32> to vector<2x32xf32>
    %16 = tpu.concatenate %15, %7 in 1 : vector<2x32xf32>, vector<2x16xf32> -> vector<2x48xf32>
    %cst = arith.constant dense<0.000000e+00> : vector<2x64xf32>
    %17 = tpu.matmul %16, %4, %cst {dimension_numbers = #tpu.dot_dimension_numbers<[1], [0], [0], [1], [0, 0, 1, 1], [], []>} : vector<2x48xf32>, vector<48x64xf32>, vector<2x64xf32> -> vector<2x64xf32>
    %18 = vector.broadcast %6 : vector<1x64xf32> to vector<2x64xf32>
    %19 = arith.addf %17, %18 : vector<2x64xf32>
    %20 = vector.extract_strided_slice %19 {offsets = [0, 0], sizes = [2, 16], strides = [1, 1]} : vector<2x64xf32> to vector<2x16xf32>
    %21 = arith.negf %20 : vector<2x16xf32>
    %22 = math.exp %21 : vector<2x16xf32>
    %cst_13 = arith.constant 1.000000e+00 : f32
    %23 = vector.broadcast %cst_13 : f32 to vector<2x16xf32>
    %24 = arith.addf %23, %22 : vector<2x16xf32>
    %25 = arith.divf %23, %24 : vector<2x16xf32>
    %26 = vector.extract_strided_slice %19 {offsets = [0, 16], sizes = [2, 16], strides = [1, 1]} : vector<2x64xf32> to vector<2x16xf32>
    %27 = arith.negf %26 : vector<2x16xf32>
    %28 = math.exp %27 : vector<2x16xf32>
    %cst_14 = arith.constant 1.000000e+00 : f32
    %29 = vector.broadcast %cst_14 : f32 to vector<2x16xf32>
    %30 = arith.addf %29, %28 : vector<2x16xf32>
    %31 = arith.divf %29, %30 : vector<2x16xf32>
    %32 = vector.extract_strided_slice %19 {offsets = [0, 32], sizes = [2, 16], strides = [1, 1]} : vector<2x64xf32> to vector<2x16xf32>
    %33 = math.tanh %32 : vector<2x16xf32>
    %34 = vector.extract_strided_slice %19 {offsets = [0, 48], sizes = [2, 16], strides = [1, 1]} : vector<2x64xf32> to vector<2x16xf32>
    %35 = arith.negf %34 : vector<2x16xf32>
    %36 = math.exp %35 : vector<2x16xf32>
    %cst_15 = arith.constant 1.000000e+00 : f32
    %37 = vector.broadcast %cst_15 : f32 to vector<2x16xf32>
    %38 = arith.addf %37, %36 : vector<2x16xf32>
    %39 = arith.divf %37, %38 : vector<2x16xf32>
    %40 = arith.mulf %31, %8 : vector<2x16xf32>
    %41 = arith.mulf %25, %33 : vector<2x16xf32>
    %42 = arith.addf %40, %41 : vector<2x16xf32>
    %43 = math.tanh %42 : vector<2x16xf32>
    %44 = arith.mulf %39, %43 : vector<2x16xf32>
    %c0_16 = arith.constant 0 : index
    %45 = arith.index_cast %12 : i32 to index
    %c0_17 = arith.constant 0 : index
    %c0_18 = arith.constant 0 : index
    %46 = vector.load %arg5[%c0_16, %45, %c0_17, %c0_18] : memref<1x8x2x16xf32, #tpu.memory_space<vmem>>, vector<1x1x2x16xf32>
    %47 = vector.shape_cast %46 : vector<1x1x2x16xf32> to vector<2x16xf32>
    %48 = vector.shape_cast %44 : vector<2x16xf32> to vector<1x1x2x16xf32>
    tpu.vector_store %arg5[%c0_16, %45, %c0_17, %c0_18], %48 {strides = array<i32>} : memref<1x8x2x16xf32, #tpu.memory_space<vmem>>, vector<1x1x2x16xf32>,
    %c1_i32 = arith.constant 1 : i32
    %c2_i32_19 = arith.constant 2 : i32
    %49 = arith.muli %c2_i32_19, %c1_i32 : i32
    %c7_i32_20 = arith.constant 7 : i32
    %50 = arith.subi %c7_i32_20, %49 : i32
    %51 = arith.muli %arg0, %50 : i32
    %52 = arith.addi %c1_i32, %51 : i32
    %53 = arith.index_cast %52 : i32 to index
    %c0_21 = arith.constant 0 : index
    %c0_22 = arith.constant 0 : index
    %54 = vector.load %arg2[%53, %c0_21, %c0_22] : memref<8x2x32xf32, #tpu.memory_space<vmem>>, vector<1x2x32xf32>
    %55 = vector.shape_cast %54 : vector<1x2x32xf32> to vector<2x32xf32>
    %56 = tpu.concatenate %55, %44 in 1 : vector<2x32xf32>, vector<2x16xf32> -> vector<2x48xf32>
    %cst_23 = arith.constant dense<0.000000e+00> : vector<2x64xf32>
    %57 = tpu.matmul %56, %4, %cst_23 {dimension_numbers = #tpu.dot_dimension_numbers<[1], [0], [0], [1], [0, 0, 1, 1], [], []>} : vector<2x48xf32>, vector<48x64xf32>, vector<2x64xf32> -> vector<2x64xf32>
    %58 = vector.broadcast %6 : vector<1x64xf32> to vector<2x64xf32>
    %59 = arith.addf %57, %58 : vector<2x64xf32>
    %60 = vector.extract_strided_slice %59 {offsets = [0, 0], sizes = [2, 16], strides = [1, 1]} : vector<2x64xf32> to vector<2x16xf32>
    %61 = arith.negf %60 : vector<2x16xf32>
    %62 = math.exp %61 : vector<2x16xf32>
    %cst_24 = arith.constant 1.000000e+00 : f32
    %63 = vector.broadcast %cst_24 : f32 to vector<2x16xf32>
    %64 = arith.addf %63, %62 : vector<2x16xf32>
    %65 = arith.divf %63, %64 : vector<2x16xf32>
    %66 = vector.extract_strided_slice %59 {offsets = [0, 16], sizes = [2, 16], strides = [1, 1]} : vector<2x64xf32> to vector<2x16xf32>
    %67 = arith.negf %66 : vector<2x16xf32>
    %68 = math.exp %67 : vector<2x16xf32>
    %cst_25 = arith.constant 1.000000e+00 : f32
    %69 = vector.broadcast %cst_25 : f32 to vector<2x16xf32>
    %70 = arith.addf %69, %68 : vector<2x16xf32>
    %71 = arith.divf %69, %70 : vector<2x16xf32>
    %72 = vector.extract_strided_slice %59 {offsets = [0, 32], sizes = [2, 16], strides = [1, 1]} : vector<2x64xf32> to vector<2x16xf32>
    %73 = math.tanh %72 : vector<2x16xf32>
    %74 = vector.extract_strided_slice %59 {offsets = [0, 48], sizes = [2, 16], strides = [1, 1]} : vector<2x64xf32> to vector<2x16xf32>
    %75 = arith.negf %74 : vector<2x16xf32>
    %76 = math.exp %75 : vector<2x16xf32>
    %cst_26 = arith.constant 1.000000e+00 : f32
    %77 = vector.broadcast %cst_26 : f32 to vector<2x16xf32>
    %78 = arith.addf %77, %76 : vector<2x16xf32>
    %79 = arith.divf %77, %78 : vector<2x16xf32>
    %80 = arith.mulf %71, %42 : vector<2x16xf32>
    %81 = arith.mulf %65, %73 : vector<2x16xf32>
    %82 = arith.addf %80, %81 : vector<2x16xf32>
    %83 = math.tanh %82 : vector<2x16xf32>
    %84 = arith.mulf %79, %83 : vector<2x16xf32>
    %c0_27 = arith.constant 0 : index
    %85 = arith.index_cast %52 : i32 to index
    %c0_28 = arith.constant 0 : index
    %c0_29 = arith.constant 0 : index
    %86 = vector.load %arg5[%c0_27, %85, %c0_28, %c0_29] : memref<1x8x2x16xf32, #tpu.memory_space<vmem>>, vector<1x1x2x16xf32>
    %87 = vector.shape_cast %86 : vector<1x1x2x16xf32> to vector<2x16xf32>
    %88 = vector.shape_cast %84 : vector<2x16xf32> to vector<1x1x2x16xf32>
    tpu.vector_store %arg5[%c0_27, %85, %c0_28, %c0_29], %88 {strides = array<i32>} : memref<1x8x2x16xf32, #tpu.memory_space<vmem>>, vector<1x1x2x16xf32>,
    %c2_i32_30 = arith.constant 2 : i32
    %c2_i32_31 = arith.constant 2 : i32
    %89 = arith.muli %c2_i32_31, %c2_i32_30 : i32
    %c7_i32_32 = arith.constant 7 : i32
    %90 = arith.subi %c7_i32_32, %89 : i32
    %91 = arith.muli %arg0, %90 : i32
    %92 = arith.addi %c2_i32_30, %91 : i32
    %93 = arith.index_cast %92 : i32 to index
    %c0_33 = arith.constant 0 : index
    %c0_34 = arith.constant 0 : index
    %94 = vector.load %arg2[%93, %c0_33, %c0_34] : memref<8x2x32xf32, #tpu.memory_space<vmem>>, vector<1x2x32xf32>
    %95 = vector.shape_cast %94 : vector<1x2x32xf32> to vector<2x32xf32>
    %96 = tpu.concatenate %95, %84 in 1 : vector<2x32xf32>, vector<2x16xf32> -> vector<2x48xf32>
    %cst_35 = arith.constant dense<0.000000e+00> : vector<2x64xf32>
    %97 = tpu.matmul %96, %4, %cst_35 {dimension_numbers = #tpu.dot_dimension_numbers<[1], [0], [0], [1], [0, 0, 1, 1], [], []>} : vector<2x48xf32>, vector<48x64xf32>, vector<2x64xf32> -> vector<2x64xf32>
    %98 = vector.broadcast %6 : vector<1x64xf32> to vector<2x64xf32>
    %99 = arith.addf %97, %98 : vector<2x64xf32>
    %100 = vector.extract_strided_slice %99 {offsets = [0, 0], sizes = [2, 16], strides = [1, 1]} : vector<2x64xf32> to vector<2x16xf32>
    %101 = arith.negf %100 : vector<2x16xf32>
    %102 = math.exp %101 : vector<2x16xf32>
    %cst_36 = arith.constant 1.000000e+00 : f32
    %103 = vector.broadcast %cst_36 : f32 to vector<2x16xf32>
    %104 = arith.addf %103, %102 : vector<2x16xf32>
    %105 = arith.divf %103, %104 : vector<2x16xf32>
    %106 = vector.extract_strided_slice %99 {offsets = [0, 16], sizes = [2, 16], strides = [1, 1]} : vector<2x64xf32> to vector<2x16xf32>
    %107 = arith.negf %106 : vector<2x16xf32>
    %108 = math.exp %107 : vector<2x16xf32>
    %cst_37 = arith.constant 1.000000e+00 : f32
    %109 = vector.broadcast %cst_37 : f32 to vector<2x16xf32>
    %110 = arith.addf %109, %108 : vector<2x16xf32>
    %111 = arith.divf %109, %110 : vector<2x16xf32>
    %112 = vector.extract_strided_slice %99 {offsets = [0, 32], sizes = [2, 16], strides = [1, 1]} : vector<2x64xf32> to vector<2x16xf32>
    %113 = math.tanh %112 : vector<2x16xf32>
    %114 = vector.extract_strided_slice %99 {offsets = [0, 48], sizes = [2, 16], strides = [1, 1]} : vector<2x64xf32> to vector<2x16xf32>
    %115 = arith.negf %114 : vector<2x16xf32>
    %116 = math.exp %115 : vector<2x16xf32>
    %cst_38 = arith.constant 1.000000e+00 : f32
    %117 = vector.broadcast %cst_38 : f32 to vector<2x16xf32>
    %118 = arith.addf %117, %116 : vector<2x16xf32>
    %119 = arith.divf %117, %118 : vector<2x16xf32>
    %120 = arith.mulf %111, %82 : vector<2x16xf32>
    %121 = arith.mulf %105, %113 : vector<2x16xf32>
    %122 = arith.addf %120, %121 : vector<2x16xf32>
    %123 = math.tanh %122 : vector<2x16xf32>
    %124 = arith.mulf %119, %123 : vector<2x16xf32>
    %c0_39 = arith.constant 0 : index
    %125 = arith.index_cast %92 : i32 to index
    %c0_40 = arith.constant 0 : index
    %c0_41 = arith.constant 0 : index
    %126 = vector.load %arg5[%c0_39, %125, %c0_40, %c0_41] : memref<1x8x2x16xf32, #tpu.memory_space<vmem>>, vector<1x1x2x16xf32>
    %127 = vector.shape_cast %126 : vector<1x1x2x16xf32> to vector<2x16xf32>
    %128 = vector.shape_cast %124 : vector<2x16xf32> to vector<1x1x2x16xf32>
    tpu.vector_store %arg5[%c0_39, %125, %c0_40, %c0_41], %128 {strides = array<i32>} : memref<1x8x2x16xf32, #tpu.memory_space<vmem>>, vector<1x1x2x16xf32>,
    %c3_i32 = arith.constant 3 : i32
    %c2_i32_42 = arith.constant 2 : i32
    %129 = arith.muli %c2_i32_42, %c3_i32 : i32
    %c7_i32_43 = arith.constant 7 : i32
    %130 = arith.subi %c7_i32_43, %129 : i32
    %131 = arith.muli %arg0, %130 : i32
    %132 = arith.addi %c3_i32, %131 : i32
    %133 = arith.index_cast %132 : i32 to index
    %c0_44 = arith.constant 0 : index
    %c0_45 = arith.constant 0 : index
    %134 = vector.load %arg2[%133, %c0_44, %c0_45] : memref<8x2x32xf32, #tpu.memory_space<vmem>>, vector<1x2x32xf32>
    %135 = vector.shape_cast %134 : vector<1x2x32xf32> to vector<2x32xf32>
    %136 = tpu.concatenate %135, %124 in 1 : vector<2x32xf32>, vector<2x16xf32> -> vector<2x48xf32>
    %cst_46 = arith.constant dense<0.000000e+00> : vector<2x64xf32>
    %137 = tpu.matmul %136, %4, %cst_46 {dimension_numbers = #tpu.dot_dimension_numbers<[1], [0], [0], [1], [0, 0, 1, 1], [], []>} : vector<2x48xf32>, vector<48x64xf32>, vector<2x64xf32> -> vector<2x64xf32>
    %138 = vector.broadcast %6 : vector<1x64xf32> to vector<2x64xf32>
    %139 = arith.addf %137, %138 : vector<2x64xf32>
    %140 = vector.extract_strided_slice %139 {offsets = [0, 0], sizes = [2, 16], strides = [1, 1]} : vector<2x64xf32> to vector<2x16xf32>
    %141 = arith.negf %140 : vector<2x16xf32>
    %142 = math.exp %141 : vector<2x16xf32>
    %cst_47 = arith.constant 1.000000e+00 : f32
    %143 = vector.broadcast %cst_47 : f32 to vector<2x16xf32>
    %144 = arith.addf %143, %142 : vector<2x16xf32>
    %145 = arith.divf %143, %144 : vector<2x16xf32>
    %146 = vector.extract_strided_slice %139 {offsets = [0, 16], sizes = [2, 16], strides = [1, 1]} : vector<2x64xf32> to vector<2x16xf32>
    %147 = arith.negf %146 : vector<2x16xf32>
    %148 = math.exp %147 : vector<2x16xf32>
    %cst_48 = arith.constant 1.000000e+00 : f32
    %149 = vector.broadcast %cst_48 : f32 to vector<2x16xf32>
    %150 = arith.addf %149, %148 : vector<2x16xf32>
    %151 = arith.divf %149, %150 : vector<2x16xf32>
    %152 = vector.extract_strided_slice %139 {offsets = [0, 32], sizes = [2, 16], strides = [1, 1]} : vector<2x64xf32> to vector<2x16xf32>
    %153 = math.tanh %152 : vector<2x16xf32>
    %154 = vector.extract_strided_slice %139 {offsets = [0, 48], sizes = [2, 16], strides = [1, 1]} : vector<2x64xf32> to vector<2x16xf32>
    %155 = arith.negf %154 : vector<2x16xf32>
    %156 = math.exp %155 : vector<2x16xf32>
    %cst_49 = arith.constant 1.000000e+00 : f32
    %157 = vector.broadcast %cst_49 : f32 to vector<2x16xf32>
    %158 = arith.addf %157, %156 : vector<2x16xf32>
    %159 = arith.divf %157, %158 : vector<2x16xf32>
    %160 = arith.mulf %151, %122 : vector<2x16xf32>
    %161 = arith.mulf %145, %153 : vector<2x16xf32>
    %162 = arith.addf %160, %161 : vector<2x16xf32>
    %163 = math.tanh %162 : vector<2x16xf32>
    %164 = arith.mulf %159, %163 : vector<2x16xf32>
    %c0_50 = arith.constant 0 : index
    %165 = arith.index_cast %132 : i32 to index
    %c0_51 = arith.constant 0 : index
    %c0_52 = arith.constant 0 : index
    %166 = vector.load %arg5[%c0_50, %165, %c0_51, %c0_52] : memref<1x8x2x16xf32, #tpu.memory_space<vmem>>, vector<1x1x2x16xf32>
    %167 = vector.shape_cast %166 : vector<1x1x2x16xf32> to vector<2x16xf32>
    %168 = vector.shape_cast %164 : vector<2x16xf32> to vector<1x1x2x16xf32>
    tpu.vector_store %arg5[%c0_50, %165, %c0_51, %c0_52], %168 {strides = array<i32>} : memref<1x8x2x16xf32, #tpu.memory_space<vmem>>, vector<1x1x2x16xf32>,
    %c4_i32 = arith.constant 4 : i32
    %c2_i32_53 = arith.constant 2 : i32
    %169 = arith.muli %c2_i32_53, %c4_i32 : i32
    %c7_i32_54 = arith.constant 7 : i32
    %170 = arith.subi %c7_i32_54, %169 : i32
    %171 = arith.muli %arg0, %170 : i32
    %172 = arith.addi %c4_i32, %171 : i32
    %173 = arith.index_cast %172 : i32 to index
    %c0_55 = arith.constant 0 : index
    %c0_56 = arith.constant 0 : index
    %174 = vector.load %arg2[%173, %c0_55, %c0_56] : memref<8x2x32xf32, #tpu.memory_space<vmem>>, vector<1x2x32xf32>
    %175 = vector.shape_cast %174 : vector<1x2x32xf32> to vector<2x32xf32>
    %176 = tpu.concatenate %175, %164 in 1 : vector<2x32xf32>, vector<2x16xf32> -> vector<2x48xf32>
    %cst_57 = arith.constant dense<0.000000e+00> : vector<2x64xf32>
    %177 = tpu.matmul %176, %4, %cst_57 {dimension_numbers = #tpu.dot_dimension_numbers<[1], [0], [0], [1], [0, 0, 1, 1], [], []>} : vector<2x48xf32>, vector<48x64xf32>, vector<2x64xf32> -> vector<2x64xf32>
    %178 = vector.broadcast %6 : vector<1x64xf32> to vector<2x64xf32>
    %179 = arith.addf %177, %178 : vector<2x64xf32>
    %180 = vector.extract_strided_slice %179 {offsets = [0, 0], sizes = [2, 16], strides = [1, 1]} : vector<2x64xf32> to vector<2x16xf32>
    %181 = arith.negf %180 : vector<2x16xf32>
    %182 = math.exp %181 : vector<2x16xf32>
    %cst_58 = arith.constant 1.000000e+00 : f32
    %183 = vector.broadcast %cst_58 : f32 to vector<2x16xf32>
    %184 = arith.addf %183, %182 : vector<2x16xf32>
    %185 = arith.divf %183, %184 : vector<2x16xf32>
    %186 = vector.extract_strided_slice %179 {offsets = [0, 16], sizes = [2, 16], strides = [1, 1]} : vector<2x64xf32> to vector<2x16xf32>
    %187 = arith.negf %186 : vector<2x16xf32>
    %188 = math.exp %187 : vector<2x16xf32>
    %cst_59 = arith.constant 1.000000e+00 : f32
    %189 = vector.broadcast %cst_59 : f32 to vector<2x16xf32>
    %190 = arith.addf %189, %188 : vector<2x16xf32>
    %191 = arith.divf %189, %190 : vector<2x16xf32>
    %192 = vector.extract_strided_slice %179 {offsets = [0, 32], sizes = [2, 16], strides = [1, 1]} : vector<2x64xf32> to vector<2x16xf32>
    %193 = math.tanh %192 : vector<2x16xf32>
    %194 = vector.extract_strided_slice %179 {offsets = [0, 48], sizes = [2, 16], strides = [1, 1]} : vector<2x64xf32> to vector<2x16xf32>
    %195 = arith.negf %194 : vector<2x16xf32>
    %196 = math.exp %195 : vector<2x16xf32>
    %cst_60 = arith.constant 1.000000e+00 : f32
    %197 = vector.broadcast %cst_60 : f32 to vector<2x16xf32>
    %198 = arith.addf %197, %196 : vector<2x16xf32>
    %199 = arith.divf %197, %198 : vector<2x16xf32>
    %200 = arith.mulf %191, %162 : vector<2x16xf32>
    %201 = arith.mulf %185, %193 : vector<2x16xf32>
    %202 = arith.addf %200, %201 : vector<2x16xf32>
    %203 = math.tanh %202 : vector<2x16xf32>
    %204 = arith.mulf %199, %203 : vector<2x16xf32>
    %c0_61 = arith.constant 0 : index
    %205 = arith.index_cast %172 : i32 to index
    %c0_62 = arith.constant 0 : index
    %c0_63 = arith.constant 0 : index
    %206 = vector.load %arg5[%c0_61, %205, %c0_62, %c0_63] : memref<1x8x2x16xf32, #tpu.memory_space<vmem>>, vector<1x1x2x16xf32>
    %207 = vector.shape_cast %206 : vector<1x1x2x16xf32> to vector<2x16xf32>
    %208 = vector.shape_cast %204 : vector<2x16xf32> to vector<1x1x2x16xf32>
    tpu.vector_store %arg5[%c0_61, %205, %c0_62, %c0_63], %208 {strides = array<i32>} : memref<1x8x2x16xf32, #tpu.memory_space<vmem>>, vector<1x1x2x16xf32>,
    %c5_i32 = arith.constant 5 : i32
    %c2_i32_64 = arith.constant 2 : i32
    %209 = arith.muli %c2_i32_64, %c5_i32 : i32
    %c7_i32_65 = arith.constant 7 : i32
    %210 = arith.subi %c7_i32_65, %209 : i32
    %211 = arith.muli %arg0, %210 : i32
    %212 = arith.addi %c5_i32, %211 : i32
    %213 = arith.index_cast %212 : i32 to index
    %c0_66 = arith.constant 0 : index
    %c0_67 = arith.constant 0 : index
    %214 = vector.load %arg2[%213, %c0_66, %c0_67] : memref<8x2x32xf32, #tpu.memory_space<vmem>>, vector<1x2x32xf32>
    %215 = vector.shape_cast %214 : vector<1x2x32xf32> to vector<2x32xf32>
    %216 = tpu.concatenate %215, %204 in 1 : vector<2x32xf32>, vector<2x16xf32> -> vector<2x48xf32>
    %cst_68 = arith.constant dense<0.000000e+00> : vector<2x64xf32>
    %217 = tpu.matmul %216, %4, %cst_68 {dimension_numbers = #tpu.dot_dimension_numbers<[1], [0], [0], [1], [0, 0, 1, 1], [], []>} : vector<2x48xf32>, vector<48x64xf32>, vector<2x64xf32> -> vector<2x64xf32>
    %218 = vector.broadcast %6 : vector<1x64xf32> to vector<2x64xf32>
    %219 = arith.addf %217, %218 : vector<2x64xf32>
    %220 = vector.extract_strided_slice %219 {offsets = [0, 0], sizes = [2, 16], strides = [1, 1]} : vector<2x64xf32> to vector<2x16xf32>
    %221 = arith.negf %220 : vector<2x16xf32>
    %222 = math.exp %221 : vector<2x16xf32>
    %cst_69 = arith.constant 1.000000e+00 : f32
    %223 = vector.broadcast %cst_69 : f32 to vector<2x16xf32>
    %224 = arith.addf %223, %222 : vector<2x16xf32>
    %225 = arith.divf %223, %224 : vector<2x16xf32>
    %226 = vector.extract_strided_slice %219 {offsets = [0, 16], sizes = [2, 16], strides = [1, 1]} : vector<2x64xf32> to vector<2x16xf32>
    %227 = arith.negf %226 : vector<2x16xf32>
    %228 = math.exp %227 : vector<2x16xf32>
    %cst_70 = arith.constant 1.000000e+00 : f32
    %229 = vector.broadcast %cst_70 : f32 to vector<2x16xf32>
    %230 = arith.addf %229, %228 : vector<2x16xf32>
    %231 = arith.divf %229, %230 : vector<2x16xf32>
    %232 = vector.extract_strided_slice %219 {offsets = [0, 32], sizes = [2, 16], strides = [1, 1]} : vector<2x64xf32> to vector<2x16xf32>
    %233 = math.tanh %232 : vector<2x16xf32>
    %234 = vector.extract_strided_slice %219 {offsets = [0, 48], sizes = [2, 16], strides = [1, 1]} : vector<2x64xf32> to vector<2x16xf32>
    %235 = arith.negf %234 : vector<2x16xf32>
    %236 = math.exp %235 : vector<2x16xf32>
    %cst_71 = arith.constant 1.000000e+00 : f32
    %237 = vector.broadcast %cst_71 : f32 to vector<2x16xf32>
    %238 = arith.addf %237, %236 : vector<2x16xf32>
    %239 = arith.divf %237, %238 : vector<2x16xf32>
    %240 = arith.mulf %231, %202 : vector<2x16xf32>
    %241 = arith.mulf %225, %233 : vector<2x16xf32>
    %242 = arith.addf %240, %241 : vector<2x16xf32>
    %243 = math.tanh %242 : vector<2x16xf32>
    %244 = arith.mulf %239, %243 : vector<2x16xf32>
    %c0_72 = arith.constant 0 : index
    %245 = arith.index_cast %212 : i32 to index
    %c0_73 = arith.constant 0 : index
    %c0_74 = arith.constant 0 : index
    %246 = vector.load %arg5[%c0_72, %245, %c0_73, %c0_74] : memref<1x8x2x16xf32, #tpu.memory_space<vmem>>, vector<1x1x2x16xf32>
    %247 = vector.shape_cast %246 : vector<1x1x2x16xf32> to vector<2x16xf32>
    %248 = vector.shape_cast %244 : vector<2x16xf32> to vector<1x1x2x16xf32>
    tpu.vector_store %arg5[%c0_72, %245, %c0_73, %c0_74], %248 {strides = array<i32>} : memref<1x8x2x16xf32, #tpu.memory_space<vmem>>, vector<1x1x2x16xf32>,
    %c6_i32 = arith.constant 6 : i32
    %c2_i32_75 = arith.constant 2 : i32
    %249 = arith.muli %c2_i32_75, %c6_i32 : i32
    %c7_i32_76 = arith.constant 7 : i32
    %250 = arith.subi %c7_i32_76, %249 : i32
    %251 = arith.muli %arg0, %250 : i32
    %252 = arith.addi %c6_i32, %251 : i32
    %253 = arith.index_cast %252 : i32 to index
    %c0_77 = arith.constant 0 : index
    %c0_78 = arith.constant 0 : index
    %254 = vector.load %arg2[%253, %c0_77, %c0_78] : memref<8x2x32xf32, #tpu.memory_space<vmem>>, vector<1x2x32xf32>
    %255 = vector.shape_cast %254 : vector<1x2x32xf32> to vector<2x32xf32>
    %256 = tpu.concatenate %255, %244 in 1 : vector<2x32xf32>, vector<2x16xf32> -> vector<2x48xf32>
    %cst_79 = arith.constant dense<0.000000e+00> : vector<2x64xf32>
    %257 = tpu.matmul %256, %4, %cst_79 {dimension_numbers = #tpu.dot_dimension_numbers<[1], [0], [0], [1], [0, 0, 1, 1], [], []>} : vector<2x48xf32>, vector<48x64xf32>, vector<2x64xf32> -> vector<2x64xf32>
    %258 = vector.broadcast %6 : vector<1x64xf32> to vector<2x64xf32>
    %259 = arith.addf %257, %258 : vector<2x64xf32>
    %260 = vector.extract_strided_slice %259 {offsets = [0, 0], sizes = [2, 16], strides = [1, 1]} : vector<2x64xf32> to vector<2x16xf32>
    %261 = arith.negf %260 : vector<2x16xf32>
    %262 = math.exp %261 : vector<2x16xf32>
    %cst_80 = arith.constant 1.000000e+00 : f32
    %263 = vector.broadcast %cst_80 : f32 to vector<2x16xf32>
    %264 = arith.addf %263, %262 : vector<2x16xf32>
    %265 = arith.divf %263, %264 : vector<2x16xf32>
    %266 = vector.extract_strided_slice %259 {offsets = [0, 16], sizes = [2, 16], strides = [1, 1]} : vector<2x64xf32> to vector<2x16xf32>
    %267 = arith.negf %266 : vector<2x16xf32>
    %268 = math.exp %267 : vector<2x16xf32>
    %cst_81 = arith.constant 1.000000e+00 : f32
    %269 = vector.broadcast %cst_81 : f32 to vector<2x16xf32>
    %270 = arith.addf %269, %268 : vector<2x16xf32>
    %271 = arith.divf %269, %270 : vector<2x16xf32>
    %272 = vector.extract_strided_slice %259 {offsets = [0, 32], sizes = [2, 16], strides = [1, 1]} : vector<2x64xf32> to vector<2x16xf32>
    %273 = math.tanh %272 : vector<2x16xf32>
    %274 = vector.extract_strided_slice %259 {offsets = [0, 48], sizes = [2, 16], strides = [1, 1]} : vector<2x64xf32> to vector<2x16xf32>
    %275 = arith.negf %274 : vector<2x16xf32>
    %276 = math.exp %275 : vector<2x16xf32>
    %cst_82 = arith.constant 1.000000e+00 : f32
    %277 = vector.broadcast %cst_82 : f32 to vector<2x16xf32>
    %278 = arith.addf %277, %276 : vector<2x16xf32>
    %279 = arith.divf %277, %278 : vector<2x16xf32>
    %280 = arith.mulf %271, %242 : vector<2x16xf32>
    %281 = arith.mulf %265, %273 : vector<2x16xf32>
    %282 = arith.addf %280, %281 : vector<2x16xf32>
    %283 = math.tanh %282 : vector<2x16xf32>
    %284 = arith.mulf %279, %283 : vector<2x16xf32>
    %c0_83 = arith.constant 0 : index
    %285 = arith.index_cast %252 : i32 to index
    %c0_84 = arith.constant 0 : index
    %c0_85 = arith.constant 0 : index
    %286 = vector.load %arg5[%c0_83, %285, %c0_84, %c0_85] : memref<1x8x2x16xf32, #tpu.memory_space<vmem>>, vector<1x1x2x16xf32>
    %287 = vector.shape_cast %286 : vector<1x1x2x16xf32> to vector<2x16xf32>
    %288 = vector.shape_cast %284 : vector<2x16xf32> to vector<1x1x2x16xf32>
    tpu.vector_store %arg5[%c0_83, %285, %c0_84, %c0_85], %288 {strides = array<i32>} : memref<1x8x2x16xf32, #tpu.memory_space<vmem>>, vector<1x1x2x16xf32>,
    %c7_i32_86 = arith.constant 7 : i32
    %c2_i32_87 = arith.constant 2 : i32
    %289 = arith.muli %c2_i32_87, %c7_i32_86 : i32
    %c7_i32_88 = arith.constant 7 : i32
    %290 = arith.subi %c7_i32_88, %289 : i32
    %291 = arith.muli %arg0, %290 : i32
    %292 = arith.addi %c7_i32_86, %291 : i32
    %293 = arith.index_cast %292 : i32 to index
    %c0_89 = arith.constant 0 : index
    %c0_90 = arith.constant 0 : index
    %294 = vector.load %arg2[%293, %c0_89, %c0_90] : memref<8x2x32xf32, #tpu.memory_space<vmem>>, vector<1x2x32xf32>
    %295 = vector.shape_cast %294 : vector<1x2x32xf32> to vector<2x32xf32>
    %296 = tpu.concatenate %295, %284 in 1 : vector<2x32xf32>, vector<2x16xf32> -> vector<2x48xf32>
    %cst_91 = arith.constant dense<0.000000e+00> : vector<2x64xf32>
    %297 = tpu.matmul %296, %4, %cst_91 {dimension_numbers = #tpu.dot_dimension_numbers<[1], [0], [0], [1], [0, 0, 1, 1], [], []>} : vector<2x48xf32>, vector<48x64xf32>, vector<2x64xf32> -> vector<2x64xf32>
    %298 = vector.broadcast %6 : vector<1x64xf32> to vector<2x64xf32>
    %299 = arith.addf %297, %298 : vector<2x64xf32>
    %300 = vector.extract_strided_slice %299 {offsets = [0, 0], sizes = [2, 16], strides = [1, 1]} : vector<2x64xf32> to vector<2x16xf32>
    %301 = arith.negf %300 : vector<2x16xf32>
    %302 = math.exp %301 : vector<2x16xf32>
    %cst_92 = arith.constant 1.000000e+00 : f32
    %303 = vector.broadcast %cst_92 : f32 to vector<2x16xf32>
    %304 = arith.addf %303, %302 : vector<2x16xf32>
    %305 = arith.divf %303, %304 : vector<2x16xf32>
    %306 = vector.extract_strided_slice %299 {offsets = [0, 16], sizes = [2, 16], strides = [1, 1]} : vector<2x64xf32> to vector<2x16xf32>
    %307 = arith.negf %306 : vector<2x16xf32>
    %308 = math.exp %307 : vector<2x16xf32>
    %cst_93 = arith.constant 1.000000e+00 : f32
    %309 = vector.broadcast %cst_93 : f32 to vector<2x16xf32>
    %310 = arith.addf %309, %308 : vector<2x16xf32>
    %311 = arith.divf %309, %310 : vector<2x16xf32>
    %312 = vector.extract_strided_slice %299 {offsets = [0, 32], sizes = [2, 16], strides = [1, 1]} : vector<2x64xf32> to vector<2x16xf32>
    %313 = math.tanh %312 : vector<2x16xf32>
    %314 = vector.extract_strided_slice %299 {offsets = [0, 48], sizes = [2, 16], strides = [1, 1]} : vector<2x64xf32> to vector<2x16xf32>
    %315 = arith.negf %314 : vector<2x16xf32>
    %316 = math.exp %315 : vector<2x16xf32>
    %cst_94 = arith.constant 1.000000e+00 : f32
    %317 = vector.broadcast %cst_94 : f32 to vector<2x16xf32>
    %318 = arith.addf %317, %316 : vector<2x16xf32>
    %319 = arith.divf %317, %318 : vector<2x16xf32>
    %320 = arith.mulf %311, %282 : vector<2x16xf32>
    %321 = arith.mulf %305, %313 : vector<2x16xf32>
    %322 = arith.addf %320, %321 : vector<2x16xf32>
    %323 = math.tanh %322 : vector<2x16xf32>
    %324 = arith.mulf %319, %323 : vector<2x16xf32>
    %c0_95 = arith.constant 0 : index
    %325 = arith.index_cast %292 : i32 to index
    %c0_96 = arith.constant 0 : index
    %c0_97 = arith.constant 0 : index
    %326 = vector.load %arg5[%c0_95, %325, %c0_96, %c0_97] : memref<1x8x2x16xf32, #tpu.memory_space<vmem>>, vector<1x1x2x16xf32>
    %327 = vector.shape_cast %326 : vector<1x1x2x16xf32> to vector<2x16xf32>
    %328 = vector.shape_cast %324 : vector<2x16xf32> to vector<1x1x2x16xf32>
    tpu.vector_store %arg5[%c0_95, %325, %c0_96, %c0_97], %328 {strides = array<i32>} : memref<1x8x2x16xf32, #tpu.memory_space<vmem>>, vector<1x1x2x16xf32>,
    %c8_i32 = arith.constant 8 : i32
    %c0_98 = arith.constant 0 : index
    %c0_99 = arith.constant 0 : index
    %329 = vector.load %arg6[%c0_98, %c0_99] : memref<2x16xf32, #tpu.memory_space<vmem>>, vector<2x16xf32>
    tpu.vector_store %arg6[%c0_98, %c0_99], %324 {strides = array<i32>} : memref<2x16xf32, #tpu.memory_space<vmem>>, vector<2x16xf32>,
    %c0_100 = arith.constant 0 : index
    %c0_101 = arith.constant 0 : index
    %330 = vector.load %arg7[%c0_100, %c0_101] : memref<2x16xf32, #tpu.memory_space<vmem>>, vector<2x16xf32>
    tpu.vector_store %arg7[%c0_100, %c0_101], %322 {strides = array<i32>} : memref<2x16xf32, #tpu.memory_space<vmem>>, vector<2x16xf32>,
    return
  }
  func.func @transform_0(%arg0: i32, %arg1: i32) -> (i32, i32, i32) {
    %c2_i32 = arith.constant 2 : i32
    %0 = arith.muli %c2_i32, %arg1 : i32
    %c0_i32 = arith.constant 0 : i32
    %1 = arith.subi %c0_i32, %0 : i32
    %2 = arith.muli %arg0, %1 : i32
    %3 = arith.addi %arg1, %2 : i32
    %c0_i32_0 = arith.constant 0 : i32
    %c0_i32_1 = arith.constant 0 : i32
    %c0_i32_2 = arith.constant 0 : i32
    return %3, %c0_i32_0, %c0_i32_1 : i32, i32, i32
  }
  func.func @transform_1(%arg0: i32, %arg1: i32) -> (i32, i32, i32) {
    %c0_i32 = arith.constant 0 : i32
    %c0_i32_0 = arith.constant 0 : i32
    %c0_i32_1 = arith.constant 0 : i32
    return %arg0, %c0_i32, %c0_i32_0 : i32, i32, i32
  }
  func.func @transform_2(%arg0: i32, %arg1: i32) -> (i32, i32, i32) {
    %c0_i32 = arith.constant 0 : i32
    %c0_i32_0 = arith.constant 0 : i32
    %c0_i32_1 = arith.constant 0 : i32
    return %arg0, %c0_i32, %c0_i32_0 : i32, i32, i32
  }
  func.func @transform_3(%arg0: i32, %arg1: i32) -> (i32, i32, i32, i32) {
    %c2_i32 = arith.constant 2 : i32
    %0 = arith.muli %c2_i32, %arg1 : i32
    %c0_i32 = arith.constant 0 : i32
    %1 = arith.subi %c0_i32, %0 : i32
    %2 = arith.muli %arg0, %1 : i32
    %3 = arith.addi %arg1, %2 : i32
    %c0_i32_0 = arith.constant 0 : i32
    %c0_i32_1 = arith.constant 0 : i32
    %c0_i32_2 = arith.constant 0 : i32
    return %arg0, %3, %c0_i32_0, %c0_i32_1 : i32, i32, i32, i32
  }
}

module attributes {stable_mosaic.version = 11 : i64} {
  func.func @_conv1d_kernel(%arg0: i32, %arg1: memref<1x12x32xf32, #tpu.memory_space<vmem>>, %arg2: memref<5x32x32xf32, #tpu.memory_space<vmem>>, %arg3: memref<1x32xf32, #tpu.memory_space<vmem>>, %arg4: memref<1x8x32xf32, #tpu.memory_space<vmem>>) attributes {dimension_semantics = [#tpu.dimension_semantics<parallel>], iteration_bounds = array<i64: 2>, scalar_prefetch = 0 : i64, scratch_operands = 0 : i64, tpu.core_type = #tpu.core_type<tc>, window_params = [{transform_indices = @transform_0, window_bounds = array<i64: 1, 12, 32>}, {pipeline_mode = #tpu.pipeline_mode<synchronous>, transform_indices = @transform_1, window_bounds = array<i64: 5, 32, 32>}, {pipeline_mode = #tpu.pipeline_mode<synchronous>, transform_indices = @transform_2, window_bounds = array<i64: 1, 32>}, {transform_indices = @transform_3, window_bounds = array<i64: 1, 8, 32>}]} {
    %c0 = arith.constant 0 : index
    %c0_0 = arith.constant 0 : index
    %c0_1 = arith.constant 0 : index
    %0 = vector.load %arg1[%c0, %c0_0, %c0_1] : memref<1x12x32xf32, #tpu.memory_space<vmem>>, vector<1x12x32xf32>
    %1 = vector.shape_cast %0 : vector<1x12x32xf32> to vector<12x32xf32>
    %2 = vector.extract_strided_slice %1 {offsets = [0, 0], sizes = [8, 32], strides = [1, 1]} : vector<12x32xf32> to vector<8x32xf32>
    %c0_2 = arith.constant 0 : index
    %c0_3 = arith.constant 0 : index
    %c0_4 = arith.constant 0 : index
    %3 = vector.load %arg2[%c0_2, %c0_3, %c0_4] : memref<5x32x32xf32, #tpu.memory_space<vmem>>, vector<1x32x32xf32>
    %4 = vector.shape_cast %3 : vector<1x32x32xf32> to vector<32x32xf32>
    %cst = arith.constant dense<0.000000e+00> : vector<8x32xf32>
    %5 = tpu.matmul %2, %4, %cst {dimension_numbers = #tpu.dot_dimension_numbers<[1], [0], [0], [1], [0, 0, 1, 1], [], []>} : vector<8x32xf32>, vector<32x32xf32>, vector<8x32xf32> -> vector<8x32xf32>
    %6 = vector.extract_strided_slice %1 {offsets = [1, 0], sizes = [8, 32], strides = [1, 1]} : vector<12x32xf32> to vector<8x32xf32>
    %c1 = arith.constant 1 : index
    %c0_5 = arith.constant 0 : index
    %c0_6 = arith.constant 0 : index
    %7 = vector.load %arg2[%c1, %c0_5, %c0_6] : memref<5x32x32xf32, #tpu.memory_space<vmem>>, vector<1x32x32xf32>
    %8 = vector.shape_cast %7 : vector<1x32x32xf32> to vector<32x32xf32>
    %cst_7 = arith.constant dense<0.000000e+00> : vector<8x32xf32>
    %9 = tpu.matmul %6, %8, %cst_7 {dimension_numbers = #tpu.dot_dimension_numbers<[1], [0], [0], [1], [0, 0, 1, 1], [], []>} : vector<8x32xf32>, vector<32x32xf32>, vector<8x32xf32> -> vector<8x32xf32>
    %10 = arith.addf %5, %9 : vector<8x32xf32>
    %11 = vector.extract_strided_slice %1 {offsets = [2, 0], sizes = [8, 32], strides = [1, 1]} : vector<12x32xf32> to vector<8x32xf32>
    %c2 = arith.constant 2 : index
    %c0_8 = arith.constant 0 : index
    %c0_9 = arith.constant 0 : index
    %12 = vector.load %arg2[%c2, %c0_8, %c0_9] : memref<5x32x32xf32, #tpu.memory_space<vmem>>, vector<1x32x32xf32>
    %13 = vector.shape_cast %12 : vector<1x32x32xf32> to vector<32x32xf32>
    %cst_10 = arith.constant dense<0.000000e+00> : vector<8x32xf32>
    %14 = tpu.matmul %11, %13, %cst_10 {dimension_numbers = #tpu.dot_dimension_numbers<[1], [0], [0], [1], [0, 0, 1, 1], [], []>} : vector<8x32xf32>, vector<32x32xf32>, vector<8x32xf32> -> vector<8x32xf32>
    %15 = arith.addf %10, %14 : vector<8x32xf32>
    %16 = vector.extract_strided_slice %1 {offsets = [3, 0], sizes = [8, 32], strides = [1, 1]} : vector<12x32xf32> to vector<8x32xf32>
    %c3 = arith.constant 3 : index
    %c0_11 = arith.constant 0 : index
    %c0_12 = arith.constant 0 : index
    %17 = vector.load %arg2[%c3, %c0_11, %c0_12] : memref<5x32x32xf32, #tpu.memory_space<vmem>>, vector<1x32x32xf32>
    %18 = vector.shape_cast %17 : vector<1x32x32xf32> to vector<32x32xf32>
    %cst_13 = arith.constant dense<0.000000e+00> : vector<8x32xf32>
    %19 = tpu.matmul %16, %18, %cst_13 {dimension_numbers = #tpu.dot_dimension_numbers<[1], [0], [0], [1], [0, 0, 1, 1], [], []>} : vector<8x32xf32>, vector<32x32xf32>, vector<8x32xf32> -> vector<8x32xf32>
    %20 = arith.addf %15, %19 : vector<8x32xf32>
    %21 = vector.extract_strided_slice %1 {offsets = [4, 0], sizes = [8, 32], strides = [1, 1]} : vector<12x32xf32> to vector<8x32xf32>
    %c4 = arith.constant 4 : index
    %c0_14 = arith.constant 0 : index
    %c0_15 = arith.constant 0 : index
    %22 = vector.load %arg2[%c4, %c0_14, %c0_15] : memref<5x32x32xf32, #tpu.memory_space<vmem>>, vector<1x32x32xf32>
    %23 = vector.shape_cast %22 : vector<1x32x32xf32> to vector<32x32xf32>
    %cst_16 = arith.constant dense<0.000000e+00> : vector<8x32xf32>
    %24 = tpu.matmul %21, %23, %cst_16 {dimension_numbers = #tpu.dot_dimension_numbers<[1], [0], [0], [1], [0, 0, 1, 1], [], []>} : vector<8x32xf32>, vector<32x32xf32>, vector<8x32xf32> -> vector<8x32xf32>
    %25 = arith.addf %20, %24 : vector<8x32xf32>
    %c0_17 = arith.constant 0 : index
    %c0_18 = arith.constant 0 : index
    %26 = vector.load %arg3[%c0_17, %c0_18] : memref<1x32xf32, #tpu.memory_space<vmem>>, vector<1x32xf32>
    %27 = vector.broadcast %26 : vector<1x32xf32> to vector<8x32xf32>
    %28 = arith.addf %25, %27 : vector<8x32xf32>
    %c0_19 = arith.constant 0 : index
    %c0_20 = arith.constant 0 : index
    %c0_21 = arith.constant 0 : index
    %29 = vector.load %arg4[%c0_19, %c0_20, %c0_21] : memref<1x8x32xf32, #tpu.memory_space<vmem>>, vector<1x8x32xf32>
    %30 = vector.shape_cast %29 : vector<1x8x32xf32> to vector<8x32xf32>
    %31 = vector.shape_cast %28 : vector<8x32xf32> to vector<1x8x32xf32>
    tpu.vector_store %arg4[%c0_19, %c0_20, %c0_21], %31 {strides = array<i32>} : memref<1x8x32xf32, #tpu.memory_space<vmem>>, vector<1x8x32xf32>,
    return
  }
  func.func @transform_0(%arg0: i32) -> (i32, i32, i32) {
    %c0_i32 = arith.constant 0 : i32
    %c0_i32_0 = arith.constant 0 : i32
    %c0_i32_1 = arith.constant 0 : i32
    return %arg0, %c0_i32, %c0_i32_0 : i32, i32, i32
  }
  func.func @transform_1(%arg0: i32) -> (i32, i32, i32) {
    %c0_i32 = arith.constant 0 : i32
    %c0_i32_0 = arith.constant 0 : i32
    %c0_i32_1 = arith.constant 0 : i32
    %c0_i32_2 = arith.constant 0 : i32
    return %c0_i32, %c0_i32_0, %c0_i32_1 : i32, i32, i32
  }
  func.func @transform_2(%arg0: i32) -> (i32, i32) {
    %c0_i32 = arith.constant 0 : i32
    %c0_i32_0 = arith.constant 0 : i32
    %c0_i32_1 = arith.constant 0 : i32
    return %c0_i32, %c0_i32_0 : i32, i32
  }
  func.func @transform_3(%arg0: i32) -> (i32, i32, i32) {
    %c0_i32 = arith.constant 0 : i32
    %c0_i32_0 = arith.constant 0 : i32
    %c0_i32_1 = arith.constant 0 : i32
    return %arg0, %c0_i32, %c0_i32_0 : i32, i32, i32
  }
}

module attributes {stable_mosaic.version = 11 : i64} {
  func.func @_decoder_chunk_kernel(%arg0: i32, %arg1: memref<8x2x80xf32, #tpu.memory_space<vmem>>, %arg2: memref<2x8x32xf32, #tpu.memory_space<vmem>>, %arg3: memref<2x128xf32, #tpu.memory_space<vmem>>, %arg4: memref<2x8xf32, #tpu.memory_space<vmem>>, %arg5: memref<80x32xf32, #tpu.memory_space<vmem>>, %arg6: memref<32x32xf32, #tpu.memory_space<vmem>>, %arg7: memref<96x128xf32, #tpu.memory_space<vmem>>, %arg8: memref<1x128xf32, #tpu.memory_space<vmem>>, %arg9: memref<32x128xf32, #tpu.memory_space<vmem>>, %arg10: memref<16x128xf32, #tpu.memory_space<vmem>>, %arg11: memref<128x8xf32, #tpu.memory_space<vmem>>, %arg12: memref<96x128xf32, #tpu.memory_space<vmem>>, %arg13: memref<1x128xf32, #tpu.memory_space<vmem>>, %arg14: memref<64x128xf32, #tpu.memory_space<vmem>>, %arg15: memref<1x128xf32, #tpu.memory_space<vmem>>, %arg16: memref<8x128xf32, #tpu.memory_space<vmem>>, %arg17: memref<8x2x128xf32, #tpu.memory_space<vmem>>, %arg18: memref<2x32xf32, #tpu.memory_space<vmem>>, %arg19: memref<2x32xf32, #tpu.memory_space<vmem>>, %arg20: memref<2x32xf32, #tpu.memory_space<vmem>>, %arg21: memref<2x32xf32, #tpu.memory_space<vmem>>, %arg22: memref<2x8xf32, #tpu.memory_space<vmem>>, %arg23: memref<2x8xf32, #tpu.memory_space<vmem>>, %arg24: memref<2x32xf32, #tpu.memory_space<vmem>>) attributes {dimension_semantics = [#tpu.dimension_semantics<arbitrary>], iteration_bounds = array<i64: 1>, scalar_prefetch = 0 : i64, scratch_operands = 7 : i64, tpu.core_type = #tpu.core_type<tc>, window_params = [{transform_indices = @transform_0, window_bounds = array<i64: 8, 2, 80>}, {pipeline_mode = #tpu.pipeline_mode<synchronous>, transform_indices = @transform_1, window_bounds = array<i64: 2, 8, 32>}, {pipeline_mode = #tpu.pipeline_mode<synchronous>, transform_indices = @transform_2, window_bounds = array<i64: 2, 128>}, {pipeline_mode = #tpu.pipeline_mode<synchronous>, transform_indices = @transform_3, window_bounds = array<i64: 2, 8>}, {pipeline_mode = #tpu.pipeline_mode<synchronous>, transform_indices = @transform_4, window_bounds = array<i64: 80, 32>}, {pipeline_mode = #tpu.pipeline_mode<synchronous>, transform_indices = @transform_5, window_bounds = array<i64: 32, 32>}, {pipeline_mode = #tpu.pipeline_mode<synchronous>, transform_indices = @transform_6, window_bounds = array<i64: 96, 128>}, {pipeline_mode = #tpu.pipeline_mode<synchronous>, transform_indices = @transform_7, window_bounds = array<i64: 1, 128>}, {pipeline_mode = #tpu.pipeline_mode<synchronous>, transform_indices = @transform_8, window_bounds = array<i64: 32, 128>}, {pipeline_mode = #tpu.pipeline_mode<synchronous>, transform_indices = @transform_9, window_bounds = array<i64: 16, 128>}, {pipeline_mode = #tpu.pipeline_mode<synchronous>, transform_indices = @transform_10, window_bounds = array<i64: 128, 8>}, {pipeline_mode = #tpu.pipeline_mode<synchronous>, transform_indices = @transform_11, window_bounds = array<i64: 96, 128>}, {pipeline_mode = #tpu.pipeline_mode<synchronous>, transform_indices = @transform_12, window_bounds = array<i64: 1, 128>}, {pipeline_mode = #tpu.pipeline_mode<synchronous>, transform_indices = @transform_13, window_bounds = array<i64: 64, 128>}, {pipeline_mode = #tpu.pipeline_mode<synchronous>, transform_indices = @transform_14, window_bounds = array<i64: 1, 128>}, {pipeline_mode = #tpu.pipeline_mode<synchronous>, transform_indices = @transform_15, window_bounds = array<i64: 8, 128>}, {transform_indices = @transform_16, window_bounds = array<i64: 8, 2, 128>}]} {
    %c0_i32 = arith.constant 0 : i32
    %0 = arith.cmpi eq, %arg0, %c0_i32 : i32
    %1 = arith.extui %0 : i1 to i32
    %c0_i32_0 = arith.constant 0 : i32
    %2 = arith.cmpi ne, %1, %c0_i32_0 : i32
    scf.if %2 {
      %cst_260 = arith.constant 0.000000e+00 : f32
      %856 = vector.broadcast %cst_260 : f32 to vector<2x32xf32>
      %c0_261 = arith.constant 0 : index
      %c0_262 = arith.constant 0 : index
      %857 = vector.load %arg18[%c0_261, %c0_262] : memref<2x32xf32, #tpu.memory_space<vmem>>, vector<2x32xf32>
      tpu.vector_store %arg18[%c0_261, %c0_262], %856 {strides = array<i32>} : memref<2x32xf32, #tpu.memory_space<vmem>>, vector<2x32xf32>,
      %cst_263 = arith.constant 0.000000e+00 : f32
      %858 = vector.broadcast %cst_263 : f32 to vector<2x32xf32>
      %c0_264 = arith.constant 0 : index
      %c0_265 = arith.constant 0 : index
      %859 = vector.load %arg19[%c0_264, %c0_265] : memref<2x32xf32, #tpu.memory_space<vmem>>, vector<2x32xf32>
      tpu.vector_store %arg19[%c0_264, %c0_265], %858 {strides = array<i32>} : memref<2x32xf32, #tpu.memory_space<vmem>>, vector<2x32xf32>,
      %cst_266 = arith.constant 0.000000e+00 : f32
      %860 = vector.broadcast %cst_266 : f32 to vector<2x32xf32>
      %c0_267 = arith.constant 0 : index
      %c0_268 = arith.constant 0 : index
      %861 = vector.load %arg20[%c0_267, %c0_268] : memref<2x32xf32, #tpu.memory_space<vmem>>, vector<2x32xf32>
      tpu.vector_store %arg20[%c0_267, %c0_268], %860 {strides = array<i32>} : memref<2x32xf32, #tpu.memory_space<vmem>>, vector<2x32xf32>,
      %cst_269 = arith.constant 0.000000e+00 : f32
      %862 = vector.broadcast %cst_269 : f32 to vector<2x32xf32>
      %c0_270 = arith.constant 0 : index
      %c0_271 = arith.constant 0 : index
      %863 = vector.load %arg21[%c0_270, %c0_271] : memref<2x32xf32, #tpu.memory_space<vmem>>, vector<2x32xf32>
      tpu.vector_store %arg21[%c0_270, %c0_271], %862 {strides = array<i32>} : memref<2x32xf32, #tpu.memory_space<vmem>>, vector<2x32xf32>,
      %cst_272 = arith.constant 0.000000e+00 : f32
      %864 = vector.broadcast %cst_272 : f32 to vector<2x8xf32>
      %c0_273 = arith.constant 0 : index
      %c0_274 = arith.constant 0 : index
      %865 = vector.load %arg22[%c0_273, %c0_274] : memref<2x8xf32, #tpu.memory_space<vmem>>, vector<2x8xf32>
      tpu.vector_store %arg22[%c0_273, %c0_274], %864 {strides = array<i32>} : memref<2x8xf32, #tpu.memory_space<vmem>>, vector<2x8xf32>,
      %cst_275 = arith.constant 0.000000e+00 : f32
      %866 = vector.broadcast %cst_275 : f32 to vector<2x8xf32>
      %c0_276 = arith.constant 0 : index
      %c0_277 = arith.constant 0 : index
      %867 = vector.load %arg23[%c0_276, %c0_277] : memref<2x8xf32, #tpu.memory_space<vmem>>, vector<2x8xf32>
      tpu.vector_store %arg23[%c0_276, %c0_277], %866 {strides = array<i32>} : memref<2x8xf32, #tpu.memory_space<vmem>>, vector<2x8xf32>,
      %cst_278 = arith.constant 0.000000e+00 : f32
      %868 = vector.broadcast %cst_278 : f32 to vector<2x32xf32>
      %c0_279 = arith.constant 0 : index
      %c0_280 = arith.constant 0 : index
      %869 = vector.load %arg24[%c0_279, %c0_280] : memref<2x32xf32, #tpu.memory_space<vmem>>, vector<2x32xf32>
      tpu.vector_store %arg24[%c0_279, %c0_280], %868 {strides = array<i32>} : memref<2x32xf32, #tpu.memory_space<vmem>>, vector<2x32xf32>,
    } else {
    }
    %c0 = arith.constant 0 : index
    %c0_1 = arith.constant 0 : index
    %c0_2 = arith.constant 0 : index
    %3 = vector.load %arg2[%c0, %c0_1, %c0_2] : memref<2x8x32xf32, #tpu.memory_space<vmem>>, vector<2x8x32xf32>
    %c0_3 = arith.constant 0 : index
    %c0_4 = arith.constant 0 : index
    %4 = vector.load %arg3[%c0_3, %c0_4] : memref<2x128xf32, #tpu.memory_space<vmem>>, vector<2x128xf32>
    %c0_5 = arith.constant 0 : index
    %c0_6 = arith.constant 0 : index
    %5 = vector.load %arg4[%c0_5, %c0_6] : memref<2x8xf32, #tpu.memory_space<vmem>>, vector<2x8xf32>
    %c0_7 = arith.constant 0 : index
    %c0_8 = arith.constant 0 : index
    %6 = vector.load %arg5[%c0_7, %c0_8] : memref<80x32xf32, #tpu.memory_space<vmem>>, vector<80x32xf32>
    %c0_9 = arith.constant 0 : index
    %c0_10 = arith.constant 0 : index
    %7 = vector.load %arg6[%c0_9, %c0_10] : memref<32x32xf32, #tpu.memory_space<vmem>>, vector<32x32xf32>
    %c0_11 = arith.constant 0 : index
    %c0_12 = arith.constant 0 : index
    %8 = vector.load %arg7[%c0_11, %c0_12] : memref<96x128xf32, #tpu.memory_space<vmem>>, vector<96x128xf32>
    %c0_13 = arith.constant 0 : index
    %c0_14 = arith.constant 0 : index
    %9 = vector.load %arg8[%c0_13, %c0_14] : memref<1x128xf32, #tpu.memory_space<vmem>>, vector<1x128xf32>
    %c0_15 = arith.constant 0 : index
    %c0_16 = arith.constant 0 : index
    %10 = vector.load %arg9[%c0_15, %c0_16] : memref<32x128xf32, #tpu.memory_space<vmem>>, vector<32x128xf32>
    %c0_17 = arith.constant 0 : index
    %c0_18 = arith.constant 0 : index
    %11 = vector.load %arg10[%c0_17, %c0_18] : memref<16x128xf32, #tpu.memory_space<vmem>>, vector<16x128xf32>
    %c0_19 = arith.constant 0 : index
    %c0_20 = arith.constant 0 : index
    %12 = vector.load %arg11[%c0_19, %c0_20] : memref<128x8xf32, #tpu.memory_space<vmem>>, vector<128x8xf32>
    %c0_21 = arith.constant 0 : index
    %c0_22 = arith.constant 0 : index
    %13 = vector.load %arg12[%c0_21, %c0_22] : memref<96x128xf32, #tpu.memory_space<vmem>>, vector<96x128xf32>
    %c0_23 = arith.constant 0 : index
    %c0_24 = arith.constant 0 : index
    %14 = vector.load %arg13[%c0_23, %c0_24] : memref<1x128xf32, #tpu.memory_space<vmem>>, vector<1x128xf32>
    %c0_25 = arith.constant 0 : index
    %c0_26 = arith.constant 0 : index
    %15 = vector.load %arg14[%c0_25, %c0_26] : memref<64x128xf32, #tpu.memory_space<vmem>>, vector<64x128xf32>
    %c0_27 = arith.constant 0 : index
    %c0_28 = arith.constant 0 : index
    %16 = vector.load %arg15[%c0_27, %c0_28] : memref<1x128xf32, #tpu.memory_space<vmem>>, vector<1x128xf32>
    %c0_29 = arith.constant 0 : index
    %c0_30 = arith.constant 0 : index
    %17 = vector.load %arg16[%c0_29, %c0_30] : memref<8x128xf32, #tpu.memory_space<vmem>>, vector<8x128xf32>
    %c0_31 = arith.constant 0 : index
    %c0_32 = arith.constant 0 : index
    %18 = vector.load %arg18[%c0_31, %c0_32] : memref<2x32xf32, #tpu.memory_space<vmem>>, vector<2x32xf32>
    %c0_33 = arith.constant 0 : index
    %c0_34 = arith.constant 0 : index
    %19 = vector.load %arg19[%c0_33, %c0_34] : memref<2x32xf32, #tpu.memory_space<vmem>>, vector<2x32xf32>
    %c0_35 = arith.constant 0 : index
    %c0_36 = arith.constant 0 : index
    %20 = vector.load %arg20[%c0_35, %c0_36] : memref<2x32xf32, #tpu.memory_space<vmem>>, vector<2x32xf32>
    %c0_37 = arith.constant 0 : index
    %c0_38 = arith.constant 0 : index
    %21 = vector.load %arg21[%c0_37, %c0_38] : memref<2x32xf32, #tpu.memory_space<vmem>>, vector<2x32xf32>
    %c0_39 = arith.constant 0 : index
    %c0_40 = arith.constant 0 : index
    %22 = vector.load %arg22[%c0_39, %c0_40] : memref<2x8xf32, #tpu.memory_space<vmem>>, vector<2x8xf32>
    %c0_41 = arith.constant 0 : index
    %c0_42 = arith.constant 0 : index
    %23 = vector.load %arg23[%c0_41, %c0_42] : memref<2x8xf32, #tpu.memory_space<vmem>>, vector<2x8xf32>
    %c0_43 = arith.constant 0 : index
    %c0_44 = arith.constant 0 : index
    %24 = vector.load %arg24[%c0_43, %c0_44] : memref<2x32xf32, #tpu.memory_space<vmem>>, vector<2x32xf32>
    %cst = arith.constant -1.000000e+09 : f32
    %c0_i32_45 = arith.constant 0 : i32
    %25 = arith.index_cast %c0_i32_45 : i32 to index
    %c0_46 = arith.constant 0 : index
    %c0_47 = arith.constant 0 : index
    %26 = vector.load %arg1[%25, %c0_46, %c0_47] : memref<8x2x80xf32, #tpu.memory_space<vmem>>, vector<1x2x80xf32>
    %27 = vector.shape_cast %26 : vector<1x2x80xf32> to vector<2x80xf32>
    %cst_48 = arith.constant dense<0.000000e+00> : vector<2x32xf32>
    %28 = tpu.matmul %27, %6, %cst_48 {dimension_numbers = #tpu.dot_dimension_numbers<[1], [0], [0], [1], [0, 0, 1, 1], [], []>} : vector<2x80xf32>, vector<80x32xf32>, vector<2x32xf32> -> vector<2x32xf32>
    %cst_49 = arith.constant 0.000000e+00 : f32
    %29 = vector.broadcast %cst_49 : f32 to vector<2x32xf32>
    %30 = arith.maximumf %28, %29 : vector<2x32xf32>
    %cst_50 = arith.constant dense<0.000000e+00> : vector<2x32xf32>
    %31 = tpu.matmul %30, %7, %cst_50 {dimension_numbers = #tpu.dot_dimension_numbers<[1], [0], [0], [1], [0, 0, 1, 1], [], []>} : vector<2x32xf32>, vector<32x32xf32>, vector<2x32xf32> -> vector<2x32xf32>
    %cst_51 = arith.constant 0.000000e+00 : f32
    %32 = vector.broadcast %cst_51 : f32 to vector<2x32xf32>
    %33 = arith.maximumf %31, %32 : vector<2x32xf32>
    %34 = tpu.concatenate %33, %24, %18 in 1 : vector<2x32xf32>, vector<2x32xf32>, vector<2x32xf32> -> vector<2x96xf32>
    %cst_52 = arith.constant dense<0.000000e+00> : vector<2x128xf32>
    %35 = tpu.matmul %34, %8, %cst_52 {dimension_numbers = #tpu.dot_dimension_numbers<[1], [0], [0], [1], [0, 0, 1, 1], [], []>} : vector<2x96xf32>, vector<96x128xf32>, vector<2x128xf32> -> vector<2x128xf32>
    %36 = vector.broadcast %9 : vector<1x128xf32> to vector<2x128xf32>
    %37 = arith.addf %35, %36 : vector<2x128xf32>
    %38 = vector.extract_strided_slice %37 {offsets = [0, 0], sizes = [2, 32], strides = [1, 1]} : vector<2x128xf32> to vector<2x32xf32>
    %39 = arith.negf %38 : vector<2x32xf32>
    %40 = math.exp %39 : vector<2x32xf32>
    %cst_53 = arith.constant 1.000000e+00 : f32
    %41 = vector.broadcast %cst_53 : f32 to vector<2x32xf32>
    %42 = arith.addf %41, %40 : vector<2x32xf32>
    %43 = arith.divf %41, %42 : vector<2x32xf32>
    %44 = vector.extract_strided_slice %37 {offsets = [0, 32], sizes = [2, 32], strides = [1, 1]} : vector<2x128xf32> to vector<2x32xf32>
    %45 = arith.negf %44 : vector<2x32xf32>
    %46 = math.exp %45 : vector<2x32xf32>
    %cst_54 = arith.constant 1.000000e+00 : f32
    %47 = vector.broadcast %cst_54 : f32 to vector<2x32xf32>
    %48 = arith.addf %47, %46 : vector<2x32xf32>
    %49 = arith.divf %47, %48 : vector<2x32xf32>
    %50 = vector.extract_strided_slice %37 {offsets = [0, 64], sizes = [2, 32], strides = [1, 1]} : vector<2x128xf32> to vector<2x32xf32>
    %51 = math.tanh %50 : vector<2x32xf32>
    %52 = vector.extract_strided_slice %37 {offsets = [0, 96], sizes = [2, 32], strides = [1, 1]} : vector<2x128xf32> to vector<2x32xf32>
    %53 = arith.negf %52 : vector<2x32xf32>
    %54 = math.exp %53 : vector<2x32xf32>
    %cst_55 = arith.constant 1.000000e+00 : f32
    %55 = vector.broadcast %cst_55 : f32 to vector<2x32xf32>
    %56 = arith.addf %55, %54 : vector<2x32xf32>
    %57 = arith.divf %55, %56 : vector<2x32xf32>
    %58 = arith.mulf %49, %19 : vector<2x32xf32>
    %59 = arith.mulf %43, %51 : vector<2x32xf32>
    %60 = arith.addf %58, %59 : vector<2x32xf32>
    %61 = math.tanh %60 : vector<2x32xf32>
    %62 = arith.mulf %57, %61 : vector<2x32xf32>
    %cst_56 = arith.constant dense<0.000000e+00> : vector<2x128xf32>
    %63 = tpu.matmul %62, %10, %cst_56 {dimension_numbers = #tpu.dot_dimension_numbers<[1], [0], [0], [1], [0, 0, 1, 1], [], []>} : vector<2x32xf32>, vector<32x128xf32>, vector<2x128xf32> -> vector<2x128xf32>
    %64 = tpu.concatenate %22, %23 in 1 : vector<2x8xf32>, vector<2x8xf32> -> vector<2x16xf32>
    %cst_57 = arith.constant dense<0.000000e+00> : vector<2x128xf32>
    %65 = tpu.matmul %64, %11, %cst_57 {dimension_numbers = #tpu.dot_dimension_numbers<[1], [0], [0], [1], [0, 0, 1, 1], [], []>} : vector<2x16xf32>, vector<16x128xf32>, vector<2x128xf32> -> vector<2x128xf32>
    %66 = arith.addf %63, %4 : vector<2x128xf32>
    %67 = arith.addf %66, %65 : vector<2x128xf32>
    %68 = math.tanh %67 : vector<2x128xf32>
    %cst_58 = arith.constant dense<0.000000e+00> : vector<2x8xf32>
    %69 = tpu.matmul %68, %12, %cst_58 {dimension_numbers = #tpu.dot_dimension_numbers<[1], [0], [0], [1], [0, 0, 1, 1], [], []>} : vector<2x128xf32>, vector<128x8xf32>, vector<2x8xf32> -> vector<2x8xf32>
    %cst_59 = arith.constant 5.000000e-01 : f32
    %70 = vector.broadcast %cst_59 : f32 to vector<2x8xf32>
    %71 = arith.cmpf ogt, %5, %70 : vector<2x8xf32>
    %72 = vector.broadcast %cst : f32 to vector<2x8xf32>
    %73 = arith.select %71, %69, %72 : vector<2x8xi1>, vector<2x8xf32>
    %cst_60 = arith.constant dense<0xFF800000> : vector<2xf32>
    %74 = vector.multi_reduction <maximumf>, %73, %cst_60 [1] : vector<2x8xf32> to vector<2xf32>
    %75 = vector.shape_cast %74 : vector<2xf32> to vector<2x1xf32>
    %76 = vector.broadcast %75 : vector<2x1xf32> to vector<2x8xf32>
    %77 = arith.subf %73, %76 : vector<2x8xf32>
    %78 = math.exp %77 : vector<2x8xf32>
    %cst_61 = arith.constant dense<0.000000e+00> : vector<2xf32>
    %79 = vector.multi_reduction <add>, %78, %cst_61 [1] : vector<2x8xf32> to vector<2xf32>
    %80 = vector.shape_cast %79 : vector<2xf32> to vector<2x1xf32>
    %81 = tpu.reciprocal %80 {approx = true} : vector<2x1xf32> -> vector<2x1xf32>
    %82 = vector.broadcast %81 : vector<2x1xf32> to vector<2x8xf32>
    %83 = arith.mulf %78, %82 : vector<2x8xf32>
    %84 = vector.shape_cast %83 : vector<2x8xf32> to vector<2x8x1xf32>
    %85 = vector.broadcast %84 : vector<2x8x1xf32> to vector<2x8x32xf32>
    %86 = arith.mulf %85, %3 : vector<2x8x32xf32>
    %cst_62 = arith.constant dense<0.000000e+00> : vector<2x32xf32>
    %87 = vector.multi_reduction <add>, %86, %cst_62 [1] : vector<2x8x32xf32> to vector<2x32xf32>
    %88 = arith.addf %23, %83 : vector<2x8xf32>
    %89 = tpu.concatenate %62, %87, %20 in 1 : vector<2x32xf32>, vector<2x32xf32>, vector<2x32xf32> -> vector<2x96xf32>
    %cst_63 = arith.constant dense<0.000000e+00> : vector<2x128xf32>
    %90 = tpu.matmul %89, %13, %cst_63 {dimension_numbers = #tpu.dot_dimension_numbers<[1], [0], [0], [1], [0, 0, 1, 1], [], []>} : vector<2x96xf32>, vector<96x128xf32>, vector<2x128xf32> -> vector<2x128xf32>
    %91 = vector.broadcast %14 : vector<1x128xf32> to vector<2x128xf32>
    %92 = arith.addf %90, %91 : vector<2x128xf32>
    %93 = vector.extract_strided_slice %92 {offsets = [0, 0], sizes = [2, 32], strides = [1, 1]} : vector<2x128xf32> to vector<2x32xf32>
    %94 = arith.negf %93 : vector<2x32xf32>
    %95 = math.exp %94 : vector<2x32xf32>
    %cst_64 = arith.constant 1.000000e+00 : f32
    %96 = vector.broadcast %cst_64 : f32 to vector<2x32xf32>
    %97 = arith.addf %96, %95 : vector<2x32xf32>
    %98 = arith.divf %96, %97 : vector<2x32xf32>
    %99 = vector.extract_strided_slice %92 {offsets = [0, 32], sizes = [2, 32], strides = [1, 1]} : vector<2x128xf32> to vector<2x32xf32>
    %100 = arith.negf %99 : vector<2x32xf32>
    %101 = math.exp %100 : vector<2x32xf32>
    %cst_65 = arith.constant 1.000000e+00 : f32
    %102 = vector.broadcast %cst_65 : f32 to vector<2x32xf32>
    %103 = arith.addf %102, %101 : vector<2x32xf32>
    %104 = arith.divf %102, %103 : vector<2x32xf32>
    %105 = vector.extract_strided_slice %92 {offsets = [0, 64], sizes = [2, 32], strides = [1, 1]} : vector<2x128xf32> to vector<2x32xf32>
    %106 = math.tanh %105 : vector<2x32xf32>
    %107 = vector.extract_strided_slice %92 {offsets = [0, 96], sizes = [2, 32], strides = [1, 1]} : vector<2x128xf32> to vector<2x32xf32>
    %108 = arith.negf %107 : vector<2x32xf32>
    %109 = math.exp %108 : vector<2x32xf32>
    %cst_66 = arith.constant 1.000000e+00 : f32
    %110 = vector.broadcast %cst_66 : f32 to vector<2x32xf32>
    %111 = arith.addf %110, %109 : vector<2x32xf32>
    %112 = arith.divf %110, %111 : vector<2x32xf32>
    %113 = arith.mulf %104, %21 : vector<2x32xf32>
    %114 = arith.mulf %98, %106 : vector<2x32xf32>
    %115 = arith.addf %113, %114 : vector<2x32xf32>
    %116 = math.tanh %115 : vector<2x32xf32>
    %117 = arith.mulf %112, %116 : vector<2x32xf32>
    %118 = tpu.concatenate %117, %87 in 1 : vector<2x32xf32>, vector<2x32xf32> -> vector<2x64xf32>
    %cst_67 = arith.constant dense<0.000000e+00> : vector<2x128xf32>
    %119 = tpu.matmul %118, %15, %cst_67 {dimension_numbers = #tpu.dot_dimension_numbers<[1], [0], [0], [1], [0, 0, 1, 1], [], []>} : vector<2x64xf32>, vector<64x128xf32>, vector<2x128xf32> -> vector<2x128xf32>
    %120 = vector.broadcast %16 : vector<1x128xf32> to vector<2x128xf32>
    %121 = arith.addf %119, %120 : vector<2x128xf32>
    %cst_68 = arith.constant dense<0.000000e+00> : vector<2x128xf32>
    %122 = tpu.matmul %83, %17, %cst_68 {dimension_numbers = #tpu.dot_dimension_numbers<[1], [0], [0], [1], [0, 0, 1, 1], [], []>} : vector<2x8xf32>, vector<8x128xf32>, vector<2x128xf32> -> vector<2x128xf32>
    %123 = arith.addf %121, %122 : vector<2x128xf32>
    %124 = arith.index_cast %c0_i32_45 : i32 to index
    %c0_69 = arith.constant 0 : index
    %c0_70 = arith.constant 0 : index
    %125 = vector.load %arg17[%124, %c0_69, %c0_70] : memref<8x2x128xf32, #tpu.memory_space<vmem>>, vector<1x2x128xf32>
    %126 = vector.shape_cast %125 : vector<1x2x128xf32> to vector<2x128xf32>
    %127 = vector.shape_cast %123 : vector<2x128xf32> to vector<1x2x128xf32>
    tpu.vector_store %arg17[%124, %c0_69, %c0_70], %127 {strides = array<i32>} : memref<8x2x128xf32, #tpu.memory_space<vmem>>, vector<1x2x128xf32>,
    %c1_i32 = arith.constant 1 : i32
    %128 = arith.index_cast %c1_i32 : i32 to index
    %c0_71 = arith.constant 0 : index
    %c0_72 = arith.constant 0 : index
    %129 = vector.load %arg1[%128, %c0_71, %c0_72] : memref<8x2x80xf32, #tpu.memory_space<vmem>>, vector<1x2x80xf32>
    %130 = vector.shape_cast %129 : vector<1x2x80xf32> to vector<2x80xf32>
    %cst_73 = arith.constant dense<0.000000e+00> : vector<2x32xf32>
    %131 = tpu.matmul %130, %6, %cst_73 {dimension_numbers = #tpu.dot_dimension_numbers<[1], [0], [0], [1], [0, 0, 1, 1], [], []>} : vector<2x80xf32>, vector<80x32xf32>, vector<2x32xf32> -> vector<2x32xf32>
    %cst_74 = arith.constant 0.000000e+00 : f32
    %132 = vector.broadcast %cst_74 : f32 to vector<2x32xf32>
    %133 = arith.maximumf %131, %132 : vector<2x32xf32>
    %cst_75 = arith.constant dense<0.000000e+00> : vector<2x32xf32>
    %134 = tpu.matmul %133, %7, %cst_75 {dimension_numbers = #tpu.dot_dimension_numbers<[1], [0], [0], [1], [0, 0, 1, 1], [], []>} : vector<2x32xf32>, vector<32x32xf32>, vector<2x32xf32> -> vector<2x32xf32>
    %cst_76 = arith.constant 0.000000e+00 : f32
    %135 = vector.broadcast %cst_76 : f32 to vector<2x32xf32>
    %136 = arith.maximumf %134, %135 : vector<2x32xf32>
    %137 = tpu.concatenate %136, %87, %62 in 1 : vector<2x32xf32>, vector<2x32xf32>, vector<2x32xf32> -> vector<2x96xf32>
    %cst_77 = arith.constant dense<0.000000e+00> : vector<2x128xf32>
    %138 = tpu.matmul %137, %8, %cst_77 {dimension_numbers = #tpu.dot_dimension_numbers<[1], [0], [0], [1], [0, 0, 1, 1], [], []>} : vector<2x96xf32>, vector<96x128xf32>, vector<2x128xf32> -> vector<2x128xf32>
    %139 = vector.broadcast %9 : vector<1x128xf32> to vector<2x128xf32>
    %140 = arith.addf %138, %139 : vector<2x128xf32>
    %141 = vector.extract_strided_slice %140 {offsets = [0, 0], sizes = [2, 32], strides = [1, 1]} : vector<2x128xf32> to vector<2x32xf32>
    %142 = arith.negf %141 : vector<2x32xf32>
    %143 = math.exp %142 : vector<2x32xf32>
    %cst_78 = arith.constant 1.000000e+00 : f32
    %144 = vector.broadcast %cst_78 : f32 to vector<2x32xf32>
    %145 = arith.addf %144, %143 : vector<2x32xf32>
    %146 = arith.divf %144, %145 : vector<2x32xf32>
    %147 = vector.extract_strided_slice %140 {offsets = [0, 32], sizes = [2, 32], strides = [1, 1]} : vector<2x128xf32> to vector<2x32xf32>
    %148 = arith.negf %147 : vector<2x32xf32>
    %149 = math.exp %148 : vector<2x32xf32>
    %cst_79 = arith.constant 1.000000e+00 : f32
    %150 = vector.broadcast %cst_79 : f32 to vector<2x32xf32>
    %151 = arith.addf %150, %149 : vector<2x32xf32>
    %152 = arith.divf %150, %151 : vector<2x32xf32>
    %153 = vector.extract_strided_slice %140 {offsets = [0, 64], sizes = [2, 32], strides = [1, 1]} : vector<2x128xf32> to vector<2x32xf32>
    %154 = math.tanh %153 : vector<2x32xf32>
    %155 = vector.extract_strided_slice %140 {offsets = [0, 96], sizes = [2, 32], strides = [1, 1]} : vector<2x128xf32> to vector<2x32xf32>
    %156 = arith.negf %155 : vector<2x32xf32>
    %157 = math.exp %156 : vector<2x32xf32>
    %cst_80 = arith.constant 1.000000e+00 : f32
    %158 = vector.broadcast %cst_80 : f32 to vector<2x32xf32>
    %159 = arith.addf %158, %157 : vector<2x32xf32>
    %160 = arith.divf %158, %159 : vector<2x32xf32>
    %161 = arith.mulf %152, %60 : vector<2x32xf32>
    %162 = arith.mulf %146, %154 : vector<2x32xf32>
    %163 = arith.addf %161, %162 : vector<2x32xf32>
    %164 = math.tanh %163 : vector<2x32xf32>
    %165 = arith.mulf %160, %164 : vector<2x32xf32>
    %cst_81 = arith.constant dense<0.000000e+00> : vector<2x128xf32>
    %166 = tpu.matmul %165, %10, %cst_81 {dimension_numbers = #tpu.dot_dimension_numbers<[1], [0], [0], [1], [0, 0, 1, 1], [], []>} : vector<2x32xf32>, vector<32x128xf32>, vector<2x128xf32> -> vector<2x128xf32>
    %167 = tpu.concatenate %83, %88 in 1 : vector<2x8xf32>, vector<2x8xf32> -> vector<2x16xf32>
    %cst_82 = arith.constant dense<0.000000e+00> : vector<2x128xf32>
    %168 = tpu.matmul %167, %11, %cst_82 {dimension_numbers = #tpu.dot_dimension_numbers<[1], [0], [0], [1], [0, 0, 1, 1], [], []>} : vector<2x16xf32>, vector<16x128xf32>, vector<2x128xf32> -> vector<2x128xf32>
    %169 = arith.addf %166, %4 : vector<2x128xf32>
    %170 = arith.addf %169, %168 : vector<2x128xf32>
    %171 = math.tanh %170 : vector<2x128xf32>
    %cst_83 = arith.constant dense<0.000000e+00> : vector<2x8xf32>
    %172 = tpu.matmul %171, %12, %cst_83 {dimension_numbers = #tpu.dot_dimension_numbers<[1], [0], [0], [1], [0, 0, 1, 1], [], []>} : vector<2x128xf32>, vector<128x8xf32>, vector<2x8xf32> -> vector<2x8xf32>
    %cst_84 = arith.constant 5.000000e-01 : f32
    %173 = vector.broadcast %cst_84 : f32 to vector<2x8xf32>
    %174 = arith.cmpf ogt, %5, %173 : vector<2x8xf32>
    %175 = vector.broadcast %cst : f32 to vector<2x8xf32>
    %176 = arith.select %174, %172, %175 : vector<2x8xi1>, vector<2x8xf32>
    %cst_85 = arith.constant dense<0xFF800000> : vector<2xf32>
    %177 = vector.multi_reduction <maximumf>, %176, %cst_85 [1] : vector<2x8xf32> to vector<2xf32>
    %178 = vector.shape_cast %177 : vector<2xf32> to vector<2x1xf32>
    %179 = vector.broadcast %178 : vector<2x1xf32> to vector<2x8xf32>
    %180 = arith.subf %176, %179 : vector<2x8xf32>
    %181 = math.exp %180 : vector<2x8xf32>
    %cst_86 = arith.constant dense<0.000000e+00> : vector<2xf32>
    %182 = vector.multi_reduction <add>, %181, %cst_86 [1] : vector<2x8xf32> to vector<2xf32>
    %183 = vector.shape_cast %182 : vector<2xf32> to vector<2x1xf32>
    %184 = tpu.reciprocal %183 {approx = true} : vector<2x1xf32> -> vector<2x1xf32>
    %185 = vector.broadcast %184 : vector<2x1xf32> to vector<2x8xf32>
    %186 = arith.mulf %181, %185 : vector<2x8xf32>
    %187 = vector.shape_cast %186 : vector<2x8xf32> to vector<2x8x1xf32>
    %188 = vector.broadcast %187 : vector<2x8x1xf32> to vector<2x8x32xf32>
    %189 = arith.mulf %188, %3 : vector<2x8x32xf32>
    %cst_87 = arith.constant dense<0.000000e+00> : vector<2x32xf32>
    %190 = vector.multi_reduction <add>, %189, %cst_87 [1] : vector<2x8x32xf32> to vector<2x32xf32>
    %191 = arith.addf %88, %186 : vector<2x8xf32>
    %192 = tpu.concatenate %165, %190, %117 in 1 : vector<2x32xf32>, vector<2x32xf32>, vector<2x32xf32> -> vector<2x96xf32>
    %cst_88 = arith.constant dense<0.000000e+00> : vector<2x128xf32>
    %193 = tpu.matmul %192, %13, %cst_88 {dimension_numbers = #tpu.dot_dimension_numbers<[1], [0], [0], [1], [0, 0, 1, 1], [], []>} : vector<2x96xf32>, vector<96x128xf32>, vector<2x128xf32> -> vector<2x128xf32>
    %194 = vector.broadcast %14 : vector<1x128xf32> to vector<2x128xf32>
    %195 = arith.addf %193, %194 : vector<2x128xf32>
    %196 = vector.extract_strided_slice %195 {offsets = [0, 0], sizes = [2, 32], strides = [1, 1]} : vector<2x128xf32> to vector<2x32xf32>
    %197 = arith.negf %196 : vector<2x32xf32>
    %198 = math.exp %197 : vector<2x32xf32>
    %cst_89 = arith.constant 1.000000e+00 : f32
    %199 = vector.broadcast %cst_89 : f32 to vector<2x32xf32>
    %200 = arith.addf %199, %198 : vector<2x32xf32>
    %201 = arith.divf %199, %200 : vector<2x32xf32>
    %202 = vector.extract_strided_slice %195 {offsets = [0, 32], sizes = [2, 32], strides = [1, 1]} : vector<2x128xf32> to vector<2x32xf32>
    %203 = arith.negf %202 : vector<2x32xf32>
    %204 = math.exp %203 : vector<2x32xf32>
    %cst_90 = arith.constant 1.000000e+00 : f32
    %205 = vector.broadcast %cst_90 : f32 to vector<2x32xf32>
    %206 = arith.addf %205, %204 : vector<2x32xf32>
    %207 = arith.divf %205, %206 : vector<2x32xf32>
    %208 = vector.extract_strided_slice %195 {offsets = [0, 64], sizes = [2, 32], strides = [1, 1]} : vector<2x128xf32> to vector<2x32xf32>
    %209 = math.tanh %208 : vector<2x32xf32>
    %210 = vector.extract_strided_slice %195 {offsets = [0, 96], sizes = [2, 32], strides = [1, 1]} : vector<2x128xf32> to vector<2x32xf32>
    %211 = arith.negf %210 : vector<2x32xf32>
    %212 = math.exp %211 : vector<2x32xf32>
    %cst_91 = arith.constant 1.000000e+00 : f32
    %213 = vector.broadcast %cst_91 : f32 to vector<2x32xf32>
    %214 = arith.addf %213, %212 : vector<2x32xf32>
    %215 = arith.divf %213, %214 : vector<2x32xf32>
    %216 = arith.mulf %207, %115 : vector<2x32xf32>
    %217 = arith.mulf %201, %209 : vector<2x32xf32>
    %218 = arith.addf %216, %217 : vector<2x32xf32>
    %219 = math.tanh %218 : vector<2x32xf32>
    %220 = arith.mulf %215, %219 : vector<2x32xf32>
    %221 = tpu.concatenate %220, %190 in 1 : vector<2x32xf32>, vector<2x32xf32> -> vector<2x64xf32>
    %cst_92 = arith.constant dense<0.000000e+00> : vector<2x128xf32>
    %222 = tpu.matmul %221, %15, %cst_92 {dimension_numbers = #tpu.dot_dimension_numbers<[1], [0], [0], [1], [0, 0, 1, 1], [], []>} : vector<2x64xf32>, vector<64x128xf32>, vector<2x128xf32> -> vector<2x128xf32>
    %223 = vector.broadcast %16 : vector<1x128xf32> to vector<2x128xf32>
    %224 = arith.addf %222, %223 : vector<2x128xf32>
    %cst_93 = arith.constant dense<0.000000e+00> : vector<2x128xf32>
    %225 = tpu.matmul %186, %17, %cst_93 {dimension_numbers = #tpu.dot_dimension_numbers<[1], [0], [0], [1], [0, 0, 1, 1], [], []>} : vector<2x8xf32>, vector<8x128xf32>, vector<2x128xf32> -> vector<2x128xf32>
    %226 = arith.addf %224, %225 : vector<2x128xf32>
    %227 = arith.index_cast %c1_i32 : i32 to index
    %c0_94 = arith.constant 0 : index
    %c0_95 = arith.constant 0 : index
    %228 = vector.load %arg17[%227, %c0_94, %c0_95] : memref<8x2x128xf32, #tpu.memory_space<vmem>>, vector<1x2x128xf32>
    %229 = vector.shape_cast %228 : vector<1x2x128xf32> to vector<2x128xf32>
    %230 = vector.shape_cast %226 : vector<2x128xf32> to vector<1x2x128xf32>
    tpu.vector_store %arg17[%227, %c0_94, %c0_95], %230 {strides = array<i32>} : memref<8x2x128xf32, #tpu.memory_space<vmem>>, vector<1x2x128xf32>,
    %c2_i32 = arith.constant 2 : i32
    %231 = arith.index_cast %c2_i32 : i32 to index
    %c0_96 = arith.constant 0 : index
    %c0_97 = arith.constant 0 : index
    %232 = vector.load %arg1[%231, %c0_96, %c0_97] : memref<8x2x80xf32, #tpu.memory_space<vmem>>, vector<1x2x80xf32>
    %233 = vector.shape_cast %232 : vector<1x2x80xf32> to vector<2x80xf32>
    %cst_98 = arith.constant dense<0.000000e+00> : vector<2x32xf32>
    %234 = tpu.matmul %233, %6, %cst_98 {dimension_numbers = #tpu.dot_dimension_numbers<[1], [0], [0], [1], [0, 0, 1, 1], [], []>} : vector<2x80xf32>, vector<80x32xf32>, vector<2x32xf32> -> vector<2x32xf32>
    %cst_99 = arith.constant 0.000000e+00 : f32
    %235 = vector.broadcast %cst_99 : f32 to vector<2x32xf32>
    %236 = arith.maximumf %234, %235 : vector<2x32xf32>
    %cst_100 = arith.constant dense<0.000000e+00> : vector<2x32xf32>
    %237 = tpu.matmul %236, %7, %cst_100 {dimension_numbers = #tpu.dot_dimension_numbers<[1], [0], [0], [1], [0, 0, 1, 1], [], []>} : vector<2x32xf32>, vector<32x32xf32>, vector<2x32xf32> -> vector<2x32xf32>
    %cst_101 = arith.constant 0.000000e+00 : f32
    %238 = vector.broadcast %cst_101 : f32 to vector<2x32xf32>
    %239 = arith.maximumf %237, %238 : vector<2x32xf32>
    %240 = tpu.concatenate %239, %190, %165 in 1 : vector<2x32xf32>, vector<2x32xf32>, vector<2x32xf32> -> vector<2x96xf32>
    %cst_102 = arith.constant dense<0.000000e+00> : vector<2x128xf32>
    %241 = tpu.matmul %240, %8, %cst_102 {dimension_numbers = #tpu.dot_dimension_numbers<[1], [0], [0], [1], [0, 0, 1, 1], [], []>} : vector<2x96xf32>, vector<96x128xf32>, vector<2x128xf32> -> vector<2x128xf32>
    %242 = vector.broadcast %9 : vector<1x128xf32> to vector<2x128xf32>
    %243 = arith.addf %241, %242 : vector<2x128xf32>
    %244 = vector.extract_strided_slice %243 {offsets = [0, 0], sizes = [2, 32], strides = [1, 1]} : vector<2x128xf32> to vector<2x32xf32>
    %245 = arith.negf %244 : vector<2x32xf32>
    %246 = math.exp %245 : vector<2x32xf32>
    %cst_103 = arith.constant 1.000000e+00 : f32
    %247 = vector.broadcast %cst_103 : f32 to vector<2x32xf32>
    %248 = arith.addf %247, %246 : vector<2x32xf32>
    %249 = arith.divf %247, %248 : vector<2x32xf32>
    %250 = vector.extract_strided_slice %243 {offsets = [0, 32], sizes = [2, 32], strides = [1, 1]} : vector<2x128xf32> to vector<2x32xf32>
    %251 = arith.negf %250 : vector<2x32xf32>
    %252 = math.exp %251 : vector<2x32xf32>
    %cst_104 = arith.constant 1.000000e+00 : f32
    %253 = vector.broadcast %cst_104 : f32 to vector<2x32xf32>
    %254 = arith.addf %253, %252 : vector<2x32xf32>
    %255 = arith.divf %253, %254 : vector<2x32xf32>
    %256 = vector.extract_strided_slice %243 {offsets = [0, 64], sizes = [2, 32], strides = [1, 1]} : vector<2x128xf32> to vector<2x32xf32>
    %257 = math.tanh %256 : vector<2x32xf32>
    %258 = vector.extract_strided_slice %243 {offsets = [0, 96], sizes = [2, 32], strides = [1, 1]} : vector<2x128xf32> to vector<2x32xf32>
    %259 = arith.negf %258 : vector<2x32xf32>
    %260 = math.exp %259 : vector<2x32xf32>
    %cst_105 = arith.constant 1.000000e+00 : f32
    %261 = vector.broadcast %cst_105 : f32 to vector<2x32xf32>
    %262 = arith.addf %261, %260 : vector<2x32xf32>
    %263 = arith.divf %261, %262 : vector<2x32xf32>
    %264 = arith.mulf %255, %163 : vector<2x32xf32>
    %265 = arith.mulf %249, %257 : vector<2x32xf32>
    %266 = arith.addf %264, %265 : vector<2x32xf32>
    %267 = math.tanh %266 : vector<2x32xf32>
    %268 = arith.mulf %263, %267 : vector<2x32xf32>
    %cst_106 = arith.constant dense<0.000000e+00> : vector<2x128xf32>
    %269 = tpu.matmul %268, %10, %cst_106 {dimension_numbers = #tpu.dot_dimension_numbers<[1], [0], [0], [1], [0, 0, 1, 1], [], []>} : vector<2x32xf32>, vector<32x128xf32>, vector<2x128xf32> -> vector<2x128xf32>
    %270 = tpu.concatenate %186, %191 in 1 : vector<2x8xf32>, vector<2x8xf32> -> vector<2x16xf32>
    %cst_107 = arith.constant dense<0.000000e+00> : vector<2x128xf32>
    %271 = tpu.matmul %270, %11, %cst_107 {dimension_numbers = #tpu.dot_dimension_numbers<[1], [0], [0], [1], [0, 0, 1, 1], [], []>} : vector<2x16xf32>, vector<16x128xf32>, vector<2x128xf32> -> vector<2x128xf32>
    %272 = arith.addf %269, %4 : vector<2x128xf32>
    %273 = arith.addf %272, %271 : vector<2x128xf32>
    %274 = math.tanh %273 : vector<2x128xf32>
    %cst_108 = arith.constant dense<0.000000e+00> : vector<2x8xf32>
    %275 = tpu.matmul %274, %12, %cst_108 {dimension_numbers = #tpu.dot_dimension_numbers<[1], [0], [0], [1], [0, 0, 1, 1], [], []>} : vector<2x128xf32>, vector<128x8xf32>, vector<2x8xf32> -> vector<2x8xf32>
    %cst_109 = arith.constant 5.000000e-01 : f32
    %276 = vector.broadcast %cst_109 : f32 to vector<2x8xf32>
    %277 = arith.cmpf ogt, %5, %276 : vector<2x8xf32>
    %278 = vector.broadcast %cst : f32 to vector<2x8xf32>
    %279 = arith.select %277, %275, %278 : vector<2x8xi1>, vector<2x8xf32>
    %cst_110 = arith.constant dense<0xFF800000> : vector<2xf32>
    %280 = vector.multi_reduction <maximumf>, %279, %cst_110 [1] : vector<2x8xf32> to vector<2xf32>
    %281 = vector.shape_cast %280 : vector<2xf32> to vector<2x1xf32>
    %282 = vector.broadcast %281 : vector<2x1xf32> to vector<2x8xf32>
    %283 = arith.subf %279, %282 : vector<2x8xf32>
    %284 = math.exp %283 : vector<2x8xf32>
    %cst_111 = arith.constant dense<0.000000e+00> : vector<2xf32>
    %285 = vector.multi_reduction <add>, %284, %cst_111 [1] : vector<2x8xf32> to vector<2xf32>
    %286 = vector.shape_cast %285 : vector<2xf32> to vector<2x1xf32>
    %287 = tpu.reciprocal %286 {approx = true} : vector<2x1xf32> -> vector<2x1xf32>
    %288 = vector.broadcast %287 : vector<2x1xf32> to vector<2x8xf32>
    %289 = arith.mulf %284, %288 : vector<2x8xf32>
    %290 = vector.shape_cast %289 : vector<2x8xf32> to vector<2x8x1xf32>
    %291 = vector.broadcast %290 : vector<2x8x1xf32> to vector<2x8x32xf32>
    %292 = arith.mulf %291, %3 : vector<2x8x32xf32>
    %cst_112 = arith.constant dense<0.000000e+00> : vector<2x32xf32>
    %293 = vector.multi_reduction <add>, %292, %cst_112 [1] : vector<2x8x32xf32> to vector<2x32xf32>
    %294 = arith.addf %191, %289 : vector<2x8xf32>
    %295 = tpu.concatenate %268, %293, %220 in 1 : vector<2x32xf32>, vector<2x32xf32>, vector<2x32xf32> -> vector<2x96xf32>
    %cst_113 = arith.constant dense<0.000000e+00> : vector<2x128xf32>
    %296 = tpu.matmul %295, %13, %cst_113 {dimension_numbers = #tpu.dot_dimension_numbers<[1], [0], [0], [1], [0, 0, 1, 1], [], []>} : vector<2x96xf32>, vector<96x128xf32>, vector<2x128xf32> -> vector<2x128xf32>
    %297 = vector.broadcast %14 : vector<1x128xf32> to vector<2x128xf32>
    %298 = arith.addf %296, %297 : vector<2x128xf32>
    %299 = vector.extract_strided_slice %298 {offsets = [0, 0], sizes = [2, 32], strides = [1, 1]} : vector<2x128xf32> to vector<2x32xf32>
    %300 = arith.negf %299 : vector<2x32xf32>
    %301 = math.exp %300 : vector<2x32xf32>
    %cst_114 = arith.constant 1.000000e+00 : f32
    %302 = vector.broadcast %cst_114 : f32 to vector<2x32xf32>
    %303 = arith.addf %302, %301 : vector<2x32xf32>
    %304 = arith.divf %302, %303 : vector<2x32xf32>
    %305 = vector.extract_strided_slice %298 {offsets = [0, 32], sizes = [2, 32], strides = [1, 1]} : vector<2x128xf32> to vector<2x32xf32>
    %306 = arith.negf %305 : vector<2x32xf32>
    %307 = math.exp %306 : vector<2x32xf32>
    %cst_115 = arith.constant 1.000000e+00 : f32
    %308 = vector.broadcast %cst_115 : f32 to vector<2x32xf32>
    %309 = arith.addf %308, %307 : vector<2x32xf32>
    %310 = arith.divf %308, %309 : vector<2x32xf32>
    %311 = vector.extract_strided_slice %298 {offsets = [0, 64], sizes = [2, 32], strides = [1, 1]} : vector<2x128xf32> to vector<2x32xf32>
    %312 = math.tanh %311 : vector<2x32xf32>
    %313 = vector.extract_strided_slice %298 {offsets = [0, 96], sizes = [2, 32], strides = [1, 1]} : vector<2x128xf32> to vector<2x32xf32>
    %314 = arith.negf %313 : vector<2x32xf32>
    %315 = math.exp %314 : vector<2x32xf32>
    %cst_116 = arith.constant 1.000000e+00 : f32
    %316 = vector.broadcast %cst_116 : f32 to vector<2x32xf32>
    %317 = arith.addf %316, %315 : vector<2x32xf32>
    %318 = arith.divf %316, %317 : vector<2x32xf32>
    %319 = arith.mulf %310, %218 : vector<2x32xf32>
    %320 = arith.mulf %304, %312 : vector<2x32xf32>
    %321 = arith.addf %319, %320 : vector<2x32xf32>
    %322 = math.tanh %321 : vector<2x32xf32>
    %323 = arith.mulf %318, %322 : vector<2x32xf32>
    %324 = tpu.concatenate %323, %293 in 1 : vector<2x32xf32>, vector<2x32xf32> -> vector<2x64xf32>
    %cst_117 = arith.constant dense<0.000000e+00> : vector<2x128xf32>
    %325 = tpu.matmul %324, %15, %cst_117 {dimension_numbers = #tpu.dot_dimension_numbers<[1], [0], [0], [1], [0, 0, 1, 1], [], []>} : vector<2x64xf32>, vector<64x128xf32>, vector<2x128xf32> -> vector<2x128xf32>
    %326 = vector.broadcast %16 : vector<1x128xf32> to vector<2x128xf32>
    %327 = arith.addf %325, %326 : vector<2x128xf32>
    %cst_118 = arith.constant dense<0.000000e+00> : vector<2x128xf32>
    %328 = tpu.matmul %289, %17, %cst_118 {dimension_numbers = #tpu.dot_dimension_numbers<[1], [0], [0], [1], [0, 0, 1, 1], [], []>} : vector<2x8xf32>, vector<8x128xf32>, vector<2x128xf32> -> vector<2x128xf32>
    %329 = arith.addf %327, %328 : vector<2x128xf32>
    %330 = arith.index_cast %c2_i32 : i32 to index
    %c0_119 = arith.constant 0 : index
    %c0_120 = arith.constant 0 : index
    %331 = vector.load %arg17[%330, %c0_119, %c0_120] : memref<8x2x128xf32, #tpu.memory_space<vmem>>, vector<1x2x128xf32>
    %332 = vector.shape_cast %331 : vector<1x2x128xf32> to vector<2x128xf32>
    %333 = vector.shape_cast %329 : vector<2x128xf32> to vector<1x2x128xf32>
    tpu.vector_store %arg17[%330, %c0_119, %c0_120], %333 {strides = array<i32>} : memref<8x2x128xf32, #tpu.memory_space<vmem>>, vector<1x2x128xf32>,
    %c3_i32 = arith.constant 3 : i32
    %334 = arith.index_cast %c3_i32 : i32 to index
    %c0_121 = arith.constant 0 : index
    %c0_122 = arith.constant 0 : index
    %335 = vector.load %arg1[%334, %c0_121, %c0_122] : memref<8x2x80xf32, #tpu.memory_space<vmem>>, vector<1x2x80xf32>
    %336 = vector.shape_cast %335 : vector<1x2x80xf32> to vector<2x80xf32>
    %cst_123 = arith.constant dense<0.000000e+00> : vector<2x32xf32>
    %337 = tpu.matmul %336, %6, %cst_123 {dimension_numbers = #tpu.dot_dimension_numbers<[1], [0], [0], [1], [0, 0, 1, 1], [], []>} : vector<2x80xf32>, vector<80x32xf32>, vector<2x32xf32> -> vector<2x32xf32>
    %cst_124 = arith.constant 0.000000e+00 : f32
    %338 = vector.broadcast %cst_124 : f32 to vector<2x32xf32>
    %339 = arith.maximumf %337, %338 : vector<2x32xf32>
    %cst_125 = arith.constant dense<0.000000e+00> : vector<2x32xf32>
    %340 = tpu.matmul %339, %7, %cst_125 {dimension_numbers = #tpu.dot_dimension_numbers<[1], [0], [0], [1], [0, 0, 1, 1], [], []>} : vector<2x32xf32>, vector<32x32xf32>, vector<2x32xf32> -> vector<2x32xf32>
    %cst_126 = arith.constant 0.000000e+00 : f32
    %341 = vector.broadcast %cst_126 : f32 to vector<2x32xf32>
    %342 = arith.maximumf %340, %341 : vector<2x32xf32>
    %343 = tpu.concatenate %342, %293, %268 in 1 : vector<2x32xf32>, vector<2x32xf32>, vector<2x32xf32> -> vector<2x96xf32>
    %cst_127 = arith.constant dense<0.000000e+00> : vector<2x128xf32>
    %344 = tpu.matmul %343, %8, %cst_127 {dimension_numbers = #tpu.dot_dimension_numbers<[1], [0], [0], [1], [0, 0, 1, 1], [], []>} : vector<2x96xf32>, vector<96x128xf32>, vector<2x128xf32> -> vector<2x128xf32>
    %345 = vector.broadcast %9 : vector<1x128xf32> to vector<2x128xf32>
    %346 = arith.addf %344, %345 : vector<2x128xf32>
    %347 = vector.extract_strided_slice %346 {offsets = [0, 0], sizes = [2, 32], strides = [1, 1]} : vector<2x128xf32> to vector<2x32xf32>
    %348 = arith.negf %347 : vector<2x32xf32>
    %349 = math.exp %348 : vector<2x32xf32>
    %cst_128 = arith.constant 1.000000e+00 : f32
    %350 = vector.broadcast %cst_128 : f32 to vector<2x32xf32>
    %351 = arith.addf %350, %349 : vector<2x32xf32>
    %352 = arith.divf %350, %351 : vector<2x32xf32>
    %353 = vector.extract_strided_slice %346 {offsets = [0, 32], sizes = [2, 32], strides = [1, 1]} : vector<2x128xf32> to vector<2x32xf32>
    %354 = arith.negf %353 : vector<2x32xf32>
    %355 = math.exp %354 : vector<2x32xf32>
    %cst_129 = arith.constant 1.000000e+00 : f32
    %356 = vector.broadcast %cst_129 : f32 to vector<2x32xf32>
    %357 = arith.addf %356, %355 : vector<2x32xf32>
    %358 = arith.divf %356, %357 : vector<2x32xf32>
    %359 = vector.extract_strided_slice %346 {offsets = [0, 64], sizes = [2, 32], strides = [1, 1]} : vector<2x128xf32> to vector<2x32xf32>
    %360 = math.tanh %359 : vector<2x32xf32>
    %361 = vector.extract_strided_slice %346 {offsets = [0, 96], sizes = [2, 32], strides = [1, 1]} : vector<2x128xf32> to vector<2x32xf32>
    %362 = arith.negf %361 : vector<2x32xf32>
    %363 = math.exp %362 : vector<2x32xf32>
    %cst_130 = arith.constant 1.000000e+00 : f32
    %364 = vector.broadcast %cst_130 : f32 to vector<2x32xf32>
    %365 = arith.addf %364, %363 : vector<2x32xf32>
    %366 = arith.divf %364, %365 : vector<2x32xf32>
    %367 = arith.mulf %358, %266 : vector<2x32xf32>
    %368 = arith.mulf %352, %360 : vector<2x32xf32>
    %369 = arith.addf %367, %368 : vector<2x32xf32>
    %370 = math.tanh %369 : vector<2x32xf32>
    %371 = arith.mulf %366, %370 : vector<2x32xf32>
    %cst_131 = arith.constant dense<0.000000e+00> : vector<2x128xf32>
    %372 = tpu.matmul %371, %10, %cst_131 {dimension_numbers = #tpu.dot_dimension_numbers<[1], [0], [0], [1], [0, 0, 1, 1], [], []>} : vector<2x32xf32>, vector<32x128xf32>, vector<2x128xf32> -> vector<2x128xf32>
    %373 = tpu.concatenate %289, %294 in 1 : vector<2x8xf32>, vector<2x8xf32> -> vector<2x16xf32>
    %cst_132 = arith.constant dense<0.000000e+00> : vector<2x128xf32>
    %374 = tpu.matmul %373, %11, %cst_132 {dimension_numbers = #tpu.dot_dimension_numbers<[1], [0], [0], [1], [0, 0, 1, 1], [], []>} : vector<2x16xf32>, vector<16x128xf32>, vector<2x128xf32> -> vector<2x128xf32>
    %375 = arith.addf %372, %4 : vector<2x128xf32>
    %376 = arith.addf %375, %374 : vector<2x128xf32>
    %377 = math.tanh %376 : vector<2x128xf32>
    %cst_133 = arith.constant dense<0.000000e+00> : vector<2x8xf32>
    %378 = tpu.matmul %377, %12, %cst_133 {dimension_numbers = #tpu.dot_dimension_numbers<[1], [0], [0], [1], [0, 0, 1, 1], [], []>} : vector<2x128xf32>, vector<128x8xf32>, vector<2x8xf32> -> vector<2x8xf32>
    %cst_134 = arith.constant 5.000000e-01 : f32
    %379 = vector.broadcast %cst_134 : f32 to vector<2x8xf32>
    %380 = arith.cmpf ogt, %5, %379 : vector<2x8xf32>
    %381 = vector.broadcast %cst : f32 to vector<2x8xf32>
    %382 = arith.select %380, %378, %381 : vector<2x8xi1>, vector<2x8xf32>
    %cst_135 = arith.constant dense<0xFF800000> : vector<2xf32>
    %383 = vector.multi_reduction <maximumf>, %382, %cst_135 [1] : vector<2x8xf32> to vector<2xf32>
    %384 = vector.shape_cast %383 : vector<2xf32> to vector<2x1xf32>
    %385 = vector.broadcast %384 : vector<2x1xf32> to vector<2x8xf32>
    %386 = arith.subf %382, %385 : vector<2x8xf32>
    %387 = math.exp %386 : vector<2x8xf32>
    %cst_136 = arith.constant dense<0.000000e+00> : vector<2xf32>
    %388 = vector.multi_reduction <add>, %387, %cst_136 [1] : vector<2x8xf32> to vector<2xf32>
    %389 = vector.shape_cast %388 : vector<2xf32> to vector<2x1xf32>
    %390 = tpu.reciprocal %389 {approx = true} : vector<2x1xf32> -> vector<2x1xf32>
    %391 = vector.broadcast %390 : vector<2x1xf32> to vector<2x8xf32>
    %392 = arith.mulf %387, %391 : vector<2x8xf32>
    %393 = vector.shape_cast %392 : vector<2x8xf32> to vector<2x8x1xf32>
    %394 = vector.broadcast %393 : vector<2x8x1xf32> to vector<2x8x32xf32>
    %395 = arith.mulf %394, %3 : vector<2x8x32xf32>
    %cst_137 = arith.constant dense<0.000000e+00> : vector<2x32xf32>
    %396 = vector.multi_reduction <add>, %395, %cst_137 [1] : vector<2x8x32xf32> to vector<2x32xf32>
    %397 = arith.addf %294, %392 : vector<2x8xf32>
    %398 = tpu.concatenate %371, %396, %323 in 1 : vector<2x32xf32>, vector<2x32xf32>, vector<2x32xf32> -> vector<2x96xf32>
    %cst_138 = arith.constant dense<0.000000e+00> : vector<2x128xf32>
    %399 = tpu.matmul %398, %13, %cst_138 {dimension_numbers = #tpu.dot_dimension_numbers<[1], [0], [0], [1], [0, 0, 1, 1], [], []>} : vector<2x96xf32>, vector<96x128xf32>, vector<2x128xf32> -> vector<2x128xf32>
    %400 = vector.broadcast %14 : vector<1x128xf32> to vector<2x128xf32>
    %401 = arith.addf %399, %400 : vector<2x128xf32>
    %402 = vector.extract_strided_slice %401 {offsets = [0, 0], sizes = [2, 32], strides = [1, 1]} : vector<2x128xf32> to vector<2x32xf32>
    %403 = arith.negf %402 : vector<2x32xf32>
    %404 = math.exp %403 : vector<2x32xf32>
    %cst_139 = arith.constant 1.000000e+00 : f32
    %405 = vector.broadcast %cst_139 : f32 to vector<2x32xf32>
    %406 = arith.addf %405, %404 : vector<2x32xf32>
    %407 = arith.divf %405, %406 : vector<2x32xf32>
    %408 = vector.extract_strided_slice %401 {offsets = [0, 32], sizes = [2, 32], strides = [1, 1]} : vector<2x128xf32> to vector<2x32xf32>
    %409 = arith.negf %408 : vector<2x32xf32>
    %410 = math.exp %409 : vector<2x32xf32>
    %cst_140 = arith.constant 1.000000e+00 : f32
    %411 = vector.broadcast %cst_140 : f32 to vector<2x32xf32>
    %412 = arith.addf %411, %410 : vector<2x32xf32>
    %413 = arith.divf %411, %412 : vector<2x32xf32>
    %414 = vector.extract_strided_slice %401 {offsets = [0, 64], sizes = [2, 32], strides = [1, 1]} : vector<2x128xf32> to vector<2x32xf32>
    %415 = math.tanh %414 : vector<2x32xf32>
    %416 = vector.extract_strided_slice %401 {offsets = [0, 96], sizes = [2, 32], strides = [1, 1]} : vector<2x128xf32> to vector<2x32xf32>
    %417 = arith.negf %416 : vector<2x32xf32>
    %418 = math.exp %417 : vector<2x32xf32>
    %cst_141 = arith.constant 1.000000e+00 : f32
    %419 = vector.broadcast %cst_141 : f32 to vector<2x32xf32>
    %420 = arith.addf %419, %418 : vector<2x32xf32>
    %421 = arith.divf %419, %420 : vector<2x32xf32>
    %422 = arith.mulf %413, %321 : vector<2x32xf32>
    %423 = arith.mulf %407, %415 : vector<2x32xf32>
    %424 = arith.addf %422, %423 : vector<2x32xf32>
    %425 = math.tanh %424 : vector<2x32xf32>
    %426 = arith.mulf %421, %425 : vector<2x32xf32>
    %427 = tpu.concatenate %426, %396 in 1 : vector<2x32xf32>, vector<2x32xf32> -> vector<2x64xf32>
    %cst_142 = arith.constant dense<0.000000e+00> : vector<2x128xf32>
    %428 = tpu.matmul %427, %15, %cst_142 {dimension_numbers = #tpu.dot_dimension_numbers<[1], [0], [0], [1], [0, 0, 1, 1], [], []>} : vector<2x64xf32>, vector<64x128xf32>, vector<2x128xf32> -> vector<2x128xf32>
    %429 = vector.broadcast %16 : vector<1x128xf32> to vector<2x128xf32>
    %430 = arith.addf %428, %429 : vector<2x128xf32>
    %cst_143 = arith.constant dense<0.000000e+00> : vector<2x128xf32>
    %431 = tpu.matmul %392, %17, %cst_143 {dimension_numbers = #tpu.dot_dimension_numbers<[1], [0], [0], [1], [0, 0, 1, 1], [], []>} : vector<2x8xf32>, vector<8x128xf32>, vector<2x128xf32> -> vector<2x128xf32>
    %432 = arith.addf %430, %431 : vector<2x128xf32>
    %433 = arith.index_cast %c3_i32 : i32 to index
    %c0_144 = arith.constant 0 : index
    %c0_145 = arith.constant 0 : index
    %434 = vector.load %arg17[%433, %c0_144, %c0_145] : memref<8x2x128xf32, #tpu.memory_space<vmem>>, vector<1x2x128xf32>
    %435 = vector.shape_cast %434 : vector<1x2x128xf32> to vector<2x128xf32>
    %436 = vector.shape_cast %432 : vector<2x128xf32> to vector<1x2x128xf32>
    tpu.vector_store %arg17[%433, %c0_144, %c0_145], %436 {strides = array<i32>} : memref<8x2x128xf32, #tpu.memory_space<vmem>>, vector<1x2x128xf32>,
    %c4_i32 = arith.constant 4 : i32
    %437 = arith.index_cast %c4_i32 : i32 to index
    %c0_146 = arith.constant 0 : index
    %c0_147 = arith.constant 0 : index
    %438 = vector.load %arg1[%437, %c0_146, %c0_147] : memref<8x2x80xf32, #tpu.memory_space<vmem>>, vector<1x2x80xf32>
    %439 = vector.shape_cast %438 : vector<1x2x80xf32> to vector<2x80xf32>
    %cst_148 = arith.constant dense<0.000000e+00> : vector<2x32xf32>
    %440 = tpu.matmul %439, %6, %cst_148 {dimension_numbers = #tpu.dot_dimension_numbers<[1], [0], [0], [1], [0, 0, 1, 1], [], []>} : vector<2x80xf32>, vector<80x32xf32>, vector<2x32xf32> -> vector<2x32xf32>
    %cst_149 = arith.constant 0.000000e+00 : f32
    %441 = vector.broadcast %cst_149 : f32 to vector<2x32xf32>
    %442 = arith.maximumf %440, %441 : vector<2x32xf32>
    %cst_150 = arith.constant dense<0.000000e+00> : vector<2x32xf32>
    %443 = tpu.matmul %442, %7, %cst_150 {dimension_numbers = #tpu.dot_dimension_numbers<[1], [0], [0], [1], [0, 0, 1, 1], [], []>} : vector<2x32xf32>, vector<32x32xf32>, vector<2x32xf32> -> vector<2x32xf32>
    %cst_151 = arith.constant 0.000000e+00 : f32
    %444 = vector.broadcast %cst_151 : f32 to vector<2x32xf32>
    %445 = arith.maximumf %443, %444 : vector<2x32xf32>
    %446 = tpu.concatenate %445, %396, %371 in 1 : vector<2x32xf32>, vector<2x32xf32>, vector<2x32xf32> -> vector<2x96xf32>
    %cst_152 = arith.constant dense<0.000000e+00> : vector<2x128xf32>
    %447 = tpu.matmul %446, %8, %cst_152 {dimension_numbers = #tpu.dot_dimension_numbers<[1], [0], [0], [1], [0, 0, 1, 1], [], []>} : vector<2x96xf32>, vector<96x128xf32>, vector<2x128xf32> -> vector<2x128xf32>
    %448 = vector.broadcast %9 : vector<1x128xf32> to vector<2x128xf32>
    %449 = arith.addf %447, %448 : vector<2x128xf32>
    %450 = vector.extract_strided_slice %449 {offsets = [0, 0], sizes = [2, 32], strides = [1, 1]} : vector<2x128xf32> to vector<2x32xf32>
    %451 = arith.negf %450 : vector<2x32xf32>
    %452 = math.exp %451 : vector<2x32xf32>
    %cst_153 = arith.constant 1.000000e+00 : f32
    %453 = vector.broadcast %cst_153 : f32 to vector<2x32xf32>
    %454 = arith.addf %453, %452 : vector<2x32xf32>
    %455 = arith.divf %453, %454 : vector<2x32xf32>
    %456 = vector.extract_strided_slice %449 {offsets = [0, 32], sizes = [2, 32], strides = [1, 1]} : vector<2x128xf32> to vector<2x32xf32>
    %457 = arith.negf %456 : vector<2x32xf32>
    %458 = math.exp %457 : vector<2x32xf32>
    %cst_154 = arith.constant 1.000000e+00 : f32
    %459 = vector.broadcast %cst_154 : f32 to vector<2x32xf32>
    %460 = arith.addf %459, %458 : vector<2x32xf32>
    %461 = arith.divf %459, %460 : vector<2x32xf32>
    %462 = vector.extract_strided_slice %449 {offsets = [0, 64], sizes = [2, 32], strides = [1, 1]} : vector<2x128xf32> to vector<2x32xf32>
    %463 = math.tanh %462 : vector<2x32xf32>
    %464 = vector.extract_strided_slice %449 {offsets = [0, 96], sizes = [2, 32], strides = [1, 1]} : vector<2x128xf32> to vector<2x32xf32>
    %465 = arith.negf %464 : vector<2x32xf32>
    %466 = math.exp %465 : vector<2x32xf32>
    %cst_155 = arith.constant 1.000000e+00 : f32
    %467 = vector.broadcast %cst_155 : f32 to vector<2x32xf32>
    %468 = arith.addf %467, %466 : vector<2x32xf32>
    %469 = arith.divf %467, %468 : vector<2x32xf32>
    %470 = arith.mulf %461, %369 : vector<2x32xf32>
    %471 = arith.mulf %455, %463 : vector<2x32xf32>
    %472 = arith.addf %470, %471 : vector<2x32xf32>
    %473 = math.tanh %472 : vector<2x32xf32>
    %474 = arith.mulf %469, %473 : vector<2x32xf32>
    %cst_156 = arith.constant dense<0.000000e+00> : vector<2x128xf32>
    %475 = tpu.matmul %474, %10, %cst_156 {dimension_numbers = #tpu.dot_dimension_numbers<[1], [0], [0], [1], [0, 0, 1, 1], [], []>} : vector<2x32xf32>, vector<32x128xf32>, vector<2x128xf32> -> vector<2x128xf32>
    %476 = tpu.concatenate %392, %397 in 1 : vector<2x8xf32>, vector<2x8xf32> -> vector<2x16xf32>
    %cst_157 = arith.constant dense<0.000000e+00> : vector<2x128xf32>
    %477 = tpu.matmul %476, %11, %cst_157 {dimension_numbers = #tpu.dot_dimension_numbers<[1], [0], [0], [1], [0, 0, 1, 1], [], []>} : vector<2x16xf32>, vector<16x128xf32>, vector<2x128xf32> -> vector<2x128xf32>
    %478 = arith.addf %475, %4 : vector<2x128xf32>
    %479 = arith.addf %478, %477 : vector<2x128xf32>
    %480 = math.tanh %479 : vector<2x128xf32>
    %cst_158 = arith.constant dense<0.000000e+00> : vector<2x8xf32>
    %481 = tpu.matmul %480, %12, %cst_158 {dimension_numbers = #tpu.dot_dimension_numbers<[1], [0], [0], [1], [0, 0, 1, 1], [], []>} : vector<2x128xf32>, vector<128x8xf32>, vector<2x8xf32> -> vector<2x8xf32>
    %cst_159 = arith.constant 5.000000e-01 : f32
    %482 = vector.broadcast %cst_159 : f32 to vector<2x8xf32>
    %483 = arith.cmpf ogt, %5, %482 : vector<2x8xf32>
    %484 = vector.broadcast %cst : f32 to vector<2x8xf32>
    %485 = arith.select %483, %481, %484 : vector<2x8xi1>, vector<2x8xf32>
    %cst_160 = arith.constant dense<0xFF800000> : vector<2xf32>
    %486 = vector.multi_reduction <maximumf>, %485, %cst_160 [1] : vector<2x8xf32> to vector<2xf32>
    %487 = vector.shape_cast %486 : vector<2xf32> to vector<2x1xf32>
    %488 = vector.broadcast %487 : vector<2x1xf32> to vector<2x8xf32>
    %489 = arith.subf %485, %488 : vector<2x8xf32>
    %490 = math.exp %489 : vector<2x8xf32>
    %cst_161 = arith.constant dense<0.000000e+00> : vector<2xf32>
    %491 = vector.multi_reduction <add>, %490, %cst_161 [1] : vector<2x8xf32> to vector<2xf32>
    %492 = vector.shape_cast %491 : vector<2xf32> to vector<2x1xf32>
    %493 = tpu.reciprocal %492 {approx = true} : vector<2x1xf32> -> vector<2x1xf32>
    %494 = vector.broadcast %493 : vector<2x1xf32> to vector<2x8xf32>
    %495 = arith.mulf %490, %494 : vector<2x8xf32>
    %496 = vector.shape_cast %495 : vector<2x8xf32> to vector<2x8x1xf32>
    %497 = vector.broadcast %496 : vector<2x8x1xf32> to vector<2x8x32xf32>
    %498 = arith.mulf %497, %3 : vector<2x8x32xf32>
    %cst_162 = arith.constant dense<0.000000e+00> : vector<2x32xf32>
    %499 = vector.multi_reduction <add>, %498, %cst_162 [1] : vector<2x8x32xf32> to vector<2x32xf32>
    %500 = arith.addf %397, %495 : vector<2x8xf32>
    %501 = tpu.concatenate %474, %499, %426 in 1 : vector<2x32xf32>, vector<2x32xf32>, vector<2x32xf32> -> vector<2x96xf32>
    %cst_163 = arith.constant dense<0.000000e+00> : vector<2x128xf32>
    %502 = tpu.matmul %501, %13, %cst_163 {dimension_numbers = #tpu.dot_dimension_numbers<[1], [0], [0], [1], [0, 0, 1, 1], [], []>} : vector<2x96xf32>, vector<96x128xf32>, vector<2x128xf32> -> vector<2x128xf32>
    %503 = vector.broadcast %14 : vector<1x128xf32> to vector<2x128xf32>
    %504 = arith.addf %502, %503 : vector<2x128xf32>
    %505 = vector.extract_strided_slice %504 {offsets = [0, 0], sizes = [2, 32], strides = [1, 1]} : vector<2x128xf32> to vector<2x32xf32>
    %506 = arith.negf %505 : vector<2x32xf32>
    %507 = math.exp %506 : vector<2x32xf32>
    %cst_164 = arith.constant 1.000000e+00 : f32
    %508 = vector.broadcast %cst_164 : f32 to vector<2x32xf32>
    %509 = arith.addf %508, %507 : vector<2x32xf32>
    %510 = arith.divf %508, %509 : vector<2x32xf32>
    %511 = vector.extract_strided_slice %504 {offsets = [0, 32], sizes = [2, 32], strides = [1, 1]} : vector<2x128xf32> to vector<2x32xf32>
    %512 = arith.negf %511 : vector<2x32xf32>
    %513 = math.exp %512 : vector<2x32xf32>
    %cst_165 = arith.constant 1.000000e+00 : f32
    %514 = vector.broadcast %cst_165 : f32 to vector<2x32xf32>
    %515 = arith.addf %514, %513 : vector<2x32xf32>
    %516 = arith.divf %514, %515 : vector<2x32xf32>
    %517 = vector.extract_strided_slice %504 {offsets = [0, 64], sizes = [2, 32], strides = [1, 1]} : vector<2x128xf32> to vector<2x32xf32>
    %518 = math.tanh %517 : vector<2x32xf32>
    %519 = vector.extract_strided_slice %504 {offsets = [0, 96], sizes = [2, 32], strides = [1, 1]} : vector<2x128xf32> to vector<2x32xf32>
    %520 = arith.negf %519 : vector<2x32xf32>
    %521 = math.exp %520 : vector<2x32xf32>
    %cst_166 = arith.constant 1.000000e+00 : f32
    %522 = vector.broadcast %cst_166 : f32 to vector<2x32xf32>
    %523 = arith.addf %522, %521 : vector<2x32xf32>
    %524 = arith.divf %522, %523 : vector<2x32xf32>
    %525 = arith.mulf %516, %424 : vector<2x32xf32>
    %526 = arith.mulf %510, %518 : vector<2x32xf32>
    %527 = arith.addf %525, %526 : vector<2x32xf32>
    %528 = math.tanh %527 : vector<2x32xf32>
    %529 = arith.mulf %524, %528 : vector<2x32xf32>
    %530 = tpu.concatenate %529, %499 in 1 : vector<2x32xf32>, vector<2x32xf32> -> vector<2x64xf32>
    %cst_167 = arith.constant dense<0.000000e+00> : vector<2x128xf32>
    %531 = tpu.matmul %530, %15, %cst_167 {dimension_numbers = #tpu.dot_dimension_numbers<[1], [0], [0], [1], [0, 0, 1, 1], [], []>} : vector<2x64xf32>, vector<64x128xf32>, vector<2x128xf32> -> vector<2x128xf32>
    %532 = vector.broadcast %16 : vector<1x128xf32> to vector<2x128xf32>
    %533 = arith.addf %531, %532 : vector<2x128xf32>
    %cst_168 = arith.constant dense<0.000000e+00> : vector<2x128xf32>
    %534 = tpu.matmul %495, %17, %cst_168 {dimension_numbers = #tpu.dot_dimension_numbers<[1], [0], [0], [1], [0, 0, 1, 1], [], []>} : vector<2x8xf32>, vector<8x128xf32>, vector<2x128xf32> -> vector<2x128xf32>
    %535 = arith.addf %533, %534 : vector<2x128xf32>
    %536 = arith.index_cast %c4_i32 : i32 to index
    %c0_169 = arith.constant 0 : index
    %c0_170 = arith.constant 0 : index
    %537 = vector.load %arg17[%536, %c0_169, %c0_170] : memref<8x2x128xf32, #tpu.memory_space<vmem>>, vector<1x2x128xf32>
    %538 = vector.shape_cast %537 : vector<1x2x128xf32> to vector<2x128xf32>
    %539 = vector.shape_cast %535 : vector<2x128xf32> to vector<1x2x128xf32>
    tpu.vector_store %arg17[%536, %c0_169, %c0_170], %539 {strides = array<i32>} : memref<8x2x128xf32, #tpu.memory_space<vmem>>, vector<1x2x128xf32>,
    %c5_i32 = arith.constant 5 : i32
    %540 = arith.index_cast %c5_i32 : i32 to index
    %c0_171 = arith.constant 0 : index
    %c0_172 = arith.constant 0 : index
    %541 = vector.load %arg1[%540, %c0_171, %c0_172] : memref<8x2x80xf32, #tpu.memory_space<vmem>>, vector<1x2x80xf32>
    %542 = vector.shape_cast %541 : vector<1x2x80xf32> to vector<2x80xf32>
    %cst_173 = arith.constant dense<0.000000e+00> : vector<2x32xf32>
    %543 = tpu.matmul %542, %6, %cst_173 {dimension_numbers = #tpu.dot_dimension_numbers<[1], [0], [0], [1], [0, 0, 1, 1], [], []>} : vector<2x80xf32>, vector<80x32xf32>, vector<2x32xf32> -> vector<2x32xf32>
    %cst_174 = arith.constant 0.000000e+00 : f32
    %544 = vector.broadcast %cst_174 : f32 to vector<2x32xf32>
    %545 = arith.maximumf %543, %544 : vector<2x32xf32>
    %cst_175 = arith.constant dense<0.000000e+00> : vector<2x32xf32>
    %546 = tpu.matmul %545, %7, %cst_175 {dimension_numbers = #tpu.dot_dimension_numbers<[1], [0], [0], [1], [0, 0, 1, 1], [], []>} : vector<2x32xf32>, vector<32x32xf32>, vector<2x32xf32> -> vector<2x32xf32>
    %cst_176 = arith.constant 0.000000e+00 : f32
    %547 = vector.broadcast %cst_176 : f32 to vector<2x32xf32>
    %548 = arith.maximumf %546, %547 : vector<2x32xf32>
    %549 = tpu.concatenate %548, %499, %474 in 1 : vector<2x32xf32>, vector<2x32xf32>, vector<2x32xf32> -> vector<2x96xf32>
    %cst_177 = arith.constant dense<0.000000e+00> : vector<2x128xf32>
    %550 = tpu.matmul %549, %8, %cst_177 {dimension_numbers = #tpu.dot_dimension_numbers<[1], [0], [0], [1], [0, 0, 1, 1], [], []>} : vector<2x96xf32>, vector<96x128xf32>, vector<2x128xf32> -> vector<2x128xf32>
    %551 = vector.broadcast %9 : vector<1x128xf32> to vector<2x128xf32>
    %552 = arith.addf %550, %551 : vector<2x128xf32>
    %553 = vector.extract_strided_slice %552 {offsets = [0, 0], sizes = [2, 32], strides = [1, 1]} : vector<2x128xf32> to vector<2x32xf32>
    %554 = arith.negf %553 : vector<2x32xf32>
    %555 = math.exp %554 : vector<2x32xf32>
    %cst_178 = arith.constant 1.000000e+00 : f32
    %556 = vector.broadcast %cst_178 : f32 to vector<2x32xf32>
    %557 = arith.addf %556, %555 : vector<2x32xf32>
    %558 = arith.divf %556, %557 : vector<2x32xf32>
    %559 = vector.extract_strided_slice %552 {offsets = [0, 32], sizes = [2, 32], strides = [1, 1]} : vector<2x128xf32> to vector<2x32xf32>
    %560 = arith.negf %559 : vector<2x32xf32>
    %561 = math.exp %560 : vector<2x32xf32>
    %cst_179 = arith.constant 1.000000e+00 : f32
    %562 = vector.broadcast %cst_179 : f32 to vector<2x32xf32>
    %563 = arith.addf %562, %561 : vector<2x32xf32>
    %564 = arith.divf %562, %563 : vector<2x32xf32>
    %565 = vector.extract_strided_slice %552 {offsets = [0, 64], sizes = [2, 32], strides = [1, 1]} : vector<2x128xf32> to vector<2x32xf32>
    %566 = math.tanh %565 : vector<2x32xf32>
    %567 = vector.extract_strided_slice %552 {offsets = [0, 96], sizes = [2, 32], strides = [1, 1]} : vector<2x128xf32> to vector<2x32xf32>
    %568 = arith.negf %567 : vector<2x32xf32>
    %569 = math.exp %568 : vector<2x32xf32>
    %cst_180 = arith.constant 1.000000e+00 : f32
    %570 = vector.broadcast %cst_180 : f32 to vector<2x32xf32>
    %571 = arith.addf %570, %569 : vector<2x32xf32>
    %572 = arith.divf %570, %571 : vector<2x32xf32>
    %573 = arith.mulf %564, %472 : vector<2x32xf32>
    %574 = arith.mulf %558, %566 : vector<2x32xf32>
    %575 = arith.addf %573, %574 : vector<2x32xf32>
    %576 = math.tanh %575 : vector<2x32xf32>
    %577 = arith.mulf %572, %576 : vector<2x32xf32>
    %cst_181 = arith.constant dense<0.000000e+00> : vector<2x128xf32>
    %578 = tpu.matmul %577, %10, %cst_181 {dimension_numbers = #tpu.dot_dimension_numbers<[1], [0], [0], [1], [0, 0, 1, 1], [], []>} : vector<2x32xf32>, vector<32x128xf32>, vector<2x128xf32> -> vector<2x128xf32>
    %579 = tpu.concatenate %495, %500 in 1 : vector<2x8xf32>, vector<2x8xf32> -> vector<2x16xf32>
    %cst_182 = arith.constant dense<0.000000e+00> : vector<2x128xf32>
    %580 = tpu.matmul %579, %11, %cst_182 {dimension_numbers = #tpu.dot_dimension_numbers<[1], [0], [0], [1], [0, 0, 1, 1], [], []>} : vector<2x16xf32>, vector<16x128xf32>, vector<2x128xf32> -> vector<2x128xf32>
    %581 = arith.addf %578, %4 : vector<2x128xf32>
    %582 = arith.addf %581, %580 : vector<2x128xf32>
    %583 = math.tanh %582 : vector<2x128xf32>
    %cst_183 = arith.constant dense<0.000000e+00> : vector<2x8xf32>
    %584 = tpu.matmul %583, %12, %cst_183 {dimension_numbers = #tpu.dot_dimension_numbers<[1], [0], [0], [1], [0, 0, 1, 1], [], []>} : vector<2x128xf32>, vector<128x8xf32>, vector<2x8xf32> -> vector<2x8xf32>
    %cst_184 = arith.constant 5.000000e-01 : f32
    %585 = vector.broadcast %cst_184 : f32 to vector<2x8xf32>
    %586 = arith.cmpf ogt, %5, %585 : vector<2x8xf32>
    %587 = vector.broadcast %cst : f32 to vector<2x8xf32>
    %588 = arith.select %586, %584, %587 : vector<2x8xi1>, vector<2x8xf32>
    %cst_185 = arith.constant dense<0xFF800000> : vector<2xf32>
    %589 = vector.multi_reduction <maximumf>, %588, %cst_185 [1] : vector<2x8xf32> to vector<2xf32>
    %590 = vector.shape_cast %589 : vector<2xf32> to vector<2x1xf32>
    %591 = vector.broadcast %590 : vector<2x1xf32> to vector<2x8xf32>
    %592 = arith.subf %588, %591 : vector<2x8xf32>
    %593 = math.exp %592 : vector<2x8xf32>
    %cst_186 = arith.constant dense<0.000000e+00> : vector<2xf32>
    %594 = vector.multi_reduction <add>, %593, %cst_186 [1] : vector<2x8xf32> to vector<2xf32>
    %595 = vector.shape_cast %594 : vector<2xf32> to vector<2x1xf32>
    %596 = tpu.reciprocal %595 {approx = true} : vector<2x1xf32> -> vector<2x1xf32>
    %597 = vector.broadcast %596 : vector<2x1xf32> to vector<2x8xf32>
    %598 = arith.mulf %593, %597 : vector<2x8xf32>
    %599 = vector.shape_cast %598 : vector<2x8xf32> to vector<2x8x1xf32>
    %600 = vector.broadcast %599 : vector<2x8x1xf32> to vector<2x8x32xf32>
    %601 = arith.mulf %600, %3 : vector<2x8x32xf32>
    %cst_187 = arith.constant dense<0.000000e+00> : vector<2x32xf32>
    %602 = vector.multi_reduction <add>, %601, %cst_187 [1] : vector<2x8x32xf32> to vector<2x32xf32>
    %603 = arith.addf %500, %598 : vector<2x8xf32>
    %604 = tpu.concatenate %577, %602, %529 in 1 : vector<2x32xf32>, vector<2x32xf32>, vector<2x32xf32> -> vector<2x96xf32>
    %cst_188 = arith.constant dense<0.000000e+00> : vector<2x128xf32>
    %605 = tpu.matmul %604, %13, %cst_188 {dimension_numbers = #tpu.dot_dimension_numbers<[1], [0], [0], [1], [0, 0, 1, 1], [], []>} : vector<2x96xf32>, vector<96x128xf32>, vector<2x128xf32> -> vector<2x128xf32>
    %606 = vector.broadcast %14 : vector<1x128xf32> to vector<2x128xf32>
    %607 = arith.addf %605, %606 : vector<2x128xf32>
    %608 = vector.extract_strided_slice %607 {offsets = [0, 0], sizes = [2, 32], strides = [1, 1]} : vector<2x128xf32> to vector<2x32xf32>
    %609 = arith.negf %608 : vector<2x32xf32>
    %610 = math.exp %609 : vector<2x32xf32>
    %cst_189 = arith.constant 1.000000e+00 : f32
    %611 = vector.broadcast %cst_189 : f32 to vector<2x32xf32>
    %612 = arith.addf %611, %610 : vector<2x32xf32>
    %613 = arith.divf %611, %612 : vector<2x32xf32>
    %614 = vector.extract_strided_slice %607 {offsets = [0, 32], sizes = [2, 32], strides = [1, 1]} : vector<2x128xf32> to vector<2x32xf32>
    %615 = arith.negf %614 : vector<2x32xf32>
    %616 = math.exp %615 : vector<2x32xf32>
    %cst_190 = arith.constant 1.000000e+00 : f32
    %617 = vector.broadcast %cst_190 : f32 to vector<2x32xf32>
    %618 = arith.addf %617, %616 : vector<2x32xf32>
    %619 = arith.divf %617, %618 : vector<2x32xf32>
    %620 = vector.extract_strided_slice %607 {offsets = [0, 64], sizes = [2, 32], strides = [1, 1]} : vector<2x128xf32> to vector<2x32xf32>
    %621 = math.tanh %620 : vector<2x32xf32>
    %622 = vector.extract_strided_slice %607 {offsets = [0, 96], sizes = [2, 32], strides = [1, 1]} : vector<2x128xf32> to vector<2x32xf32>
    %623 = arith.negf %622 : vector<2x32xf32>
    %624 = math.exp %623 : vector<2x32xf32>
    %cst_191 = arith.constant 1.000000e+00 : f32
    %625 = vector.broadcast %cst_191 : f32 to vector<2x32xf32>
    %626 = arith.addf %625, %624 : vector<2x32xf32>
    %627 = arith.divf %625, %626 : vector<2x32xf32>
    %628 = arith.mulf %619, %527 : vector<2x32xf32>
    %629 = arith.mulf %613, %621 : vector<2x32xf32>
    %630 = arith.addf %628, %629 : vector<2x32xf32>
    %631 = math.tanh %630 : vector<2x32xf32>
    %632 = arith.mulf %627, %631 : vector<2x32xf32>
    %633 = tpu.concatenate %632, %602 in 1 : vector<2x32xf32>, vector<2x32xf32> -> vector<2x64xf32>
    %cst_192 = arith.constant dense<0.000000e+00> : vector<2x128xf32>
    %634 = tpu.matmul %633, %15, %cst_192 {dimension_numbers = #tpu.dot_dimension_numbers<[1], [0], [0], [1], [0, 0, 1, 1], [], []>} : vector<2x64xf32>, vector<64x128xf32>, vector<2x128xf32> -> vector<2x128xf32>
    %635 = vector.broadcast %16 : vector<1x128xf32> to vector<2x128xf32>
    %636 = arith.addf %634, %635 : vector<2x128xf32>
    %cst_193 = arith.constant dense<0.000000e+00> : vector<2x128xf32>
    %637 = tpu.matmul %598, %17, %cst_193 {dimension_numbers = #tpu.dot_dimension_numbers<[1], [0], [0], [1], [0, 0, 1, 1], [], []>} : vector<2x8xf32>, vector<8x128xf32>, vector<2x128xf32> -> vector<2x128xf32>
    %638 = arith.addf %636, %637 : vector<2x128xf32>
    %639 = arith.index_cast %c5_i32 : i32 to index
    %c0_194 = arith.constant 0 : index
    %c0_195 = arith.constant 0 : index
    %640 = vector.load %arg17[%639, %c0_194, %c0_195] : memref<8x2x128xf32, #tpu.memory_space<vmem>>, vector<1x2x128xf32>
    %641 = vector.shape_cast %640 : vector<1x2x128xf32> to vector<2x128xf32>
    %642 = vector.shape_cast %638 : vector<2x128xf32> to vector<1x2x128xf32>
    tpu.vector_store %arg17[%639, %c0_194, %c0_195], %642 {strides = array<i32>} : memref<8x2x128xf32, #tpu.memory_space<vmem>>, vector<1x2x128xf32>,
    %c6_i32 = arith.constant 6 : i32
    %643 = arith.index_cast %c6_i32 : i32 to index
    %c0_196 = arith.constant 0 : index
    %c0_197 = arith.constant 0 : index
    %644 = vector.load %arg1[%643, %c0_196, %c0_197] : memref<8x2x80xf32, #tpu.memory_space<vmem>>, vector<1x2x80xf32>
    %645 = vector.shape_cast %644 : vector<1x2x80xf32> to vector<2x80xf32>
    %cst_198 = arith.constant dense<0.000000e+00> : vector<2x32xf32>
    %646 = tpu.matmul %645, %6, %cst_198 {dimension_numbers = #tpu.dot_dimension_numbers<[1], [0], [0], [1], [0, 0, 1, 1], [], []>} : vector<2x80xf32>, vector<80x32xf32>, vector<2x32xf32> -> vector<2x32xf32>
    %cst_199 = arith.constant 0.000000e+00 : f32
    %647 = vector.broadcast %cst_199 : f32 to vector<2x32xf32>
    %648 = arith.maximumf %646, %647 : vector<2x32xf32>
    %cst_200 = arith.constant dense<0.000000e+00> : vector<2x32xf32>
    %649 = tpu.matmul %648, %7, %cst_200 {dimension_numbers = #tpu.dot_dimension_numbers<[1], [0], [0], [1], [0, 0, 1, 1], [], []>} : vector<2x32xf32>, vector<32x32xf32>, vector<2x32xf32> -> vector<2x32xf32>
    %cst_201 = arith.constant 0.000000e+00 : f32
    %650 = vector.broadcast %cst_201 : f32 to vector<2x32xf32>
    %651 = arith.maximumf %649, %650 : vector<2x32xf32>
    %652 = tpu.concatenate %651, %602, %577 in 1 : vector<2x32xf32>, vector<2x32xf32>, vector<2x32xf32> -> vector<2x96xf32>
    %cst_202 = arith.constant dense<0.000000e+00> : vector<2x128xf32>
    %653 = tpu.matmul %652, %8, %cst_202 {dimension_numbers = #tpu.dot_dimension_numbers<[1], [0], [0], [1], [0, 0, 1, 1], [], []>} : vector<2x96xf32>, vector<96x128xf32>, vector<2x128xf32> -> vector<2x128xf32>
    %654 = vector.broadcast %9 : vector<1x128xf32> to vector<2x128xf32>
    %655 = arith.addf %653, %654 : vector<2x128xf32>
    %656 = vector.extract_strided_slice %655 {offsets = [0, 0], sizes = [2, 32], strides = [1, 1]} : vector<2x128xf32> to vector<2x32xf32>
    %657 = arith.negf %656 : vector<2x32xf32>
    %658 = math.exp %657 : vector<2x32xf32>
    %cst_203 = arith.constant 1.000000e+00 : f32
    %659 = vector.broadcast %cst_203 : f32 to vector<2x32xf32>
    %660 = arith.addf %659, %658 : vector<2x32xf32>
    %661 = arith.divf %659, %660 : vector<2x32xf32>
    %662 = vector.extract_strided_slice %655 {offsets = [0, 32], sizes = [2, 32], strides = [1, 1]} : vector<2x128xf32> to vector<2x32xf32>
    %663 = arith.negf %662 : vector<2x32xf32>
    %664 = math.exp %663 : vector<2x32xf32>
    %cst_204 = arith.constant 1.000000e+00 : f32
    %665 = vector.broadcast %cst_204 : f32 to vector<2x32xf32>
    %666 = arith.addf %665, %664 : vector<2x32xf32>
    %667 = arith.divf %665, %666 : vector<2x32xf32>
    %668 = vector.extract_strided_slice %655 {offsets = [0, 64], sizes = [2, 32], strides = [1, 1]} : vector<2x128xf32> to vector<2x32xf32>
    %669 = math.tanh %668 : vector<2x32xf32>
    %670 = vector.extract_strided_slice %655 {offsets = [0, 96], sizes = [2, 32], strides = [1, 1]} : vector<2x128xf32> to vector<2x32xf32>
    %671 = arith.negf %670 : vector<2x32xf32>
    %672 = math.exp %671 : vector<2x32xf32>
    %cst_205 = arith.constant 1.000000e+00 : f32
    %673 = vector.broadcast %cst_205 : f32 to vector<2x32xf32>
    %674 = arith.addf %673, %672 : vector<2x32xf32>
    %675 = arith.divf %673, %674 : vector<2x32xf32>
    %676 = arith.mulf %667, %575 : vector<2x32xf32>
    %677 = arith.mulf %661, %669 : vector<2x32xf32>
    %678 = arith.addf %676, %677 : vector<2x32xf32>
    %679 = math.tanh %678 : vector<2x32xf32>
    %680 = arith.mulf %675, %679 : vector<2x32xf32>
    %cst_206 = arith.constant dense<0.000000e+00> : vector<2x128xf32>
    %681 = tpu.matmul %680, %10, %cst_206 {dimension_numbers = #tpu.dot_dimension_numbers<[1], [0], [0], [1], [0, 0, 1, 1], [], []>} : vector<2x32xf32>, vector<32x128xf32>, vector<2x128xf32> -> vector<2x128xf32>
    %682 = tpu.concatenate %598, %603 in 1 : vector<2x8xf32>, vector<2x8xf32> -> vector<2x16xf32>
    %cst_207 = arith.constant dense<0.000000e+00> : vector<2x128xf32>
    %683 = tpu.matmul %682, %11, %cst_207 {dimension_numbers = #tpu.dot_dimension_numbers<[1], [0], [0], [1], [0, 0, 1, 1], [], []>} : vector<2x16xf32>, vector<16x128xf32>, vector<2x128xf32> -> vector<2x128xf32>
    %684 = arith.addf %681, %4 : vector<2x128xf32>
    %685 = arith.addf %684, %683 : vector<2x128xf32>
    %686 = math.tanh %685 : vector<2x128xf32>
    %cst_208 = arith.constant dense<0.000000e+00> : vector<2x8xf32>
    %687 = tpu.matmul %686, %12, %cst_208 {dimension_numbers = #tpu.dot_dimension_numbers<[1], [0], [0], [1], [0, 0, 1, 1], [], []>} : vector<2x128xf32>, vector<128x8xf32>, vector<2x8xf32> -> vector<2x8xf32>
    %cst_209 = arith.constant 5.000000e-01 : f32
    %688 = vector.broadcast %cst_209 : f32 to vector<2x8xf32>
    %689 = arith.cmpf ogt, %5, %688 : vector<2x8xf32>
    %690 = vector.broadcast %cst : f32 to vector<2x8xf32>
    %691 = arith.select %689, %687, %690 : vector<2x8xi1>, vector<2x8xf32>
    %cst_210 = arith.constant dense<0xFF800000> : vector<2xf32>
    %692 = vector.multi_reduction <maximumf>, %691, %cst_210 [1] : vector<2x8xf32> to vector<2xf32>
    %693 = vector.shape_cast %692 : vector<2xf32> to vector<2x1xf32>
    %694 = vector.broadcast %693 : vector<2x1xf32> to vector<2x8xf32>
    %695 = arith.subf %691, %694 : vector<2x8xf32>
    %696 = math.exp %695 : vector<2x8xf32>
    %cst_211 = arith.constant dense<0.000000e+00> : vector<2xf32>
    %697 = vector.multi_reduction <add>, %696, %cst_211 [1] : vector<2x8xf32> to vector<2xf32>
    %698 = vector.shape_cast %697 : vector<2xf32> to vector<2x1xf32>
    %699 = tpu.reciprocal %698 {approx = true} : vector<2x1xf32> -> vector<2x1xf32>
    %700 = vector.broadcast %699 : vector<2x1xf32> to vector<2x8xf32>
    %701 = arith.mulf %696, %700 : vector<2x8xf32>
    %702 = vector.shape_cast %701 : vector<2x8xf32> to vector<2x8x1xf32>
    %703 = vector.broadcast %702 : vector<2x8x1xf32> to vector<2x8x32xf32>
    %704 = arith.mulf %703, %3 : vector<2x8x32xf32>
    %cst_212 = arith.constant dense<0.000000e+00> : vector<2x32xf32>
    %705 = vector.multi_reduction <add>, %704, %cst_212 [1] : vector<2x8x32xf32> to vector<2x32xf32>
    %706 = arith.addf %603, %701 : vector<2x8xf32>
    %707 = tpu.concatenate %680, %705, %632 in 1 : vector<2x32xf32>, vector<2x32xf32>, vector<2x32xf32> -> vector<2x96xf32>
    %cst_213 = arith.constant dense<0.000000e+00> : vector<2x128xf32>
    %708 = tpu.matmul %707, %13, %cst_213 {dimension_numbers = #tpu.dot_dimension_numbers<[1], [0], [0], [1], [0, 0, 1, 1], [], []>} : vector<2x96xf32>, vector<96x128xf32>, vector<2x128xf32> -> vector<2x128xf32>
    %709 = vector.broadcast %14 : vector<1x128xf32> to vector<2x128xf32>
    %710 = arith.addf %708, %709 : vector<2x128xf32>
    %711 = vector.extract_strided_slice %710 {offsets = [0, 0], sizes = [2, 32], strides = [1, 1]} : vector<2x128xf32> to vector<2x32xf32>
    %712 = arith.negf %711 : vector<2x32xf32>
    %713 = math.exp %712 : vector<2x32xf32>
    %cst_214 = arith.constant 1.000000e+00 : f32
    %714 = vector.broadcast %cst_214 : f32 to vector<2x32xf32>
    %715 = arith.addf %714, %713 : vector<2x32xf32>
    %716 = arith.divf %714, %715 : vector<2x32xf32>
    %717 = vector.extract_strided_slice %710 {offsets = [0, 32], sizes = [2, 32], strides = [1, 1]} : vector<2x128xf32> to vector<2x32xf32>
    %718 = arith.negf %717 : vector<2x32xf32>
    %719 = math.exp %718 : vector<2x32xf32>
    %cst_215 = arith.constant 1.000000e+00 : f32
    %720 = vector.broadcast %cst_215 : f32 to vector<2x32xf32>
    %721 = arith.addf %720, %719 : vector<2x32xf32>
    %722 = arith.divf %720, %721 : vector<2x32xf32>
    %723 = vector.extract_strided_slice %710 {offsets = [0, 64], sizes = [2, 32], strides = [1, 1]} : vector<2x128xf32> to vector<2x32xf32>
    %724 = math.tanh %723 : vector<2x32xf32>
    %725 = vector.extract_strided_slice %710 {offsets = [0, 96], sizes = [2, 32], strides = [1, 1]} : vector<2x128xf32> to vector<2x32xf32>
    %726 = arith.negf %725 : vector<2x32xf32>
    %727 = math.exp %726 : vector<2x32xf32>
    %cst_216 = arith.constant 1.000000e+00 : f32
    %728 = vector.broadcast %cst_216 : f32 to vector<2x32xf32>
    %729 = arith.addf %728, %727 : vector<2x32xf32>
    %730 = arith.divf %728, %729 : vector<2x32xf32>
    %731 = arith.mulf %722, %630 : vector<2x32xf32>
    %732 = arith.mulf %716, %724 : vector<2x32xf32>
    %733 = arith.addf %731, %732 : vector<2x32xf32>
    %734 = math.tanh %733 : vector<2x32xf32>
    %735 = arith.mulf %730, %734 : vector<2x32xf32>
    %736 = tpu.concatenate %735, %705 in 1 : vector<2x32xf32>, vector<2x32xf32> -> vector<2x64xf32>
    %cst_217 = arith.constant dense<0.000000e+00> : vector<2x128xf32>
    %737 = tpu.matmul %736, %15, %cst_217 {dimension_numbers = #tpu.dot_dimension_numbers<[1], [0], [0], [1], [0, 0, 1, 1], [], []>} : vector<2x64xf32>, vector<64x128xf32>, vector<2x128xf32> -> vector<2x128xf32>
    %738 = vector.broadcast %16 : vector<1x128xf32> to vector<2x128xf32>
    %739 = arith.addf %737, %738 : vector<2x128xf32>
    %cst_218 = arith.constant dense<0.000000e+00> : vector<2x128xf32>
    %740 = tpu.matmul %701, %17, %cst_218 {dimension_numbers = #tpu.dot_dimension_numbers<[1], [0], [0], [1], [0, 0, 1, 1], [], []>} : vector<2x8xf32>, vector<8x128xf32>, vector<2x128xf32> -> vector<2x128xf32>
    %741 = arith.addf %739, %740 : vector<2x128xf32>
    %742 = arith.index_cast %c6_i32 : i32 to index
    %c0_219 = arith.constant 0 : index
    %c0_220 = arith.constant 0 : index
    %743 = vector.load %arg17[%742, %c0_219, %c0_220] : memref<8x2x128xf32, #tpu.memory_space<vmem>>, vector<1x2x128xf32>
    %744 = vector.shape_cast %743 : vector<1x2x128xf32> to vector<2x128xf32>
    %745 = vector.shape_cast %741 : vector<2x128xf32> to vector<1x2x128xf32>
    tpu.vector_store %arg17[%742, %c0_219, %c0_220], %745 {strides = array<i32>} : memref<8x2x128xf32, #tpu.memory_space<vmem>>, vector<1x2x128xf32>,
    %c7_i32 = arith.constant 7 : i32
    %746 = arith.index_cast %c7_i32 : i32 to index
    %c0_221 = arith.constant 0 : index
    %c0_222 = arith.constant 0 : index
    %747 = vector.load %arg1[%746, %c0_221, %c0_222] : memref<8x2x80xf32, #tpu.memory_space<vmem>>, vector<1x2x80xf32>
    %748 = vector.shape_cast %747 : vector<1x2x80xf32> to vector<2x80xf32>
    %cst_223 = arith.constant dense<0.000000e+00> : vector<2x32xf32>
    %749 = tpu.matmul %748, %6, %cst_223 {dimension_numbers = #tpu.dot_dimension_numbers<[1], [0], [0], [1], [0, 0, 1, 1], [], []>} : vector<2x80xf32>, vector<80x32xf32>, vector<2x32xf32> -> vector<2x32xf32>
    %cst_224 = arith.constant 0.000000e+00 : f32
    %750 = vector.broadcast %cst_224 : f32 to vector<2x32xf32>
    %751 = arith.maximumf %749, %750 : vector<2x32xf32>
    %cst_225 = arith.constant dense<0.000000e+00> : vector<2x32xf32>
    %752 = tpu.matmul %751, %7, %cst_225 {dimension_numbers = #tpu.dot_dimension_numbers<[1], [0], [0], [1], [0, 0, 1, 1], [], []>} : vector<2x32xf32>, vector<32x32xf32>, vector<2x32xf32> -> vector<2x32xf32>
    %cst_226 = arith.constant 0.000000e+00 : f32
    %753 = vector.broadcast %cst_226 : f32 to vector<2x32xf32>
    %754 = arith.maximumf %752, %753 : vector<2x32xf32>
    %755 = tpu.concatenate %754, %705, %680 in 1 : vector<2x32xf32>, vector<2x32xf32>, vector<2x32xf32> -> vector<2x96xf32>
    %cst_227 = arith.constant dense<0.000000e+00> : vector<2x128xf32>
    %756 = tpu.matmul %755, %8, %cst_227 {dimension_numbers = #tpu.dot_dimension_numbers<[1], [0], [0], [1], [0, 0, 1, 1], [], []>} : vector<2x96xf32>, vector<96x128xf32>, vector<2x128xf32> -> vector<2x128xf32>
    %757 = vector.broadcast %9 : vector<1x128xf32> to vector<2x128xf32>
    %758 = arith.addf %756, %757 : vector<2x128xf32>
    %759 = vector.extract_strided_slice %758 {offsets = [0, 0], sizes = [2, 32], strides = [1, 1]} : vector<2x128xf32> to vector<2x32xf32>
    %760 = arith.negf %759 : vector<2x32xf32>
    %761 = math.exp %760 : vector<2x32xf32>
    %cst_228 = arith.constant 1.000000e+00 : f32
    %762 = vector.broadcast %cst_228 : f32 to vector<2x32xf32>
    %763 = arith.addf %762, %761 : vector<2x32xf32>
    %764 = arith.divf %762, %763 : vector<2x32xf32>
    %765 = vector.extract_strided_slice %758 {offsets = [0, 32], sizes = [2, 32], strides = [1, 1]} : vector<2x128xf32> to vector<2x32xf32>
    %766 = arith.negf %765 : vector<2x32xf32>
    %767 = math.exp %766 : vector<2x32xf32>
    %cst_229 = arith.constant 1.000000e+00 : f32
    %768 = vector.broadcast %cst_229 : f32 to vector<2x32xf32>
    %769 = arith.addf %768, %767 : vector<2x32xf32>
    %770 = arith.divf %768, %769 : vector<2x32xf32>
    %771 = vector.extract_strided_slice %758 {offsets = [0, 64], sizes = [2, 32], strides = [1, 1]} : vector<2x128xf32> to vector<2x32xf32>
    %772 = math.tanh %771 : vector<2x32xf32>
    %773 = vector.extract_strided_slice %758 {offsets = [0, 96], sizes = [2, 32], strides = [1, 1]} : vector<2x128xf32> to vector<2x32xf32>
    %774 = arith.negf %773 : vector<2x32xf32>
    %775 = math.exp %774 : vector<2x32xf32>
    %cst_230 = arith.constant 1.000000e+00 : f32
    %776 = vector.broadcast %cst_230 : f32 to vector<2x32xf32>
    %777 = arith.addf %776, %775 : vector<2x32xf32>
    %778 = arith.divf %776, %777 : vector<2x32xf32>
    %779 = arith.mulf %770, %678 : vector<2x32xf32>
    %780 = arith.mulf %764, %772 : vector<2x32xf32>
    %781 = arith.addf %779, %780 : vector<2x32xf32>
    %782 = math.tanh %781 : vector<2x32xf32>
    %783 = arith.mulf %778, %782 : vector<2x32xf32>
    %cst_231 = arith.constant dense<0.000000e+00> : vector<2x128xf32>
    %784 = tpu.matmul %783, %10, %cst_231 {dimension_numbers = #tpu.dot_dimension_numbers<[1], [0], [0], [1], [0, 0, 1, 1], [], []>} : vector<2x32xf32>, vector<32x128xf32>, vector<2x128xf32> -> vector<2x128xf32>
    %785 = tpu.concatenate %701, %706 in 1 : vector<2x8xf32>, vector<2x8xf32> -> vector<2x16xf32>
    %cst_232 = arith.constant dense<0.000000e+00> : vector<2x128xf32>
    %786 = tpu.matmul %785, %11, %cst_232 {dimension_numbers = #tpu.dot_dimension_numbers<[1], [0], [0], [1], [0, 0, 1, 1], [], []>} : vector<2x16xf32>, vector<16x128xf32>, vector<2x128xf32> -> vector<2x128xf32>
    %787 = arith.addf %784, %4 : vector<2x128xf32>
    %788 = arith.addf %787, %786 : vector<2x128xf32>
    %789 = math.tanh %788 : vector<2x128xf32>
    %cst_233 = arith.constant dense<0.000000e+00> : vector<2x8xf32>
    %790 = tpu.matmul %789, %12, %cst_233 {dimension_numbers = #tpu.dot_dimension_numbers<[1], [0], [0], [1], [0, 0, 1, 1], [], []>} : vector<2x128xf32>, vector<128x8xf32>, vector<2x8xf32> -> vector<2x8xf32>
    %cst_234 = arith.constant 5.000000e-01 : f32
    %791 = vector.broadcast %cst_234 : f32 to vector<2x8xf32>
    %792 = arith.cmpf ogt, %5, %791 : vector<2x8xf32>
    %793 = vector.broadcast %cst : f32 to vector<2x8xf32>
    %794 = arith.select %792, %790, %793 : vector<2x8xi1>, vector<2x8xf32>
    %cst_235 = arith.constant dense<0xFF800000> : vector<2xf32>
    %795 = vector.multi_reduction <maximumf>, %794, %cst_235 [1] : vector<2x8xf32> to vector<2xf32>
    %796 = vector.shape_cast %795 : vector<2xf32> to vector<2x1xf32>
    %797 = vector.broadcast %796 : vector<2x1xf32> to vector<2x8xf32>
    %798 = arith.subf %794, %797 : vector<2x8xf32>
    %799 = math.exp %798 : vector<2x8xf32>
    %cst_236 = arith.constant dense<0.000000e+00> : vector<2xf32>
    %800 = vector.multi_reduction <add>, %799, %cst_236 [1] : vector<2x8xf32> to vector<2xf32>
    %801 = vector.shape_cast %800 : vector<2xf32> to vector<2x1xf32>
    %802 = tpu.reciprocal %801 {approx = true} : vector<2x1xf32> -> vector<2x1xf32>
    %803 = vector.broadcast %802 : vector<2x1xf32> to vector<2x8xf32>
    %804 = arith.mulf %799, %803 : vector<2x8xf32>
    %805 = vector.shape_cast %804 : vector<2x8xf32> to vector<2x8x1xf32>
    %806 = vector.broadcast %805 : vector<2x8x1xf32> to vector<2x8x32xf32>
    %807 = arith.mulf %806, %3 : vector<2x8x32xf32>
    %cst_237 = arith.constant dense<0.000000e+00> : vector<2x32xf32>
    %808 = vector.multi_reduction <add>, %807, %cst_237 [1] : vector<2x8x32xf32> to vector<2x32xf32>
    %809 = arith.addf %706, %804 : vector<2x8xf32>
    %810 = tpu.concatenate %783, %808, %735 in 1 : vector<2x32xf32>, vector<2x32xf32>, vector<2x32xf32> -> vector<2x96xf32>
    %cst_238 = arith.constant dense<0.000000e+00> : vector<2x128xf32>
    %811 = tpu.matmul %810, %13, %cst_238 {dimension_numbers = #tpu.dot_dimension_numbers<[1], [0], [0], [1], [0, 0, 1, 1], [], []>} : vector<2x96xf32>, vector<96x128xf32>, vector<2x128xf32> -> vector<2x128xf32>
    %812 = vector.broadcast %14 : vector<1x128xf32> to vector<2x128xf32>
    %813 = arith.addf %811, %812 : vector<2x128xf32>
    %814 = vector.extract_strided_slice %813 {offsets = [0, 0], sizes = [2, 32], strides = [1, 1]} : vector<2x128xf32> to vector<2x32xf32>
    %815 = arith.negf %814 : vector<2x32xf32>
    %816 = math.exp %815 : vector<2x32xf32>
    %cst_239 = arith.constant 1.000000e+00 : f32
    %817 = vector.broadcast %cst_239 : f32 to vector<2x32xf32>
    %818 = arith.addf %817, %816 : vector<2x32xf32>
    %819 = arith.divf %817, %818 : vector<2x32xf32>
    %820 = vector.extract_strided_slice %813 {offsets = [0, 32], sizes = [2, 32], strides = [1, 1]} : vector<2x128xf32> to vector<2x32xf32>
    %821 = arith.negf %820 : vector<2x32xf32>
    %822 = math.exp %821 : vector<2x32xf32>
    %cst_240 = arith.constant 1.000000e+00 : f32
    %823 = vector.broadcast %cst_240 : f32 to vector<2x32xf32>
    %824 = arith.addf %823, %822 : vector<2x32xf32>
    %825 = arith.divf %823, %824 : vector<2x32xf32>
    %826 = vector.extract_strided_slice %813 {offsets = [0, 64], sizes = [2, 32], strides = [1, 1]} : vector<2x128xf32> to vector<2x32xf32>
    %827 = math.tanh %826 : vector<2x32xf32>
    %828 = vector.extract_strided_slice %813 {offsets = [0, 96], sizes = [2, 32], strides = [1, 1]} : vector<2x128xf32> to vector<2x32xf32>
    %829 = arith.negf %828 : vector<2x32xf32>
    %830 = math.exp %829 : vector<2x32xf32>
    %cst_241 = arith.constant 1.000000e+00 : f32
    %831 = vector.broadcast %cst_241 : f32 to vector<2x32xf32>
    %832 = arith.addf %831, %830 : vector<2x32xf32>
    %833 = arith.divf %831, %832 : vector<2x32xf32>
    %834 = arith.mulf %825, %733 : vector<2x32xf32>
    %835 = arith.mulf %819, %827 : vector<2x32xf32>
    %836 = arith.addf %834, %835 : vector<2x32xf32>
    %837 = math.tanh %836 : vector<2x32xf32>
    %838 = arith.mulf %833, %837 : vector<2x32xf32>
    %839 = tpu.concatenate %838, %808 in 1 : vector<2x32xf32>, vector<2x32xf32> -> vector<2x64xf32>
    %cst_242 = arith.constant dense<0.000000e+00> : vector<2x128xf32>
    %840 = tpu.matmul %839, %15, %cst_242 {dimension_numbers = #tpu.dot_dimension_numbers<[1], [0], [0], [1], [0, 0, 1, 1], [], []>} : vector<2x64xf32>, vector<64x128xf32>, vector<2x128xf32> -> vector<2x128xf32>
    %841 = vector.broadcast %16 : vector<1x128xf32> to vector<2x128xf32>
    %842 = arith.addf %840, %841 : vector<2x128xf32>
    %cst_243 = arith.constant dense<0.000000e+00> : vector<2x128xf32>
    %843 = tpu.matmul %804, %17, %cst_243 {dimension_numbers = #tpu.dot_dimension_numbers<[1], [0], [0], [1], [0, 0, 1, 1], [], []>} : vector<2x8xf32>, vector<8x128xf32>, vector<2x128xf32> -> vector<2x128xf32>
    %844 = arith.addf %842, %843 : vector<2x128xf32>
    %845 = arith.index_cast %c7_i32 : i32 to index
    %c0_244 = arith.constant 0 : index
    %c0_245 = arith.constant 0 : index
    %846 = vector.load %arg17[%845, %c0_244, %c0_245] : memref<8x2x128xf32, #tpu.memory_space<vmem>>, vector<1x2x128xf32>
    %847 = vector.shape_cast %846 : vector<1x2x128xf32> to vector<2x128xf32>
    %848 = vector.shape_cast %844 : vector<2x128xf32> to vector<1x2x128xf32>
    tpu.vector_store %arg17[%845, %c0_244, %c0_245], %848 {strides = array<i32>} : memref<8x2x128xf32, #tpu.memory_space<vmem>>, vector<1x2x128xf32>,
    %c8_i32 = arith.constant 8 : i32
    %c0_246 = arith.constant 0 : index
    %c0_247 = arith.constant 0 : index
    %849 = vector.load %arg18[%c0_246, %c0_247] : memref<2x32xf32, #tpu.memory_space<vmem>>, vector<2x32xf32>
    tpu.vector_store %arg18[%c0_246, %c0_247], %783 {strides = array<i32>} : memref<2x32xf32, #tpu.memory_space<vmem>>, vector<2x32xf32>,
    %c0_248 = arith.constant 0 : index
    %c0_249 = arith.constant 0 : index
    %850 = vector.load %arg19[%c0_248, %c0_249] : memref<2x32xf32, #tpu.memory_space<vmem>>, vector<2x32xf32>
    tpu.vector_store %arg19[%c0_248, %c0_249], %781 {strides = array<i32>} : memref<2x32xf32, #tpu.memory_space<vmem>>, vector<2x32xf32>,
    %c0_250 = arith.constant 0 : index
    %c0_251 = arith.constant 0 : index
    %851 = vector.load %arg20[%c0_250, %c0_251] : memref<2x32xf32, #tpu.memory_space<vmem>>, vector<2x32xf32>
    tpu.vector_store %arg20[%c0_250, %c0_251], %838 {strides = array<i32>} : memref<2x32xf32, #tpu.memory_space<vmem>>, vector<2x32xf32>,
    %c0_252 = arith.constant 0 : index
    %c0_253 = arith.constant 0 : index
    %852 = vector.load %arg21[%c0_252, %c0_253] : memref<2x32xf32, #tpu.memory_space<vmem>>, vector<2x32xf32>
    tpu.vector_store %arg21[%c0_252, %c0_253], %836 {strides = array<i32>} : memref<2x32xf32, #tpu.memory_space<vmem>>, vector<2x32xf32>,
    %c0_254 = arith.constant 0 : index
    %c0_255 = arith.constant 0 : index
    %853 = vector.load %arg22[%c0_254, %c0_255] : memref<2x8xf32, #tpu.memory_space<vmem>>, vector<2x8xf32>
    tpu.vector_store %arg22[%c0_254, %c0_255], %804 {strides = array<i32>} : memref<2x8xf32, #tpu.memory_space<vmem>>, vector<2x8xf32>,
    %c0_256 = arith.constant 0 : index
    %c0_257 = arith.constant 0 : index
    %854 = vector.load %arg23[%c0_256, %c0_257] : memref<2x8xf32, #tpu.memory_space<vmem>>, vector<2x8xf32>
    tpu.vector_store %arg23[%c0_256, %c0_257], %809 {strides = array<i32>} : memref<2x8xf32, #tpu.memory_space<vmem>>, vector<2x8xf32>,
    %c0_258 = arith.constant 0 : index
    %c0_259 = arith.constant 0 : index
    %855 = vector.load %arg24[%c0_258, %c0_259] : memref<2x32xf32, #tpu.memory_space<vmem>>, vector<2x32xf32>
    tpu.vector_store %arg24[%c0_258, %c0_259], %808 {strides = array<i32>} : memref<2x32xf32, #tpu.memory_space<vmem>>, vector<2x32xf32>,
    return
  }
  func.func @transform_0(%arg0: i32) -> (i32, i32, i32) {
    %c0_i32 = arith.constant 0 : i32
    %c0_i32_0 = arith.constant 0 : i32
    %c0_i32_1 = arith.constant 0 : i32
    return %arg0, %c0_i32, %c0_i32_0 : i32, i32, i32
  }
  func.func @transform_1(%arg0: i32) -> (i32, i32, i32) {
    %c0_i32 = arith.constant 0 : i32
    %c0_i32_0 = arith.constant 0 : i32
    %c0_i32_1 = arith.constant 0 : i32
    %c0_i32_2 = arith.constant 0 : i32
    return %c0_i32, %c0_i32_0, %c0_i32_1 : i32, i32, i32
  }
  func.func @transform_2(%arg0: i32) -> (i32, i32) {
    %c0_i32 = arith.constant 0 : i32
    %c0_i32_0 = arith.constant 0 : i32
    %c0_i32_1 = arith.constant 0 : i32
    return %c0_i32, %c0_i32_0 : i32, i32
  }
  func.func @transform_3(%arg0: i32) -> (i32, i32) {
    %c0_i32 = arith.constant 0 : i32
    %c0_i32_0 = arith.constant 0 : i32
    %c0_i32_1 = arith.constant 0 : i32
    return %c0_i32, %c0_i32_0 : i32, i32
  }
  func.func @transform_4(%arg0: i32) -> (i32, i32) {
    %c0_i32 = arith.constant 0 : i32
    %c0_i32_0 = arith.constant 0 : i32
    %c0_i32_1 = arith.constant 0 : i32
    return %c0_i32, %c0_i32_0 : i32, i32
  }
  func.func @transform_5(%arg0: i32) -> (i32, i32) {
    %c0_i32 = arith.constant 0 : i32
    %c0_i32_0 = arith.constant 0 : i32
    %c0_i32_1 = arith.constant 0 : i32
    return %c0_i32, %c0_i32_0 : i32, i32
  }
  func.func @transform_6(%arg0: i32) -> (i32, i32) {
    %c0_i32 = arith.constant 0 : i32
    %c0_i32_0 = arith.constant 0 : i32
    %c0_i32_1 = arith.constant 0 : i32
    return %c0_i32, %c0_i32_0 : i32, i32
  }
  func.func @transform_7(%arg0: i32) -> (i32, i32) {
    %c0_i32 = arith.constant 0 : i32
    %c0_i32_0 = arith.constant 0 : i32
    %c0_i32_1 = arith.constant 0 : i32
    return %c0_i32, %c0_i32_0 : i32, i32
  }
  func.func @transform_8(%arg0: i32) -> (i32, i32) {
    %c0_i32 = arith.constant 0 : i32
    %c0_i32_0 = arith.constant 0 : i32
    %c0_i32_1 = arith.constant 0 : i32
    return %c0_i32, %c0_i32_0 : i32, i32
  }
  func.func @transform_9(%arg0: i32) -> (i32, i32) {
    %c0_i32 = arith.constant 0 : i32
    %c0_i32_0 = arith.constant 0 : i32
    %c0_i32_1 = arith.constant 0 : i32
    return %c0_i32, %c0_i32_0 : i32, i32
  }
  func.func @transform_10(%arg0: i32) -> (i32, i32) {
    %c0_i32 = arith.constant 0 : i32
    %c0_i32_0 = arith.constant 0 : i32
    %c0_i32_1 = arith.constant 0 : i32
    return %c0_i32, %c0_i32_0 : i32, i32
  }
  func.func @transform_11(%arg0: i32) -> (i32, i32) {
    %c0_i32 = arith.constant 0 : i32
    %c0_i32_0 = arith.constant 0 : i32
    %c0_i32_1 = arith.constant 0 : i32
    return %c0_i32, %c0_i32_0 : i32, i32
  }
  func.func @transform_12(%arg0: i32) -> (i32, i32) {
    %c0_i32 = arith.constant 0 : i32
    %c0_i32_0 = arith.constant 0 : i32
    %c0_i32_1 = arith.constant 0 : i32
    return %c0_i32, %c0_i32_0 : i32, i32
  }
  func.func @transform_13(%arg0: i32) -> (i32, i32) {
    %c0_i32 = arith.constant 0 : i32
    %c0_i32_0 = arith.constant 0 : i32
    %c0_i32_1 = arith.constant 0 : i32
    return %c0_i32, %c0_i32_0 : i32, i32
  }
  func.func @transform_14(%arg0: i32) -> (i32, i32) {
    %c0_i32 = arith.constant 0 : i32
    %c0_i32_0 = arith.constant 0 : i32
    %c0_i32_1 = arith.constant 0 : i32
    return %c0_i32, %c0_i32_0 : i32, i32
  }
  func.func @transform_15(%arg0: i32) -> (i32, i32) {
    %c0_i32 = arith.constant 0 : i32
    %c0_i32_0 = arith.constant 0 : i32
    %c0_i32_1 = arith.constant 0 : i32
    return %c0_i32, %c0_i32_0 : i32, i32
  }
  func.func @transform_16(%arg0: i32) -> (i32, i32, i32) {
    %c0_i32 = arith.constant 0 : i32
    %c0_i32_0 = arith.constant 0 : i32
    %c0_i32_1 = arith.constant 0 : i32
    return %arg0, %c0_i32, %c0_i32_0 : i32, i32, i32
  }
}

module attributes {stable_mosaic.version = 11 : i64} {
  func.func @_conv1d_kernel(%arg0: i32, %arg1: memref<1x12x80xf32, #tpu.memory_space<vmem>>, %arg2: memref<5x80x32xf32, #tpu.memory_space<vmem>>, %arg3: memref<1x32xf32, #tpu.memory_space<vmem>>, %arg4: memref<1x8x32xf32, #tpu.memory_space<vmem>>) attributes {dimension_semantics = [#tpu.dimension_semantics<parallel>], iteration_bounds = array<i64: 2>, scalar_prefetch = 0 : i64, scratch_operands = 0 : i64, tpu.core_type = #tpu.core_type<tc>, window_params = [{transform_indices = @transform_0, window_bounds = array<i64: 1, 12, 80>}, {pipeline_mode = #tpu.pipeline_mode<synchronous>, transform_indices = @transform_1, window_bounds = array<i64: 5, 80, 32>}, {pipeline_mode = #tpu.pipeline_mode<synchronous>, transform_indices = @transform_2, window_bounds = array<i64: 1, 32>}, {transform_indices = @transform_3, window_bounds = array<i64: 1, 8, 32>}]} {
    %c0 = arith.constant 0 : index
    %c0_0 = arith.constant 0 : index
    %c0_1 = arith.constant 0 : index
    %0 = vector.load %arg1[%c0, %c0_0, %c0_1] : memref<1x12x80xf32, #tpu.memory_space<vmem>>, vector<1x12x80xf32>
    %1 = vector.shape_cast %0 : vector<1x12x80xf32> to vector<12x80xf32>
    %2 = vector.extract_strided_slice %1 {offsets = [0, 0], sizes = [8, 80], strides = [1, 1]} : vector<12x80xf32> to vector<8x80xf32>
    %c0_2 = arith.constant 0 : index
    %c0_3 = arith.constant 0 : index
    %c0_4 = arith.constant 0 : index
    %3 = vector.load %arg2[%c0_2, %c0_3, %c0_4] : memref<5x80x32xf32, #tpu.memory_space<vmem>>, vector<1x80x32xf32>
    %4 = vector.shape_cast %3 : vector<1x80x32xf32> to vector<80x32xf32>
    %cst = arith.constant dense<0.000000e+00> : vector<8x32xf32>
    %5 = tpu.matmul %2, %4, %cst {dimension_numbers = #tpu.dot_dimension_numbers<[1], [0], [0], [1], [0, 0, 1, 1], [], []>} : vector<8x80xf32>, vector<80x32xf32>, vector<8x32xf32> -> vector<8x32xf32>
    %6 = vector.extract_strided_slice %1 {offsets = [1, 0], sizes = [8, 80], strides = [1, 1]} : vector<12x80xf32> to vector<8x80xf32>
    %c1 = arith.constant 1 : index
    %c0_5 = arith.constant 0 : index
    %c0_6 = arith.constant 0 : index
    %7 = vector.load %arg2[%c1, %c0_5, %c0_6] : memref<5x80x32xf32, #tpu.memory_space<vmem>>, vector<1x80x32xf32>
    %8 = vector.shape_cast %7 : vector<1x80x32xf32> to vector<80x32xf32>
    %cst_7 = arith.constant dense<0.000000e+00> : vector<8x32xf32>
    %9 = tpu.matmul %6, %8, %cst_7 {dimension_numbers = #tpu.dot_dimension_numbers<[1], [0], [0], [1], [0, 0, 1, 1], [], []>} : vector<8x80xf32>, vector<80x32xf32>, vector<8x32xf32> -> vector<8x32xf32>
    %10 = arith.addf %5, %9 : vector<8x32xf32>
    %11 = vector.extract_strided_slice %1 {offsets = [2, 0], sizes = [8, 80], strides = [1, 1]} : vector<12x80xf32> to vector<8x80xf32>
    %c2 = arith.constant 2 : index
    %c0_8 = arith.constant 0 : index
    %c0_9 = arith.constant 0 : index
    %12 = vector.load %arg2[%c2, %c0_8, %c0_9] : memref<5x80x32xf32, #tpu.memory_space<vmem>>, vector<1x80x32xf32>
    %13 = vector.shape_cast %12 : vector<1x80x32xf32> to vector<80x32xf32>
    %cst_10 = arith.constant dense<0.000000e+00> : vector<8x32xf32>
    %14 = tpu.matmul %11, %13, %cst_10 {dimension_numbers = #tpu.dot_dimension_numbers<[1], [0], [0], [1], [0, 0, 1, 1], [], []>} : vector<8x80xf32>, vector<80x32xf32>, vector<8x32xf32> -> vector<8x32xf32>
    %15 = arith.addf %10, %14 : vector<8x32xf32>
    %16 = vector.extract_strided_slice %1 {offsets = [3, 0], sizes = [8, 80], strides = [1, 1]} : vector<12x80xf32> to vector<8x80xf32>
    %c3 = arith.constant 3 : index
    %c0_11 = arith.constant 0 : index
    %c0_12 = arith.constant 0 : index
    %17 = vector.load %arg2[%c3, %c0_11, %c0_12] : memref<5x80x32xf32, #tpu.memory_space<vmem>>, vector<1x80x32xf32>
    %18 = vector.shape_cast %17 : vector<1x80x32xf32> to vector<80x32xf32>
    %cst_13 = arith.constant dense<0.000000e+00> : vector<8x32xf32>
    %19 = tpu.matmul %16, %18, %cst_13 {dimension_numbers = #tpu.dot_dimension_numbers<[1], [0], [0], [1], [0, 0, 1, 1], [], []>} : vector<8x80xf32>, vector<80x32xf32>, vector<8x32xf32> -> vector<8x32xf32>
    %20 = arith.addf %15, %19 : vector<8x32xf32>
    %21 = vector.extract_strided_slice %1 {offsets = [4, 0], sizes = [8, 80], strides = [1, 1]} : vector<12x80xf32> to vector<8x80xf32>
    %c4 = arith.constant 4 : index
    %c0_14 = arith.constant 0 : index
    %c0_15 = arith.constant 0 : index
    %22 = vector.load %arg2[%c4, %c0_14, %c0_15] : memref<5x80x32xf32, #tpu.memory_space<vmem>>, vector<1x80x32xf32>
    %23 = vector.shape_cast %22 : vector<1x80x32xf32> to vector<80x32xf32>
    %cst_16 = arith.constant dense<0.000000e+00> : vector<8x32xf32>
    %24 = tpu.matmul %21, %23, %cst_16 {dimension_numbers = #tpu.dot_dimension_numbers<[1], [0], [0], [1], [0, 0, 1, 1], [], []>} : vector<8x80xf32>, vector<80x32xf32>, vector<8x32xf32> -> vector<8x32xf32>
    %25 = arith.addf %20, %24 : vector<8x32xf32>
    %c0_17 = arith.constant 0 : index
    %c0_18 = arith.constant 0 : index
    %26 = vector.load %arg3[%c0_17, %c0_18] : memref<1x32xf32, #tpu.memory_space<vmem>>, vector<1x32xf32>
    %27 = vector.broadcast %26 : vector<1x32xf32> to vector<8x32xf32>
    %28 = arith.addf %25, %27 : vector<8x32xf32>
    %c0_19 = arith.constant 0 : index
    %c0_20 = arith.constant 0 : index
    %c0_21 = arith.constant 0 : index
    %29 = vector.load %arg4[%c0_19, %c0_20, %c0_21] : memref<1x8x32xf32, #tpu.memory_space<vmem>>, vector<1x8x32xf32>
    %30 = vector.shape_cast %29 : vector<1x8x32xf32> to vector<8x32xf32>
    %31 = vector.shape_cast %28 : vector<8x32xf32> to vector<1x8x32xf32>
    tpu.vector_store %arg4[%c0_19, %c0_20, %c0_21], %31 {strides = array<i32>} : memref<1x8x32xf32, #tpu.memory_space<vmem>>, vector<1x8x32xf32>,
    return
  }
  func.func @transform_0(%arg0: i32) -> (i32, i32, i32) {
    %c0_i32 = arith.constant 0 : i32
    %c0_i32_0 = arith.constant 0 : i32
    %c0_i32_1 = arith.constant 0 : i32
    return %arg0, %c0_i32, %c0_i32_0 : i32, i32, i32
  }
  func.func @transform_1(%arg0: i32) -> (i32, i32, i32) {
    %c0_i32 = arith.constant 0 : i32
    %c0_i32_0 = arith.constant 0 : i32
    %c0_i32_1 = arith.constant 0 : i32
    %c0_i32_2 = arith.constant 0 : i32
    return %c0_i32, %c0_i32_0, %c0_i32_1 : i32, i32, i32
  }
  func.func @transform_2(%arg0: i32) -> (i32, i32) {
    %c0_i32 = arith.constant 0 : i32
    %c0_i32_0 = arith.constant 0 : i32
    %c0_i32_1 = arith.constant 0 : i32
    return %c0_i32, %c0_i32_0 : i32, i32
  }
  func.func @transform_3(%arg0: i32) -> (i32, i32, i32) {
    %c0_i32 = arith.constant 0 : i32
    %c0_i32_0 = arith.constant 0 : i32
    %c0_i32_1 = arith.constant 0 : i32
    return %arg0, %c0_i32, %c0_i32_0 : i32, i32, i32
  }
}

module attributes {stable_mosaic.version = 11 : i64} {
  func.func @_conv1d_kernel(%arg0: i32, %arg1: memref<1x12x32xf32, #tpu.memory_space<vmem>>, %arg2: memref<5x32x80xf32, #tpu.memory_space<vmem>>, %arg3: memref<1x80xf32, #tpu.memory_space<vmem>>, %arg4: memref<1x8x80xf32, #tpu.memory_space<vmem>>) attributes {dimension_semantics = [#tpu.dimension_semantics<parallel>], iteration_bounds = array<i64: 2>, scalar_prefetch = 0 : i64, scratch_operands = 0 : i64, tpu.core_type = #tpu.core_type<tc>, window_params = [{transform_indices = @transform_0, window_bounds = array<i64: 1, 12, 32>}, {pipeline_mode = #tpu.pipeline_mode<synchronous>, transform_indices = @transform_1, window_bounds = array<i64: 5, 32, 80>}, {pipeline_mode = #tpu.pipeline_mode<synchronous>, transform_indices = @transform_2, window_bounds = array<i64: 1, 80>}, {transform_indices = @transform_3, window_bounds = array<i64: 1, 8, 80>}]} {
    %c0 = arith.constant 0 : index
    %c0_0 = arith.constant 0 : index
    %c0_1 = arith.constant 0 : index
    %0 = vector.load %arg1[%c0, %c0_0, %c0_1] : memref<1x12x32xf32, #tpu.memory_space<vmem>>, vector<1x12x32xf32>
    %1 = vector.shape_cast %0 : vector<1x12x32xf32> to vector<12x32xf32>
    %2 = vector.extract_strided_slice %1 {offsets = [0, 0], sizes = [8, 32], strides = [1, 1]} : vector<12x32xf32> to vector<8x32xf32>
    %c0_2 = arith.constant 0 : index
    %c0_3 = arith.constant 0 : index
    %c0_4 = arith.constant 0 : index
    %3 = vector.load %arg2[%c0_2, %c0_3, %c0_4] : memref<5x32x80xf32, #tpu.memory_space<vmem>>, vector<1x32x80xf32>
    %4 = vector.shape_cast %3 : vector<1x32x80xf32> to vector<32x80xf32>
    %cst = arith.constant dense<0.000000e+00> : vector<8x80xf32>
    %5 = tpu.matmul %2, %4, %cst {dimension_numbers = #tpu.dot_dimension_numbers<[1], [0], [0], [1], [0, 0, 1, 1], [], []>} : vector<8x32xf32>, vector<32x80xf32>, vector<8x80xf32> -> vector<8x80xf32>
    %6 = vector.extract_strided_slice %1 {offsets = [1, 0], sizes = [8, 32], strides = [1, 1]} : vector<12x32xf32> to vector<8x32xf32>
    %c1 = arith.constant 1 : index
    %c0_5 = arith.constant 0 : index
    %c0_6 = arith.constant 0 : index
    %7 = vector.load %arg2[%c1, %c0_5, %c0_6] : memref<5x32x80xf32, #tpu.memory_space<vmem>>, vector<1x32x80xf32>
    %8 = vector.shape_cast %7 : vector<1x32x80xf32> to vector<32x80xf32>
    %cst_7 = arith.constant dense<0.000000e+00> : vector<8x80xf32>
    %9 = tpu.matmul %6, %8, %cst_7 {dimension_numbers = #tpu.dot_dimension_numbers<[1], [0], [0], [1], [0, 0, 1, 1], [], []>} : vector<8x32xf32>, vector<32x80xf32>, vector<8x80xf32> -> vector<8x80xf32>
    %10 = arith.addf %5, %9 : vector<8x80xf32>
    %11 = vector.extract_strided_slice %1 {offsets = [2, 0], sizes = [8, 32], strides = [1, 1]} : vector<12x32xf32> to vector<8x32xf32>
    %c2 = arith.constant 2 : index
    %c0_8 = arith.constant 0 : index
    %c0_9 = arith.constant 0 : index
    %12 = vector.load %arg2[%c2, %c0_8, %c0_9] : memref<5x32x80xf32, #tpu.memory_space<vmem>>, vector<1x32x80xf32>
    %13 = vector.shape_cast %12 : vector<1x32x80xf32> to vector<32x80xf32>
    %cst_10 = arith.constant dense<0.000000e+00> : vector<8x80xf32>
    %14 = tpu.matmul %11, %13, %cst_10 {dimension_numbers = #tpu.dot_dimension_numbers<[1], [0], [0], [1], [0, 0, 1, 1], [], []>} : vector<8x32xf32>, vector<32x80xf32>, vector<8x80xf32> -> vector<8x80xf32>
    %15 = arith.addf %10, %14 : vector<8x80xf32>
    %16 = vector.extract_strided_slice %1 {offsets = [3, 0], sizes = [8, 32], strides = [1, 1]} : vector<12x32xf32> to vector<8x32xf32>
    %c3 = arith.constant 3 : index
    %c0_11 = arith.constant 0 : index
    %c0_12 = arith.constant 0 : index
    %17 = vector.load %arg2[%c3, %c0_11, %c0_12] : memref<5x32x80xf32, #tpu.memory_space<vmem>>, vector<1x32x80xf32>
    %18 = vector.shape_cast %17 : vector<1x32x80xf32> to vector<32x80xf32>
    %cst_13 = arith.constant dense<0.000000e+00> : vector<8x80xf32>
    %19 = tpu.matmul %16, %18, %cst_13 {dimension_numbers = #tpu.dot_dimension_numbers<[1], [0], [0], [1], [0, 0, 1, 1], [], []>} : vector<8x32xf32>, vector<32x80xf32>, vector<8x80xf32> -> vector<8x80xf32>
    %20 = arith.addf %15, %19 : vector<8x80xf32>
    %21 = vector.extract_strided_slice %1 {offsets = [4, 0], sizes = [8, 32], strides = [1, 1]} : vector<12x32xf32> to vector<8x32xf32>
    %c4 = arith.constant 4 : index
    %c0_14 = arith.constant 0 : index
    %c0_15 = arith.constant 0 : index
    %22 = vector.load %arg2[%c4, %c0_14, %c0_15] : memref<5x32x80xf32, #tpu.memory_space<vmem>>, vector<1x32x80xf32>
    %23 = vector.shape_cast %22 : vector<1x32x80xf32> to vector<32x80xf32>
    %cst_16 = arith.constant dense<0.000000e+00> : vector<8x80xf32>
    %24 = tpu.matmul %21, %23, %cst_16 {dimension_numbers = #tpu.dot_dimension_numbers<[1], [0], [0], [1], [0, 0, 1, 1], [], []>} : vector<8x32xf32>, vector<32x80xf32>, vector<8x80xf32> -> vector<8x80xf32>
    %25 = arith.addf %20, %24 : vector<8x80xf32>
    %c0_17 = arith.constant 0 : index
    %c0_18 = arith.constant 0 : index
    %26 = vector.load %arg3[%c0_17, %c0_18] : memref<1x80xf32, #tpu.memory_space<vmem>>, vector<1x80xf32>
    %27 = vector.broadcast %26 : vector<1x80xf32> to vector<8x80xf32>
    %28 = arith.addf %25, %27 : vector<8x80xf32>
    %c0_19 = arith.constant 0 : index
    %c0_20 = arith.constant 0 : index
    %c0_21 = arith.constant 0 : index
    %29 = vector.load %arg4[%c0_19, %c0_20, %c0_21] : memref<1x8x80xf32, #tpu.memory_space<vmem>>, vector<1x8x80xf32>
    %30 = vector.shape_cast %29 : vector<1x8x80xf32> to vector<8x80xf32>
    %31 = vector.shape_cast %28 : vector<8x80xf32> to vector<1x8x80xf32>
    tpu.vector_store %arg4[%c0_19, %c0_20, %c0_21], %31 {strides = array<i32>} : memref<1x8x80xf32, #tpu.memory_space<vmem>>, vector<1x8x80xf32>,
    return
  }
  func.func @transform_0(%arg0: i32) -> (i32, i32, i32) {
    %c0_i32 = arith.constant 0 : i32
    %c0_i32_0 = arith.constant 0 : i32
    %c0_i32_1 = arith.constant 0 : i32
    return %arg0, %c0_i32, %c0_i32_0 : i32, i32, i32
  }
  func.func @transform_1(%arg0: i32) -> (i32, i32, i32) {
    %c0_i32 = arith.constant 0 : i32
    %c0_i32_0 = arith.constant 0 : i32
    %c0_i32_1 = arith.constant 0 : i32
    %c0_i32_2 = arith.constant 0 : i32
    return %c0_i32, %c0_i32_0, %c0_i32_1 : i32, i32, i32
  }
  func.func @transform_2(%arg0: i32) -> (i32, i32) {
    %c0_i32 = arith.constant 0 : i32
    %c0_i32_0 = arith.constant 0 : i32
    %c0_i32_1 = arith.constant 0 : i32
    return %c0_i32, %c0_i32_0 : i32, i32
  }
  func.func @transform_3(%arg0: i32) -> (i32, i32, i32) {
    %c0_i32 = arith.constant 0 : i32
    %c0_i32_0 = arith.constant 0 : i32
    %c0_i32_1 = arith.constant 0 : i32
    return %arg0, %c0_i32, %c0_i32_0 : i32, i32, i32
  }
}

</mosaic_0001>

<bundles_post_ra>
// kernel: squeeze.7
= control target key start
LH: loop header
LB: loop body
LE: loop exit
PB: predicated region body
PF: predicated region fallthrough
CT: control target
= control target key end

     0   :  { %vm4_vm0 = vcmask 1047556   ;;  %s99_s14 = smov 112   ;;  %s100_s19 = smov 80   ;;  %vm6_vm1 = vcmask 130048   ;;  %vm16_vm2 = vcmask 1048448   ;;  %vm26_vm3 = vcmask 917248   ;;  %s196_s0 = inlined_call_operand.vmem [shape: f32[1,8,8,16], index: 0, kind: input, shape index: {}]   ;;  %s197_s1 = inlined_call_operand.vmem [shape: f32[8,128], index: 1, kind: output, shape index: {}]  }
   0x1   :  { %v78_v0 = vld [vmem:[%s196_s0 + $0x7] ss:$8 sm:$0xf]   ;;  %v82_v3 = vld [vmem:[%s196_s0 + $0x5] ss:$8 sm:$0xf]  }
   0x2   :  { %v79_v1 = vld [vmem:[%s196_s0 + $0x7] ss:$8 sm:$0xf0]   ;;  %v83_v4 = vld [vmem:[%s196_s0 + $0x5] ss:$8 sm:$0xf0]  }
   0x3   :  { %v13_v2 = vsel %vm4_vm0, %v79_v1, %v78_v0  ;;  %v33_v5 = vsel %vm4_vm0, %v83_v4, %v82_v3  ;;  %v80_v6 = vld [vmem:[%s196_s0 + $0x6] ss:$8 sm:$0xf]   ;;  %v84_v9 = vld [vmem:[%s196_s0 + $0x4] ss:$8 sm:$0xf]  }
   0x4   :  { %14 = vrot.lane.b32.xlu0 %v13_v2, %s99_s14  ;;  %v81_v7 = vld [vmem:[%s196_s0 + $0x6] ss:$8 sm:$0xf0]   ;;  %34 = vrot.lane.b32.xlu1 %v33_v5, %s100_s19  ;;  %v85_v10 = vld [vmem:[%s196_s0 + $0x4] ss:$8 sm:$0xf0]  }
   0x5   :  { %v23_v8 = vsel %vm4_vm0, %v81_v7, %v80_v6  ;;  %v86_v11 = vld [vmem:[%s196_s0 + $0x3] ss:$8 sm:$0xf]   ;;  %v43_v12 = vsel %vm4_vm0, %v85_v10, %v84_v9  ;;  %s101_s28 = smov 96   ;;  %s102_s4 = smov 64   ;;  %vm36_vm4 = vcmask 786048  }
   0x6   :  { %v87_v13 = vld [vmem:[%s196_s0 + $0x3] ss:$8 sm:$0xf0]   ;;  %v88_v14 = vld [vmem:[%s196_s0 + $0x2] ss:$8 sm:$0xf]  }
   0x7   :  { %v89_v15 = vld [vmem:[%s196_s0 + $0x2] ss:$8 sm:$0xf0]   ;;  %v53_v16 = vsel %vm4_vm0, %v87_v13, %v86_v11  ;;  %v90_v17 = vld [vmem:[%s196_s0 + $0x1] ss:$8 sm:$0xf]  }
   0x8   :  { %24 = vrot.lane.b32.xlu0 %v23_v8, %s101_s28  ;;  %44 = vrot.lane.b32.xlu1 %v43_v12, %s102_s4  ;;  %v63_v18 = vsel %vm4_vm0, %v89_v15, %v88_v14  ;;  %v91_v19 = vld [vmem:[%s196_s0 + $0x1] ss:$8 sm:$0xf0]   ;;  %v2_v20 = vld [vmem:[%s196_s0] ss:$8 sm:$0xf]  }
   0x9   :  { %v3_v21 = vld [vmem:[%s196_s0] ss:$8 sm:$0xf0]   ;;  %s103_s0 = smov 48   ;;  %s104_s13 = smov 32   ;;  %v73_v23 = vsel %vm4_vm0, %v91_v19, %v90_v17  ;;  %vm46_vm5 = vcmask 654848  }
   0xa   :  { %v5_v22 = vsel %vm4_vm0, %v3_v21, %v2_v20  ;;  %s105_s16 = smov 16   ;;  %vm56_vm6 = vcmask 523648   ;;  %vm66_vm7 = vcmask 392448   ;;  %vm76_vm8 = vcmask 261248  }
   0xb   :  { %7 = vst.msk [vmem:[%s197_s1] sm:$0xff] %vm6_vm1, %v5_v22  }
   0xc   :  { %54 = vrot.lane.b32.xlu0 %v53_v16, %s103_s0  ;;  %64 = vrot.lane.b32.xlu1 %v63_v18, %s104_s13 }
  0x10   :  { %74 = vrot.lane.b32.xlu0 %v73_v23, %s105_s16 }
  0x76   :  { %v15_v24 = vpop.permute.xlu0 %14   ;;  %v35_v25 = vpop.permute.xlu1 %34  }
  0x77   :  { %17 = vst.msk [vmem:[%s197_s1] sm:$0xff] %vm16_vm2, %v15_v24  }
  0x7a   :  { %v25_v26 = vpop.permute.xlu0 %24   ;;  %v45_v27 = vpop.permute.xlu1 %44  }
  0x7b   :  { %27 = vst.msk [vmem:[%s197_s1] sm:$0xff] %vm26_vm3, %v25_v26  }
  0x7c   :  { %37 = vst.msk [vmem:[%s197_s1] sm:$0xff] %vm36_vm4, %v35_v25  }
  0x7d   :  { %47 = vst.msk [vmem:[%s197_s1] sm:$0xff] %vm46_vm5, %v45_v27  }
  0x7e   :  { %v55_v28 = vpop.permute.xlu0 %54   ;;  %v65_v29 = vpop.permute.xlu1 %64  }
  0x7f   :  { %57 = vst.msk [vmem:[%s197_s1] sm:$0xff] %vm56_vm6, %v55_v28  }
  0x80   :  { %67 = vst.msk [vmem:[%s197_s1] sm:$0xff] %vm66_vm7, %v65_v29  }
  0x82   :  { %v75_v30 = vpop.permute.xlu0 %74  }
  0x83   :  { %77 = vst.msk [vmem:[%s197_s1] sm:$0xff] %vm76_vm8, %v75_v30  }

// kernel: my_model_forward.10
= control target key start
LH: loop header
LB: loop body
LE: loop exit
PB: predicated region body
PF: predicated region fallthrough
CT: control target
= control target key end

     0   :  { %s824_s12 = smov 0   ;;  %s934_s0 = inlined_call_operand.vmem [shape: f32[2,12,32], index: 0, kind: input, shape index: {}]   ;;  %s935_s1 = inlined_call_operand.vmem [shape: f32[5,32,32], index: 1, kind: input, shape index: {}]   ;;  %s936_s2 = inlined_call_operand.vmem [shape: f32[1,32], index: 2, kind: input, shape index: {}]   ;;  %s937_s3 = inlined_call_operand.vmem [shape: f32[2,8,32], index: 3, kind: output, shape index: {}]  }
   0x1 LB: > { %s639_s13 = sadd.s32 4294967295, %s799_s12   ;;  %p643_p0 = scmp.ge.s32.totalorder %s799_s12, 1  ;;  %s799_s12 = sphi %s824_s12, %s13_s12  }
   0x2   : > { %p137_p1 = scmp.lt.s32.totalorder %s799_s12, 3 }
   0x4   : > { %p138_p2 = pnand %p643_p0, %p137_p1 }
   0x5   : > { %v647_v0 = vld [vmem:[%s935_s1 + $0x20] sm:$0xff] (!%p138_p2)  ;;  %v648_v1 = vld [vmem:[%s935_s1 + $0x28] sm:$0xff] (!%p138_p2)  ;;  %v801_v3 = vmov (!%p138_p2), 0.0|0.0   ;;  %v649_v6 = vld [vmem:[%s935_s1 + $0x30] sm:$0xff] (!%p138_p2)  ;;  %p160_p3 = scmp.lt.s32.totalorder (!%p138_p2), %s639_s13, 1  ;;  %vm802_vm0 = vmmov (!%p138_p2), 0  }
   0x6   : > { %141 = sbr.rel (%p138_p2) target bundleno = 253 (0xfd), region = 32  ;;  %v171_v2 = vld [vmem:[%s935_s1] sm:$0xff] (!%p138_p2)  ;;  %752 = vmatprep.subr.bf16.mxu0 (!%p138_p2), %v801_v3  ;;  %v753_v4 = vpack.c.bf16 (!%p138_p2), %v648_v1, %v647_v0  ;;  %758 = vmatprep.subr.bf16.mxu1 (!%p138_p2), %v801_v3  ;;  %v172_v5 = vld [vmem:[%s935_s1 + $0x8] sm:$0xff] (!%p138_p2)  ;;  %v650_v7 = vld [vmem:[%s935_s1 + $0x38] sm:$0xff] (!%p138_p2)  ;;  %v803_v11 = vmov (!%p138_p2), 0.0   ;;  %vm182_vm1 = vcmask (!%p138_p2), 1046528  }
   0x7   : > { %v759_v8 = vpack.c.bf16 (!%p138_p2), %v172_v5, %v171_v2  ;;  %v173_v9 = vld [vmem:[%s935_s1 + $0x10] sm:$0xff] (!%p138_p2)  ;;  %v174_v10 = vld [vmem:[%s935_s1 + $0x18] sm:$0xff] (!%p138_p2)  ;;  %705 = vmatprep.mubr.msk.f32.mxu0 (!%p138_p2), %vm802_vm0, %v803_v11  ;;  %716 = vmatprep.mubr.msk.f32.mxu1 (!%p138_p2), %vm802_vm0, %v803_v11  ;;  %v756_v12 = vpack.c.bf16 (!%p138_p2), %v650_v7, %v649_v6  ;;  %v653_v14 = vld [vmem:[%s935_s1 + $0x40] sm:$0xff] (!%p138_p2)  ;;  %vm186_vm2 = vcmask (!%p138_p2), 261120   ;;  %vm336_vm3 = vcmask (!%p138_p2), 1045504  }
   0x8   : > { %754 = vmatpush3.bf16.msra.mxu0 (!%p138_p2), %v753_v4  ;;  %v762_v13 = vpack.c.bf16 (!%p138_p2), %v174_v10, %v173_v9  ;;  %v654_v15 = vld [vmem:[%s935_s1 + $0x48] sm:$0xff] (!%p138_p2)  ;;  %v658_v16 = vld [vmem:[%s935_s1 + $0x60] sm:$0xff] (!%p138_p2)  ;;  %v655_v20 = vld [vmem:[%s935_s1 + $0x50] sm:$0xff] (!%p138_p2)  ;;  %vm418_vm4 = vcmask (!%p138_p2), 1044480   ;;  %vm500_vm5 = vcmask (!%p138_p2), 1043456  }
   0x9   : > { %760 = vmatpush3.bf16.msra.mxu1 (!%p138_p2), %v759_v8  ;;  %755 = vmatprep.subr.bf16.mxu0 (!%p138_p2), %v801_v3  ;;  %v659_v17 = vld [vmem:[%s935_s1 + $0x68] sm:$0xff] (!%p138_p2)  ;;  %v765_v23 = vpack.c.bf16 (!%p138_p2), %v654_v15, %v653_v14  ;;  %v656_v25 = vld [vmem:[%s935_s1 + $0x58] sm:$0xff] (!%p138_p2)  ;;  %v660_v26 = vld [vmem:[%s935_s1 + $0x70] sm:$0xff] (!%p138_p2) }
   0xa   : > { %761 = vmatprep.subr.bf16.mxu1 (!%p138_p2), %v801_v3  ;;  %v771_v24 = vpack.c.bf16 (!%p138_p2), %v659_v17, %v658_v16  ;;  %v661_v27 = vld [vmem:[%s935_s1 + $0x78] sm:$0xff] (!%p138_p2)  ;;  %v768_v29 = vpack.c.bf16 (!%p138_p2), %v656_v25, %v655_v20  ;;  %v663_v35 = vld [vmem:[%s935_s1 + $0x80] sm:$0xff] (!%p138_p2)  ;;  %v664_v36 = vld [vmem:[%s935_s1 + $0x88] sm:$0xff] (!%p138_p2) }
   0xb   : > { %v774_v30 = vpack.c.bf16 (!%p138_p2), %v661_v27, %v660_v26  ;;  %v777_v38 = vpack.c.bf16 (!%p138_p2), %v664_v36, %v663_v35  ;;  %v665_v40 = vld [vmem:[%s935_s1 + $0x90] sm:$0xff] (!%p138_p2)  ;;  %v666_v41 = vld [vmem:[%s935_s1 + $0x98] sm:$0xff] (!%p138_p2)  ;;  %v668_v58 = vld [vmem:[%s936_s2] ss:$0 sm:$0xff] (!%p138_p2) }
   0xc   : > { %757 = vmatpush3.bf16.msra.mxu0 (!%p138_p2), %v756_v12  ;;  %v780_v42 = vpack.c.bf16 (!%p138_p2), %v666_v41, %v665_v40 }
   0xd   : > { %s939_s13 = smov (!%p160_p3, %s639_s13), 1  ;;  %763 = vmatpush3.bf16.msra.mxu1 %v762_v13  ;;  %764 = vmatprep.subr.bf16.mxu0 %v801_v3 }
   0xe   : > { %s671_s5 = sshll.u32 %s939_s13, 4  ;;  %770 = vmatprep.subr.bf16.mxu1 %v801_v3  ;;  %s646_s6 = sshll.u32 %s939_s13, 3 }
   0xf   : > { %s164_s16 = scalar_lea.vmem %s934_s0, %s671_s5  ;;  %s168_s11 = scalar_lea.vmem %s937_s3, %s646_s6 }
  0x10   : > { %v169_v18 = vld [vmem:[%s164_s16] sm:$0xff]  ;;  %v170_v19 = vld [vmem:[%s164_s16 + $0x8] sm:$0xf] }
  0x11   : > { %v183_v21 = vrot.slane %v169_v18, 1  ;;  %v184_v22 = vrot.slane %v170_v19, 1  ;;  %717 = vmatmul.mubr.msk.f32.vlgmr.msra.gmra.mrb[0].mxu1 %vm186_vm2, %v169_v18  ;;  %v337_v31 = vrot.slane %v169_v18, 2  ;;  %v338_v32 = vrot.slane %v170_v19, 2 }
  0x12   : > { %772 = vmatpush3.bf16.msra.mxu1 %v771_v24  ;;  %v419_v33 = vrot.slane %v169_v18, 3  ;;  %v420_v34 = vrot.slane %v170_v19, 3  ;;  %738 = vmatprep.mubr.msk.f32.mxu1 %vm802_vm0, %v803_v11  ;;  %v501_v43 = vrot.slane %v169_v18, 4  ;;  %v502_v44 = vrot.slane %v170_v19, 4 }
  0x13   : > { %v185_v28 = vsel %vm182_vm1, %v183_v21, %v184_v22  ;;  %773 = vmatprep.subr.bf16.mxu1 %v801_v3  ;;  %v339_v37 = vsel %vm336_vm3, %v337_v31, %v338_v32 }
  0x14   : > { %706 = vmatmul.mubr.msk.f32.vlgmr.msra.gmra.mrb[0].mxu0 %vm186_vm2, %v185_v28  ;;  %v421_v39 = vsel %vm418_vm4, %v419_v33, %v420_v34  ;;  %v503_v45 = vsel %vm500_vm5, %v501_v43, %v502_v44 }
  0x15   : > { %766 = vmatpush3.bf16.msra.mxu0 %v765_v23  ;;  %727 = vmatprep.mubr.msk.f32.mxu0 %vm802_vm0, %v803_v11 }
  0x16   : > { %767 = vmatprep.subr.bf16.mxu0 %v801_v3  ;;  %775 = vmatpush3.bf16.msra.mxu1 %v774_v30 }
  0x19   : > { %769 = vmatpush3.bf16.msra.mxu0 %v768_v29  ;;  %739 = vmatmul.mubr.msk.f32.vlgmr.msra.gmra.mrb[2].mxu1 %vm186_vm2, %v421_v39 }
  0x1a   : > { %776 = vmatprep.subr.bf16.mxu0 %v801_v3 }
  0x1c   : > { %728 = vmatmul.mubr.msk.f32.vlgmr.msra.gmra.mrb[2].mxu0 %vm186_vm2, %v339_v37 }
  0x1d   : > { %778 = vmatpush3.bf16.msra.mxu0 %v777_v38  ;;  %749 = vmatprep.mubr.msk.f32.mxu0 %vm802_vm0, %v803_v11 }
  0x1e   : > { %779 = vmatprep.subr.bf16.mxu0 %v801_v3 }
  0x21   : > { %781 = vmatpush3.bf16.msra.mxu0 %v780_v42 }
  0x24   : > { %750 = vmatmul.mubr.msk.f32.vlgmr.msra.gmra.mrb[4].mxu0 %vm186_vm2, %v503_v45 }
  0xe4   : > { %v327_v47 = vpop.f32.mrb[0].mxu1 }
  0xe5   : > { %v718_v50 = vpop.f32.mrb[1].mxu1 }
  0xe7   : > { %v255_v46 = vpop.f32.mrb[0].mxu0 }
  0xe8   : > { %v707_v48 = vpop.f32.mrb[1].mxu0  ;;  %v328_v49 = vadd.f32 %v327_v47, %v255_v46 }
  0xec   : > { %v490_v52 = vpop.f32.mrb[2].mxu1 }
  0xed   : > { %v740_v55 = vpop.f32.mrb[3].mxu1 }
  0xef   : > { %v408_v51 = vpop.f32.mrb[2].mxu0 }
  0xf0   : > { %v412_v53 = vadd.f32 %v408_v51, %v328_v49  ;;  %v729_v54 = vpop.f32.mrb[3].mxu0 }
  0xf2   : > { %v494_v56 = vadd.f32 %v490_v52, %v412_v53 }
  0xf7   : > { %v572_v57 = vpop.f32.mrb[4].mxu0 }
  0xf8   : > { %v576_v59 = vadd.f32 %v572_v57, %v494_v56  ;;  %v751_v60 = vpop.f32.mrb[5].mxu0 }
  0xfa   : > { %v584_v61 = vadd.f32 %v668_v58, %v576_v59 }
  0xfc   : > { %585 = vst.msk [vmem:[%s168_s11] sm:$0xff] %vm186_vm2, %v584_v61 }
  0xfd PF: > { %s13_s12 = sadd.s32 1, %s799_s12  }
  0xfe   : > { %p10_p4 = scmp.ge.s32.totalorder %s13_s12, 4  }
 0x100   :  { %12 = sbr.rel (!%p10_p4) target bundleno = 1 (0x1), region = 66 }

// kernel: my_model_forward.13
= control target key start
LH: loop header
LB: loop body
LE: loop exit
PB: predicated region body
PF: predicated region fallthrough
CT: control target
= control target key end

     0   :  { %s1827_s12 = smov 0   ;;  %s1829_s13 = smov 0   ;;  %s2122_s0 = inlined_call_operand.vmem [shape: f32[8,2,32], index: 0, kind: input, shape index: {}]   ;;  %s2123_s1 = inlined_call_operand.vmem [shape: f32[2,48,64], index: 1, kind: input, shape index: {}]   ;;  %s2124_s2 = inlined_call_operand.vmem [shape: f32[2,1,64], index: 2, kind: input, shape index: {}]   ;;  %s2125_s3 = inlined_call_operand.vmem [shape: f32[2,8,2,16], index: 3, kind: output, shape index: {}]  }
   0x1   :  { %s1831_s14 = smov 0  }
   0x2 LB: > { %s25_s15 = sadd.s32 1, %s1793_s13  ;;  %p1380_p0 = scmp.ge.s32.totalorder %s1797_s14, 1  ;;  %s1797_s14 = sphi %s1831_s14, %s13_s14   ;;  %s1793_s13 = sphi %s1829_s13, %s2127_s13   ;;  %s1789_s12 = sphi %s1827_s12, %s2126_s12  }
   0x3   : > { %p27_p1 = scmp.ge.s32.totalorder %s25_s15, 2  ;;  %p194_p2 = scmp.lt.s32.totalorder %s1797_s14, 3 }
   0x5   : > { %s2129_s15 = smov (%p27_p1, %s25_s15), 0  ;;  %p195_p3 = pnand %p1380_p0, %p194_p2 }
   0x6   : > { %vm282_vm0 = vcmask (!%p195_p3), 123904   ;;  %p252_p4 = scmp.lt.s32.totalorder (!%p195_p3), %s1789_s12, 1  ;;  %v1799_v0 = vmov (!%p195_p3), 0.0   ;;  %v1800_v1 = vmov (!%p195_p3), 0.0|0.0   ;;  %vm1801_vm1 = vmmov (!%p195_p3), 0   ;;  %s1802_s21 = smov (!%p195_p3), 32  }
   0x7   : > { %198 = sbr.rel (%p195_p3) target bundleno = 5755 (0x167b), region = 32  ;;  %283 = vst.msk [vmem:[#allocation2] sm:$0x3] (!%p195_p3), %vm282_vm0, %v1799_v0  ;;  %284 = vst.msk [vmem:[#allocation3] sm:$0x3] (!%p195_p3), %vm282_vm0, %v1799_v0  ;;  %1606 = vmatprep.subr.bf16.mxu0 (!%p195_p3), %v1800_v1  ;;  %1615 = vmatprep.subr.bf16.mxu1 (!%p195_p3), %v1800_v1  ;;  %s1803_s22 = smov (!%p195_p3), 16  }
   0x8   : > { %1498 = vmatprep.mubr.msk.f32.mxu0 (!%p195_p3), %vm1801_vm1, %v1799_v0  ;;  %1513 = vmatprep.mubr.msk.f32.mxu1 (!%p195_p3), %vm1801_vm1, %v1799_v0  ;;  %s1384_s23 = smul.u32 (!%p195_p3), 14, %s1789_s12  ;;  %vm302_vm2 = vcmask (!%p195_p3), 261120   ;;  %vm310_vm3 = vcmask (!%p195_p3), 392192   ;;  %s1804_s30 = smov (!%p195_p3), 96  }
   0x9   : > { %s1805_s4 = smov (!%p195_p3), 112   ;;  %s1388_s5 = smul.u32 (!%p195_p3), 10, %s1789_s12 }
   0xa   : > { %s296_s26 = scalar_lea.vmem (!%p195_p3), %s2122_s0, %s1384_s23  ;;  %s1394_s9 = smul.u32 (!%p195_p3), 6, %s1789_s12 }
   0xb   : > { %v297_v13 = vld [vmem:[%s296_s26] sm:$0x3] (!%p195_p3)  ;;  %s1278_s8 = scalar_lea.vmem (!%p195_p3), %s2122_s0, %s1388_s5  ;;  %s1400_s18 = sshll.u32 (!%p195_p3), %s1789_s12, 1 }
   0xc   : > { %v1389_v34 = vld [vmem:[%s1278_s8 + $0x2] sm:$0x3] (!%p195_p3)  ;;  %s1293_s24 = scalar_lea.vmem (!%p195_p3), %s2122_s0, %s1400_s18  ;;  %s754_s25 = ssub.s32 (!%p195_p3), 4, %s1789_s12 }
   0xd   : > { %s1988_s26 = sshll.u32 (!%p195_p3), %s754_s25, 1  ;;  %s1409_s6 = smul.u32 (!%p195_p3), 4294967290, %s1789_s12 }
   0xe   : > { %s1855_s16 = scalar_select %p252_p4, %s1789_s12, 1  ;;  %v292_v5 = vld [vmem:[#allocation2] sm:$0x3]  ;;  %v293_v8 = vld [vmem:[#allocation3] sm:$0x3] }
   0xf   : > { %299 = vrot.lane.b32.xlu0 %v292_v5, %s1802_s21  ;;  %392 = vrot.lane.b32.xlu1 %v293_v8, %s1803_s22  ;;  %s1304_s10 = scalar_lea.vmem %s2122_s0, %s1409_s6  ;;  %s1415_s11 = smul.u32 4294967286, %s1789_s12 }
  0x10   : > { %s1678_s17 = smul.u32 48, %s1855_s16  ;;  %s259_s29 = scalar_lea.vmem %s2124_s2, %s1855_s16 }
  0x11   : > { %v1905_v16 = vld [vmem:[%s259_s29] ss:$0 sm:$0xff]  ;;  %s756_s29 = scalar_lea.vmem %s2122_s0, %s1988_s26 }
  0x12   : > { %s256_s20 = scalar_lea.vmem %s2123_s1, %s1678_s17  ;;  %s1286_s17 = scalar_lea.vmem %s2122_s0, %s1394_s9 }
  0x13   : > { %v285_v2 = vld [vmem:[%s256_s20] sm:$0xff]  ;;  %v286_v3 = vld [vmem:[%s256_s20 + $0x8] sm:$0xff]  ;;  %v287_v4 = vld [vmem:[%s256_s20 + $0x10] sm:$0xff] }
  0x14   : > { %v1865_v6 = vpack.c.bf16 %v286_v3, %v285_v2  ;;  %v288_v7 = vld [vmem:[%s256_s20 + $0x18] sm:$0xff]  ;;  %v289_v10 = vld [vmem:[%s256_s20 + $0x20] sm:$0xff]  ;;  %v290_v11 = vld [vmem:[%s256_s20 + $0x28] sm:$0xff]  ;;  %s1312_s20 = scalar_lea.vmem %s2122_s0, %s1415_s11 }
  0x15   : > { %v1869_v9 = vpack.c.bf16 %v288_v7, %v287_v4  ;;  %v1876_v12 = vpack.c.bf16 %v290_v11, %v289_v10  ;;  %v1395_v53 = vld [vmem:[%s1286_s17 + $0x4] sm:$0x3] }
  0x16   : > { %1608 = vmatpush3.bf16.msra.mxu0 %v1865_v6  ;;  %1617 = vmatpush3.bf16.msra.mxu1 %v1865_v6 }
  0x17   : > { %1609 = vmatprep.subr.bf16.mxu0 %v1800_v1  ;;  %1618 = vmatprep.subr.bf16.mxu1 %v1800_v1 }
  0x1a   : > { %1611 = vmatpush3.bf16.msra.mxu0 %v1869_v9  ;;  %1620 = vmatpush3.bf16.msra.mxu1 %v1869_v9 }
  0x1b   : > { %1612 = vmatprep.subr.bf16.mxu0 %v1800_v1  ;;  %1621 = vmatprep.subr.bf16.mxu1 %v1800_v1 }
  0x1e   : > { %1614 = vmatpush3.bf16.msra.mxu0 %v1876_v12  ;;  %1623 = vmatpush3.bf16.msra.mxu1 %v1876_v12 }
  0x1f   : > { %1624 = vmatprep.subr.bf16.mxu0 %v1800_v1  ;;  %1633 = vmatprep.subr.bf16.mxu1 %v1800_v1 }
  0x81   : > { %v300_v14 = vpop.permute.xlu0 %299  ;;  %v393_v27 = vpop.permute.xlu1 %392 }
  0x82   : > { %v303_v15 = vsel %vm302_vm2, %v297_v13, %v300_v14  ;;  %v1401_v13 = vld [vmem:[%s1293_s24 + $0x6] sm:$0x3]  ;;  %s1421_s24 = smul.u32 4294967282, %s1789_s12 }
  0x83   : > { %1499 = vmatmul.mubr.msk.f32.vlgmr.msra.gmra.mrb[0].mxu0 %vm310_vm3, %v303_v15 }
  0x84   : > { %1626 = vmatpush3.bf16.msra.mxu0 %v1865_v6  ;;  %1528 = vmatprep.mubr.msk.f32.mxu0 %vm1801_vm1, %v1799_v0  ;;  %s1320_s28 = scalar_lea.vmem %s2122_s0, %s1421_s24 }
  0x85   : > { %1627 = vmatprep.subr.bf16.mxu0 %v1800_v1 }
  0x88   : > { %1629 = vmatpush3.bf16.msra.mxu0 %v1869_v9 }
  0x89   : > { %1630 = vmatprep.subr.bf16.mxu0 %v1800_v1 }
  0x8c   : > { %1632 = vmatpush3.bf16.msra.mxu0 %v1876_v12 }
  0x8d   : > { %1642 = vmatprep.subr.bf16.mxu0 %v1800_v1 }
 0x156   : > { %v380_v17 = vpop.f32.mrb[0].mxu0 }
 0x157   : > { %v381_v18 = vadd.f32 %v1905_v16, %v380_v17  ;;  %v1500_v19 = vpop.f32.mrb[1].mxu0 }
 0x159   : > { %1711 = vtanh.f32 %v381_v18  ;;  %v1387_v21 = vmul.f32 -1.442695, %v381_v18 }
 0x15b   : > { %1713 = vpow2.f32 %v1387_v21 }
 0x163   : > { %v1712_v20 = vpop.eup %1711 }
 0x164   : > { %397 = vrot.lane.b32.xlu0 %v1712_v20, %s1804_s30 }
 0x165   : > { %v1714_v22 = vpop.eup %1713 }
 0x166   : > { %v387_v23 = vadd.f32 1.0, %v1714_v22 }
 0x168   : > { %1715 = vrcp.f32 %v387_v23 }
 0x172   : > { %v1716_v24 = vpop.eup %1715 }
 0x173   : > { %v395_v28 = vmul.f32 %v1716_v24, %v393_v27 }
 0x1d6   : > { %v398_v25 = vpop.permute.xlu0 %397 }
 0x1d7   : > { %v400_v26 = vmul.f32 %v1716_v24, %v398_v25 }
 0x1d9   : > { %402 = vrot.lane.b32.xlu1 %v400_v26, %s1803_s22 }
 0x24b   : > { %v403_v29 = vpop.permute.xlu1 %402 }
 0x24c   : > { %v405_v30 = vadd.f32 %v403_v29, %v395_v28 }
 0x24e   : > { %1717 = vtanh.f32 %v405_v30 }
 0x258   : > { %v1718_v31 = vpop.eup %1717 }
 0x259   : > { %408 = vrot.lane.b32.xlu0 %v1718_v31, %s1802_s21 }
 0x2cb   : > { %v409_v32 = vpop.permute.xlu0 %408 }
 0x2cc   : > { %v1911_v33 = vmul.f32 %v1716_v24, %v409_v32 }
 0x2ce   : > { %424 = vrot.lane.b32.xlu1 %v1911_v33, %s1805_s4 }
 0x340   : > { %v425_v35 = vpop.permute.xlu1 %424 }
 0x341   : > { %v427_v36 = vsel %vm302_vm2, %v1389_v34, %v425_v35  ;;  %v757_v34 = vld [vmem:[%s756_s29] sm:$0x3]  ;;  %s1806_s29 = smov 80  }
 0x342   : > { %1514 = vmatmul.mubr.msk.f32.vlgmr.msra.gmra.mrb[0].mxu1 %vm310_vm3, %v427_v36 }
 0x343   : > { %1635 = vmatpush3.bf16.msra.mxu1 %v1865_v6  ;;  %1543 = vmatprep.mubr.msk.f32.mxu1 %vm1801_vm1, %v1799_v0 }
 0x344   : > { %1636 = vmatprep.subr.bf16.mxu1 %v1800_v1 }
 0x347   : > { %1638 = vmatpush3.bf16.msra.mxu1 %v1869_v9 }
 0x348   : > { %1639 = vmatprep.subr.bf16.mxu1 %v1800_v1 }
 0x34b   : > { %1641 = vmatpush3.bf16.msra.mxu1 %v1876_v12 }
 0x34c   : > { %1651 = vmatprep.subr.bf16.mxu1 %v1800_v1 }
 0x415   : > { %v497_v37 = vpop.f32.mrb[0].mxu1 }
 0x416   : > { %v498_v38 = vadd.f32 %v1905_v16, %v497_v37  ;;  %v1515_v39 = vpop.f32.mrb[1].mxu1 }
 0x418   : > { %1719 = vtanh.f32 %v498_v38  ;;  %v1391_v41 = vmul.f32 -1.442695, %v498_v38 }
 0x41a   : > { %1721 = vpow2.f32 %v1391_v41 }
 0x422   : > { %v1720_v40 = vpop.eup %1719 }
 0x423   : > { %510 = vrot.lane.b32.xlu0 %v1720_v40, %s1804_s30 }
 0x424   : > { %v1722_v42 = vpop.eup %1721 }
 0x425   : > { %v504_v43 = vadd.f32 1.0, %v1722_v42 }
 0x427   : > { %1723 = vrcp.f32 %v504_v43 }
 0x431   : > { %v1724_v44 = vpop.eup %1723 }
 0x432   : > { %v508_v47 = vmul.f32 %v1724_v44, %v405_v30 }
 0x495   : > { %v511_v45 = vpop.permute.xlu0 %510 }
 0x496   : > { %v513_v46 = vmul.f32 %v1724_v44, %v511_v45 }
 0x498   : > { %515 = vrot.lane.b32.xlu1 %v513_v46, %s1803_s22 }
 0x50a   : > { %v516_v48 = vpop.permute.xlu1 %515 }
 0x50b   : > { %v518_v49 = vadd.f32 %v516_v48, %v508_v47 }
 0x50d   : > { %1725 = vtanh.f32 %v518_v49 }
 0x517   : > { %v1726_v50 = vpop.eup %1725 }
 0x518   : > { %521 = vrot.lane.b32.xlu0 %v1726_v50, %s1802_s21 }
 0x58a   : > { %v522_v51 = vpop.permute.xlu0 %521 }
 0x58b   : > { %v1935_v52 = vmul.f32 %v1724_v44, %v522_v51 }
 0x58d   : > { %536 = vrot.lane.b32.xlu1 %v1935_v52, %s1805_s4 }
 0x5ff   : > { %v537_v54 = vpop.permute.xlu1 %536 }
 0x600   : > { %v539_v55 = vsel %vm302_vm2, %v1395_v53, %v537_v54  ;;  %v1410_v54 = vld [vmem:[%s1304_s10 + $0xa] sm:$0x3] }
 0x601   : > { %1529 = vmatmul.mubr.msk.f32.vlgmr.msra.gmra.mrb[2].mxu0 %vm310_vm3, %v539_v55 }
 0x602   : > { %1644 = vmatpush3.bf16.msra.mxu0 %v1865_v6  ;;  %1558 = vmatprep.mubr.msk.f32.mxu0 %vm1801_vm1, %v1799_v0 }
 0x603   : > { %1645 = vmatprep.subr.bf16.mxu0 %v1800_v1 }
 0x606   : > { %1647 = vmatpush3.bf16.msra.mxu0 %v1869_v9 }
 0x607   : > { %1648 = vmatprep.subr.bf16.mxu0 %v1800_v1 }
 0x60a   : > { %1650 = vmatpush3.bf16.msra.mxu0 %v1876_v12 }
 0x60b   : > { %1660 = vmatprep.subr.bf16.mxu0 %v1800_v1 }
 0x6d4   : > { %v609_v56 = vpop.f32.mrb[2].mxu0 }
 0x6d5   : > { %v610_v57 = vadd.f32 %v1905_v16, %v609_v56  ;;  %v1530_v58 = vpop.f32.mrb[3].mxu0 }
 0x6d7   : > { %1727 = vtanh.f32 %v610_v57  ;;  %v1397_v60 = vmul.f32 -1.442695, %v610_v57 }
 0x6d9   : > { %1729 = vpow2.f32 %v1397_v60 }
 0x6e1   : > { %v1728_v59 = vpop.eup %1727 }
 0x6e2   : > { %622 = vrot.lane.b32.xlu0 %v1728_v59, %s1804_s30 }
 0x6e3   : > { %v1730_v61 = vpop.eup %1729 }
 0x6e4   : > { %v616_v62 = vadd.f32 1.0, %v1730_v61 }
 0x6e6   : > { %1731 = vrcp.f32 %v616_v62 }
 0x6f0   : > { %v1732_v63 = vpop.eup %1731 }
 0x6f1   : > { %v620_v4 = vmul.f32 %v1732_v63, %v518_v49 }
 0x754   : > { %v623_v2 = vpop.permute.xlu0 %622 }
 0x755   : > { %v625_v3 = vmul.f32 %v1732_v63, %v623_v2 }
 0x757   : > { %627 = vrot.lane.b32.xlu1 %v625_v3, %s1803_s22 }
 0x7c9   : > { %v628_v5 = vpop.permute.xlu1 %627 }
 0x7ca   : > { %v630_v7 = vadd.f32 %v628_v5, %v620_v4 }
 0x7cc   : > { %1733 = vtanh.f32 %v630_v7 }
 0x7d6   : > { %v1734_v8 = vpop.eup %1733 }
 0x7d7   : > { %633 = vrot.lane.b32.xlu0 %v1734_v8, %s1802_s21 }
 0x849   : > { %v634_v10 = vpop.permute.xlu0 %633 }
 0x84a   : > { %v1959_v11 = vmul.f32 %v1732_v63, %v634_v10 }
 0x84c   : > { %647 = vrot.lane.b32.xlu1 %v1959_v11, %s1805_s4 }
 0x8be   : > { %v648_v14 = vpop.permute.xlu1 %647 }
 0x8bf   : > { %v650_v15 = vsel %vm302_vm2, %v1401_v13, %v648_v14 }
 0x8c0   : > { %1544 = vmatmul.mubr.msk.f32.vlgmr.msra.gmra.mrb[2].mxu1 %vm310_vm3, %v650_v15 }
 0x8c1   : > { %1653 = vmatpush3.bf16.msra.mxu1 %v1865_v6  ;;  %1573 = vmatprep.mubr.msk.f32.mxu1 %vm1801_vm1, %v1799_v0 }
 0x8c2   : > { %1654 = vmatprep.subr.bf16.mxu1 %v1800_v1 }
 0x8c5   : > { %1656 = vmatpush3.bf16.msra.mxu1 %v1869_v9 }
 0x8c6   : > { %1657 = vmatprep.subr.bf16.mxu1 %v1800_v1 }
 0x8c9   : > { %1659 = vmatpush3.bf16.msra.mxu1 %v1876_v12 }
 0x8ca   : > { %1669 = vmatprep.subr.bf16.mxu1 %v1800_v1 }
 0x993   : > { %v720_v17 = vpop.f32.mrb[2].mxu1 }
 0x994   : > { %v721_v18 = vadd.f32 %v1905_v16, %v720_v17  ;;  %v1545_v19 = vpop.f32.mrb[3].mxu1 }
 0x996   : > { %1735 = vtanh.f32 %v721_v18  ;;  %v1403_v21 = vmul.f32 -1.442695, %v721_v18 }
 0x998   : > { %1737 = vpow2.f32 %v1403_v21 }
 0x9a0   : > { %v1736_v20 = vpop.eup %1735 }
 0x9a1   : > { %733 = vrot.lane.b32.xlu0 %v1736_v20, %s1804_s30 }
 0x9a2   : > { %v1738_v22 = vpop.eup %1737 }
 0x9a3   : > { %v727_v23 = vadd.f32 1.0, %v1738_v22 }
 0x9a5   : > { %1739 = vrcp.f32 %v727_v23 }
 0x9af   : > { %v1740_v24 = vpop.eup %1739 }
 0x9b0   : > { %v731_v27 = vmul.f32 %v1740_v24, %v630_v7  ;;  %v1416_v7 = vld [vmem:[%s1312_s20 + $0xc] sm:$0x3] }
 0xa13   : > { %v734_v25 = vpop.permute.xlu0 %733 }
 0xa14   : > { %v736_v26 = vmul.f32 %v1740_v24, %v734_v25 }
 0xa16   : > { %738 = vrot.lane.b32.xlu1 %v736_v26, %s1803_s22 }
 0xa88   : > { %v739_v28 = vpop.permute.xlu1 %738 }
 0xa89   : > { %v741_v29 = vadd.f32 %v739_v28, %v731_v27 }
 0xa8b   : > { %1741 = vtanh.f32 %v741_v29 }
 0xa95   : > { %v1742_v30 = vpop.eup %1741 }
 0xa96   : > { %744 = vrot.lane.b32.xlu0 %v1742_v30, %s1802_s21  ;;  %v1422_v30 = vld [vmem:[%s1320_s28 + $0xe] sm:$0x3] }
 0xb08   : > { %v745_v31 = vpop.permute.xlu0 %744 }
 0xb09   : > { %v1983_v32 = vmul.f32 %v1740_v24, %v745_v31 }
 0xb0b   : > { %758 = vrot.lane.b32.xlu1 %v1983_v32, %s1805_s4 }
 0xb7d   : > { %v759_v35 = vpop.permute.xlu1 %758 }
 0xb7e   : > { %v761_v36 = vsel %vm302_vm2, %v757_v34, %v759_v35 }
 0xb7f   : > { %1559 = vmatmul.mubr.msk.f32.vlgmr.msra.gmra.mrb[4].mxu0 %vm310_vm3, %v761_v36 }
 0xb80   : > { %1662 = vmatpush3.bf16.msra.mxu0 %v1865_v6  ;;  %1588 = vmatprep.mubr.msk.f32.mxu0 %vm1801_vm1, %v1799_v0 }
 0xb81   : > { %1663 = vmatprep.subr.bf16.mxu0 %v1800_v1 }
 0xb84   : > { %1665 = vmatpush3.bf16.msra.mxu0 %v1869_v9 }
 0xb85   : > { %1666 = vmatprep.subr.bf16.mxu0 %v1800_v1 }
 0xb88   : > { %1668 = vmatpush3.bf16.msra.mxu0 %v1876_v12 }
 0xc52   : > { %v831_v37 = vpop.f32.mrb[4].mxu0 }
 0xc53   : > { %v832_v38 = vadd.f32 %v1905_v16, %v831_v37  ;;  %v1560_v39 = vpop.f32.mrb[5].mxu0 }
 0xc55   : > { %1743 = vtanh.f32 %v832_v38  ;;  %v1408_v41 = vmul.f32 -1.442695, %v832_v38 }
 0xc57   : > { %1745 = vpow2.f32 %v1408_v41 }
 0xc5f   : > { %v1744_v40 = vpop.eup %1743 }
 0xc60   : > { %844 = vrot.lane.b32.xlu0 %v1744_v40, %s1804_s30 }
 0xc61   : > { %v1746_v42 = vpop.eup %1745 }
 0xc62   : > { %v838_v43 = vadd.f32 1.0, %v1746_v42 }
 0xc64   : > { %1747 = vrcp.f32 %v838_v43 }
 0xc6e   : > { %v1748_v44 = vpop.eup %1747 }
 0xc6f   : > { %v842_v47 = vmul.f32 %v1748_v44, %v741_v29 }
 0xcd2   : > { %v845_v45 = vpop.permute.xlu0 %844 }
 0xcd3   : > { %v847_v46 = vmul.f32 %v1748_v44, %v845_v45 }
 0xcd5   : > { %849 = vrot.lane.b32.xlu1 %v847_v46, %s1803_s22 }
 0xd47   : > { %v850_v48 = vpop.permute.xlu1 %849 }
 0xd48   : > { %v852_v49 = vadd.f32 %v850_v48, %v842_v47 }
 0xd4a   : > { %1749 = vtanh.f32 %v852_v49 }
 0xd54   : > { %v1750_v50 = vpop.eup %1749 }
 0xd55   : > { %855 = vrot.lane.b32.xlu0 %v1750_v50, %s1802_s21 }
 0xdc7   : > { %v856_v51 = vpop.permute.xlu0 %855 }
 0xdc8   : > { %v2007_v53 = vmul.f32 %v1748_v44, %v856_v51 }
 0xdca   : > { %870 = vrot.lane.b32.xlu1 %v2007_v53, %s1805_s4 }
 0xe3c   : > { %v871_v55 = vpop.permute.xlu1 %870 }
 0xe3d   : > { %v873_v56 = vsel %vm302_vm2, %v1410_v54, %v871_v55 }
 0xe3e   : > { %1574 = vmatmul.mubr.msk.f32.vlgmr.msra.gmra.mrb[4].mxu1 %vm310_vm3, %v873_v56 }
 0xe3f   : > { %1671 = vmatpush3.bf16.msra.mxu1 %v1865_v6  ;;  %1603 = vmatprep.mubr.msk.f32.mxu1 %vm1801_vm1, %v1799_v0 }
 0xe40   : > { %1672 = vmatprep.subr.bf16.mxu1 %v1800_v1 }
 0xe43   : > { %1674 = vmatpush3.bf16.msra.mxu1 %v1869_v9 }
 0xe44   : > { %1675 = vmatprep.subr.bf16.mxu1 %v1800_v1 }
 0xe47   : > { %1677 = vmatpush3.bf16.msra.mxu1 %v1876_v12 }
 0xf11   : > { %v943_v57 = vpop.f32.mrb[4].mxu1 }
 0xf12   : > { %v944_v58 = vadd.f32 %v1905_v16, %v943_v57  ;;  %v1575_v59 = vpop.f32.mrb[5].mxu1 }
 0xf14   : > { %1751 = vtanh.f32 %v944_v58  ;;  %v1412_v6 = vmul.f32 -1.442695, %v944_v58 }
 0xf16   : > { %1753 = vpow2.f32 %v1412_v6 }
 0xf1e   : > { %v1752_v60 = vpop.eup %1751 }
 0xf1f   : > { %956 = vrot.lane.b32.xlu0 %v1752_v60, %s1804_s30 }
 0xf20   : > { %v1754_v61 = vpop.eup %1753 }
 0xf21   : > { %v950_v0 = vadd.f32 1.0, %v1754_v61 }
 0xf23   : > { %1755 = vrcp.f32 %v950_v0 }
 0xf2d   : > { %v1756_v9 = vpop.eup %1755 }
 0xf2e   : > { %v954_v12 = vmul.f32 %v1756_v9, %v852_v49 }
 0xf91   : > { %v957_v62 = vpop.permute.xlu0 %956 }
 0xf92   : > { %v959_v1 = vmul.f32 %v1756_v9, %v957_v62 }
 0xf94   : > { %961 = vrot.lane.b32.xlu1 %v959_v1, %s1803_s22 }
0x1006   : > { %v962_v63 = vpop.permute.xlu1 %961 }
0x1007   : > { %v964_v2 = vadd.f32 %v962_v63, %v954_v12 }
0x1009   : > { %1757 = vtanh.f32 %v964_v2 }
0x1013   : > { %v1758_v3 = vpop.eup %1757 }
0x1014   : > { %967 = vrot.lane.b32.xlu0 %v1758_v3, %s1802_s21 }
0x1086   : > { %v968_v4 = vpop.permute.xlu0 %967 }
0x1087   : > { %v2030_v5 = vmul.f32 %v1756_v9, %v968_v4 }
0x1089   : > { %982 = vrot.lane.b32.xlu1 %v2030_v5, %s1805_s4 }
0x10fb   : > { %v983_v8 = vpop.permute.xlu1 %982 }
0x10fc   : > { %v985_v10 = vsel %vm302_vm2, %v1416_v7, %v983_v8 }
0x10fd   : > { %1589 = vmatmul.mubr.msk.f32.vlgmr.msra.gmra.mrb[6].mxu0 %vm310_vm3, %v985_v10 }
0x11d0   : > { %v1055_v13 = vpop.f32.mrb[6].mxu0 }
0x11d1   : > { %v1056_v14 = vadd.f32 %v1905_v16, %v1055_v13  ;;  %v1590_v15 = vpop.f32.mrb[7].mxu0 }
0x11d3   : > { %1759 = vtanh.f32 %v1056_v14  ;;  %v1418_v18 = vmul.f32 -1.442695, %v1056_v14 }
0x11d5   : > { %1761 = vpow2.f32 %v1418_v18 }
0x11dd   : > { %v1760_v17 = vpop.eup %1759 }
0x11de   : > { %1068 = vrot.lane.b32.xlu0 %v1760_v17, %s1804_s30 }
0x11df   : > { %v1762_v19 = vpop.eup %1761 }
0x11e0   : > { %v1062_v20 = vadd.f32 1.0, %v1762_v19 }
0x11e2   : > { %1763 = vrcp.f32 %v1062_v20 }
0x11ec   : > { %v1764_v21 = vpop.eup %1763 }
0x11ed   : > { %v1066_v24 = vmul.f32 %v1764_v21, %v964_v2 }
0x1250   : > { %v1069_v22 = vpop.permute.xlu0 %1068 }
0x1251   : > { %v1071_v23 = vmul.f32 %v1764_v21, %v1069_v22 }
0x1253   : > { %1073 = vrot.lane.b32.xlu1 %v1071_v23, %s1803_s22 }
0x12c5   : > { %v1074_v25 = vpop.permute.xlu1 %1073 }
0x12c6   : > { %v1076_v26 = vadd.f32 %v1074_v25, %v1066_v24 }
0x12c8   : > { %1765 = vtanh.f32 %v1076_v26 }
0x12d2   : > { %v1766_v27 = vpop.eup %1765 }
0x12d3   : > { %1079 = vrot.lane.b32.xlu0 %v1766_v27, %s1802_s21 }
0x1345   : > { %v1080_v28 = vpop.permute.xlu0 %1079 }
0x1346   : > { %v1082_v29 = vmul.f32 %v1764_v21, %v1080_v28 }
0x1348   : > { %1094 = vrot.lane.b32.xlu1 %v1082_v29, %s1805_s4 }
0x13ba   : > { %v1095_v31 = vpop.permute.xlu1 %1094 }
0x13bb   : > { %v1097_v34 = vsel %vm302_vm2, %v1422_v30, %v1095_v31 }
0x13bc   : > { %1604 = vmatmul.mubr.msk.f32.vlgmr.msra.gmra.mrb[6].mxu1 %vm310_vm3, %v1097_v34 }
0x148f   : > { %v1167_v35 = vpop.f32.mrb[6].mxu1 }
0x1490   : > { %v1168_v36 = vadd.f32 %v1905_v16, %v1167_v35  ;;  %v1605_v37 = vpop.f32.mrb[7].mxu1 }
0x1492   : > { %1767 = vtanh.f32 %v1168_v36  ;;  %v1424_v39 = vmul.f32 -1.442695, %v1168_v36 }
0x1494   : > { %1769 = vpow2.f32 %v1424_v39 }
0x149c   : > { %v1768_v38 = vpop.eup %1767 }
0x149d   : > { %1180 = vrot.lane.b32.xlu0 %v1768_v38, %s1804_s30  ;;  %s1429_s30 = sshll.u32 %s1855_s16, 4 }
0x149e   : > { %v1770_v40 = vpop.eup %1769  ;;  %s2069_s10 = scalar_lea.vmem %s2125_s3, %s1429_s30 }
0x149f   : > { %v1174_v41 = vadd.f32 1.0, %v1770_v40  ;;  %s1282_s16 = scalar_lea.vmem %s2069_s10, %s1388_s5  ;;  %s1308_s17 = scalar_lea.vmem %s2069_s10, %s1409_s6 }
0x14a0   : > { %s1316_s5 = scalar_lea.vmem %s2069_s10, %s1415_s11 }
0x14a1   : > { %1771 = vrcp.f32 %v1174_v41 }
0x14ab   : > { %v1772_v42 = vpop.eup %1771 }
0x14ac   : > { %v1178_v16 = vmul.f32 %v1772_v42, %v1076_v26 }
0x150f   : > { %v1181_v43 = vpop.permute.xlu0 %1180 }
0x1510   : > { %v1183_v44 = vmul.f32 %v1772_v42, %v1181_v43 }
0x1512   : > { %1185 = vrot.lane.b32.xlu1 %v1183_v44, %s1803_s22  ;;  %s416_s22 = scalar_lea.vmem %s2069_s10, %s1384_s23  ;;  %s1296_s23 = scalar_lea.vmem %s2069_s10, %s1400_s18 }
0x1516   : > { %413 = vrot.lane.b32.xlu1 %v1911_v33, %s1806_s29 }
0x151a   : > { %638 = vrot.lane.b32.xlu1 %v1959_v11, %s1806_s29 }
0x151e   : > { %860 = vrot.lane.b32.xlu1 %v2007_v53, %s1806_s29 }
0x1522   : > { %1084 = vrot.lane.b32.xlu1 %v1082_v29, %s1806_s29 }
0x1584   : > { %v1186_v45 = vpop.permute.xlu1 %1185 }
0x1585   : > { %v1188_v46 = vadd.f32 %v1186_v45, %v1178_v16 }
0x1587   : > { %1773 = vtanh.f32 %v1188_v46  ;;  %1203 = vrot.lane.b32.xlu1 %v1188_v46, %s1805_s4  ;;  %s863_s4 = scalar_lea.vmem %s2069_s10, %s1988_s26 }
0x1588   : > { %v414_v33 = vpop.permute.xlu1 %413 }
0x1589   : > { %418 = vst.msk [vmem:[%s416_s22] sm:$0x3] %vm282_vm0, %v414_v33 }
0x158c   : > { %v639_v47 = vpop.permute.xlu1 %638 }
0x1590   : > { %v861_v48 = vpop.permute.xlu1 %860 }
0x1591   : > { %v1774_v11 = vpop.eup %1773 }
0x1592   : > { %1191 = vrot.lane.b32.xlu0 %v1774_v11, %s1802_s21  ;;  %s1290_s21 = scalar_lea.vmem %s2069_s10, %s1394_s9  ;;  %s1324_s9 = scalar_lea.vmem %s2069_s10, %s1421_s24 }
0x1594   : > { %v1085_v49 = vpop.permute.xlu1 %1084 }
0x1596   : > { %526 = vrot.lane.b32.xlu0 %v1935_v52, %s1806_s29 }
0x159a   : > { %749 = vrot.lane.b32.xlu0 %v1983_v32, %s1806_s29 }
0x159e   : > { %972 = vrot.lane.b32.xlu0 %v2030_v5, %s1806_s29 }
0x15f9   : > { %v1204_v50 = vpop.permute.xlu1 %1203 }
0x15fa   : > { %1206 = vst.msk [vmem:[#allocation3] sm:$0x3] %vm282_vm0, %v1204_v50 }
0x1604   : > { %v1192_v51 = vpop.permute.xlu0 %1191 }
0x1605   : > { %v1194_v52 = vmul.f32 %v1772_v42, %v1192_v51 }
0x1607   : > { %1196 = vrot.lane.b32.xlu0 %v1194_v52, %s1806_s29 }
0x1608   : > { %v527_v32 = vpop.permute.xlu0 %526 }
0x1609   : > { %1393 = vst.msk [vmem:[%s1282_s16 + $0x2] sm:$0x3] %vm282_vm0, %v527_v32 }
0x160a   : > { %1399 = vst.msk [vmem:[%s1290_s21 + $0x4] sm:$0x3] %vm282_vm0, %v639_v47 }
0x160c   : > { %v750_v53 = vpop.permute.xlu0 %749 }
0x160d   : > { %1405 = vst.msk [vmem:[%s1296_s23 + $0x6] sm:$0x3] %vm282_vm0, %v750_v53 }
0x160e   : > { %864 = vst.msk [vmem:[%s863_s4] sm:$0x3] %vm282_vm0, %v861_v48 }
0x1610   : > { %v973_v54 = vpop.permute.xlu0 %972 }
0x1611   : > { %1414 = vst.msk [vmem:[%s1308_s17 + $0xa] sm:$0x3] %vm282_vm0, %v973_v54 }
0x1612   : > { %1420 = vst.msk [vmem:[%s1316_s5 + $0xc] sm:$0x3] %vm282_vm0, %v1085_v49 }
0x1679   : > { %v1197_v55 = vpop.permute.xlu0 %1196 }
0x167a   : > { %1426 = vst.msk [vmem:[%s1324_s9 + $0xe] sm:$0x3] %vm282_vm0, %v1197_v55  ;;  %1201 = vst.msk [vmem:[#allocation2] sm:$0x3] %vm282_vm0, %v1197_v55 }
0x167b PF: > { %s13_s14 = sadd.s32 1, %s1797_s14   ;;  %s2126_s12 = smov %s1793_s13 }
0x167c   : > { %p10_p5 = scmp.ge.s32.totalorder %s13_s14, 4   ;;  %s2127_s13 = smov %s2129_s15 }
0x167e   :  { %12 = sbr.rel (!%p10_p5) target bundleno = 2 (0x2), region = 88 }

// kernel: my_model_forward.15
= control target key start
LH: loop header
LB: loop body
LE: loop exit
PB: predicated region body
PF: predicated region fallthrough
CT: control target
= control target key end

     0   :  { %s1014_s12 = smov 0   ;;  %s1241_s0 = inlined_call_operand.vmem [shape: f32[2,12,80], index: 0, kind: input, shape index: {}]   ;;  %s1242_s1 = inlined_call_operand.vmem [shape: f32[5,80,32], index: 1, kind: input, shape index: {}]   ;;  %s1243_s2 = inlined_call_operand.vmem [shape: f32[1,32], index: 2, kind: input, shape index: {}]   ;;  %s1244_s3 = inlined_call_operand.vmem [shape: f32[2,8,32], index: 3, kind: output, shape index: {}]  }
   0x1 LB: > { %s670_s13 = sadd.s32 4294967295, %s989_s12   ;;  %p674_p0 = scmp.ge.s32.totalorder %s989_s12, 1  ;;  %s989_s12 = sphi %s1014_s12, %s13_s12  }
   0x2   : > { %p137_p1 = scmp.lt.s32.totalorder %s989_s12, 3 }
   0x4   : > { %p138_p2 = pnand %p674_p0, %p137_p1 }
   0x5   : > { %v678_v0 = vld [vmem:[%s1242_s1 + $0x50] sm:$0xff] (!%p138_p2)  ;;  %v679_v1 = vld [vmem:[%s1242_s1 + $0x58] sm:$0xff] (!%p138_p2)  ;;  %v171_v2 = vld [vmem:[%s1242_s1] sm:$0xff] (!%p138_p2)  ;;  %v991_v3 = vmov (!%p138_p2), 0.0|0.0   ;;  %p160_p3 = scmp.lt.s32.totalorder (!%p138_p2), %s670_s13, 1  ;;  %vm992_vm0 = vmmov (!%p138_p2), 0  }
   0x6   : > { %141 = sbr.rel (%p138_p2) target bundleno = 284 (0x11c), region = 32  ;;  %897 = vmatprep.subr.bf16.mxu0 (!%p138_p2), %v991_v3  ;;  %v898_v4 = vpack.c.bf16 (!%p138_p2), %v679_v1, %v678_v0  ;;  %912 = vmatprep.subr.bf16.mxu1 (!%p138_p2), %v991_v3  ;;  %v172_v5 = vld [vmem:[%s1242_s1 + $0x8] sm:$0xff] (!%p138_p2)  ;;  %v680_v6 = vld [vmem:[%s1242_s1 + $0x60] sm:$0xff] (!%p138_p2)  ;;  %v173_v9 = vld [vmem:[%s1242_s1 + $0x10] sm:$0xff] (!%p138_p2)  ;;  %v993_v11 = vmov (!%p138_p2), 0.0   ;;  %vm194_vm1 = vcmask (!%p138_p2), 1046528  }
   0x7   : > { %v681_v7 = vld [vmem:[%s1242_s1 + $0x68] sm:$0xff] (!%p138_p2)  ;;  %v913_v8 = vpack.c.bf16 (!%p138_p2), %v172_v5, %v171_v2  ;;  %v174_v10 = vld [vmem:[%s1242_s1 + $0x18] sm:$0xff] (!%p138_p2)  ;;  %802 = vmatprep.mubr.msk.f32.mxu0 (!%p138_p2), %vm992_vm0, %v993_v11  ;;  %825 = vmatprep.mubr.msk.f32.mxu1 (!%p138_p2), %vm992_vm0, %v993_v11  ;;  %v682_v14 = vld [vmem:[%s1242_s1 + $0x70] sm:$0xff] (!%p138_p2)  ;;  %vm198_vm2 = vcmask (!%p138_p2), 654336   ;;  %vm354_vm3 = vcmask (!%p138_p2), 1045504   ;;  %vm442_vm4 = vcmask (!%p138_p2), 1044480  }
   0x8   : > { %899 = vmatpush3.bf16.msra.mxu0 (!%p138_p2), %v898_v4  ;;  %v901_v12 = vpack.c.bf16 (!%p138_p2), %v681_v7, %v680_v6  ;;  %v916_v13 = vpack.c.bf16 (!%p138_p2), %v174_v10, %v173_v9  ;;  %v683_v15 = vld [vmem:[%s1242_s1 + $0x78] sm:$0xff] (!%p138_p2)  ;;  %v175_v16 = vld [vmem:[%s1242_s1 + $0x20] sm:$0xff] (!%p138_p2)  ;;  %v176_v17 = vld [vmem:[%s1242_s1 + $0x28] sm:$0xff] (!%p138_p2)  ;;  %vm530_vm5 = vcmask (!%p138_p2), 1043456   ;;  %vm615_vm6 = vcmask (!%p138_p2), 261120  }
   0x9   : > { %914 = vmatpush3.bf16.msra.mxu1 (!%p138_p2), %v913_v8  ;;  %900 = vmatprep.subr.bf16.mxu0 (!%p138_p2), %v991_v3  ;;  %v904_v18 = vpack.c.bf16 (!%p138_p2), %v683_v15, %v682_v14  ;;  %v919_v19 = vpack.c.bf16 (!%p138_p2), %v176_v17, %v175_v16  ;;  %v684_v20 = vld [vmem:[%s1242_s1 + $0x80] sm:$0xff] (!%p138_p2)  ;;  %v685_v21 = vld [vmem:[%s1242_s1 + $0x88] sm:$0xff] (!%p138_p2)  ;;  %v177_v22 = vld [vmem:[%s1242_s1 + $0x30] sm:$0xff] (!%p138_p2) }
   0xa   : > { %915 = vmatprep.subr.bf16.mxu1 (!%p138_p2), %v991_v3  ;;  %v178_v23 = vld [vmem:[%s1242_s1 + $0x38] sm:$0xff] (!%p138_p2)  ;;  %v907_v24 = vpack.c.bf16 (!%p138_p2), %v685_v21, %v684_v20  ;;  %v686_v25 = vld [vmem:[%s1242_s1 + $0x90] sm:$0xff] (!%p138_p2)  ;;  %v179_v30 = vld [vmem:[%s1242_s1 + $0x40] sm:$0xff] (!%p138_p2) }
   0xb   : > { %v922_v26 = vpack.c.bf16 (!%p138_p2), %v178_v23, %v177_v22  ;;  %v687_v27 = vld [vmem:[%s1242_s1 + $0x98] sm:$0xff] (!%p138_p2)  ;;  %v180_v31 = vld [vmem:[%s1242_s1 + $0x48] sm:$0xff] (!%p138_p2)  ;;  %v690_v36 = vld [vmem:[%s1242_s1 + $0xa0] sm:$0xff] (!%p138_p2) }
   0xc   : > { %902 = vmatpush3.bf16.msra.mxu0 (!%p138_p2), %v901_v12  ;;  %v910_v32 = vpack.c.bf16 (!%p138_p2), %v687_v27, %v686_v25  ;;  %v925_v35 = vpack.c.bf16 (!%p138_p2), %v180_v31, %v179_v30  ;;  %v691_v37 = vld [vmem:[%s1242_s1 + $0xa8] sm:$0xff] (!%p138_p2)  ;;  %v701_v38 = vld [vmem:[%s1242_s1 + $0xf0] sm:$0xff] (!%p138_p2)  ;;  %v702_v39 = vld [vmem:[%s1242_s1 + $0xf8] sm:$0xff] (!%p138_p2) }
   0xd   : > { %s1246_s13 = smov (!%p160_p3, %s670_s13), 1  ;;  %917 = vmatpush3.bf16.msra.mxu1 %v916_v13  ;;  %903 = vmatprep.subr.bf16.mxu0 %v991_v3  ;;  %v928_v41 = vpack.c.bf16 %v691_v37, %v690_v36  ;;  %v943_v42 = vpack.c.bf16 %v702_v39, %v701_v38  ;;  %v692_v43 = vld [vmem:[%s1242_s1 + $0xb0] sm:$0xff]  ;;  %v693_v44 = vld [vmem:[%s1242_s1 + $0xb8] sm:$0xff]  ;;  %v703_v45 = vld [vmem:[%s1242_s1 + $0x100] sm:$0xff] }
   0xe   : > { %s726_s11 = sshll.u32 %s1246_s13, 4  ;;  %918 = vmatprep.subr.bf16.mxu1 %v991_v3  ;;  %v704_v46 = vld [vmem:[%s1242_s1 + $0x108] sm:$0xff]  ;;  %v931_v47 = vpack.c.bf16 %v693_v44, %v692_v43  ;;  %v694_v49 = vld [vmem:[%s1242_s1 + $0xc0] sm:$0xff]  ;;  %v705_v51 = vld [vmem:[%s1242_s1 + $0x110] sm:$0xff]  ;;  %s677_s18 = sshll.u32 %s1246_s13, 3 }
   0xf   : > { %s164_s24 = scalar_lea.vmem %s1241_s0, %s726_s11  ;;  %v946_v48 = vpack.c.bf16 %v704_v46, %v703_v45  ;;  %v695_v50 = vld [vmem:[%s1242_s1 + $0xc8] sm:$0xff]  ;;  %v706_v52 = vld [vmem:[%s1242_s1 + $0x118] sm:$0xff]  ;;  %v696_v55 = vld [vmem:[%s1242_s1 + $0xd0] sm:$0xff]  ;;  %s168_s23 = scalar_lea.vmem %s1244_s3, %s677_s18 }
  0x10   : > { %905 = vmatpush3.bf16.msra.mxu0 %v904_v18  ;;  %v1093_v28 = vld [vmem:[%s164_s24] sm:$0xff]  ;;  %v1095_v29 = vld [vmem:[%s164_s24 + $0x8] sm:$0xf]  ;;  %v934_v53 = vpack.c.bf16 %v695_v50, %v694_v49  ;;  %v949_v54 = vpack.c.bf16 %v706_v52, %v705_v51  ;;  %v697_v56 = vld [vmem:[%s1242_s1 + $0xd8] sm:$0xff] }
  0x11   : > { %920 = vmatpush3.bf16.msra.mxu1 %v919_v19  ;;  %906 = vmatprep.subr.bf16.mxu0 %v991_v3  ;;  %v195_v33 = vrot.slane %v1093_v28, 1  ;;  %v196_v34 = vrot.slane %v1095_v29, 1  ;;  %v707_v57 = vld [vmem:[%s1242_s1 + $0x120] sm:$0xff]  ;;  %v708_v58 = vld [vmem:[%s1242_s1 + $0x128] sm:$0xff]  ;;  %v937_v59 = vpack.c.bf16 %v697_v56, %v696_v55  ;;  %v709_v63 = vld [vmem:[%s1242_s1 + $0x130] sm:$0xff]  ;;  %v355_v2 = vrot.slane %v1093_v28, 2 }
  0x12   : > { %921 = vmatprep.subr.bf16.mxu1 %v991_v3  ;;  %v952_v60 = vpack.c.bf16 %v708_v58, %v707_v57  ;;  %v698_v61 = vld [vmem:[%s1242_s1 + $0xe0] sm:$0xff]  ;;  %v699_v62 = vld [vmem:[%s1242_s1 + $0xe8] sm:$0xff]  ;;  %v710_v0 = vld [vmem:[%s1242_s1 + $0x138] sm:$0xff]  ;;  %v356_v4 = vrot.slane %v1095_v29, 2  ;;  %v443_v8 = vrot.slane %v1093_v28, 3  ;;  %v444_v9 = vrot.slane %v1095_v29, 3 }
  0x13   : > { %v197_v40 = vsel %vm194_vm1, %v195_v33, %v196_v34  ;;  %v940_v1 = vpack.c.bf16 %v699_v62, %v698_v61  ;;  %v955_v5 = vpack.c.bf16 %v710_v0, %v709_v63  ;;  %v712_v6 = vld [vmem:[%s1242_s1 + $0x140] sm:$0xff]  ;;  %v713_v7 = vld [vmem:[%s1242_s1 + $0x148] sm:$0xff]  ;;  %v714_v14 = vld [vmem:[%s1242_s1 + $0x150] sm:$0xff]  ;;  %v531_v25 = vrot.slane %v1093_v28, 4 }
  0x14   : > { %908 = vmatpush3.bf16.msra.mxu0 %v907_v24  ;;  %v357_v10 = vsel %vm354_vm3, %v355_v2, %v356_v4  ;;  %v958_v12 = vpack.c.bf16 %v713_v7, %v712_v6  ;;  %v445_v13 = vsel %vm442_vm4, %v443_v8, %v444_v9  ;;  %v715_v15 = vld [vmem:[%s1242_s1 + $0x158] sm:$0xff]  ;;  %v716_v17 = vld [vmem:[%s1242_s1 + $0x160] sm:$0xff]  ;;  %v717_v18 = vld [vmem:[%s1242_s1 + $0x168] sm:$0xff] }
  0x15   : > { %923 = vmatpush3.bf16.msra.mxu1 %v922_v26  ;;  %909 = vmatprep.subr.bf16.mxu0 %v991_v3  ;;  %v961_v16 = vpack.c.bf16 %v715_v15, %v714_v14  ;;  %v964_v19 = vpack.c.bf16 %v717_v18, %v716_v17  ;;  %v718_v20 = vld [vmem:[%s1242_s1 + $0x170] sm:$0xff]  ;;  %v719_v21 = vld [vmem:[%s1242_s1 + $0x178] sm:$0xff]  ;;  %v721_v23 = vld [vmem:[%s1242_s1 + $0x188] sm:$0xff]  ;;  %v532_v26 = vrot.slane %v1095_v29, 4 }
  0x16   : > { %924 = vmatprep.subr.bf16.mxu1 %v991_v3  ;;  %v967_v22 = vpack.c.bf16 %v719_v21, %v718_v20 }
  0x17   : > { %v533_v27 = vsel %vm530_vm5, %v531_v25, %v532_v26 }
  0x18   : > { %911 = vmatpush3.bf16.msra.mxu0 %v910_v32 }
  0x19   : > { %926 = vmatpush3.bf16.msra.mxu1 %v925_v35  ;;  %927 = vmatprep.subr.bf16.mxu0 %v991_v3 }
  0x1a   : > { %942 = vmatprep.subr.bf16.mxu1 %v991_v3 }
  0x1b   : > { %803 = vmatmul.mubr.msk.f32.vlgmr.msra.gmra.mrb[0].mxu0 %vm198_vm2, %v197_v40 }
  0x1c   : > { %826 = vmatmul.mubr.msk.f32.vlgmr.msra.gmra.mrb[0].mxu1 %vm198_vm2, %v1093_v28  ;;  %929 = vmatpush3.bf16.msra.mxu0 %v928_v41 }
  0x1d   : > { %944 = vmatpush3.bf16.msra.mxu1 %v943_v42  ;;  %930 = vmatprep.subr.bf16.mxu0 %v991_v3 }
  0x1e   : > { %945 = vmatprep.subr.bf16.mxu1 %v991_v3  ;;  %848 = vmatprep.mubr.msk.f32.mxu0 %vm992_vm0, %v993_v11 }
  0x1f   : > { %871 = vmatprep.mubr.msk.f32.mxu1 %vm992_vm0, %v993_v11 }
  0x20   : > { %932 = vmatpush3.bf16.msra.mxu0 %v931_v47 }
  0x21   : > { %947 = vmatpush3.bf16.msra.mxu1 %v946_v48  ;;  %933 = vmatprep.subr.bf16.mxu0 %v991_v3 }
  0x22   : > { %948 = vmatprep.subr.bf16.mxu1 %v991_v3 }
  0x24   : > { %935 = vmatpush3.bf16.msra.mxu0 %v934_v53 }
  0x25   : > { %950 = vmatpush3.bf16.msra.mxu1 %v949_v54  ;;  %936 = vmatprep.subr.bf16.mxu0 %v991_v3 }
  0x26   : > { %951 = vmatprep.subr.bf16.mxu1 %v991_v3 }
  0x28   : > { %938 = vmatpush3.bf16.msra.mxu0 %v937_v59 }
  0x29   : > { %953 = vmatpush3.bf16.msra.mxu1 %v952_v60  ;;  %939 = vmatprep.subr.bf16.mxu0 %v991_v3 }
  0x2a   : > { %954 = vmatprep.subr.bf16.mxu1 %v991_v3 }
  0x2c   : > { %941 = vmatpush3.bf16.msra.mxu0 %v940_v1 }
  0x2d   : > { %956 = vmatpush3.bf16.msra.mxu1 %v955_v5  ;;  %957 = vmatprep.subr.bf16.mxu0 %v991_v3 }
  0x2f   : > { %849 = vmatmul.mubr.msk.f32.vlgmr.msra.gmra.mrb[2].mxu0 %vm198_vm2, %v357_v10 }
  0x30   : > { %959 = vmatpush3.bf16.msra.mxu0 %v958_v12  ;;  %872 = vmatmul.mubr.msk.f32.vlgmr.msra.gmra.mrb[2].mxu1 %vm198_vm2, %v445_v13 }
  0x31   : > { %960 = vmatprep.subr.bf16.mxu0 %v991_v3  ;;  %894 = vmatprep.mubr.msk.f32.mxu0 %vm992_vm0, %v993_v11  ;;  %v720_v11 = vld [vmem:[%s1242_s1 + $0x180] sm:$0xff] }
  0x32   : > { %v970_v24 = vpack.c.bf16 %v721_v23, %v720_v11 }
  0x34   : > { %962 = vmatpush3.bf16.msra.mxu0 %v961_v16 }
  0x35   : > { %963 = vmatprep.subr.bf16.mxu0 %v991_v3 }
  0x38   : > { %965 = vmatpush3.bf16.msra.mxu0 %v964_v19 }
  0x39   : > { %966 = vmatprep.subr.bf16.mxu0 %v991_v3 }
  0x3c   : > { %968 = vmatpush3.bf16.msra.mxu0 %v967_v22 }
  0x3d   : > { %969 = vmatprep.subr.bf16.mxu0 %v991_v3  ;;  %v723_v3 = vld [vmem:[%s1243_s2] ss:$0 sm:$0xff] }
  0x40   : > { %971 = vmatpush3.bf16.msra.mxu0 %v970_v24 }
  0x43   : > { %895 = vmatmul.mubr.msk.f32.vlgmr.msra.gmra.mrb[4].mxu0 %vm198_vm2, %v533_v27 }
  0xee   : > { %v267_v30 = vpop.f32.mrb[0].mxu0 }
  0xef   : > { %v804_v31 = vpop.f32.mrb[1].mxu0  ;;  %v339_v32 = vpop.f32.mrb[0].mxu1 }
  0xf0   : > { %v340_v33 = vadd.f32 %v339_v32, %v267_v30  ;;  %v827_v34 = vpop.f32.mrb[1].mxu1 }
 0x102   : > { %v426_v35 = vpop.f32.mrb[2].mxu0 }
 0x103   : > { %v430_v36 = vadd.f32 %v426_v35, %v340_v33  ;;  %v850_v37 = vpop.f32.mrb[3].mxu0  ;;  %v514_v38 = vpop.f32.mrb[2].mxu1 }
 0x104   : > { %v873_v28 = vpop.f32.mrb[3].mxu1 }
 0x105   : > { %v518_v39 = vadd.f32 %v514_v38, %v430_v36 }
 0x116   : > { %v602_v29 = vpop.f32.mrb[4].mxu0 }
 0x117   : > { %v606_v40 = vadd.f32 %v602_v29, %v518_v39  ;;  %v896_v41 = vpop.f32.mrb[5].mxu0 }
 0x119   : > { %v614_v42 = vadd.f32 %v723_v3, %v606_v40 }
 0x11b   : > { %616 = vst.msk [vmem:[%s168_s23] sm:$0xff] %vm615_vm6, %v614_v42 }
 0x11c PF: > { %s13_s12 = sadd.s32 1, %s989_s12  }
 0x11d   : > { %p10_p4 = scmp.ge.s32.totalorder %s13_s12, 4  }
 0x11f   :  { %12 = sbr.rel (!%p10_p4) target bundleno = 1 (0x1), region = 66 }

// kernel: my_model_forward.19
= control target key start
LH: loop header
LB: loop body
LE: loop exit
PB: predicated region body
PF: predicated region fallthrough
CT: control target
= control target key end

     0   :  { %s825_s12 = smov 0   ;;  %s934_s0 = inlined_call_operand.vmem [shape: f32[2,12,32], index: 0, kind: input, shape index: {}]   ;;  %s935_s1 = inlined_call_operand.vmem [shape: f32[5,32,80], index: 1, kind: input, shape index: {}]   ;;  %s936_s2 = inlined_call_operand.vmem [shape: f32[1,80], index: 2, kind: input, shape index: {}]   ;;  %s937_s3 = inlined_call_operand.vmem [shape: f32[2,8,80], index: 3, kind: output, shape index: {}]  }
   0x1 LB: > { %s640_s13 = sadd.s32 4294967295, %s800_s12   ;;  %p644_p0 = scmp.ge.s32.totalorder %s800_s12, 1  ;;  %s800_s12 = sphi %s825_s12, %s13_s12  }
   0x2   : > { %p137_p1 = scmp.lt.s32.totalorder %s800_s12, 3 }
   0x4   : > { %p138_p2 = pnand %p644_p0, %p137_p1 }
   0x5   : > { %v648_v0 = vld [vmem:[%s935_s1 + $0x20] sm:$0xff] (!%p138_p2)  ;;  %v649_v1 = vld [vmem:[%s935_s1 + $0x28] sm:$0xff] (!%p138_p2)  ;;  %v802_v3 = vmov (!%p138_p2), 0.0|0.0   ;;  %v650_v6 = vld [vmem:[%s935_s1 + $0x30] sm:$0xff] (!%p138_p2)  ;;  %p160_p3 = scmp.lt.s32.totalorder (!%p138_p2), %s640_s13, 1  ;;  %vm803_vm0 = vmmov (!%p138_p2), 0  }
   0x6   : > { %141 = sbr.rel (%p138_p2) target bundleno = 253 (0xfd), region = 32  ;;  %v171_v2 = vld [vmem:[%s935_s1] sm:$0xff] (!%p138_p2)  ;;  %753 = vmatprep.subr.bf16.mxu0 (!%p138_p2), %v802_v3  ;;  %v754_v4 = vpack.c.bf16 (!%p138_p2), %v649_v1, %v648_v0  ;;  %759 = vmatprep.subr.bf16.mxu1 (!%p138_p2), %v802_v3  ;;  %v172_v5 = vld [vmem:[%s935_s1 + $0x8] sm:$0xff] (!%p138_p2)  ;;  %v651_v7 = vld [vmem:[%s935_s1 + $0x38] sm:$0xff] (!%p138_p2)  ;;  %v804_v11 = vmov (!%p138_p2), 0.0   ;;  %vm182_vm1 = vcmask (!%p138_p2), 1046528  }
   0x7   : > { %v760_v8 = vpack.c.bf16 (!%p138_p2), %v172_v5, %v171_v2  ;;  %v173_v9 = vld [vmem:[%s935_s1 + $0x10] sm:$0xff] (!%p138_p2)  ;;  %v174_v10 = vld [vmem:[%s935_s1 + $0x18] sm:$0xff] (!%p138_p2)  ;;  %706 = vmatprep.mubr.msk.f32.mxu0 (!%p138_p2), %vm803_vm0, %v804_v11  ;;  %717 = vmatprep.mubr.msk.f32.mxu1 (!%p138_p2), %vm803_vm0, %v804_v11  ;;  %v757_v12 = vpack.c.bf16 (!%p138_p2), %v651_v7, %v650_v6  ;;  %v654_v14 = vld [vmem:[%s935_s1 + $0x40] sm:$0xff] (!%p138_p2)  ;;  %vm186_vm2 = vcmask (!%p138_p2), 261120   ;;  %vm336_vm3 = vcmask (!%p138_p2), 1045504  }
   0x8   : > { %755 = vmatpush3.bf16.msra.mxu0 (!%p138_p2), %v754_v4  ;;  %v763_v13 = vpack.c.bf16 (!%p138_p2), %v174_v10, %v173_v9  ;;  %v655_v15 = vld [vmem:[%s935_s1 + $0x48] sm:$0xff] (!%p138_p2)  ;;  %v659_v16 = vld [vmem:[%s935_s1 + $0x60] sm:$0xff] (!%p138_p2)  ;;  %v656_v20 = vld [vmem:[%s935_s1 + $0x50] sm:$0xff] (!%p138_p2)  ;;  %vm418_vm4 = vcmask (!%p138_p2), 1044480   ;;  %vm500_vm5 = vcmask (!%p138_p2), 1043456   ;;  %vm585_vm6 = vcmask (!%p138_p2), 654336  }
   0x9   : > { %761 = vmatpush3.bf16.msra.mxu1 (!%p138_p2), %v760_v8  ;;  %756 = vmatprep.subr.bf16.mxu0 (!%p138_p2), %v802_v3  ;;  %v660_v17 = vld [vmem:[%s935_s1 + $0x68] sm:$0xff] (!%p138_p2)  ;;  %v766_v23 = vpack.c.bf16 (!%p138_p2), %v655_v15, %v654_v14  ;;  %v657_v25 = vld [vmem:[%s935_s1 + $0x58] sm:$0xff] (!%p138_p2)  ;;  %v661_v26 = vld [vmem:[%s935_s1 + $0x70] sm:$0xff] (!%p138_p2) }
   0xa   : > { %762 = vmatprep.subr.bf16.mxu1 (!%p138_p2), %v802_v3  ;;  %v772_v24 = vpack.c.bf16 (!%p138_p2), %v660_v17, %v659_v16  ;;  %v662_v27 = vld [vmem:[%s935_s1 + $0x78] sm:$0xff] (!%p138_p2)  ;;  %v769_v29 = vpack.c.bf16 (!%p138_p2), %v657_v25, %v656_v20  ;;  %v664_v35 = vld [vmem:[%s935_s1 + $0x80] sm:$0xff] (!%p138_p2)  ;;  %v665_v36 = vld [vmem:[%s935_s1 + $0x88] sm:$0xff] (!%p138_p2) }
   0xb   : > { %v775_v30 = vpack.c.bf16 (!%p138_p2), %v662_v27, %v661_v26  ;;  %v778_v38 = vpack.c.bf16 (!%p138_p2), %v665_v36, %v664_v35  ;;  %v666_v40 = vld [vmem:[%s935_s1 + $0x90] sm:$0xff] (!%p138_p2)  ;;  %v667_v41 = vld [vmem:[%s935_s1 + $0x98] sm:$0xff] (!%p138_p2)  ;;  %v669_v58 = vld [vmem:[%s936_s2] ss:$0 sm:$0xff] (!%p138_p2) }
   0xc   : > { %758 = vmatpush3.bf16.msra.mxu0 (!%p138_p2), %v757_v12  ;;  %v781_v42 = vpack.c.bf16 (!%p138_p2), %v667_v41, %v666_v40 }
   0xd   : > { %s939_s13 = smov (!%p160_p3, %s640_s13), 1  ;;  %764 = vmatpush3.bf16.msra.mxu1 %v763_v13  ;;  %765 = vmatprep.subr.bf16.mxu0 %v802_v3 }
   0xe   : > { %s672_s5 = sshll.u32 %s939_s13, 4  ;;  %771 = vmatprep.subr.bf16.mxu1 %v802_v3  ;;  %s647_s6 = sshll.u32 %s939_s13, 3 }
   0xf   : > { %s164_s16 = scalar_lea.vmem %s934_s0, %s672_s5  ;;  %s168_s11 = scalar_lea.vmem %s937_s3, %s647_s6 }
  0x10   : > { %v169_v18 = vld [vmem:[%s164_s16] sm:$0xff]  ;;  %v170_v19 = vld [vmem:[%s164_s16 + $0x8] sm:$0xf] }
  0x11   : > { %v183_v21 = vrot.slane %v169_v18, 1  ;;  %v184_v22 = vrot.slane %v170_v19, 1  ;;  %718 = vmatmul.mubr.msk.f32.vlgmr.msra.gmra.mrb[0].mxu1 %vm186_vm2, %v169_v18  ;;  %v337_v31 = vrot.slane %v169_v18, 2  ;;  %v338_v32 = vrot.slane %v170_v19, 2 }
  0x12   : > { %773 = vmatpush3.bf16.msra.mxu1 %v772_v24  ;;  %v419_v33 = vrot.slane %v169_v18, 3  ;;  %v420_v34 = vrot.slane %v170_v19, 3  ;;  %739 = vmatprep.mubr.msk.f32.mxu1 %vm803_vm0, %v804_v11  ;;  %v501_v43 = vrot.slane %v169_v18, 4  ;;  %v502_v44 = vrot.slane %v170_v19, 4 }
  0x13   : > { %v185_v28 = vsel %vm182_vm1, %v183_v21, %v184_v22  ;;  %774 = vmatprep.subr.bf16.mxu1 %v802_v3  ;;  %v339_v37 = vsel %vm336_vm3, %v337_v31, %v338_v32 }
  0x14   : > { %707 = vmatmul.mubr.msk.f32.vlgmr.msra.gmra.mrb[0].mxu0 %vm186_vm2, %v185_v28  ;;  %v421_v39 = vsel %vm418_vm4, %v419_v33, %v420_v34  ;;  %v503_v45 = vsel %vm500_vm5, %v501_v43, %v502_v44 }
  0x15   : > { %767 = vmatpush3.bf16.msra.mxu0 %v766_v23  ;;  %728 = vmatprep.mubr.msk.f32.mxu0 %vm803_vm0, %v804_v11 }
  0x16   : > { %768 = vmatprep.subr.bf16.mxu0 %v802_v3  ;;  %776 = vmatpush3.bf16.msra.mxu1 %v775_v30 }
  0x19   : > { %770 = vmatpush3.bf16.msra.mxu0 %v769_v29  ;;  %740 = vmatmul.mubr.msk.f32.vlgmr.msra.gmra.mrb[2].mxu1 %vm186_vm2, %v421_v39 }
  0x1a   : > { %777 = vmatprep.subr.bf16.mxu0 %v802_v3 }
  0x1c   : > { %729 = vmatmul.mubr.msk.f32.vlgmr.msra.gmra.mrb[2].mxu0 %vm186_vm2, %v339_v37 }
  0x1d   : > { %779 = vmatpush3.bf16.msra.mxu0 %v778_v38  ;;  %750 = vmatprep.mubr.msk.f32.mxu0 %vm803_vm0, %v804_v11 }
  0x1e   : > { %780 = vmatprep.subr.bf16.mxu0 %v802_v3 }
  0x21   : > { %782 = vmatpush3.bf16.msra.mxu0 %v781_v42 }
  0x24   : > { %751 = vmatmul.mubr.msk.f32.vlgmr.msra.gmra.mrb[4].mxu0 %vm186_vm2, %v503_v45 }
  0xe4   : > { %v327_v47 = vpop.f32.mrb[0].mxu1 }
  0xe5   : > { %v719_v50 = vpop.f32.mrb[1].mxu1 }
  0xe7   : > { %v255_v46 = vpop.f32.mrb[0].mxu0 }
  0xe8   : > { %v708_v48 = vpop.f32.mrb[1].mxu0  ;;  %v328_v49 = vadd.f32 %v327_v47, %v255_v46 }
  0xec   : > { %v490_v52 = vpop.f32.mrb[2].mxu1 }
  0xed   : > { %v741_v55 = vpop.f32.mrb[3].mxu1 }
  0xef   : > { %v408_v51 = vpop.f32.mrb[2].mxu0 }
  0xf0   : > { %v412_v53 = vadd.f32 %v408_v51, %v328_v49  ;;  %v730_v54 = vpop.f32.mrb[3].mxu0 }
  0xf2   : > { %v494_v56 = vadd.f32 %v490_v52, %v412_v53 }
  0xf7   : > { %v572_v57 = vpop.f32.mrb[4].mxu0 }
  0xf8   : > { %v576_v59 = vadd.f32 %v572_v57, %v494_v56  ;;  %v752_v60 = vpop.f32.mrb[5].mxu0 }
  0xfa   : > { %v584_v61 = vadd.f32 %v669_v58, %v576_v59 }
  0xfc   : > { %586 = vst.msk [vmem:[%s168_s11] sm:$0xff] %vm585_vm6, %v584_v61 }
  0xfd PF: > { %s13_s12 = sadd.s32 1, %s800_s12  }
  0xfe   : > { %p10_p4 = scmp.ge.s32.totalorder %s13_s12, 4  }
 0x100   :  { %12 = sbr.rel (!%p10_p4) target bundleno = 1 (0x1), region = 66 }

// kernel: my_model_forward.14
= control target key start
LH: loop header
LB: loop body
LE: loop exit
PB: predicated region body
PF: predicated region fallthrough
CT: control target
= control target key end

     0   :  { %v11446_v0 = vmov 0.0|0.0   ;;  %vm9576_vm0 = vmmov 0   ;;  %v11448_v4 = vmov 0.0   ;;  %vm150_vm1 = vcmask 654336   ;;  %s9579_s22 = smov 64   ;;  %s9580_s18 = smov 8   ;;  %s11428_s4 = inlined_call_operand.vmem [shape: f32[80,32], index: 4, kind: input, shape index: {}]   ;;  %s11429_s5 = inlined_call_operand.vmem [shape: f32[32,32], index: 5, kind: input, shape index: {}]   ;;  %s11430_s0 = inlined_call_operand.vmem [shape: f32[8,2,80], index: 0, kind: input, shape index: {}]   ;;  %s11431_s6 = inlined_call_operand.vmem [shape: f32[96,128], index: 6, kind: input, shape index: {}]   ;;  %s11432_s7 = inlined_call_operand.vmem [shape: f32[1,128], index: 7, kind: input, shape index: {}]   ;;  %s11433_s9 = inlined_call_operand.vmem [shape: f32[16,128], index: 9, kind: input, shape index: {}]   ;;  %s11434_s8 = inlined_call_operand.vmem [shape: f32[32,128], index: 8, kind: input, shape index: {}]   ;;  %s11435_s10 = inlined_call_operand.vmem [shape: f32[128,8], index: 10, kind: input, shape index: {}]   ;;  %s11436_s2 = inlined_call_operand.vmem [shape: f32[2,128], index: 2, kind: input, shape index: {}]   ;;  %s11437_s3 = inlined_call_operand.vmem [shape: f32[2,8], index: 3, kind: input, shape index: {}]   ;;  %s11438_s11 = inlined_call_operand.vmem [shape: f32[96,128], index: 11, kind: input, shape index: {}]   ;;  %s11439_s1 = inlined_call_operand.vmem [shape: f32[2,8,32], index: 1, kind: input, shape index: {}]   ;;  %s11440_s12 = inlined_call_operand.vmem [shape: f32[1,128], index: 12, kind: input, shape index: {}]   ;;  %s11441_s13 = inlined_call_operand.vmem [shape: f32[64,128], index: 13, kind: input, shape index: {}]   ;;  %s11442_s15 = inlined_call_operand.vmem [shape: f32[8,128], index: 15, kind: input, shape index: {}]   ;;  %s11443_s14 = inlined_call_operand.vmem [shape: f32[1,128], index: 14, kind: input, shape index: {}]   ;;  %s11444_s16 = inlined_call_operand.vmem [shape: f32[8,2,128], index: 16, kind: output, shape index: {}]  }
   0x1   :  { %11468 = sst [smem:[#allocation17_spill]] %s11428_s4  ;;  %8514 = vmatprep.subr.bf16.mxu0 %v11446_v0  ;;  %7214 = vmatprep.mubr.msk.f32.mxu0 %vm9576_vm0, %v11448_v4  ;;  %v80_v17 = vld [vmem:[%s11429_s5] sm:$0xff]  ;;  %v81_v18 = vld [vmem:[%s11429_s5 + $0x8] sm:$0xff]  ;;  %v82_v21 = vld [vmem:[%s11429_s5 + $0x10] sm:$0xff]  ;;  %vm57_vm2 = vcmask 254976   ;;  %vm225_vm3 = vcmask 261120  }
   0x2   :  { %s11469_s23 = sld [smem:[#allocation17_spill]]  ;;  %8535 = vmatprep.subr.bf16.mxu1 %v11446_v0  ;;  %7252 = vmatprep.mubr.msk.f32.mxu1 %vm9576_vm0, %v11448_v4  ;;  %v149_v19 = vld [vmem:[%s11430_s0] sm:$0x3]  ;;  %v9731_v20 = vpack.c.bf16 %v81_v18, %v80_v17  ;;  %v83_v22 = vld [vmem:[%s11429_s5 + $0x18] sm:$0xff]  ;;  %65 = vst.msk [vmem:[#allocation8] sm:$0x3] %vm57_vm2, %v11448_v4 }
   0x3   :  { %v9745_v23 = vpack.c.bf16 %v83_v22, %v82_v21  ;;  %58 = vst.msk [vmem:[#allocation2] sm:$0x3] %vm57_vm2, %v11448_v4  ;;  %59 = vst.msk [vmem:[#allocation3] sm:$0x3] %vm57_vm2, %v11448_v4  ;;  %v84_v24 = vld [vmem:[%s11431_s6] sm:$0xff]  ;;  %v85_v25 = vld [vmem:[%s11431_s6 + $0x8] sm:$0xff] }
   0x4   :  { %60 = vst.msk [vmem:[#allocation4] sm:$0x3] %vm57_vm2, %v11448_v4  ;;  %61 = vst.msk [vmem:[#allocation5] sm:$0x3] %vm57_vm2, %v11448_v4  ;;  %v86_v26 = vld [vmem:[%s11431_s6 + $0x10] sm:$0xff]  ;;  %v9768_v27 = vpack.c.bf16 %v85_v25, %v84_v24  ;;  %v87_v28 = vld [vmem:[%s11431_s6 + $0x18] sm:$0xff] }
   0x5   :  { %v9774_v29 = vpack.c.bf16 %v87_v28, %v86_v26  ;;  %v88_v30 = vld [vmem:[%s11431_s6 + $0x20] sm:$0xff]  ;;  %v89_v31 = vld [vmem:[%s11431_s6 + $0x28] sm:$0xff]  ;;  %v90_v34 = vld [vmem:[%s11431_s6 + $0x30] sm:$0xff]  ;;  %vm309_vm4 = vcmask 523264   ;;  %vm317_vm5 = vcmask 785408   ;;  %vm62_vm6 = vcmask 58368  }
   0x6   :  { %8537 = vmatpush3.bf16.msra.mxu1 %v9768_v27  ;;  %v9784_v33 = vpack.c.bf16 %v89_v31, %v88_v30  ;;  %v91_v35 = vld [vmem:[%s11431_s6 + $0x38] sm:$0xff]  ;;  %v92_v38 = vld [vmem:[%s11431_s6 + $0x40] sm:$0xff]  ;;  %v93_v39 = vld [vmem:[%s11431_s6 + $0x48] sm:$0xff]  ;;  %64 = vst.msk [vmem:[#allocation7] sm:$0x3] %vm62_vm6, %v11448_v4  ;;  %vm423_vm7 = vcmask 64512  }
   0x7   :  { %8538 = vmatprep.subr.bf16.mxu1 %v11446_v0  ;;  %v9795_v37 = vpack.c.bf16 %v91_v35, %v90_v34  ;;  %v9806_v40 = vpack.c.bf16 %v93_v39, %v92_v38  ;;  %v94_v44 = vld [vmem:[%s11431_s6 + $0x50] sm:$0xff]  ;;  %v95_v45 = vld [vmem:[%s11431_s6 + $0x58] sm:$0xff]  ;;  %v9832_v54 = vld [vmem:[%s11432_s7] ss:$0 sm:$0xff]  ;;  %63 = vst.msk [vmem:[#allocation6] sm:$0x3] %vm62_vm6, %v11448_v4 }
   0x8   :  { %v70_v1 = vld [vmem:[%s11469_s23] sm:$0xff]  ;;  %v71_v2 = vld [vmem:[%s11469_s23 + $0x8] sm:$0xff]  ;;  %v72_v3 = vld [vmem:[%s11469_s23 + $0x10] sm:$0xff]  ;;  %v9820_v46 = vpack.c.bf16 %v95_v45, %v94_v44  ;;  %vm425_vm8 = vcmask 130048   ;;  %vm694_vm10 = vcmask 1041409  }
   0x9   :  { %v9679_v5 = vpack.c.bf16 %v71_v2, %v70_v1  ;;  %v73_v6 = vld [vmem:[%s11469_s23 + $0x18] sm:$0xff]  ;;  %v74_v8 = vld [vmem:[%s11469_s23 + $0x20] sm:$0xff]  ;;  %v75_v9 = vld [vmem:[%s11469_s23 + $0x28] sm:$0xff] }
   0xa   :  { %v9688_v7 = vpack.c.bf16 %v73_v6, %v72_v3  ;;  %v9698_v10 = vpack.c.bf16 %v75_v9, %v74_v8  ;;  %v76_v11 = vld [vmem:[%s11469_s23 + $0x30] sm:$0xff]  ;;  %v77_v12 = vld [vmem:[%s11469_s23 + $0x38] sm:$0xff]  ;;  %v78_v14 = vld [vmem:[%s11469_s23 + $0x40] sm:$0xff]  ;;  %8540 = vmatpush3.bf16.msra.mxu1 %v9774_v29 }
   0xb   :  { %8516 = vmatpush3.bf16.msra.mxu0 %v9679_v5  ;;  %v9708_v13 = vpack.c.bf16 %v77_v12, %v76_v11  ;;  %v79_v15 = vld [vmem:[%s11469_s23 + $0x48] sm:$0xff]  ;;  %s9578_s23 = smov 32   ;;  %8541 = vmatprep.subr.bf16.mxu1 %v11446_v0  ;;  %v142_v36 = vld [vmem:[#allocation2] sm:$0x3]  ;;  %v143_v59 = vld [vmem:[#allocation3] sm:$0x3] }
   0xc   :  { %8517 = vmatprep.subr.bf16.mxu0 %v11446_v0  ;;  %v9718_v16 = vpack.c.bf16 %v79_v15, %v78_v14  ;;  %v148_v32 = vld [vmem:[#allocation8] sm:$0x3]  ;;  %v101_v12 = vld [vmem:[%s11433_s9] sm:$0xff]  ;;  %v99_v24 = vld [vmem:[%s11434_s8 + $0x10] sm:$0xff] }
   0xd   :  { %11470 = vst [vmem:[#allocation9_spill] sm:$0xff] %v9708_v13  ;;  %301 = vrot.lane.b32.xlu0 %v148_v32, %s9578_s23  ;;  %v9842_v3 = vld [vmem:[#allocation7] sm:$0x3]  ;;  %v97_v17 = vld [vmem:[%s11434_s8] sm:$0xff]  ;;  %v100_v25 = vld [vmem:[%s11434_s8 + $0x18] sm:$0xff] }
   0xe   :  { %11471 = vst [vmem:[#allocation10_spill] sm:$0xff] %v9718_v16  ;;  %8543 = vmatpush3.bf16.msra.mxu1 %v9784_v33  ;;  %v102_v14 = vld [vmem:[%s11433_s9 + $0x8] sm:$0xff]  ;;  %v9876_v28 = vpack.c.bf16 %v100_v25, %v99_v24  ;;  %v103_v34 = vld [vmem:[%s11435_s10] sm:$0xff]  ;;  %v105_v38 = vld [vmem:[%s11435_s10 + $0x10] sm:$0xff]  ;;  %s9581_s9 = smov 96  }
   0xf   :  { %8519 = vmatpush3.bf16.msra.mxu0 %v9688_v7  ;;  %8544 = vmatprep.subr.bf16.mxu1 %v11446_v0  ;;  %v9855_v15 = vpack.c.bf16 %v102_v14, %v101_v12  ;;  %v98_v18 = vld [vmem:[%s11434_s8 + $0x8] sm:$0xff]  ;;  %v106_v39 = vld [vmem:[%s11435_s10 + $0x18] sm:$0xff] }
  0x10   :  { %8520 = vmatprep.subr.bf16.mxu0 %v11446_v0  ;;  %v9865_v21 = vpack.c.bf16 %v98_v18, %v97_v17  ;;  %v104_v35 = vld [vmem:[%s11435_s10 + $0x8] sm:$0xff] }
  0x11   :  { %305 = vrot.lane.b32.xlu0 %v142_v36, %s9579_s22  ;;  %v9894_v36 = vpack.c.bf16 %v104_v35, %v103_v34  ;;  %v108_v44 = vld [vmem:[%s11435_s10 + $0x28] sm:$0xff] }
  0x12   :  { %8546 = vmatpush3.bf16.msra.mxu1 %v9795_v37 }
  0x13   :  { %8522 = vmatpush3.bf16.msra.mxu0 %v9698_v10  ;;  %8547 = vmatprep.subr.bf16.mxu1 %v11446_v0 }
  0x14   :  { %8523 = vmatprep.subr.bf16.mxu0 %v11446_v0 }
  0x16   :  { %8549 = vmatpush3.bf16.msra.mxu1 %v9806_v40 }
  0x17   :  { %8525 = vmatpush3.bf16.msra.mxu0 %v9708_v13  ;;  %8550 = vmatprep.subr.bf16.mxu1 %v11446_v0 }
  0x18   :  { %8526 = vmatprep.subr.bf16.mxu0 %v11446_v0 }
  0x1a   :  { %8552 = vmatpush3.bf16.msra.mxu1 %v9820_v46 }
  0x1b   :  { %8528 = vmatpush3.bf16.msra.mxu0 %v9718_v16  ;;  %8586 = vmatprep.subr.bf16.mxu1 %v11446_v0 }
  0x1c   :  { %8529 = vmatprep.subr.bf16.mxu0 %v11446_v0 }
  0x1e   :  { %7215 = vmatmul.mubr.msk.f32.vlgmr.msra.gmra.mrb[0].mxu0 %vm150_vm1, %v149_v19  ;;  %v146_v19 = vld [vmem:[#allocation6] sm:$0x3] }
  0x1f   :  { %8531 = vmatpush3.bf16.msra.mxu0 %v9731_v20  ;;  %7225 = vmatprep.mubr.msk.f32.mxu0 %vm9576_vm0, %v11448_v4 }
  0x20   :  { %8532 = vmatprep.subr.bf16.mxu0 %v11446_v0 }
  0x23   :  { %8534 = vmatpush3.bf16.msra.mxu0 %v9745_v23 }
  0x24   :  { %8553 = vmatprep.subr.bf16.mxu0 %v11446_v0 }
  0x7f   :  { %v302_v47 = vpop.permute.xlu0 %301 }
  0x83   :  { %v306_v51 = vpop.permute.xlu0 %305 }
  0xf1   :  { %v220_v41 = vpop.f32.mrb[0].mxu0 }
  0xf2   :  { %v224_v42 = vmax.f32 %v220_v41, 0.0  ;;  %v7216_v43 = vpop.f32.mrb[1].mxu0 }
  0xf3   :  { %v107_v43 = vld [vmem:[%s11435_s10 + $0x20] sm:$0xff] }
  0xf4   :  { %7226 = vmatmul.mubr.msk.f32.vlgmr.msra.gmra.mrb[2].mxu0 %vm225_vm3, %v224_v42  ;;  %v9907_v42 = vpack.c.bf16 %v106_v39, %v105_v38  ;;  %v9919_v45 = vpack.c.bf16 %v108_v44, %v107_v43 }
  0xf5   :  { %7259 = vmatprep.mubr.msk.f32.mxu0 %vm9576_vm0, %v11448_v4  ;;  %8555 = vmatpush3.bf16.msra.mxu0 %v9855_v15 }
  0xf6   :  { %8556 = vmatprep.subr.bf16.mxu0 %v11446_v0 }
 0x1c7   :  { %v295_v48 = vpop.f32.mrb[2].mxu0 }
 0x1c8   :  { %v299_v49 = vmax.f32 %v295_v48, 0.0  ;;  %v7227_v50 = vpop.f32.mrb[3].mxu0  ;;  %v110_v48 = vld [vmem:[%s11435_s10 + $0x38] sm:$0xff] }
 0x1c9   :  { %v111_v50 = vld [vmem:[%s11435_s10 + $0x40] sm:$0xff] }
 0x1ca   :  { %v308_v52 = vsel %vm225_vm3, %v299_v49, %v302_v47  ;;  %v109_v47 = vld [vmem:[%s11435_s10 + $0x30] sm:$0xff] }
 0x1cb   :  { %v310_v53 = vsel %vm309_vm4, %v308_v52, %v306_v51  ;;  %v9929_v49 = vpack.c.bf16 %v110_v48, %v109_v47  ;;  %v112_v51 = vld [vmem:[%s11435_s10 + $0x48] sm:$0xff]  ;;  %v144_v48 = vld [vmem:[#allocation4] sm:$0x3] }
 0x1cc   :  { %7253 = vmatmul.mubr.msk.f32.vlgmr.msra.gmra.mrb[0].mxu1 %vm317_vm5, %v310_v53  ;;  %v9939_v52 = vpack.c.bf16 %v112_v51, %v111_v50  ;;  %v113_v53 = vld [vmem:[%s11435_s10 + $0x50] sm:$0xff]  ;;  %v119_v50 = vld [vmem:[%s11438_s11] sm:$0xff]  ;;  %v120_v51 = vld [vmem:[%s11438_s11 + $0x8] sm:$0xff] }
 0x1cd   :  { %7332 = vmatprep.mubr.msk.f32.mxu1 %vm9576_vm0, %v11448_v4 }
 0x29f   :  { %v387_v55 = vpop.f32.mrb[0].mxu1 }
 0x2a0   :  { %v388_v56 = vadd.f32 %v9832_v54, %v387_v55  ;;  %v7254_v57 = vpop.f32.mrb[1].mxu1  ;;  %v114_v55 = vld [vmem:[%s11435_s10 + $0x58] sm:$0xff] }
 0x2a1   :  { %v115_v57 = vld [vmem:[%s11435_s10 + $0x60] sm:$0xff] }
 0x2a2   :  { %9385 = vtanh.f32 %v388_v56  ;;  %v6477_v60 = vmul.f32 -1.442695, %v388_v56  ;;  %v9950_v56 = vpack.c.bf16 %v114_v55, %v113_v53  ;;  %v121_v53 = vld [vmem:[%s11438_s11 + $0x10] sm:$0xff]  ;;  %v10022_v55 = vpack.c.bf16 %v120_v51, %v119_v50 }
 0x2a4   :  { %9387 = vpow2.f32 %v6477_v60  ;;  %v117_v60 = vld [vmem:[%s11435_s10 + $0x70] sm:$0xff]  ;;  %8588 = vmatpush3.bf16.msra.mxu1 %v10022_v55 }
 0x2a5   :  { %8589 = vmatprep.subr.bf16.mxu1 %v11446_v0 }
 0x2ac   :  { %v9386_v58 = vpop.eup %9385 }
 0x2ad   :  { %404 = vrot.lane.b32.xlu1 %v9386_v58, %s9579_s22  ;;  %v116_v58 = vld [vmem:[%s11435_s10 + $0x68] sm:$0xff] }
 0x2ae   :  { %v9388_v61 = vpop.eup %9387 }
 0x2af   :  { %v394_v62 = vadd.f32 1.0, %v9388_v61  ;;  %v118_v61 = vld [vmem:[%s11435_s10 + $0x78] sm:$0xff] }
 0x2b1   :  { %399 = vrot.lane.b32.xlu1 %v143_v59, %s9578_s23  ;;  %9389 = vrcp.f32 %v394_v62  ;;  %v9960_v59 = vpack.c.bf16 %v116_v58, %v115_v57  ;;  %v9969_v62 = vpack.c.bf16 %v118_v61, %v117_v60  ;;  %v122_v57 = vld [vmem:[%s11438_s11 + $0x18] sm:$0xff]  ;;  %v123_v60 = vld [vmem:[%s11438_s11 + $0x20] sm:$0xff]  ;;  %v124_v61 = vld [vmem:[%s11438_s11 + $0x28] sm:$0xff] }
 0x2b2   :  { %v10028_v58 = vpack.c.bf16 %v122_v57, %v121_v53  ;;  %v145_v53 = vld [vmem:[#allocation5] sm:$0x3] }
 0x2b4   :  { %8591 = vmatpush3.bf16.msra.mxu1 %v10028_v58 }
 0x2b5   :  { %8592 = vmatprep.subr.bf16.mxu1 %v11446_v0 }
 0x2bb   :  { %v9390_v63 = vpop.eup %9389 }
 0x31f   :  { %v405_v1 = vpop.permute.xlu1 %404 }
 0x320   :  { %v407_v2 = vmul.f32 %v9390_v63, %v405_v1 }
 0x322   :  { %409 = vrot.lane.b32.xlu0 %v407_v2, %s9578_s23 }
 0x323   :  { %v400_v6 = vpop.permute.xlu1 %399 }
 0x324   :  { %v402_v8 = vmul.f32 %v9390_v63, %v400_v6 }
 0x326   :  { %420 = vrot.lane.b32.xlu0 %v9842_v3, %s9580_s18 }
 0x394   :  { %v410_v9 = vpop.permute.xlu0 %409 }
 0x395   :  { %v9846_v11 = vadd.f32 %v410_v9, %v402_v8  ;;  %v9995_v9 = vld [vmem:[%s11437_s3] sm:$0x3] }
 0x396   :  { %11472 = vst [vmem:[#allocation11_spill] sm:$0xff] %v9995_v9  ;;  %vm646_vm9 = vcmp.gt.f32.partialorder %v9995_v9, 0.5 }
 0x397   :  { %9391 = vtanh.f32 %v9846_v11 }
 0x398   :  { %v421_v22 = vpop.permute.xlu0 %420 }
 0x399   :  { %v424_v26 = vsel %vm423_vm7, %v146_v19, %v421_v22 }
 0x39a   :  { %7260 = vmatmul.mubr.msk.f32.vlgmr.msra.gmra.mrb[4].mxu0 %vm425_vm8, %v424_v26 }
 0x39b   :  { %8558 = vmatpush3.bf16.msra.mxu0 %v9865_v21  ;;  %7270 = vmatprep.mubr.msk.f32.mxu0 %vm9576_vm0, %v11448_v4 }
 0x39c   :  { %8559 = vmatprep.subr.bf16.mxu0 %v11446_v0 }
 0x39f   :  { %8561 = vmatpush3.bf16.msra.mxu0 %v9876_v28 }
 0x3a0   :  { %8562 = vmatprep.subr.bf16.mxu0 %v11446_v0 }
 0x3a1   :  { %v9392_v30 = vpop.eup %9391 }
 0x3a2   :  { %415 = vrot.lane.b32.xlu1 %v9392_v30, %s9579_s22 }
 0x414   :  { %v416_v31 = vpop.permute.xlu1 %415 }
 0x415   :  { %v9884_v32 = vmul.f32 %v9390_v63, %v416_v31  ;;  %v9977_v63 = vld [vmem:[%s11436_s2] sm:$0x3]  ;;  %v660_v31 = vlaneseq }
 0x417   :  { %500 = vrot.lane.b32.xlu1 %v9884_v32, %s9578_s23  ;;  %v661_v34 = vshrl.u32 %v660_v31, 7 }
 0x419   :  { %v10002_v35 = vsub.s32 1, %v661_v34  ;;  %v10004_v38 = vsub.s32 0, %v661_v34 }
 0x41b   :  { %11473 = vst [vmem:[#allocation12_spill] sm:$0xff] %v10002_v35  ;;  %11474 = vst [vmem:[#allocation13_spill] sm:$0xff] %v10004_v38 }
 0x489   :  { %v9902_v41 = vpop.permute.xlu1 %500 }
 0x48a   :  { %7271 = vmatmul.mubr.msk.f32.vlgmr.msra.gmra.mrb[4].mxu0 %vm225_vm3, %v9902_v41 }
 0x48b   :  { %8564 = vmatpush3.bf16.msra.mxu0 %v9894_v36  ;;  %7305 = vmatprep.mubr.msk.f32.mxu0 %vm9576_vm0, %v11448_v4 }
 0x48c   :  { %8565 = vmatprep.subr.bf16.mxu0 %v11446_v0 }
 0x48f   :  { %8567 = vmatpush3.bf16.msra.mxu0 %v9907_v42 }
 0x490   :  { %8568 = vmatprep.subr.bf16.mxu0 %v11446_v0 }
 0x493   :  { %8570 = vmatpush3.bf16.msra.mxu0 %v9919_v45 }
 0x494   :  { %8571 = vmatprep.subr.bf16.mxu0 %v11446_v0 }
 0x497   :  { %8573 = vmatpush3.bf16.msra.mxu0 %v9929_v49 }
 0x498   :  { %8574 = vmatprep.subr.bf16.mxu0 %v11446_v0 }
 0x49b   :  { %8576 = vmatpush3.bf16.msra.mxu0 %v9939_v52 }
 0x49c   :  { %8577 = vmatprep.subr.bf16.mxu0 %v11446_v0 }
 0x49f   :  { %8579 = vmatpush3.bf16.msra.mxu0 %v9950_v56 }
 0x4a0   :  { %8580 = vmatprep.subr.bf16.mxu0 %v11446_v0 }
 0x4a3   :  { %8582 = vmatpush3.bf16.msra.mxu0 %v9960_v59 }
 0x4a4   :  { %8583 = vmatprep.subr.bf16.mxu0 %v11446_v0 }
 0x4a7   :  { %8585 = vmatpush3.bf16.msra.mxu0 %v9969_v62 }
 0x4a8   :  { %8616 = vmatprep.subr.bf16.mxu0 %v11446_v0 }
 0x55d   :  { %v570_v1 = vpop.f32.mrb[4].mxu0 }
 0x55e   :  { %v571_v2 = vadd.f32 %v570_v1, %v9977_v63  ;;  %v7272_v6 = vpop.f32.mrb[5].mxu0  ;;  %v10038_v1 = vpack.c.bf16 %v124_v61, %v123_v60 }
 0x55f   :  { %v126_v6 = vld [vmem:[%s11438_s11 + $0x38] sm:$0xff] }
 0x560   :  { %9393 = vtanh.f32 %v571_v2  ;;  %v125_v2 = vld [vmem:[%s11438_s11 + $0x30] sm:$0xff]  ;;  %8594 = vmatpush3.bf16.msra.mxu1 %v10038_v1 }
 0x561   :  { %8595 = vmatprep.subr.bf16.mxu1 %v11446_v0 }
 0x56a   :  { %v9394_v8 = vpop.eup %9393 }
 0x56b   :  { %7306 = vmatmul.mubr.f32.vlgmr.msra.gmra.mrb[6].mxu0 %v9394_v8  ;;  %v10048_v8 = vpack.c.bf16 %v126_v6, %v125_v2 }
 0x56c   :  { %8618 = vmatpush3.bf16.msra.mxu0 %v9679_v5  ;;  %7379 = vmatprep.mubr.msk.f32.mxu0 %vm9576_vm0, %v11448_v4 }
 0x56d   :  { %8619 = vmatprep.subr.bf16.mxu0 %v11446_v0  ;;  %8597 = vmatpush3.bf16.msra.mxu1 %v10048_v8 }
 0x56e   :  { %8598 = vmatprep.subr.bf16.mxu1 %v11446_v0 }
 0x570   :  { %8621 = vmatpush3.bf16.msra.mxu0 %v9688_v7 }
 0x571   :  { %8622 = vmatprep.subr.bf16.mxu0 %v11446_v0 }
 0x574   :  { %8624 = vmatpush3.bf16.msra.mxu0 %v9698_v10 }
 0x575   :  { %8625 = vmatprep.subr.bf16.mxu0 %v11446_v0 }
 0x578   :  { %8627 = vmatpush3.bf16.msra.mxu0 %v9708_v13 }
 0x579   :  { %8628 = vmatprep.subr.bf16.mxu0 %v11446_v0 }
 0x57c   :  { %8630 = vmatpush3.bf16.msra.mxu0 %v9718_v16 }
 0x57d   :  { %8637 = vmatprep.subr.bf16.mxu0 %v11446_v0 }
 0x63e   :  { %v642_v12 = vpop.f32.mrb[6].mxu0 }
 0x63f   :  { %v647_v14 = vsel %vm646_vm9, %v642_v12, -1e+09  ;;  %v7307_v17 = vpop.f32.mrb[7].mxu0  ;;  %v127_v12 = vld [vmem:[%s11438_s11 + $0x40] sm:$0xff] }
 0x640   :  { %v649_v18 = vsel %vm62_vm6, %v647_v14, -inf }
 0x641   :  { %650 = vmax.xlane.f32.xlu0 %v649_v18  ;;  %v129_v18 = vld [vmem:[%s11438_s11 + $0x50] sm:$0xff] }
 0x6ce   :  { %v651_v19 = vpop.xlane.xlu0 %650 }
 0x6cf   :  { %v652_v22 = vsub.f32 %v647_v14, %v651_v19  ;;  %v128_v14 = vld [vmem:[%s11438_s11 + $0x48] sm:$0xff]  ;;  %v130_v19 = vld [vmem:[%s11438_s11 + $0x58] sm:$0xff] }
 0x6d0   :  { %v10058_v17 = vpack.c.bf16 %v128_v14, %v127_v12 }
 0x6d1   :  { %v653_v24 = vmul.f32 1.442695, %v652_v22  ;;  %v10068_v22 = vpack.c.bf16 %v130_v19, %v129_v18 }
 0x6d2   :  { %8600 = vmatpush3.bf16.msra.mxu1 %v10058_v17 }
 0x6d3   :  { %9395 = vpow2.f32 %v653_v24  ;;  %8601 = vmatprep.subr.bf16.mxu1 %v11446_v0  ;;  %v10076_v24 = vld [vmem:[%s11439_s1 + $0x8] sm:$0xff] }
 0x6d6   :  { %8603 = vmatpush3.bf16.msra.mxu1 %v10068_v22 }
 0x6d7   :  { %8604 = vmatprep.subr.bf16.mxu1 %v11446_v0 }
 0x6dd   :  { %v9396_v25 = vpop.eup %9395 }
 0x6de   :  { %v655_v26 = vsel %vm62_vm6, %v9396_v25, 0.0 }
 0x6df   :  { %656 = vadd.xlane.f32.xlu1 %v655_v26 }
 0x76c   :  { %v657_v30 = vpop.xlane.xlu1 %656 }
 0x76d   :  { %9397 = vrcp.f32 %v657_v30 }
 0x777   :  { %v9398_v39 = vpop.eup %9397 }
 0x778   :  { %v10006_v43 = vmul.f32 %v9398_v39, %v9396_v25  ;;  %v10081_v25 = vld [vmem:[%s11439_s1] sm:$0xff] }
 0x77a   :  { %v670_v44 = vrot.slane %v10006_v43, %v10002_v35  ;;  %v663_v47 = vrot.slane %v10006_v43, %v10004_v38 }
 0x77c   :  { %672 = vbcast.lane.b32.xlu1 %v670_v44, 256  ;;  %665 = vbcast.lane.b32.xlu0 %v663_v47, 256 }
 0x780   :  { %700 = vrot.lane.b32.xlu1 %v144_v48, %s9579_s22 }
 0x784   :  { %792 = vrot.lane.b32.xlu1 %v145_v53, %s9578_s23 }
 0x7ee   :  { %v673_v26 = vpop.permute.xlu1 %672  ;;  %v666_v30 = vpop.permute.xlu0 %665 }
 0x7ef   :  { %v675_v31 = vmul.f32 %v673_v26, %v10076_v24  ;;  %v674_v34 = vmul.f32 %v666_v30, %v10081_v25 }
 0x7f1   :  { %v683_v39 = vsel %vm225_vm3, %v675_v31, 0.0  ;;  %v676_v44 = vsel %vm225_vm3, %v674_v34, 0.0 }
 0x7f2   :  { %v684_v47 = vrot.slane %v683_v39, 4  ;;  %v677_v48 = vrot.slane %v676_v44, 4  ;;  %v701_v26 = vpop.permute.xlu1 %700 }
 0x7f4   :  { %v685_v50 = vadd.f32 %v684_v47, %v683_v39  ;;  %v678_v51 = vadd.f32 %v677_v48, %v676_v44  ;;  %v10102_v39 = vld [vmem:[%s11440_s12] ss:$0 sm:$0xff] }
 0x7f6   :  { %v686_v57 = vrot.slane %v685_v50, 2  ;;  %v679_v60 = vrot.slane %v678_v51, 2 }
 0x7f8   :  { %v687_v61 = vadd.f32 %v686_v57, %v685_v50  ;;  %v680_v2 = vadd.f32 %v679_v60, %v678_v51 }
 0x7fa   :  { %v681_v6 = vrot.slane %v680_v2, 1  ;;  %v688_v12 = vrot.slane %v687_v61, 1 }
 0x7fc   :  { %v682_v14 = vadd.f32 %v681_v6, %v680_v2  ;;  %v689_v18 = vadd.f32 %v688_v12, %v687_v61  ;;  %v6486_v2 = vld [vmem:[%s11430_s0 + $0x2] sm:$0x3]  ;;  %v793_v6 = vpop.permute.xlu1 %792 }
 0x7fd   :  { %7380 = vmatmul.mubr.msk.f32.vlgmr.msra.gmra.mrb[8].mxu0 %vm150_vm1, %v6486_v2 }
 0x7fe   :  { %v695_v19 = vsel %vm694_vm10, %v689_v18, %v682_v14  ;;  %8639 = vmatpush3.bf16.msra.mxu0 %v9768_v27  ;;  %7417 = vmatprep.mubr.msk.f32.mxu0 %vm9576_vm0, %v11448_v4 }
 0x7ff   :  { %696 = vrot.lane.b32.xlu0 %v695_v19, %s9578_s23  ;;  %8640 = vmatprep.subr.bf16.mxu0 %v11446_v0  ;;  %v132_v19 = vld [vmem:[%s11441_s13] sm:$0xff] }
 0x802   :  { %8642 = vmatpush3.bf16.msra.mxu0 %v9774_v29 }
 0x803   :  { %8643 = vmatprep.subr.bf16.mxu0 %v11446_v0 }
 0x806   :  { %8645 = vmatpush3.bf16.msra.mxu0 %v9784_v33 }
 0x807   :  { %8646 = vmatprep.subr.bf16.mxu0 %v11446_v0 }
 0x80a   :  { %8648 = vmatpush3.bf16.msra.mxu0 %v9795_v37 }
 0x80b   :  { %8649 = vmatprep.subr.bf16.mxu0 %v11446_v0 }
 0x80e   :  { %8651 = vmatpush3.bf16.msra.mxu0 %v9806_v40 }
 0x80f   :  { %8652 = vmatprep.subr.bf16.mxu0 %v11446_v0 }
 0x812   :  { %8654 = vmatpush3.bf16.msra.mxu0 %v9820_v46 }
 0x813   :  { %8688 = vmatprep.subr.bf16.mxu0 %v11446_v0 }
 0x871   :  { %v10090_v30 = vpop.permute.xlu0 %696 }
 0x872   :  { %v703_v31 = vsel %vm225_vm3, %v9902_v41, %v10090_v30 }
 0x873   :  { %v704_v34 = vsel %vm309_vm4, %v703_v31, %v701_v26  ;;  %v133_v26 = vld [vmem:[%s11441_s13 + $0x8] sm:$0xff]  ;;  %v134_v31 = vld [vmem:[%s11441_s13 + $0x10] sm:$0xff] }
 0x874   :  { %7333 = vmatmul.mubr.msk.f32.vlgmr.msra.gmra.mrb[2].mxu1 %vm317_vm5, %v704_v34  ;;  %v10137_v34 = vpack.c.bf16 %v133_v26, %v132_v19  ;;  %v10178_v26 = vld [vmem:[%s11442_s15] sm:$0xff] }
 0x875   :  { %7351 = vmatprep.mubr.msk.f32.mxu1 %vm9576_vm0, %v11448_v4 }
 0x876   :  { %8606 = vmatpush3.bf16.msra.mxu1 %v10137_v34 }
 0x877   :  { %8607 = vmatprep.subr.bf16.mxu1 %v11446_v0 }
 0x947   :  { %v780_v44 = vpop.f32.mrb[2].mxu1 }
 0x948   :  { %v781_v47 = vadd.f32 %v10102_v39, %v780_v44  ;;  %v7334_v48 = vpop.f32.mrb[3].mxu1  ;;  %v135_v44 = vld [vmem:[%s11441_s13 + $0x18] sm:$0xff] }
 0x949   :  { %v136_v48 = vld [vmem:[%s11441_s13 + $0x20] sm:$0xff] }
 0x94a   :  { %9399 = vtanh.f32 %v781_v47  ;;  %v6482_v41 = vmul.f32 -1.442695, %v781_v47  ;;  %v10143_v47 = vpack.c.bf16 %v135_v44, %v134_v31  ;;  %v10203_v31 = vld [vmem:[%s11443_s14] ss:$0 sm:$0xff] }
 0x94c   :  { %9401 = vpow2.f32 %v6482_v41  ;;  %11475 = vst [vmem:[#allocation14_spill] sm:$0xff] %v10143_v47  ;;  %8609 = vmatpush3.bf16.msra.mxu1 %v10143_v47 }
 0x94d   :  { %8610 = vmatprep.subr.bf16.mxu1 %v11446_v0 }
 0x954   :  { %v9400_v50 = vpop.eup %9399 }
 0x955   :  { %797 = vrot.lane.b32.xlu0 %v9400_v50, %s9579_s22  ;;  %v137_v50 = vld [vmem:[%s11441_s13 + $0x28] sm:$0xff] }
 0x956   :  { %v9402_v51 = vpop.eup %9401  ;;  %v10153_v41 = vpack.c.bf16 %v137_v50, %v136_v48 }
 0x957   :  { %v787_v53 = vadd.f32 1.0, %v9402_v51 }
 0x958   :  { %11476 = vst [vmem:[#allocation15_spill] sm:$0xff] %v10153_v41  ;;  %8612 = vmatpush3.bf16.msra.mxu1 %v10153_v41 }
 0x959   :  { %9403 = vrcp.f32 %v787_v53  ;;  %v138_v53 = vld [vmem:[%s11441_s13 + $0x30] sm:$0xff]  ;;  %8613 = vmatprep.subr.bf16.mxu1 %v11446_v0 }
 0x963   :  { %v9404_v57 = vpop.eup %9403 }
 0x964   :  { %v795_v12 = vmul.f32 %v9404_v57, %v793_v6  ;;  %v1042_v6 = vpop.f32.mrb[8].mxu0 }
 0x9c7   :  { %v798_v60 = vpop.permute.xlu0 %797 }
 0x9c8   :  { %v800_v61 = vmul.f32 %v9404_v57, %v798_v60  ;;  %v139_v60 = vld [vmem:[%s11441_s13 + $0x38] sm:$0xff] }
 0x9ca   :  { %802 = vrot.lane.b32.xlu0 %v800_v61, %s9578_s23  ;;  %v10164_v61 = vpack.c.bf16 %v139_v60, %v138_v53 }
 0x9cc   :  { %11477 = vst [vmem:[#allocation16_spill] sm:$0xff] %v10164_v61  ;;  %8615 = vmatpush3.bf16.msra.mxu1 %v10164_v61 }
 0x9cd   :  { %7354 = vmatprep.subr.mxu1 %v11448_v4 }
 0xa3c   :  { %v803_v14 = vpop.permute.xlu0 %802 }
 0xa3d   :  { %v10125_v18 = vadd.f32 %v803_v14, %v795_v12  ;;  %v7381_v14 = vpop.f32.mrb[9].mxu0 }
 0xa3f   :  { %9405 = vtanh.f32 %v10125_v18 }
 0xa49   :  { %v9406_v51 = vpop.eup %9405 }
 0xa4a   :  { %808 = vrot.lane.b32.xlu1 %v9406_v51, %s9579_s22 }
 0xa4e   :  { %1121 = vrot.lane.b32.xlu1 %v9884_v32, %s9581_s9 }
 0xabc   :  { %v809_v2 = vpop.permute.xlu1 %808 }
 0xabd   :  { %v10171_v12 = vmul.f32 %v9404_v57, %v809_v2  ;;  %v1046_v57 = vmax.f32 %v1042_v6, 0.0 }
 0xabf   :  { %813 = vrot.lane.b32.xlu0 %v10171_v12, %s9578_s23 }
 0xac0   :  { %v1122_v2 = vpop.permute.xlu1 %1121 }
 0xb31   :  { %v814_v19 = vpop.permute.xlu0 %813 }
 0xb32   :  { %v816_v32 = vsel %vm225_vm3, %v814_v19, %v10090_v30 }
 0xb33   :  { %7352 = vmatmul.mubr.msk.f32.vlgmr.msra.gmra.mrb[4].mxu1 %vm309_vm4, %v816_v32 }
 0xb34   :  { %7355 = vmatpush3.msra.mxu1 %v10178_v26  ;;  %7356 = vmatprep.mubr.msk.f32.mxu1 %vm9576_vm0, %v11448_v4 }
 0xb35   :  { %8631 = vmatprep.subr.bf16.mxu1 %v11446_v0 }
 0xb3b   :  { %7357 = vmatmul.mubr.msk.f32.vlgmr.msra.gmra.mrb[4].mxu1 %vm423_vm7, %v10006_v43 }
 0xb3c   :  { %8633 = vmatpush3.bf16.msra.mxu1 %v9731_v20  ;;  %7390 = vmatprep.mubr.msk.f32.mxu1 %vm9576_vm0, %v11448_v4 }
 0xb3d   :  { %8634 = vmatprep.subr.bf16.mxu1 %v11446_v0 }
 0xb40   :  { %8636 = vmatpush3.bf16.msra.mxu1 %v9745_v23 }
 0xb41   :  { %8655 = vmatprep.subr.bf16.mxu1 %v11446_v0 }
 0xb43   :  { %7391 = vmatmul.mubr.msk.f32.vlgmr.msra.gmra.mrb[6].mxu1 %vm225_vm3, %v1046_v57 }
 0xb44   :  { %8657 = vmatpush3.bf16.msra.mxu1 %v9855_v15  ;;  %7424 = vmatprep.mubr.msk.f32.mxu1 %vm9576_vm0, %v11448_v4 }
 0xb45   :  { %8658 = vmatprep.subr.bf16.mxu1 %v11446_v0 }
 0xc0e   :  { %v965_v44 = vpop.f32.mrb[4].mxu1 }
 0xc0f   :  { %v9331_v48 = vadd.f32 %v10203_v31, %v965_v44  ;;  %v7358_v50 = vpop.f32.mrb[5].mxu1 }
 0xc11   :  { %970 = vst [vmem:[%s11444_s16] sm:$0x3] %v9331_v48 }
 0xc16   :  { %v1116_v51 = vpop.f32.mrb[6].mxu1 }
 0xc17   :  { %v1120_v53 = vmax.f32 %v1116_v51, 0.0  ;;  %v7392_v60 = vpop.f32.mrb[7].mxu1 }
 0xc19   :  { %v1124_v6 = vsel %vm225_vm3, %v1120_v53, %v10090_v30 }
 0xc1a   :  { %v1125_v14 = vsel %vm309_vm4, %v1124_v6, %v1122_v2  ;;  %v10232_v2 = vadd.f32 %v10006_v43, %v9842_v3 }
 0xc1b   :  { %7418 = vmatmul.mubr.msk.f32.vlgmr.msra.gmra.mrb[10].mxu0 %vm317_vm5, %v1125_v14 }
 0xc1c   :  { %8690 = vmatpush3.bf16.msra.mxu0 %v10022_v55  ;;  %7497 = vmatprep.mubr.msk.f32.mxu0 %vm9576_vm0, %v11448_v4 }
 0xc1d   :  { %8691 = vmatprep.subr.bf16.mxu0 %v11446_v0 }
 0xc20   :  { %8693 = vmatpush3.bf16.msra.mxu0 %v10028_v58 }
 0xc21   :  { %8694 = vmatprep.subr.bf16.mxu0 %v11446_v0 }
 0xc24   :  { %8696 = vmatpush3.bf16.msra.mxu0 %v10038_v1 }
 0xc25   :  { %8697 = vmatprep.subr.bf16.mxu0 %v11446_v0 }
 0xc28   :  { %8699 = vmatpush3.bf16.msra.mxu0 %v10048_v8 }
 0xc29   :  { %8700 = vmatprep.subr.bf16.mxu0 %v11446_v0 }
 0xc2c   :  { %8702 = vmatpush3.bf16.msra.mxu0 %v10058_v17 }
 0xc2d   :  { %8703 = vmatprep.subr.bf16.mxu0 %v11446_v0 }
 0xc30   :  { %8705 = vmatpush3.bf16.msra.mxu0 %v10068_v22 }
 0xc31   :  { %8718 = vmatprep.subr.bf16.mxu0 %v11446_v0 }
 0xcee   :  { %v1195_v30 = vpop.f32.mrb[10].mxu0 }
 0xcef   :  { %v1196_v19 = vadd.f32 %v9832_v54, %v1195_v30  ;;  %v7419_v32 = vpop.f32.mrb[11].mxu0 }
 0xcf1   :  { %9407 = vtanh.f32 %v1196_v19  ;;  %v6490_v44 = vmul.f32 -1.442695, %v1196_v19 }
 0xcf3   :  { %9409 = vpow2.f32 %v6490_v44 }
 0xcfb   :  { %v9408_v57 = vpop.eup %9407 }
 0xcfc   :  { %1208 = vrot.lane.b32.xlu0 %v9408_v57, %s9579_s22 }
 0xcfd   :  { %v9410_v48 = vpop.eup %9409 }
 0xcfe   :  { %v1202_v50 = vadd.f32 1.0, %v9410_v48 }
 0xd00   :  { %9411 = vrcp.f32 %v1202_v50 }
 0xd0a   :  { %v9412_v51 = vpop.eup %9411 }
 0xd0b   :  { %v1206_v54 = vmul.f32 %v9412_v51, %v9846_v11 }
 0xd6e   :  { %v1209_v53 = vpop.permute.xlu0 %1208 }
 0xd6f   :  { %v1211_v60 = vmul.f32 %v9412_v51, %v1209_v53 }
 0xd71   :  { %1213 = vrot.lane.b32.xlu1 %v1211_v60, %s9578_s23 }
 0xd75   :  { %1224 = vrot.lane.b32.xlu1 %v10232_v2, %s9580_s18 }
 0xde3   :  { %v1214_v6 = vpop.permute.xlu1 %1213 }
 0xde4   :  { %v10237_v14 = vadd.f32 %v1214_v6, %v1206_v54 }
 0xde6   :  { %9413 = vtanh.f32 %v10237_v14 }
 0xde7   :  { %v1225_v30 = vpop.permute.xlu1 %1224 }
 0xde8   :  { %v1227_v19 = vsel %vm423_vm7, %v10006_v43, %v1225_v30 }
 0xde9   :  { %7425 = vmatmul.mubr.msk.f32.vlgmr.msra.gmra.mrb[8].mxu1 %vm425_vm8, %v1227_v19 }
 0xdea   :  { %8660 = vmatpush3.bf16.msra.mxu1 %v9865_v21  ;;  %7435 = vmatprep.mubr.msk.f32.mxu1 %vm9576_vm0, %v11448_v4 }
 0xdeb   :  { %8661 = vmatprep.subr.bf16.mxu1 %v11446_v0 }
 0xdee   :  { %8663 = vmatpush3.bf16.msra.mxu1 %v9876_v28 }
 0xdef   :  { %8664 = vmatprep.subr.bf16.mxu1 %v11446_v0 }
 0xdf0   :  { %v9414_v3 = vpop.eup %9413 }
 0xdf1   :  { %1219 = vrot.lane.b32.xlu0 %v9414_v3, %s9579_s22 }
 0xe63   :  { %v1220_v11 = vpop.permute.xlu0 %1219 }
 0xe64   :  { %v10250_v32 = vmul.f32 %v9412_v51, %v1220_v11 }
 0xe66   :  { %1302 = vrot.lane.b32.xlu0 %v10250_v32, %s9578_s23 }
 0xed8   :  { %v10254_v43 = vpop.permute.xlu0 %1302 }
 0xed9   :  { %7436 = vmatmul.mubr.msk.f32.vlgmr.msra.gmra.mrb[8].mxu1 %vm225_vm3, %v10254_v43 }
 0xeda   :  { %8666 = vmatpush3.bf16.msra.mxu1 %v9894_v36  ;;  %7470 = vmatprep.mubr.msk.f32.mxu1 %vm9576_vm0, %v11448_v4 }
 0xedb   :  { %8667 = vmatprep.subr.bf16.mxu1 %v11446_v0 }
 0xede   :  { %8669 = vmatpush3.bf16.msra.mxu1 %v9907_v42 }
 0xedf   :  { %8670 = vmatprep.subr.bf16.mxu1 %v11446_v0 }
 0xee2   :  { %8672 = vmatpush3.bf16.msra.mxu1 %v9919_v45 }
 0xee3   :  { %8673 = vmatprep.subr.bf16.mxu1 %v11446_v0 }
 0xee6   :  { %8675 = vmatpush3.bf16.msra.mxu1 %v9929_v49 }
 0xee7   :  { %8676 = vmatprep.subr.bf16.mxu1 %v11446_v0 }
 0xeea   :  { %8678 = vmatpush3.bf16.msra.mxu1 %v9939_v52 }
 0xeeb   :  { %8679 = vmatprep.subr.bf16.mxu1 %v11446_v0 }
 0xeee   :  { %8681 = vmatpush3.bf16.msra.mxu1 %v9950_v56 }
 0xeef   :  { %8682 = vmatprep.subr.bf16.mxu1 %v11446_v0 }
 0xef2   :  { %8684 = vmatpush3.bf16.msra.mxu1 %v9960_v59 }
 0xef3   :  { %8685 = vmatprep.subr.bf16.mxu1 %v11446_v0 }
 0xef6   :  { %8687 = vmatpush3.bf16.msra.mxu1 %v9969_v62 }
 0xef7   :  { %8706 = vmatprep.subr.bf16.mxu1 %v11446_v0 }
 0xfac   :  { %v1372_v57 = vpop.f32.mrb[8].mxu1 }
 0xfad   :  { %v1373_v44 = vadd.f32 %v1372_v57, %v9977_v63  ;;  %v7437_v48 = vpop.f32.mrb[9].mxu1 }
 0xfaf   :  { %9415 = vtanh.f32 %v1373_v44 }
 0xfb9   :  { %v9416_v50 = vpop.eup %9415 }
 0xfba   :  { %7471 = vmatmul.mubr.f32.vlgmr.msra.gmra.mrb[10].mxu1 %v9416_v50 }
 0xfbb   :  { %8708 = vmatpush3.bf16.msra.mxu1 %v10137_v34  ;;  %7516 = vmatprep.mubr.msk.f32.mxu1 %vm9576_vm0, %v11448_v4 }
 0xfbc   :  { %8709 = vmatprep.subr.bf16.mxu1 %v11446_v0 }
 0xfbf   :  { %8711 = vmatpush3.bf16.msra.mxu1 %v10143_v47 }
 0xfc0   :  { %8712 = vmatprep.subr.bf16.mxu1 %v11446_v0 }
 0xfc3   :  { %8714 = vmatpush3.bf16.msra.mxu1 %v10153_v41 }
 0xfc4   :  { %8715 = vmatprep.subr.bf16.mxu1 %v11446_v0 }
 0xfc7   :  { %8717 = vmatpush3.bf16.msra.mxu1 %v10164_v61 }
 0xfc8   :  { %7519 = vmatprep.subr.mxu1 %v11448_v4 }
0x108d   :  { %v1444_v51 = vpop.f32.mrb[10].mxu1 }
0x108e   :  { %v1448_v53 = vsel %vm646_vm9, %v1444_v51, -1e+09  ;;  %v7472_v60 = vpop.f32.mrb[11].mxu1 }
0x108f   :  { %v1449_v54 = vsel %vm62_vm6, %v1448_v53, -inf }
0x1090   :  { %1450 = vmax.xlane.f32.xlu1 %v1449_v54 }
0x111d   :  { %v1451_v6 = vpop.xlane.xlu1 %1450 }
0x111e   :  { %v1452_v30 = vsub.f32 %v1448_v53, %v1451_v6 }
0x1120   :  { %v1453_v19 = vmul.f32 1.442695, %v1452_v30 }
0x1122   :  { %9417 = vpow2.f32 %v1453_v19 }
0x112c   :  { %v9418_v3 = vpop.eup %9417 }
0x112d   :  { %v1455_v11 = vsel %vm62_vm6, %v9418_v3, 0.0 }
0x112e   :  { %1456 = vadd.xlane.f32.xlu0 %v1455_v11 }
0x11bb   :  { %v1457_v57 = vpop.xlane.xlu0 %1456 }
0x11bc   :  { %9419 = vrcp.f32 %v1457_v57 }
0x11c6   :  { %v9420_v44 = vpop.eup %9419 }
0x11c7   :  { %v10291_v48 = vmul.f32 %v9420_v44, %v9418_v3 }
0x11c9   :  { %v1470_v50 = vrot.slane %v10291_v48, %v10002_v35  ;;  %v1463_v51 = vrot.slane %v10291_v48, %v10004_v38 }
0x11cb   :  { %1472 = vbcast.lane.b32.xlu1 %v1470_v50, 256  ;;  %1465 = vbcast.lane.b32.xlu0 %v1463_v51, 256 }
0x11cf   :  { %1498 = vrot.lane.b32.xlu0 %v10171_v12, %s9581_s9 }
0x123d   :  { %v1473_v53 = vpop.permute.xlu1 %1472  ;;  %v1466_v60 = vpop.permute.xlu0 %1465 }
0x123e   :  { %v1475_v54 = vmul.f32 %v1473_v53, %v10076_v24  ;;  %v1474_v6 = vmul.f32 %v1466_v60, %v10081_v25 }
0x1240   :  { %v1483_v30 = vsel %vm225_vm3, %v1475_v54, 0.0  ;;  %v1476_v19 = vsel %vm225_vm3, %v1474_v6, 0.0 }
0x1241   :  { %v1484_v3 = vrot.slane %v1483_v30, 4  ;;  %v1477_v11 = vrot.slane %v1476_v19, 4  ;;  %v1499_v54 = vpop.permute.xlu0 %1498 }
0x1243   :  { %v1485_v57 = vadd.f32 %v1484_v3, %v1483_v30  ;;  %v1478_v44 = vadd.f32 %v1477_v11, %v1476_v19 }
0x1245   :  { %v1486_v0 = vrot.slane %v1485_v57, 2  ;;  %v1479_v50 = vrot.slane %v1478_v44, 2 }
0x1247   :  { %v1487_v51 = vadd.f32 %v1486_v0, %v1485_v57  ;;  %v1480_v4 = vadd.f32 %v1479_v50, %v1478_v44  ;;  %v11478_v0 = vmov 0.0  }
0x1249   :  { %v1481_v61 = vrot.slane %v1480_v4, 1  ;;  %v1488_v12 = vrot.slane %v1487_v51, 1 }
0x124b   :  { %v1482_v41 = vadd.f32 %v1481_v61, %v1480_v4  ;;  %v1489_v47 = vadd.f32 %v1488_v12, %v1487_v51  ;;  %v11479_v4 = vmov 0.0|0.0   ;;  %v6498_v51 = vld [vmem:[%s11430_s0 + $0x4] sm:$0x3] }
0x124d   :  { %v1494_v53 = vsel %vm694_vm10, %v1489_v47, %v1482_v41 }
0x124e   :  { %1495 = vrot.lane.b32.xlu1 %v1494_v53, %s9578_s23 }
0x12c0   :  { %v10305_v60 = vpop.permute.xlu1 %1495 }
0x12c1   :  { %v1501_v6 = vsel %vm225_vm3, %v10254_v43, %v10305_v60 }
0x12c2   :  { %v1502_v30 = vsel %vm309_vm4, %v1501_v6, %v1499_v54 }
0x12c3   :  { %7498 = vmatmul.mubr.msk.f32.vlgmr.msra.gmra.mrb[12].mxu0 %vm317_vm5, %v1502_v30 }
0x12c4   :  { %8720 = vmatpush3.bf16.msra.mxu0 %v9679_v5  ;;  %7544 = vmatprep.mubr.msk.f32.mxu0 %vm9576_vm0, %v11478_v0 }
0x12c5   :  { %8721 = vmatprep.subr.bf16.mxu0 %v11479_v4 }
0x12c8   :  { %8723 = vmatpush3.bf16.msra.mxu0 %v9688_v7 }
0x12c9   :  { %8724 = vmatprep.subr.bf16.mxu0 %v11479_v4 }
0x12cc   :  { %8726 = vmatpush3.bf16.msra.mxu0 %v9698_v10 }
0x12cd   :  { %8727 = vmatprep.subr.bf16.mxu0 %v11479_v4 }
0x12d0   :  { %8729 = vmatpush3.bf16.msra.mxu0 %v9708_v13 }
0x12d1   :  { %8730 = vmatprep.subr.bf16.mxu0 %v11479_v4 }
0x12d4   :  { %8732 = vmatpush3.bf16.msra.mxu0 %v9718_v16 }
0x12d5   :  { %8739 = vmatprep.subr.bf16.mxu0 %v11479_v4 }
0x12d7   :  { %7545 = vmatmul.mubr.msk.f32.vlgmr.msra.gmra.mrb[14].mxu0 %vm150_vm1, %v6498_v51 }
0x12d8   :  { %8741 = vmatpush3.bf16.msra.mxu0 %v9768_v27  ;;  %7582 = vmatprep.mubr.msk.f32.mxu0 %vm9576_vm0, %v11478_v0 }
0x12d9   :  { %8742 = vmatprep.subr.bf16.mxu0 %v11479_v4 }
0x12dc   :  { %8744 = vmatpush3.bf16.msra.mxu0 %v9774_v29 }
0x12dd   :  { %8745 = vmatprep.subr.bf16.mxu0 %v11479_v4 }
0x12e0   :  { %8747 = vmatpush3.bf16.msra.mxu0 %v9784_v33 }
0x12e1   :  { %8748 = vmatprep.subr.bf16.mxu0 %v11479_v4 }
0x12e4   :  { %8750 = vmatpush3.bf16.msra.mxu0 %v9795_v37 }
0x12e5   :  { %8751 = vmatprep.subr.bf16.mxu0 %v11479_v4 }
0x12e8   :  { %8753 = vmatpush3.bf16.msra.mxu0 %v9806_v40 }
0x12e9   :  { %8754 = vmatprep.subr.bf16.mxu0 %v11479_v4 }
0x12ec   :  { %8756 = vmatpush3.bf16.msra.mxu0 %v9820_v46 }
0x12ed   :  { %8790 = vmatprep.subr.bf16.mxu0 %v11479_v4 }
0x1396   :  { %v1572_v47 = vpop.f32.mrb[12].mxu0 }
0x1397   :  { %v1573_v41 = vadd.f32 %v10102_v39, %v1572_v47  ;;  %v7499_v61 = vpop.f32.mrb[13].mxu0 }
0x1399   :  { %9421 = vtanh.f32 %v1573_v41  ;;  %v6494_v19 = vmul.f32 -1.442695, %v1573_v41 }
0x139b   :  { %9423 = vpow2.f32 %v6494_v19 }
0x13a3   :  { %v9422_v43 = vpop.eup %9421 }
0x13a4   :  { %1585 = vrot.lane.b32.xlu1 %v9422_v43, %s9579_s22 }
0x13a5   :  { %v9424_v3 = vpop.eup %9423 }
0x13a6   :  { %v1579_v11 = vadd.f32 1.0, %v9424_v3 }
0x13a8   :  { %9425 = vrcp.f32 %v1579_v11 }
0x13aa   :  { %v1825_v47 = vpop.f32.mrb[14].mxu0 }
0x13ab   :  { %v7546_v61 = vpop.f32.mrb[15].mxu0 }
0x13b2   :  { %v9426_v57 = vpop.eup %9425 }
0x13b3   :  { %v1583_v12 = vmul.f32 %v9426_v57, %v10125_v18 }
0x1416   :  { %v1586_v44 = vpop.permute.xlu1 %1585 }
0x1417   :  { %v1588_v50 = vmul.f32 %v9426_v57, %v1586_v44 }
0x1419   :  { %1590 = vrot.lane.b32.xlu0 %v1588_v50, %s9578_s23 }
0x148b   :  { %v1591_v53 = vpop.permute.xlu0 %1590 }
0x148c   :  { %v10346_v54 = vadd.f32 %v1591_v53, %v1583_v12 }
0x148e   :  { %9427 = vtanh.f32 %v10346_v54 }
0x1498   :  { %v9428_v6 = vpop.eup %9427 }
0x1499   :  { %1596 = vrot.lane.b32.xlu1 %v9428_v6, %s9579_s22  ;;  %v10401_v6 = vld [vmem:[%s11432_s7] ss:$0 sm:$0xff] }
0x149d   :  { %1904 = vrot.lane.b32.xlu1 %v10250_v32, %s9581_s9  ;;  %v1829_v32 = vmax.f32 %v1825_v47, 0.0 }
0x150b   :  { %v1597_v30 = vpop.permute.xlu1 %1596 }
0x150c   :  { %v10352_v41 = vmul.f32 %v9426_v57, %v1597_v30 }
0x150e   :  { %1601 = vrot.lane.b32.xlu0 %v10352_v41, %s9578_s23 }
0x150f   :  { %v1905_v51 = vpop.permute.xlu1 %1904 }
0x1580   :  { %v1602_v18 = vpop.permute.xlu0 %1601 }
0x1581   :  { %v1604_v43 = vsel %vm225_vm3, %v1602_v18, %v10305_v60 }
0x1582   :  { %7517 = vmatmul.mubr.msk.f32.vlgmr.msra.gmra.mrb[12].mxu1 %vm309_vm4, %v1604_v43 }
0x1583   :  { %7520 = vmatpush3.msra.mxu1 %v10178_v26  ;;  %7521 = vmatprep.mubr.msk.f32.mxu1 %vm9576_vm0, %v11478_v0 }
0x1584   :  { %8733 = vmatprep.subr.bf16.mxu1 %v11479_v4 }
0x158a   :  { %7522 = vmatmul.mubr.msk.f32.vlgmr.msra.gmra.mrb[12].mxu1 %vm423_vm7, %v10291_v48 }
0x158b   :  { %8735 = vmatpush3.bf16.msra.mxu1 %v9731_v20  ;;  %7555 = vmatprep.mubr.msk.f32.mxu1 %vm9576_vm0, %v11478_v0 }
0x158c   :  { %8736 = vmatprep.subr.bf16.mxu1 %v11479_v4 }
0x158f   :  { %8738 = vmatpush3.bf16.msra.mxu1 %v9745_v23 }
0x1590   :  { %8757 = vmatprep.subr.bf16.mxu1 %v11479_v4 }
0x1592   :  { %7556 = vmatmul.mubr.msk.f32.vlgmr.msra.gmra.mrb[14].mxu1 %vm225_vm3, %v1829_v32 }
0x1593   :  { %8759 = vmatpush3.bf16.msra.mxu1 %v9855_v15  ;;  %7589 = vmatprep.mubr.msk.f32.mxu1 %vm9576_vm0, %v11478_v0 }
0x1594   :  { %8760 = vmatprep.subr.bf16.mxu1 %v11479_v4 }
0x165d   :  { %v1747_v19 = vpop.f32.mrb[12].mxu1 }
0x165e   :  { %v9333_v3 = vadd.f32 %v10203_v31, %v1747_v19  ;;  %v7523_v11 = vpop.f32.mrb[13].mxu1 }
0x1660   :  { %6497 = vst [vmem:[%s11444_s16 + $0x2] sm:$0x3] %v9333_v3 }
0x1665   :  { %v1899_v57 = vpop.f32.mrb[14].mxu1 }
0x1666   :  { %v1903_v44 = vmax.f32 %v1899_v57, 0.0  ;;  %v7557_v50 = vpop.f32.mrb[15].mxu1  ;;  %v10408_v57 = vadd.f32 %v10291_v48, %v10232_v2 }
0x1668   :  { %v1907_v12 = vsel %vm225_vm3, %v1903_v44, %v10305_v60 }
0x1669   :  { %v1908_v53 = vsel %vm309_vm4, %v1907_v12, %v1905_v51 }
0x166a   :  { %7583 = vmatmul.mubr.msk.f32.vlgmr.msra.gmra.mrb[16].mxu0 %vm317_vm5, %v1908_v53 }
0x166b   :  { %8792 = vmatpush3.bf16.msra.mxu0 %v10022_v55  ;;  %7662 = vmatprep.mubr.msk.f32.mxu0 %vm9576_vm0, %v11478_v0 }
0x166c   :  { %8793 = vmatprep.subr.bf16.mxu0 %v11479_v4 }
0x166f   :  { %8795 = vmatpush3.bf16.msra.mxu0 %v10028_v58 }
0x1670   :  { %8796 = vmatprep.subr.bf16.mxu0 %v11479_v4 }
0x1673   :  { %8798 = vmatpush3.bf16.msra.mxu0 %v10038_v1 }
0x1674   :  { %8799 = vmatprep.subr.bf16.mxu0 %v11479_v4 }
0x1677   :  { %8801 = vmatpush3.bf16.msra.mxu0 %v10048_v8 }
0x1678   :  { %8802 = vmatprep.subr.bf16.mxu0 %v11479_v4 }
0x167b   :  { %8804 = vmatpush3.bf16.msra.mxu0 %v10058_v17 }
0x167c   :  { %8805 = vmatprep.subr.bf16.mxu0 %v11479_v4 }
0x167f   :  { %8807 = vmatpush3.bf16.msra.mxu0 %v10068_v22 }
0x1680   :  { %8808 = vmatprep.subr.bf16.mxu0 %v11479_v4 }
0x173d   :  { %v1978_v60 = vpop.f32.mrb[16].mxu0 }
0x173e   :  { %v1979_v30 = vadd.f32 %v10401_v6, %v1978_v60  ;;  %v7584_v47 = vpop.f32.mrb[17].mxu0 }
0x1740   :  { %9429 = vtanh.f32 %v1979_v30  ;;  %v6502_v18 = vmul.f32 -1.442695, %v1979_v30 }
0x1742   :  { %9431 = vpow2.f32 %v6502_v18 }
0x174a   :  { %v9430_v61 = vpop.eup %9429 }
0x174b   :  { %1991 = vrot.lane.b32.xlu0 %v9430_v61, %s9579_s22 }
0x174c   :  { %v9432_v43 = vpop.eup %9431 }
0x174d   :  { %v1985_v32 = vadd.f32 1.0, %v9432_v43 }
0x174f   :  { %9433 = vrcp.f32 %v1985_v32 }
0x1759   :  { %v9434_v19 = vpop.eup %9433 }
0x175a   :  { %v1989_v44 = vmul.f32 %v9434_v19, %v10237_v14 }
0x17bd   :  { %v1992_v3 = vpop.permute.xlu0 %1991 }
0x17be   :  { %v1994_v11 = vmul.f32 %v9434_v19, %v1992_v3 }
0x17c0   :  { %1996 = vrot.lane.b32.xlu1 %v1994_v11, %s9578_s23 }
0x17c4   :  { %2007 = vrot.lane.b32.xlu1 %v10408_v57, %s9580_s18 }
0x1832   :  { %v1997_v50 = vpop.permute.xlu1 %1996 }
0x1833   :  { %v10413_v51 = vadd.f32 %v1997_v50, %v1989_v44 }
0x1835   :  { %9435 = vtanh.f32 %v10413_v51 }
0x1836   :  { %v2008_v12 = vpop.permute.xlu1 %2007 }
0x1837   :  { %v2010_v53 = vsel %vm423_vm7, %v10291_v48, %v2008_v12 }
0x1838   :  { %7590 = vmatmul.mubr.msk.f32.vlgmr.msra.gmra.mrb[16].mxu1 %vm425_vm8, %v2010_v53 }
0x1839   :  { %8762 = vmatpush3.bf16.msra.mxu1 %v9865_v21  ;;  %7600 = vmatprep.mubr.msk.f32.mxu1 %vm9576_vm0, %v11478_v0 }
0x183a   :  { %8763 = vmatprep.subr.bf16.mxu1 %v11479_v4 }
0x183d   :  { %8765 = vmatpush3.bf16.msra.mxu1 %v9876_v28 }
0x183e   :  { %8766 = vmatprep.subr.bf16.mxu1 %v11479_v4 }
0x183f   :  { %v9436_v2 = vpop.eup %9435 }
0x1840   :  { %2002 = vrot.lane.b32.xlu0 %v9436_v2, %s9579_s22 }
0x18b2   :  { %v2003_v14 = vpop.permute.xlu0 %2002 }
0x18b3   :  { %v10426_v60 = vmul.f32 %v9434_v19, %v2003_v14 }
0x18b5   :  { %2085 = vrot.lane.b32.xlu0 %v10426_v60, %s9578_s23 }
0x1927   :  { %v10430_v48 = vpop.permute.xlu0 %2085 }
0x1928   :  { %7601 = vmatmul.mubr.msk.f32.vlgmr.msra.gmra.mrb[16].mxu1 %vm225_vm3, %v10430_v48 }
0x1929   :  { %8768 = vmatpush3.bf16.msra.mxu1 %v9894_v36  ;;  %7635 = vmatprep.mubr.msk.f32.mxu1 %vm9576_vm0, %v11478_v0 }
0x192a   :  { %8769 = vmatprep.subr.bf16.mxu1 %v11479_v4 }
0x192d   :  { %8771 = vmatpush3.bf16.msra.mxu1 %v9907_v42 }
0x192e   :  { %8772 = vmatprep.subr.bf16.mxu1 %v11479_v4 }
0x1931   :  { %8774 = vmatpush3.bf16.msra.mxu1 %v9919_v45 }
0x1932   :  { %8775 = vmatprep.subr.bf16.mxu1 %v11479_v4 }
0x1935   :  { %8777 = vmatpush3.bf16.msra.mxu1 %v9929_v49 }
0x1936   :  { %8778 = vmatprep.subr.bf16.mxu1 %v11479_v4 }
0x1939   :  { %8780 = vmatpush3.bf16.msra.mxu1 %v9939_v52 }
0x193a   :  { %8781 = vmatprep.subr.bf16.mxu1 %v11479_v4 }
0x193d   :  { %8783 = vmatpush3.bf16.msra.mxu1 %v9950_v56 }
0x193e   :  { %8784 = vmatprep.subr.bf16.mxu1 %v11479_v4 }
0x1941   :  { %8786 = vmatpush3.bf16.msra.mxu1 %v9960_v59 }
0x1942   :  { %8787 = vmatprep.subr.bf16.mxu1 %v11479_v4 }
0x1945   :  { %8789 = vmatpush3.bf16.msra.mxu1 %v9969_v62 }
0x1946   :  { %8820 = vmatprep.subr.bf16.mxu1 %v11479_v4 }
0x19fb   :  { %v2155_v30 = vpop.f32.mrb[16].mxu1 }
0x19fc   :  { %v2156_v47 = vadd.f32 %v2155_v30, %v9977_v63  ;;  %v7602_v61 = vpop.f32.mrb[17].mxu1 }
0x19fe   :  { %9437 = vtanh.f32 %v2156_v47 }
0x1a08   :  { %v9438_v18 = vpop.eup %9437 }
0x1a09   :  { %7636 = vmatmul.mubr.f32.vlgmr.msra.gmra.mrb[18].mxu1 %v9438_v18 }
0x1a0a   :  { %8822 = vmatpush3.bf16.msra.mxu1 %v9679_v5  ;;  %7709 = vmatprep.mubr.msk.f32.mxu1 %vm9576_vm0, %v11478_v0 }
0x1a0b   :  { %8823 = vmatprep.subr.bf16.mxu1 %v11479_v4 }
0x1a0e   :  { %8825 = vmatpush3.bf16.msra.mxu1 %v9688_v7 }
0x1a0f   :  { %8826 = vmatprep.subr.bf16.mxu1 %v11479_v4 }
0x1a12   :  { %8828 = vmatpush3.bf16.msra.mxu1 %v9698_v10 }
0x1a13   :  { %8829 = vmatprep.subr.bf16.mxu1 %v11479_v4 }
0x1a16   :  { %8831 = vmatpush3.bf16.msra.mxu1 %v9708_v13 }
0x1a17   :  { %8832 = vmatprep.subr.bf16.mxu1 %v11479_v4 }
0x1a1a   :  { %8834 = vmatpush3.bf16.msra.mxu1 %v9718_v16 }
0x1a1b   :  { %8841 = vmatprep.subr.bf16.mxu1 %v11479_v4 }
0x1adc   :  { %v2227_v63 = vpop.f32.mrb[18].mxu1 }
0x1add   :  { %v2231_v43 = vsel %vm646_vm9, %v2227_v63, -1e+09  ;;  %v7637_v32 = vpop.f32.mrb[19].mxu1 }
0x1ade   :  { %v2232_v19 = vsel %vm62_vm6, %v2231_v43, -inf }
0x1adf   :  { %2233 = vmax.xlane.f32.xlu1 %v2232_v19 }
0x1b6c   :  { %v2234_v3 = vpop.xlane.xlu1 %2233 }
0x1b6d   :  { %v2235_v11 = vsub.f32 %v2231_v43, %v2234_v3 }
0x1b6f   :  { %v2236_v44 = vmul.f32 1.442695, %v2235_v11 }
0x1b71   :  { %9439 = vpow2.f32 %v2236_v44 }
0x1b7b   :  { %v9440_v50 = vpop.eup %9439 }
0x1b7c   :  { %v2238_v12 = vsel %vm62_vm6, %v9440_v50, 0.0 }
0x1b7d   :  { %2239 = vadd.xlane.f32.xlu0 %v2238_v12 }
0x1c0a   :  { %v2240_v53 = vpop.xlane.xlu0 %2239 }
0x1c0b   :  { %9441 = vrcp.f32 %v2240_v53 }
0x1c15   :  { %v9442_v2 = vpop.eup %9441 }
0x1c16   :  { %v10469_v14 = vmul.f32 %v9442_v2, %v9440_v50 }
0x1c18   :  { %v2253_v30 = vrot.slane %v10469_v14, %v10002_v35  ;;  %v2246_v47 = vrot.slane %v10469_v14, %v10004_v38 }
0x1c1a   :  { %2255 = vbcast.lane.b32.xlu1 %v2253_v30, 256  ;;  %2248 = vbcast.lane.b32.xlu0 %v2246_v47, 256 }
0x1c1e   :  { %2281 = vrot.lane.b32.xlu0 %v10352_v41, %s9581_s9 }
0x1c8c   :  { %v2256_v61 = vpop.permute.xlu1 %2255  ;;  %v2249_v18 = vpop.permute.xlu0 %2248 }
0x1c8d   :  { %v2258_v63 = vmul.f32 %v2256_v61, %v10076_v24  ;;  %v2257_v43 = vmul.f32 %v2249_v18, %v10081_v25 }
0x1c8f   :  { %v2266_v32 = vsel %vm225_vm3, %v2258_v63, 0.0  ;;  %v2259_v19 = vsel %vm225_vm3, %v2257_v43, 0.0 }
0x1c90   :  { %v2267_v3 = vrot.slane %v2266_v32, 4  ;;  %v2260_v11 = vrot.slane %v2259_v19, 4  ;;  %v2282_v61 = vpop.permute.xlu0 %2281 }
0x1c92   :  { %v2268_v44 = vadd.f32 %v2267_v3, %v2266_v32  ;;  %v2261_v50 = vadd.f32 %v2260_v11, %v2259_v19 }
0x1c94   :  { %v2269_v12 = vrot.slane %v2268_v44, 2  ;;  %v2262_v53 = vrot.slane %v2261_v50, 2 }
0x1c96   :  { %v2270_v2 = vadd.f32 %v2269_v12, %v2268_v44  ;;  %v2263_v30 = vadd.f32 %v2262_v53, %v2261_v50 }
0x1c98   :  { %v2271_v47 = vrot.slane %v2270_v2, 1  ;;  %v2264_v41 = vrot.slane %v2263_v30, 1 }
0x1c9a   :  { %v2265_v38 = vadd.f32 %v2264_v41, %v2263_v30  ;;  %v2272_v35 = vadd.f32 %v2271_v47, %v2270_v2  ;;  %v6510_v30 = vld [vmem:[%s11430_s0 + $0x6] sm:$0x3] }
0x1c9b   :  { %7710 = vmatmul.mubr.msk.f32.vlgmr.msra.gmra.mrb[20].mxu1 %vm150_vm1, %v6510_v30 }
0x1c9c   :  { %v2277_v24 = vsel %vm694_vm10, %v2272_v35, %v2265_v38  ;;  %v11480_v35 = vld [vmem:[#allocation14_spill] sm:$0xff]  ;;  %v11481_v38 = vld [vmem:[#allocation15_spill] sm:$0xff]  ;;  %8843 = vmatpush3.bf16.msra.mxu1 %v9768_v27  ;;  %7747 = vmatprep.mubr.msk.f32.mxu1 %vm9576_vm0, %v11478_v0 }
0x1c9d   :  { %2278 = vrot.lane.b32.xlu1 %v2277_v24, %s9578_s23  ;;  %8844 = vmatprep.subr.bf16.mxu1 %v11479_v4 }
0x1ca0   :  { %8846 = vmatpush3.bf16.msra.mxu1 %v9774_v29 }
0x1ca1   :  { %8847 = vmatprep.subr.bf16.mxu1 %v11479_v4 }
0x1ca4   :  { %8849 = vmatpush3.bf16.msra.mxu1 %v9784_v33 }
0x1ca5   :  { %8850 = vmatprep.subr.bf16.mxu1 %v11479_v4 }
0x1ca8   :  { %8852 = vmatpush3.bf16.msra.mxu1 %v9795_v37 }
0x1ca9   :  { %8853 = vmatprep.subr.bf16.mxu1 %v11479_v4 }
0x1cac   :  { %8855 = vmatpush3.bf16.msra.mxu1 %v9806_v40 }
0x1cad   :  { %8856 = vmatprep.subr.bf16.mxu1 %v11479_v4 }
0x1cb0   :  { %8858 = vmatpush3.bf16.msra.mxu1 %v9820_v46 }
0x1cb1   :  { %8892 = vmatprep.subr.bf16.mxu1 %v11479_v4 }
0x1d0f   :  { %v10483_v25 = vpop.permute.xlu1 %2278 }
0x1d10   :  { %v2284_v18 = vsel %vm225_vm3, %v10430_v48, %v10483_v25  ;;  %v11482_v48 = vld [vmem:[#allocation16_spill] sm:$0xff] }
0x1d11   :  { %v2285_v63 = vsel %vm309_vm4, %v2284_v18, %v2282_v61 }
0x1d12   :  { %7663 = vmatmul.mubr.msk.f32.vlgmr.msra.gmra.mrb[18].mxu0 %vm317_vm5, %v2285_v63 }
0x1d13   :  { %8810 = vmatpush3.bf16.msra.mxu0 %v10137_v34  ;;  %7681 = vmatprep.mubr.msk.f32.mxu0 %vm9576_vm0, %v11478_v0 }
0x1d14   :  { %8811 = vmatprep.subr.bf16.mxu0 %v11479_v4 }
0x1d17   :  { %8813 = vmatpush3.bf16.msra.mxu0 %v11480_v35 }
0x1d18   :  { %8814 = vmatprep.subr.bf16.mxu0 %v11479_v4 }
0x1d1b   :  { %8816 = vmatpush3.bf16.msra.mxu0 %v11481_v38 }
0x1d1c   :  { %8817 = vmatprep.subr.bf16.mxu0 %v11479_v4 }
0x1d1f   :  { %8819 = vmatpush3.bf16.msra.mxu0 %v11482_v48 }
0x1d20   :  { %7684 = vmatprep.subr.mxu0 %v11478_v0 }
0x1d6e   :  { %v2608_v18 = vpop.f32.mrb[20].mxu1 }
0x1de5   :  { %v2355_v43 = vpop.f32.mrb[18].mxu0 }
0x1de6   :  { %v2356_v32 = vadd.f32 %v10102_v39, %v2355_v43  ;;  %v7664_v19 = vpop.f32.mrb[19].mxu0  ;;  %v7711_v43 = vpop.f32.mrb[21].mxu1 }
0x1de8   :  { %9443 = vtanh.f32 %v2356_v32  ;;  %v6506_v11 = vmul.f32 -1.442695, %v2356_v32 }
0x1dea   :  { %9445 = vpow2.f32 %v6506_v11 }
0x1df2   :  { %v9444_v3 = vpop.eup %9443 }
0x1df3   :  { %2368 = vrot.lane.b32.xlu1 %v9444_v3, %s9579_s22 }
0x1df4   :  { %v9446_v44 = vpop.eup %9445 }
0x1df5   :  { %v2362_v50 = vadd.f32 1.0, %v9446_v44 }
0x1df7   :  { %9447 = vrcp.f32 %v2362_v50 }
0x1e01   :  { %v9448_v12 = vpop.eup %9447 }
0x1e02   :  { %v2366_v39 = vmul.f32 %v9448_v12, %v10346_v54 }
0x1e65   :  { %v2369_v53 = vpop.permute.xlu1 %2368 }
0x1e66   :  { %v2371_v2 = vmul.f32 %v9448_v12, %v2369_v53 }
0x1e68   :  { %2373 = vrot.lane.b32.xlu0 %v2371_v2, %s9578_s23 }
0x1eda   :  { %v2374_v47 = vpop.permute.xlu0 %2373 }
0x1edb   :  { %v10522_v41 = vadd.f32 %v2374_v47, %v2366_v39 }
0x1edd   :  { %9449 = vtanh.f32 %v10522_v41 }
0x1ee7   :  { %v9450_v24 = vpop.eup %9449 }
0x1ee8   :  { %2379 = vrot.lane.b32.xlu1 %v9450_v24, %s9579_s22 }
0x1eec   :  { %2687 = vrot.lane.b32.xlu1 %v10426_v60, %s9581_s9  ;;  %v2612_v60 = vmax.f32 %v2608_v18, 0.0 }
0x1f5a   :  { %v2380_v61 = vpop.permute.xlu1 %2379 }
0x1f5b   :  { %v10528_v63 = vmul.f32 %v9448_v12, %v2380_v61 }
0x1f5d   :  { %2384 = vrot.lane.b32.xlu0 %v10528_v63, %s9578_s23 }
0x1f5e   :  { %v2688_v12 = vpop.permute.xlu1 %2687 }
0x1fcf   :  { %v2385_v54 = vpop.permute.xlu0 %2384 }
0x1fd0   :  { %v2387_v32 = vsel %vm225_vm3, %v2385_v54, %v10483_v25 }
0x1fd1   :  { %7682 = vmatmul.mubr.msk.f32.vlgmr.msra.gmra.mrb[20].mxu0 %vm309_vm4, %v2387_v32  ;;  %v10579_v32 = vadd.f32 %v10469_v14, %v10408_v57 }
0x1fd2   :  { %7685 = vmatpush3.msra.mxu0 %v10178_v26  ;;  %7686 = vmatprep.mubr.msk.f32.mxu0 %vm9576_vm0, %v11478_v0 }
0x1fd3   :  { %8835 = vmatprep.subr.bf16.mxu0 %v11479_v4 }
0x1fd9   :  { %7687 = vmatmul.mubr.msk.f32.vlgmr.msra.gmra.mrb[20].mxu0 %vm423_vm7, %v10469_v14 }
0x1fda   :  { %8837 = vmatpush3.bf16.msra.mxu0 %v9731_v20  ;;  %7720 = vmatprep.mubr.msk.f32.mxu0 %vm9576_vm0, %v11478_v0 }
0x1fdb   :  { %8838 = vmatprep.subr.bf16.mxu0 %v11479_v4 }
0x1fde   :  { %8840 = vmatpush3.bf16.msra.mxu0 %v9745_v23 }
0x1fdf   :  { %8859 = vmatprep.subr.bf16.mxu0 %v11479_v4 }
0x1fe1   :  { %7721 = vmatmul.mubr.msk.f32.vlgmr.msra.gmra.mrb[22].mxu0 %vm225_vm3, %v2612_v60 }
0x1fe2   :  { %8861 = vmatpush3.bf16.msra.mxu0 %v9855_v15  ;;  %7754 = vmatprep.mubr.msk.f32.mxu0 %vm9576_vm0, %v11478_v0 }
0x1fe3   :  { %8862 = vmatprep.subr.bf16.mxu0 %v11479_v4 }
0x20ac   :  { %v2530_v26 = vpop.f32.mrb[20].mxu0 }
0x20ad   :  { %v9335_v19 = vadd.f32 %v10203_v31, %v2530_v26  ;;  %v7688_v3 = vpop.f32.mrb[21].mxu0 }
0x20af   :  { %6509 = vst [vmem:[%s11444_s16 + $0x4] sm:$0x3] %v9335_v19 }
0x20b4   :  { %v2682_v11 = vpop.f32.mrb[22].mxu0 }
0x20b5   :  { %v2686_v44 = vmax.f32 %v2682_v11, 0.0  ;;  %v7722_v50 = vpop.f32.mrb[23].mxu0 }
0x20b7   :  { %v2690_v53 = vsel %vm225_vm3, %v2686_v44, %v10483_v25 }
0x20b8   :  { %v2691_v2 = vsel %vm309_vm4, %v2690_v53, %v2688_v12  ;;  %v10626_v12 = vld [vmem:[%s11436_s2] sm:$0x3] }
0x20b9   :  { %7748 = vmatmul.mubr.msk.f32.vlgmr.msra.gmra.mrb[22].mxu1 %vm317_vm5, %v2691_v2 }
0x20ba   :  { %8894 = vmatpush3.bf16.msra.mxu1 %v10022_v55  ;;  %7827 = vmatprep.mubr.msk.f32.mxu1 %vm9576_vm0, %v11478_v0 }
0x20bb   :  { %8895 = vmatprep.subr.bf16.mxu1 %v11479_v4 }
0x20be   :  { %8897 = vmatpush3.bf16.msra.mxu1 %v10028_v58 }
0x20bf   :  { %8898 = vmatprep.subr.bf16.mxu1 %v11479_v4 }
0x20c2   :  { %8900 = vmatpush3.bf16.msra.mxu1 %v10038_v1 }
0x20c3   :  { %8901 = vmatprep.subr.bf16.mxu1 %v11479_v4 }
0x20c6   :  { %8903 = vmatpush3.bf16.msra.mxu1 %v10048_v8 }
0x20c7   :  { %8904 = vmatprep.subr.bf16.mxu1 %v11479_v4 }
0x20ca   :  { %8906 = vmatpush3.bf16.msra.mxu1 %v10058_v17 }
0x20cb   :  { %8907 = vmatprep.subr.bf16.mxu1 %v11479_v4 }
0x20ce   :  { %8909 = vmatpush3.bf16.msra.mxu1 %v10068_v22 }
0x20cf   :  { %8910 = vmatprep.subr.bf16.mxu1 %v11479_v4 }
0x218c   :  { %v2761_v31 = vpop.f32.mrb[22].mxu1 }
0x218d   :  { %v2762_v25 = vadd.f32 %v10401_v6, %v2761_v31  ;;  %v7749_v30 = vpop.f32.mrb[23].mxu1 }
0x218f   :  { %9451 = vtanh.f32 %v2762_v25  ;;  %v6514_v47 = vmul.f32 -1.442695, %v2762_v25 }
0x2191   :  { %9453 = vpow2.f32 %v6514_v47 }
0x2199   :  { %v9452_v39 = vpop.eup %9451 }
0x219a   :  { %2774 = vrot.lane.b32.xlu0 %v9452_v39, %s9579_s22 }
0x219b   :  { %v9454_v24 = vpop.eup %9453 }
0x219c   :  { %v2768_v61 = vadd.f32 1.0, %v9454_v24 }
0x219e   :  { %9455 = vrcp.f32 %v2768_v61 }
0x21a8   :  { %v9456_v18 = vpop.eup %9455 }
0x21a9   :  { %v2772_v60 = vmul.f32 %v9456_v18, %v10413_v51 }
0x220c   :  { %v2775_v43 = vpop.permute.xlu0 %2774 }
0x220d   :  { %v2777_v54 = vmul.f32 %v9456_v18, %v2775_v43 }
0x220f   :  { %2779 = vrot.lane.b32.xlu1 %v2777_v54, %s9578_s23 }
0x2213   :  { %2790 = vrot.lane.b32.xlu1 %v10579_v32, %s9580_s18 }
0x2281   :  { %v2780_v26 = vpop.permute.xlu1 %2779 }
0x2282   :  { %v10584_v19 = vadd.f32 %v2780_v26, %v2772_v60 }
0x2284   :  { %9457 = vtanh.f32 %v10584_v19 }
0x2285   :  { %v2791_v3 = vpop.permute.xlu1 %2790 }
0x2286   :  { %v2793_v11 = vsel %vm423_vm7, %v10469_v14, %v2791_v3 }
0x2287   :  { %7755 = vmatmul.mubr.msk.f32.vlgmr.msra.gmra.mrb[24].mxu0 %vm425_vm8, %v2793_v11  ;;  %v11483_v11 = vld [vmem:[#allocation12_spill] sm:$0xff] }
0x2288   :  { %8864 = vmatpush3.bf16.msra.mxu0 %v9865_v21  ;;  %7765 = vmatprep.mubr.msk.f32.mxu0 %vm9576_vm0, %v11478_v0 }
0x2289   :  { %8865 = vmatprep.subr.bf16.mxu0 %v11479_v4 }
0x228c   :  { %8867 = vmatpush3.bf16.msra.mxu0 %v9876_v28 }
0x228d   :  { %8868 = vmatprep.subr.bf16.mxu0 %v11479_v4 }
0x228e   :  { %v9458_v57 = vpop.eup %9457 }
0x228f   :  { %2785 = vrot.lane.b32.xlu0 %v9458_v57, %s9579_s22 }
0x2301   :  { %v2786_v51 = vpop.permute.xlu0 %2785 }
0x2302   :  { %v10597_v44 = vmul.f32 %v9456_v18, %v2786_v51  ;;  %v11484_v51 = vld [vmem:[#allocation13_spill] sm:$0xff] }
0x2304   :  { %2868 = vrot.lane.b32.xlu0 %v10597_v44, %s9578_s23 }
0x2376   :  { %v10601_v14 = vpop.permute.xlu0 %2868 }
0x2377   :  { %7766 = vmatmul.mubr.msk.f32.vlgmr.msra.gmra.mrb[24].mxu0 %vm225_vm3, %v10601_v14 }
0x2378   :  { %8870 = vmatpush3.bf16.msra.mxu0 %v9894_v36  ;;  %7800 = vmatprep.mubr.msk.f32.mxu0 %vm9576_vm0, %v11478_v0 }
0x2379   :  { %8871 = vmatprep.subr.bf16.mxu0 %v11479_v4 }
0x237c   :  { %8873 = vmatpush3.bf16.msra.mxu0 %v9907_v42 }
0x237d   :  { %8874 = vmatprep.subr.bf16.mxu0 %v11479_v4 }
0x2380   :  { %8876 = vmatpush3.bf16.msra.mxu0 %v9919_v45 }
0x2381   :  { %8877 = vmatprep.subr.bf16.mxu0 %v11479_v4 }
0x2384   :  { %8879 = vmatpush3.bf16.msra.mxu0 %v9929_v49 }
0x2385   :  { %8880 = vmatprep.subr.bf16.mxu0 %v11479_v4 }
0x2388   :  { %8882 = vmatpush3.bf16.msra.mxu0 %v9939_v52 }
0x2389   :  { %8883 = vmatprep.subr.bf16.mxu0 %v11479_v4 }
0x238c   :  { %8885 = vmatpush3.bf16.msra.mxu0 %v9950_v56 }
0x238d   :  { %8886 = vmatprep.subr.bf16.mxu0 %v11479_v4 }
0x2390   :  { %8888 = vmatpush3.bf16.msra.mxu0 %v9960_v59 }
0x2391   :  { %8889 = vmatprep.subr.bf16.mxu0 %v11479_v4 }
0x2394   :  { %8891 = vmatpush3.bf16.msra.mxu0 %v9969_v62 }
0x2395   :  { %8922 = vmatprep.subr.bf16.mxu0 %v11479_v4 }
0x244a   :  { %v2938_v50 = vpop.f32.mrb[24].mxu0 }
0x244b   :  { %v2939_v53 = vadd.f32 %v10626_v12, %v2938_v50  ;;  %v7767_v2 = vpop.f32.mrb[25].mxu0 }
0x244d   :  { %9459 = vtanh.f32 %v2939_v53 }
0x2457   :  { %v9460_v31 = vpop.eup %9459 }
0x2458   :  { %7801 = vmatmul.mubr.f32.vlgmr.msra.gmra.mrb[26].mxu0 %v9460_v31  ;;  %v10656_v31 = vld [vmem:[%s11439_s1 + $0x8] sm:$0xff] }
0x2459   :  { %8924 = vmatpush3.bf16.msra.mxu0 %v9679_v5  ;;  %7874 = vmatprep.mubr.msk.f32.mxu0 %vm9576_vm0, %v11478_v0  ;;  %11485 = vst [vmem:[#allocation14_spill] sm:$0xff] %v10656_v31 }
0x245a   :  { %8925 = vmatprep.subr.bf16.mxu0 %v11479_v4 }
0x245d   :  { %8927 = vmatpush3.bf16.msra.mxu0 %v9688_v7 }
0x245e   :  { %8928 = vmatprep.subr.bf16.mxu0 %v11479_v4 }
0x2461   :  { %8930 = vmatpush3.bf16.msra.mxu0 %v9698_v10 }
0x2462   :  { %8931 = vmatprep.subr.bf16.mxu0 %v11479_v4 }
0x2465   :  { %8933 = vmatpush3.bf16.msra.mxu0 %v9708_v13 }
0x2466   :  { %8934 = vmatprep.subr.bf16.mxu0 %v11479_v4 }
0x2469   :  { %8936 = vmatpush3.bf16.msra.mxu0 %v9718_v16 }
0x246a   :  { %8943 = vmatprep.subr.bf16.mxu0 %v11479_v4 }
0x252b   :  { %v3010_v25 = vpop.f32.mrb[26].mxu0 }
0x252c   :  { %v3014_v30 = vsel %vm646_vm9, %v3010_v25, -1e+09  ;;  %v7802_v39 = vpop.f32.mrb[27].mxu0 }
0x252d   :  { %v3015_v47 = vsel %vm62_vm6, %v3014_v30, -inf }
0x252e   :  { %3016 = vmax.xlane.f32.xlu1 %v3015_v47 }
0x25bb   :  { %v3017_v24 = vpop.xlane.xlu1 %3016 }
0x25bc   :  { %v3018_v61 = vsub.f32 %v3014_v30, %v3017_v24  ;;  %v10662_v30 = vld [vmem:[%s11439_s1] sm:$0xff] }
0x25be   :  { %v3019_v18 = vmul.f32 1.442695, %v3018_v61 }
0x25c0   :  { %9461 = vpow2.f32 %v3019_v18 }
0x25ca   :  { %v9462_v43 = vpop.eup %9461 }
0x25cb   :  { %v3021_v54 = vsel %vm62_vm6, %v9462_v43, 0.0 }
0x25cc   :  { %3022 = vadd.xlane.f32.xlu0 %v3021_v54 }
0x2659   :  { %v3023_v60 = vpop.xlane.xlu0 %3022 }
0x265a   :  { %9463 = vrcp.f32 %v3023_v60 }
0x2664   :  { %v9464_v26 = vpop.eup %9463 }
0x2665   :  { %v10645_v3 = vmul.f32 %v9464_v26, %v9462_v43 }
0x2667   :  { %v3036_v57 = vrot.slane %v10645_v3, %v11483_v11  ;;  %v3029_v50 = vrot.slane %v10645_v3, %v11484_v51 }
0x2669   :  { %3038 = vbcast.lane.b32.xlu1 %v3036_v57, 256  ;;  %3031 = vbcast.lane.b32.xlu0 %v3029_v50, 256 }
0x266d   :  { %3064 = vrot.lane.b32.xlu0 %v10528_v63, %s9581_s9 }
0x26db   :  { %v3039_v53 = vpop.permute.xlu1 %3038  ;;  %v3032_v2 = vpop.permute.xlu0 %3031 }
0x26dc   :  { %v3041_v25 = vmul.f32 %v10656_v31, %v3039_v53  ;;  %v3040_v39 = vmul.f32 %v10662_v30, %v3032_v2 }
0x26de   :  { %v3049_v47 = vsel %vm225_vm3, %v3041_v25, 0.0  ;;  %v3042_v63 = vsel %vm225_vm3, %v3040_v39, 0.0 }
0x26df   :  { %v3050_v24 = vrot.slane %v3049_v47, 4  ;;  %v3043_v61 = vrot.slane %v3042_v63, 4  ;;  %v3065_v25 = vpop.permute.xlu0 %3064 }
0x26e1   :  { %v3051_v18 = vadd.f32 %v3050_v24, %v3049_v47  ;;  %v3044_v43 = vadd.f32 %v3043_v61, %v3042_v63 }
0x26e3   :  { %v3052_v54 = vrot.slane %v3051_v18, 2  ;;  %v3045_v60 = vrot.slane %v3044_v43, 2 }
0x26e5   :  { %v3053_v26 = vadd.f32 %v3052_v54, %v3051_v18  ;;  %v3046_v57 = vadd.f32 %v3045_v60, %v3044_v43 }
0x26e7   :  { %v3054_v50 = vrot.slane %v3053_v26, 1  ;;  %v3047_v53 = vrot.slane %v3046_v57, 1 }
0x26e9   :  { %v3048_v31 = vadd.f32 %v3047_v53, %v3046_v57  ;;  %v3055_v51 = vadd.f32 %v3054_v50, %v3053_v26  ;;  %v6522_v26 = vld [vmem:[%s11430_s0 + $0x8] sm:$0x3] }
0x26ea   :  { %7875 = vmatmul.mubr.msk.f32.vlgmr.msra.gmra.mrb[28].mxu0 %vm150_vm1, %v6522_v26 }
0x26eb   :  { %v3060_v11 = vsel %vm694_vm10, %v3055_v51, %v3048_v31  ;;  %8945 = vmatpush3.bf16.msra.mxu0 %v9768_v27  ;;  %7912 = vmatprep.mubr.msk.f32.mxu0 %vm9576_vm0, %v11478_v0 }
0x26ec   :  { %3061 = vrot.lane.b32.xlu1 %v3060_v11, %s9578_s23  ;;  %v10689_v11 = vld [vmem:[%s11440_s12] ss:$0 sm:$0xff]  ;;  %8946 = vmatprep.subr.bf16.mxu0 %v11479_v4 }
0x26ef   :  { %8948 = vmatpush3.bf16.msra.mxu0 %v9774_v29 }
0x26f0   :  { %8949 = vmatprep.subr.bf16.mxu0 %v11479_v4 }
0x26f3   :  { %8951 = vmatpush3.bf16.msra.mxu0 %v9784_v33 }
0x26f4   :  { %8952 = vmatprep.subr.bf16.mxu0 %v11479_v4 }
0x26f7   :  { %8954 = vmatpush3.bf16.msra.mxu0 %v9795_v37 }
0x26f8   :  { %8955 = vmatprep.subr.bf16.mxu0 %v11479_v4 }
0x26fb   :  { %8957 = vmatpush3.bf16.msra.mxu0 %v9806_v40 }
0x26fc   :  { %8958 = vmatprep.subr.bf16.mxu0 %v11479_v4 }
0x26ff   :  { %8960 = vmatpush3.bf16.msra.mxu0 %v9820_v46 }
0x2700   :  { %8994 = vmatprep.subr.bf16.mxu0 %v11479_v4 }
0x275e   :  { %v10669_v2 = vpop.permute.xlu1 %3061 }
0x275f   :  { %v3067_v39 = vsel %vm225_vm3, %v10601_v14, %v10669_v2 }
0x2760   :  { %v3068_v47 = vsel %vm309_vm4, %v3067_v39, %v3065_v25 }
0x2761   :  { %7828 = vmatmul.mubr.msk.f32.vlgmr.msra.gmra.mrb[24].mxu1 %vm317_vm5, %v3068_v47 }
0x2762   :  { %8912 = vmatpush3.bf16.msra.mxu1 %v10137_v34  ;;  %7846 = vmatprep.mubr.msk.f32.mxu1 %vm9576_vm0, %v11478_v0 }
0x2763   :  { %8913 = vmatprep.subr.bf16.mxu1 %v11479_v4 }
0x2766   :  { %8915 = vmatpush3.bf16.msra.mxu1 %v11480_v35 }
0x2767   :  { %8916 = vmatprep.subr.bf16.mxu1 %v11479_v4 }
0x276a   :  { %8918 = vmatpush3.bf16.msra.mxu1 %v11481_v38 }
0x276b   :  { %8919 = vmatprep.subr.bf16.mxu1 %v11479_v4 }
0x276e   :  { %8921 = vmatpush3.bf16.msra.mxu1 %v11482_v48 }
0x276f   :  { %7849 = vmatprep.subr.mxu1 %v11478_v0 }
0x27bd   :  { %v3391_v47 = vpop.f32.mrb[28].mxu0 }
0x2834   :  { %v3138_v14 = vpop.f32.mrb[24].mxu1 }
0x2835   :  { %v3139_v51 = vadd.f32 %v10689_v11, %v3138_v14  ;;  %v7829_v31 = vpop.f32.mrb[25].mxu1 }
0x2837   :  { %9465 = vtanh.f32 %v3139_v51  ;;  %v6518_v24 = vmul.f32 -1.442695, %v3139_v51  ;;  %v7876_v51 = vpop.f32.mrb[29].mxu0 }
0x2839   :  { %9467 = vpow2.f32 %v6518_v24 }
0x2841   :  { %v9466_v63 = vpop.eup %9465 }
0x2842   :  { %3151 = vrot.lane.b32.xlu1 %v9466_v63, %s9579_s22  ;;  %v10729_v63 = vld [vmem:[%s11442_s15] sm:$0xff] }
0x2843   :  { %v9468_v61 = vpop.eup %9467 }
0x2844   :  { %v3145_v18 = vadd.f32 1.0, %v9468_v61  ;;  %v10751_v61 = vld [vmem:[%s11443_s14] ss:$0 sm:$0xff] }
0x2846   :  { %9469 = vrcp.f32 %v3145_v18 }
0x2850   :  { %v9470_v43 = vpop.eup %9469 }
0x2851   :  { %v3149_v57 = vmul.f32 %v9470_v43, %v10522_v41 }
0x28b4   :  { %v3152_v54 = vpop.permute.xlu1 %3151 }
0x28b5   :  { %v3154_v60 = vmul.f32 %v9470_v43, %v3152_v54 }
0x28b7   :  { %3156 = vrot.lane.b32.xlu0 %v3154_v60, %s9578_s23 }
0x2929   :  { %v3157_v50 = vpop.permute.xlu0 %3156 }
0x292a   :  { %v10713_v53 = vadd.f32 %v3157_v50, %v3149_v57 }
0x292c   :  { %9471 = vtanh.f32 %v10713_v53 }
0x2936   :  { %v9472_v25 = vpop.eup %9471 }
0x2937   :  { %3162 = vrot.lane.b32.xlu1 %v9472_v25, %s9579_s22 }
0x293b   :  { %3470 = vrot.lane.b32.xlu1 %v10597_v44, %s9581_s9  ;;  %v3395_v44 = vmax.f32 %v3391_v47, 0.0 }
0x29a9   :  { %v3163_v39 = vpop.permute.xlu1 %3162 }
0x29aa   :  { %v10719_v14 = vmul.f32 %v9470_v43, %v3163_v39 }
0x29ac   :  { %3167 = vrot.lane.b32.xlu0 %v10719_v14, %s9578_s23 }
0x29ad   :  { %v3471_v57 = vpop.permute.xlu1 %3470 }
0x2a1e   :  { %v3168_v41 = vpop.permute.xlu0 %3167 }
0x2a1f   :  { %v3170_v31 = vsel %vm225_vm3, %v3168_v41, %v10669_v2 }
0x2a20   :  { %7847 = vmatmul.mubr.msk.f32.vlgmr.msra.gmra.mrb[26].mxu1 %vm309_vm4, %v3170_v31 }
0x2a21   :  { %7850 = vmatpush3.msra.mxu1 %v10729_v63  ;;  %7851 = vmatprep.mubr.msk.f32.mxu1 %vm9576_vm0, %v11478_v0 }
0x2a22   :  { %8937 = vmatprep.subr.bf16.mxu1 %v11479_v4 }
0x2a28   :  { %7852 = vmatmul.mubr.msk.f32.vlgmr.msra.gmra.mrb[26].mxu1 %vm423_vm7, %v10645_v3 }
0x2a29   :  { %8939 = vmatpush3.bf16.msra.mxu1 %v9731_v20  ;;  %7885 = vmatprep.mubr.msk.f32.mxu1 %vm9576_vm0, %v11478_v0 }
0x2a2a   :  { %8940 = vmatprep.subr.bf16.mxu1 %v11479_v4 }
0x2a2d   :  { %8942 = vmatpush3.bf16.msra.mxu1 %v9745_v23 }
0x2a2e   :  { %8961 = vmatprep.subr.bf16.mxu1 %v11479_v4 }
0x2a30   :  { %7886 = vmatmul.mubr.msk.f32.vlgmr.msra.gmra.mrb[28].mxu1 %vm225_vm3, %v3395_v44 }
0x2a31   :  { %8963 = vmatpush3.bf16.msra.mxu1 %v9855_v15  ;;  %7919 = vmatprep.mubr.msk.f32.mxu1 %vm9576_vm0, %v11478_v0 }
0x2a32   :  { %8964 = vmatprep.subr.bf16.mxu1 %v11479_v4 }
0x2afb   :  { %v3313_v24 = vpop.f32.mrb[26].mxu1 }
0x2afc   :  { %v9337_v18 = vadd.f32 %v10751_v61, %v3313_v24  ;;  %v7853_v43 = vpop.f32.mrb[27].mxu1 }
0x2afe   :  { %6521 = vst [vmem:[%s11444_s16 + $0x6] sm:$0x3] %v9337_v18 }
0x2b03   :  { %v3465_v54 = vpop.f32.mrb[28].mxu1 }
0x2b04   :  { %v3469_v60 = vmax.f32 %v3465_v54, 0.0  ;;  %v7887_v26 = vpop.f32.mrb[29].mxu1  ;;  %v10780_v54 = vadd.f32 %v10645_v3, %v10579_v32 }
0x2b06   :  { %v3473_v50 = vsel %vm225_vm3, %v3469_v60, %v10669_v2 }
0x2b07   :  { %v3474_v25 = vsel %vm309_vm4, %v3473_v50, %v3471_v57 }
0x2b08   :  { %7913 = vmatmul.mubr.msk.f32.vlgmr.msra.gmra.mrb[30].mxu0 %vm317_vm5, %v3474_v25 }
0x2b09   :  { %8996 = vmatpush3.bf16.msra.mxu0 %v10022_v55  ;;  %7992 = vmatprep.mubr.msk.f32.mxu0 %vm9576_vm0, %v11478_v0 }
0x2b0a   :  { %8997 = vmatprep.subr.bf16.mxu0 %v11479_v4 }
0x2b0d   :  { %8999 = vmatpush3.bf16.msra.mxu0 %v10028_v58 }
0x2b0e   :  { %9000 = vmatprep.subr.bf16.mxu0 %v11479_v4 }
0x2b11   :  { %9002 = vmatpush3.bf16.msra.mxu0 %v10038_v1 }
0x2b12   :  { %9003 = vmatprep.subr.bf16.mxu0 %v11479_v4 }
0x2b15   :  { %9005 = vmatpush3.bf16.msra.mxu0 %v10048_v8 }
0x2b16   :  { %9006 = vmatprep.subr.bf16.mxu0 %v11479_v4 }
0x2b19   :  { %9008 = vmatpush3.bf16.msra.mxu0 %v10058_v17 }
0x2b1a   :  { %9009 = vmatprep.subr.bf16.mxu0 %v11479_v4 }
0x2b1d   :  { %9011 = vmatpush3.bf16.msra.mxu0 %v10068_v22 }
0x2b1e   :  { %9012 = vmatprep.subr.bf16.mxu0 %v11479_v4 }
0x2bdb   :  { %v3544_v2 = vpop.f32.mrb[30].mxu0 }
0x2bdc   :  { %v3545_v39 = vadd.f32 %v10401_v6, %v3544_v2  ;;  %v7914_v47 = vpop.f32.mrb[31].mxu0 }
0x2bde   :  { %9473 = vtanh.f32 %v3545_v39  ;;  %v6526_v41 = vmul.f32 -1.442695, %v3545_v39 }
0x2be0   :  { %9475 = vpow2.f32 %v6526_v41 }
0x2be8   :  { %v9474_v51 = vpop.eup %9473 }
0x2be9   :  { %3557 = vrot.lane.b32.xlu0 %v9474_v51, %s9579_s22 }
0x2bea   :  { %v9476_v31 = vpop.eup %9475 }
0x2beb   :  { %v3551_v44 = vadd.f32 1.0, %v9476_v31 }
0x2bed   :  { %9477 = vrcp.f32 %v3551_v44 }
0x2bf7   :  { %v9478_v24 = vpop.eup %9477 }
0x2bf8   :  { %v3555_v6 = vmul.f32 %v9478_v24, %v10584_v19 }
0x2c5b   :  { %v3558_v18 = vpop.permute.xlu0 %3557 }
0x2c5c   :  { %v3560_v43 = vmul.f32 %v9478_v24, %v3558_v18 }
0x2c5e   :  { %3562 = vrot.lane.b32.xlu1 %v3560_v43, %s9578_s23 }
0x2c62   :  { %3573 = vrot.lane.b32.xlu1 %v10780_v54, %s9580_s18 }
0x2cd0   :  { %v3563_v60 = vpop.permute.xlu1 %3562 }
0x2cd1   :  { %v10785_v26 = vadd.f32 %v3563_v60, %v3555_v6 }
0x2cd3   :  { %9479 = vtanh.f32 %v10785_v26 }
0x2cd4   :  { %v3574_v57 = vpop.permute.xlu1 %3573 }
0x2cd5   :  { %v3576_v50 = vsel %vm423_vm7, %v10645_v3, %v3574_v57 }
0x2cd6   :  { %7920 = vmatmul.mubr.msk.f32.vlgmr.msra.gmra.mrb[30].mxu1 %vm425_vm8, %v3576_v50 }
0x2cd7   :  { %8966 = vmatpush3.bf16.msra.mxu1 %v9865_v21  ;;  %7930 = vmatprep.mubr.msk.f32.mxu1 %vm9576_vm0, %v11478_v0 }
0x2cd8   :  { %8967 = vmatprep.subr.bf16.mxu1 %v11479_v4 }
0x2cdb   :  { %8969 = vmatpush3.bf16.msra.mxu1 %v9876_v28 }
0x2cdc   :  { %8970 = vmatprep.subr.bf16.mxu1 %v11479_v4 }
0x2cdd   :  { %v9480_v32 = vpop.eup %9479 }
0x2cde   :  { %3568 = vrot.lane.b32.xlu0 %v9480_v32, %s9579_s22 }
0x2d50   :  { %v3569_v19 = vpop.permute.xlu0 %3568 }
0x2d51   :  { %v10798_v25 = vmul.f32 %v9478_v24, %v3569_v19 }
0x2d53   :  { %3651 = vrot.lane.b32.xlu0 %v10798_v25, %s9578_s23 }
0x2dc5   :  { %v10802_v3 = vpop.permute.xlu0 %3651 }
0x2dc6   :  { %7931 = vmatmul.mubr.msk.f32.vlgmr.msra.gmra.mrb[30].mxu1 %vm225_vm3, %v10802_v3 }
0x2dc7   :  { %8972 = vmatpush3.bf16.msra.mxu1 %v9894_v36  ;;  %7965 = vmatprep.mubr.msk.f32.mxu1 %vm9576_vm0, %v11478_v0 }
0x2dc8   :  { %8973 = vmatprep.subr.bf16.mxu1 %v11479_v4 }
0x2dcb   :  { %8975 = vmatpush3.bf16.msra.mxu1 %v9907_v42 }
0x2dcc   :  { %8976 = vmatprep.subr.bf16.mxu1 %v11479_v4 }
0x2dcf   :  { %8978 = vmatpush3.bf16.msra.mxu1 %v9919_v45 }
0x2dd0   :  { %8979 = vmatprep.subr.bf16.mxu1 %v11479_v4 }
0x2dd3   :  { %8981 = vmatpush3.bf16.msra.mxu1 %v9929_v49 }
0x2dd4   :  { %8982 = vmatprep.subr.bf16.mxu1 %v11479_v4 }
0x2dd7   :  { %8984 = vmatpush3.bf16.msra.mxu1 %v9939_v52 }
0x2dd8   :  { %8985 = vmatprep.subr.bf16.mxu1 %v11479_v4 }
0x2ddb   :  { %8987 = vmatpush3.bf16.msra.mxu1 %v9950_v56 }
0x2ddc   :  { %8988 = vmatprep.subr.bf16.mxu1 %v11479_v4 }
0x2ddf   :  { %8990 = vmatpush3.bf16.msra.mxu1 %v9960_v59 }
0x2de0   :  { %8991 = vmatprep.subr.bf16.mxu1 %v11479_v4 }
0x2de3   :  { %8993 = vmatpush3.bf16.msra.mxu1 %v9969_v62 }
0x2de4   :  { %9024 = vmatprep.subr.bf16.mxu1 %v11479_v4 }
0x2e99   :  { %v3721_v2 = vpop.f32.mrb[30].mxu1 }
0x2e9a   :  { %v3722_v39 = vadd.f32 %v10626_v12, %v3721_v2  ;;  %v7932_v47 = vpop.f32.mrb[31].mxu1  ;;  %v11486_v2 = vld [vmem:[#allocation12_spill] sm:$0xff] }
0x2e9b   :  { %v11487_v47 = vld [vmem:[#allocation13_spill] sm:$0xff] }
0x2e9c   :  { %9481 = vtanh.f32 %v3722_v39 }
0x2ea6   :  { %v9482_v51 = vpop.eup %9481 }
0x2ea7   :  { %7966 = vmatmul.mubr.f32.vlgmr.msra.gmra.mrb[32].mxu1 %v9482_v51 }
0x2ea8   :  { %9026 = vmatpush3.bf16.msra.mxu1 %v9679_v5  ;;  %8039 = vmatprep.mubr.msk.f32.mxu1 %vm9576_vm0, %v11478_v0 }
0x2ea9   :  { %9027 = vmatprep.subr.bf16.mxu1 %v11479_v4 }
0x2eac   :  { %9029 = vmatpush3.bf16.msra.mxu1 %v9688_v7 }
0x2ead   :  { %9030 = vmatprep.subr.bf16.mxu1 %v11479_v4 }
0x2eb0   :  { %9032 = vmatpush3.bf16.msra.mxu1 %v9698_v10 }
0x2eb1   :  { %9033 = vmatprep.subr.bf16.mxu1 %v11479_v4 }
0x2eb4   :  { %9035 = vmatpush3.bf16.msra.mxu1 %v9708_v13 }
0x2eb5   :  { %9036 = vmatprep.subr.bf16.mxu1 %v11479_v4 }
0x2eb8   :  { %9038 = vmatpush3.bf16.msra.mxu1 %v9718_v16 }
0x2eb9   :  { %9045 = vmatprep.subr.bf16.mxu1 %v11479_v4 }
0x2f7a   :  { %v3793_v41 = vpop.f32.mrb[32].mxu1 }
0x2f7b   :  { %v3797_v31 = vsel %vm646_vm9, %v3793_v41, -1e+09  ;;  %v7967_v44 = vpop.f32.mrb[33].mxu1 }
0x2f7c   :  { %v3798_v24 = vsel %vm62_vm6, %v3797_v31, -inf  ;;  %v11488_v44 = vld [vmem:[#allocation14_spill] sm:$0xff] }
0x2f7d   :  { %3799 = vmax.xlane.f32.xlu1 %v3798_v24 }
0x300a   :  { %v3800_v18 = vpop.xlane.xlu1 %3799 }
0x300b   :  { %v3801_v43 = vsub.f32 %v3797_v31, %v3800_v18 }
0x300d   :  { %v3802_v6 = vmul.f32 1.442695, %v3801_v43 }
0x300f   :  { %9483 = vpow2.f32 %v3802_v6 }
0x3019   :  { %v9484_v60 = vpop.eup %9483 }
0x301a   :  { %v3804_v57 = vsel %vm62_vm6, %v9484_v60, 0.0 }
0x301b   :  { %3805 = vadd.xlane.f32.xlu0 %v3804_v57 }
0x30a8   :  { %v3806_v50 = vpop.xlane.xlu0 %3805 }
0x30a9   :  { %9485 = vrcp.f32 %v3806_v50 }
0x30b3   :  { %v9486_v32 = vpop.eup %9485 }
0x30b4   :  { %v10841_v19 = vmul.f32 %v9486_v32, %v9484_v60 }
0x30b6   :  { %v3819_v39 = vrot.slane %v10841_v19, %v11486_v2  ;;  %v3812_v51 = vrot.slane %v10841_v19, %v11487_v47 }
0x30b8   :  { %3821 = vbcast.lane.b32.xlu1 %v3819_v39, 256  ;;  %3814 = vbcast.lane.b32.xlu0 %v3812_v51, 256 }
0x30bc   :  { %3847 = vrot.lane.b32.xlu0 %v10719_v14, %s9581_s9 }
0x312a   :  { %v3822_v41 = vpop.permute.xlu1 %3821  ;;  %v3815_v31 = vpop.permute.xlu0 %3814 }
0x312b   :  { %v3824_v24 = vmul.f32 %v11488_v44, %v3822_v41  ;;  %v3823_v18 = vmul.f32 %v10662_v30, %v3815_v31 }
0x312d   :  { %v3832_v43 = vsel %vm225_vm3, %v3824_v24, 0.0  ;;  %v3825_v6 = vsel %vm225_vm3, %v3823_v18, 0.0 }
0x312e   :  { %v3833_v60 = vrot.slane %v3832_v43, 4  ;;  %v3826_v57 = vrot.slane %v3825_v6, 4  ;;  %v3848_v24 = vpop.permute.xlu0 %3847 }
0x3130   :  { %v3834_v50 = vadd.f32 %v3833_v60, %v3832_v43  ;;  %v3827_v32 = vadd.f32 %v3826_v57, %v3825_v6 }
0x3132   :  { %v3835_v47 = vrot.slane %v3834_v50, 2  ;;  %v3828_v39 = vrot.slane %v3827_v32, 2 }
0x3134   :  { %v3836_v51 = vadd.f32 %v3835_v47, %v3834_v50  ;;  %v3829_v2 = vadd.f32 %v3828_v39, %v3827_v32  ;;  %v6534_v32 = vld [vmem:[%s11430_s0 + $0xa] sm:$0x3] }
0x3135   :  { %8040 = vmatmul.mubr.msk.f32.vlgmr.msra.gmra.mrb[34].mxu1 %vm150_vm1, %v6534_v32 }
0x3136   :  { %v3837_v9 = vrot.slane %v3836_v51, 1  ;;  %v3830_v14 = vrot.slane %v3829_v2, 1  ;;  %9047 = vmatpush3.bf16.msra.mxu1 %v9768_v27  ;;  %8077 = vmatprep.mubr.msk.f32.mxu1 %vm9576_vm0, %v11478_v0 }
0x3137   :  { %9048 = vmatprep.subr.bf16.mxu1 %v11479_v4 }
0x3138   :  { %v3831_v16 = vadd.f32 %v3830_v14, %v3829_v2  ;;  %v3838_v13 = vadd.f32 %v3837_v9, %v3836_v51 }
0x313a   :  { %v3843_v41 = vsel %vm694_vm10, %v3838_v13, %v3831_v16  ;;  %9050 = vmatpush3.bf16.msra.mxu1 %v9774_v29 }
0x313b   :  { %3844 = vrot.lane.b32.xlu1 %v3843_v41, %s9578_s23  ;;  %9051 = vmatprep.subr.bf16.mxu1 %v11479_v4 }
0x313e   :  { %9053 = vmatpush3.bf16.msra.mxu1 %v9784_v33 }
0x313f   :  { %9054 = vmatprep.subr.bf16.mxu1 %v11479_v4 }
0x3142   :  { %9056 = vmatpush3.bf16.msra.mxu1 %v9795_v37 }
0x3143   :  { %9057 = vmatprep.subr.bf16.mxu1 %v11479_v4 }
0x3146   :  { %9059 = vmatpush3.bf16.msra.mxu1 %v9806_v40 }
0x3147   :  { %9060 = vmatprep.subr.bf16.mxu1 %v11479_v4 }
0x314a   :  { %9062 = vmatpush3.bf16.msra.mxu1 %v9820_v46 }
0x314b   :  { %9096 = vmatprep.subr.bf16.mxu1 %v11479_v4 }
0x31ad   :  { %v10855_v31 = vpop.permute.xlu1 %3844 }
0x31ae   :  { %v3850_v18 = vsel %vm225_vm3, %v10802_v3, %v10855_v31 }
0x31af   :  { %v3851_v43 = vsel %vm309_vm4, %v3850_v18, %v3848_v24 }
0x31b0   :  { %7993 = vmatmul.mubr.msk.f32.vlgmr.msra.gmra.mrb[32].mxu0 %vm317_vm5, %v3851_v43 }
0x31b1   :  { %9014 = vmatpush3.bf16.msra.mxu0 %v10137_v34  ;;  %8011 = vmatprep.mubr.msk.f32.mxu0 %vm9576_vm0, %v11478_v0 }
0x31b2   :  { %9015 = vmatprep.subr.bf16.mxu0 %v11479_v4 }
0x31b5   :  { %9017 = vmatpush3.bf16.msra.mxu0 %v11480_v35 }
0x31b6   :  { %9018 = vmatprep.subr.bf16.mxu0 %v11479_v4 }
0x31b9   :  { %9020 = vmatpush3.bf16.msra.mxu0 %v11481_v38 }
0x31ba   :  { %9021 = vmatprep.subr.bf16.mxu0 %v11479_v4 }
0x31bd   :  { %9023 = vmatpush3.bf16.msra.mxu0 %v11482_v48 }
0x31be   :  { %8014 = vmatprep.subr.mxu0 %v11478_v0 }
0x3208   :  { %v4174_v18 = vpop.f32.mrb[34].mxu1 }
0x3283   :  { %v3921_v13 = vpop.f32.mrb[32].mxu0 }
0x3284   :  { %v3922_v16 = vadd.f32 %v10689_v11, %v3921_v13  ;;  %v7994_v9 = vpop.f32.mrb[33].mxu0  ;;  %v8041_v13 = vpop.f32.mrb[35].mxu1 }
0x3286   :  { %9487 = vtanh.f32 %v3922_v16  ;;  %v6530_v2 = vmul.f32 -1.442695, %v3922_v16 }
0x3288   :  { %9489 = vpow2.f32 %v6530_v2 }
0x3290   :  { %v9488_v3 = vpop.eup %9487 }
0x3291   :  { %3934 = vrot.lane.b32.xlu1 %v9488_v3, %s9579_s22 }
0x3292   :  { %v9490_v47 = vpop.eup %9489 }
0x3293   :  { %v3928_v6 = vadd.f32 1.0, %v9490_v47 }
0x3295   :  { %9491 = vrcp.f32 %v3928_v6 }
0x329f   :  { %v9492_v60 = vpop.eup %9491 }
0x32a0   :  { %v3932_v39 = vmul.f32 %v9492_v60, %v10713_v53 }
0x3303   :  { %v3935_v57 = vpop.permute.xlu1 %3934 }
0x3304   :  { %v3937_v50 = vmul.f32 %v9492_v60, %v3935_v57 }
0x3306   :  { %3939 = vrot.lane.b32.xlu0 %v3937_v50, %s9578_s23 }
0x3378   :  { %v3940_v51 = vpop.permute.xlu0 %3939 }
0x3379   :  { %v10894_v14 = vadd.f32 %v3940_v51, %v3932_v39  ;;  %v10949_v39 = vld [vmem:[%s11432_s7] ss:$0 sm:$0xff] }
0x337b   :  { %9493 = vtanh.f32 %v10894_v14 }
0x3385   :  { %v9494_v41 = vpop.eup %9493 }
0x3386   :  { %3945 = vrot.lane.b32.xlu1 %v9494_v41, %s9579_s22 }
0x338a   :  { %4253 = vrot.lane.b32.xlu1 %v10798_v25, %s9581_s9  ;;  %v4178_v25 = vmax.f32 %v4174_v18, 0.0 }
0x33f8   :  { %v3946_v24 = vpop.permute.xlu1 %3945 }
0x33f9   :  { %v10900_v43 = vmul.f32 %v9492_v60, %v3946_v24 }
0x33fb   :  { %3950 = vrot.lane.b32.xlu0 %v10900_v43, %s9578_s23 }
0x33fc   :  { %v4254_v57 = vpop.permute.xlu1 %4253 }
0x346d   :  { %v3951_v53 = vpop.permute.xlu0 %3950 }
0x346e   :  { %v3953_v16 = vsel %vm225_vm3, %v3951_v53, %v10855_v31 }
0x346f   :  { %8012 = vmatmul.mubr.msk.f32.vlgmr.msra.gmra.mrb[34].mxu0 %vm309_vm4, %v3953_v16 }
0x3470   :  { %8015 = vmatpush3.msra.mxu0 %v10729_v63  ;;  %8016 = vmatprep.mubr.msk.f32.mxu0 %vm9576_vm0, %v11478_v0 }
0x3471   :  { %9039 = vmatprep.subr.bf16.mxu0 %v11479_v4 }
0x3477   :  { %8017 = vmatmul.mubr.msk.f32.vlgmr.msra.gmra.mrb[34].mxu0 %vm423_vm7, %v10841_v19 }
0x3478   :  { %9041 = vmatpush3.bf16.msra.mxu0 %v9731_v20  ;;  %8050 = vmatprep.mubr.msk.f32.mxu0 %vm9576_vm0, %v11478_v0 }
0x3479   :  { %9042 = vmatprep.subr.bf16.mxu0 %v11479_v4 }
0x347c   :  { %9044 = vmatpush3.bf16.msra.mxu0 %v9745_v23 }
0x347d   :  { %9063 = vmatprep.subr.bf16.mxu0 %v11479_v4 }
0x347f   :  { %8051 = vmatmul.mubr.msk.f32.vlgmr.msra.gmra.mrb[36].mxu0 %vm225_vm3, %v4178_v25 }
0x3480   :  { %9065 = vmatpush3.bf16.msra.mxu0 %v9855_v15  ;;  %8084 = vmatprep.mubr.msk.f32.mxu0 %vm9576_vm0, %v11478_v0 }
0x3481   :  { %9066 = vmatprep.subr.bf16.mxu0 %v11479_v4 }
0x354a   :  { %v4096_v9 = vpop.f32.mrb[34].mxu0 }
0x354b   :  { %v9339_v3 = vadd.f32 %v10751_v61, %v4096_v9  ;;  %v8018_v2 = vpop.f32.mrb[35].mxu0 }
0x354d   :  { %6533 = vst [vmem:[%s11444_s16 + $0x8] sm:$0x3] %v9339_v3  ;;  %v10956_v3 = vadd.f32 %v10841_v19, %v10780_v54 }
0x3552   :  { %v4248_v47 = vpop.f32.mrb[36].mxu0 }
0x3553   :  { %v4252_v6 = vmax.f32 %v4248_v47, 0.0  ;;  %v8052_v60 = vpop.f32.mrb[37].mxu0 }
0x3555   :  { %v4256_v50 = vsel %vm225_vm3, %v4252_v6, %v10855_v31 }
0x3556   :  { %v4257_v32 = vsel %vm309_vm4, %v4256_v50, %v4254_v57 }
0x3557   :  { %8078 = vmatmul.mubr.msk.f32.vlgmr.msra.gmra.mrb[36].mxu1 %vm317_vm5, %v4257_v32 }
0x3558   :  { %9098 = vmatpush3.bf16.msra.mxu1 %v10022_v55  ;;  %8157 = vmatprep.mubr.msk.f32.mxu1 %vm9576_vm0, %v11478_v0 }
0x3559   :  { %9099 = vmatprep.subr.bf16.mxu1 %v11479_v4 }
0x355c   :  { %9101 = vmatpush3.bf16.msra.mxu1 %v10028_v58 }
0x355d   :  { %9102 = vmatprep.subr.bf16.mxu1 %v11479_v4 }
0x3560   :  { %9104 = vmatpush3.bf16.msra.mxu1 %v10038_v1 }
0x3561   :  { %9105 = vmatprep.subr.bf16.mxu1 %v11479_v4 }
0x3564   :  { %9107 = vmatpush3.bf16.msra.mxu1 %v10048_v8 }
0x3565   :  { %9108 = vmatprep.subr.bf16.mxu1 %v11479_v4 }
0x3568   :  { %9110 = vmatpush3.bf16.msra.mxu1 %v10058_v17 }
0x3569   :  { %9111 = vmatprep.subr.bf16.mxu1 %v11479_v4 }
0x356c   :  { %9113 = vmatpush3.bf16.msra.mxu1 %v10068_v22 }
0x356d   :  { %9114 = vmatprep.subr.bf16.mxu1 %v11479_v4 }
0x362a   :  { %v4327_v31 = vpop.f32.mrb[36].mxu1 }
0x362b   :  { %v4328_v51 = vadd.f32 %v10949_v39, %v4327_v31  ;;  %v8079_v41 = vpop.f32.mrb[37].mxu1 }
0x362d   :  { %9495 = vtanh.f32 %v4328_v51  ;;  %v6538_v18 = vmul.f32 -1.442695, %v4328_v51 }
0x362f   :  { %9497 = vpow2.f32 %v6538_v18 }
0x3637   :  { %v9496_v24 = vpop.eup %9495 }
0x3638   :  { %4340 = vrot.lane.b32.xlu0 %v9496_v24, %s9579_s22  ;;  %v11490_v24 = vld [vmem:[#allocation10_spill] sm:$0xff] }
0x3639   :  { %v9498_v13 = vpop.eup %9497 }
0x363a   :  { %v4334_v53 = vadd.f32 1.0, %v9498_v13 }
0x363c   :  { %9499 = vrcp.f32 %v4334_v53 }
0x3646   :  { %v9500_v16 = vpop.eup %9499 }
0x3647   :  { %v4338_v2 = vmul.f32 %v9500_v16, %v10785_v26 }
0x36aa   :  { %v4341_v25 = vpop.permute.xlu0 %4340 }
0x36ab   :  { %v4343_v9 = vmul.f32 %v9500_v16, %v4341_v25 }
0x36ad   :  { %4345 = vrot.lane.b32.xlu1 %v4343_v9, %s9578_s23 }
0x36b1   :  { %4356 = vrot.lane.b32.xlu1 %v10956_v3, %s9580_s18 }
0x371f   :  { %v4346_v47 = vpop.permute.xlu1 %4345 }
0x3720   :  { %v10961_v6 = vadd.f32 %v4346_v47, %v4338_v2 }
0x3722   :  { %9501 = vtanh.f32 %v10961_v6 }
0x3723   :  { %v4357_v60 = vpop.permute.xlu1 %4356 }
0x3724   :  { %v4359_v57 = vsel %vm423_vm7, %v10841_v19, %v4357_v60 }
0x3725   :  { %8085 = vmatmul.mubr.msk.f32.vlgmr.msra.gmra.mrb[38].mxu0 %vm425_vm8, %v4359_v57 }
0x3726   :  { %9068 = vmatpush3.bf16.msra.mxu0 %v9865_v21  ;;  %8095 = vmatprep.mubr.msk.f32.mxu0 %vm9576_vm0, %v11478_v0 }
0x3727   :  { %9069 = vmatprep.subr.bf16.mxu0 %v11479_v4 }
0x372a   :  { %9071 = vmatpush3.bf16.msra.mxu0 %v9876_v28 }
0x372b   :  { %9072 = vmatprep.subr.bf16.mxu0 %v11479_v4 }
0x372c   :  { %v9502_v54 = vpop.eup %9501 }
0x372d   :  { %4351 = vrot.lane.b32.xlu0 %v9502_v54, %s9579_s22 }
0x379f   :  { %v4352_v26 = vpop.permute.xlu0 %4351 }
0x37a0   :  { %v10974_v50 = vmul.f32 %v9500_v16, %v4352_v26 }
0x37a2   :  { %4434 = vrot.lane.b32.xlu0 %v10974_v50, %s9578_s23 }
0x3814   :  { %v10978_v19 = vpop.permute.xlu0 %4434 }
0x3815   :  { %8096 = vmatmul.mubr.msk.f32.vlgmr.msra.gmra.mrb[38].mxu0 %vm225_vm3, %v10978_v19 }
0x3816   :  { %9074 = vmatpush3.bf16.msra.mxu0 %v9894_v36  ;;  %8130 = vmatprep.mubr.msk.f32.mxu0 %vm9576_vm0, %v11478_v0 }
0x3817   :  { %9075 = vmatprep.subr.bf16.mxu0 %v11479_v4 }
0x381a   :  { %9077 = vmatpush3.bf16.msra.mxu0 %v9907_v42 }
0x381b   :  { %9078 = vmatprep.subr.bf16.mxu0 %v11479_v4 }
0x381e   :  { %9080 = vmatpush3.bf16.msra.mxu0 %v9919_v45 }
0x381f   :  { %9081 = vmatprep.subr.bf16.mxu0 %v11479_v4 }
0x3822   :  { %9083 = vmatpush3.bf16.msra.mxu0 %v9929_v49 }
0x3823   :  { %9084 = vmatprep.subr.bf16.mxu0 %v11479_v4 }
0x3826   :  { %9086 = vmatpush3.bf16.msra.mxu0 %v9939_v52 }
0x3827   :  { %9087 = vmatprep.subr.bf16.mxu0 %v11479_v4 }
0x382a   :  { %9089 = vmatpush3.bf16.msra.mxu0 %v9950_v56 }
0x382b   :  { %9090 = vmatprep.subr.bf16.mxu0 %v11479_v4 }
0x382e   :  { %9092 = vmatpush3.bf16.msra.mxu0 %v9960_v59 }
0x382f   :  { %9093 = vmatprep.subr.bf16.mxu0 %v11479_v4 }
0x3832   :  { %9095 = vmatpush3.bf16.msra.mxu0 %v9969_v62 }
0x3833   :  { %9126 = vmatprep.subr.bf16.mxu0 %v11479_v4 }
0x38e8   :  { %v4504_v32 = vpop.f32.mrb[38].mxu0 }
0x38e9   :  { %v4505_v31 = vadd.f32 %v10626_v12, %v4504_v32  ;;  %v8097_v51 = vpop.f32.mrb[39].mxu0  ;;  %v11489_v12 = vld [vmem:[#allocation9_spill] sm:$0xff] }
0x38eb   :  { %9503 = vtanh.f32 %v4505_v31  ;;  %v11492_v31 = vld [vmem:[#allocation12_spill] sm:$0xff] }
0x38f5   :  { %v9504_v41 = vpop.eup %9503 }
0x38f6   :  { %8131 = vmatmul.mubr.f32.vlgmr.msra.gmra.mrb[40].mxu0 %v9504_v41  ;;  %v11493_v41 = vld [vmem:[#allocation13_spill] sm:$0xff] }
0x38f7   :  { %9128 = vmatpush3.bf16.msra.mxu0 %v9679_v5  ;;  %8204 = vmatprep.mubr.msk.f32.mxu0 %vm9576_vm0, %v11478_v0 }
0x38f8   :  { %9129 = vmatprep.subr.bf16.mxu0 %v11479_v4 }
0x38fb   :  { %9131 = vmatpush3.bf16.msra.mxu0 %v9688_v7 }
0x38fc   :  { %9132 = vmatprep.subr.bf16.mxu0 %v11479_v4 }
0x38ff   :  { %9134 = vmatpush3.bf16.msra.mxu0 %v9698_v10 }
0x3900   :  { %9135 = vmatprep.subr.bf16.mxu0 %v11479_v4 }
0x3903   :  { %9137 = vmatpush3.bf16.msra.mxu0 %v11489_v12 }
0x3904   :  { %9138 = vmatprep.subr.bf16.mxu0 %v11479_v4 }
0x3907   :  { %9140 = vmatpush3.bf16.msra.mxu0 %v11490_v24 }
0x3908   :  { %9147 = vmatprep.subr.bf16.mxu0 %v11479_v4 }
0x39c9   :  { %v4576_v18 = vpop.f32.mrb[40].mxu0 }
0x39ca   :  { %v4580_v53 = vsel %vm646_vm9, %v4576_v18, -1e+09  ;;  %v8132_v16 = vpop.f32.mrb[41].mxu0 }
0x39cb   :  { %v4581_v25 = vsel %vm62_vm6, %v4580_v53, -inf }
0x39cc   :  { %4582 = vmax.xlane.f32.xlu1 %v4581_v25 }
0x3a59   :  { %v4583_v9 = vpop.xlane.xlu1 %4582 }
0x3a5a   :  { %v4584_v2 = vsub.f32 %v4580_v53, %v4583_v9 }
0x3a5c   :  { %v4585_v47 = vmul.f32 1.442695, %v4584_v2 }
0x3a5e   :  { %9505 = vpow2.f32 %v4585_v47 }
0x3a68   :  { %v9506_v60 = vpop.eup %9505 }
0x3a69   :  { %v4587_v57 = vsel %vm62_vm6, %v9506_v60, 0.0 }
0x3a6a   :  { %4588 = vadd.xlane.f32.xlu0 %v4587_v57 }
0x3af7   :  { %v4589_v54 = vpop.xlane.xlu0 %4588 }
0x3af8   :  { %9507 = vrcp.f32 %v4589_v54 }
0x3b02   :  { %v9508_v26 = vpop.eup %9507 }
0x3b03   :  { %v11017_v32 = vmul.f32 %v9508_v26, %v9506_v60 }
0x3b05   :  { %v4602_v51 = vrot.slane %v11017_v32, %v11492_v31  ;;  %v4595_v18 = vrot.slane %v11017_v32, %v11493_v41 }
0x3b07   :  { %4604 = vbcast.lane.b32.xlu1 %v4602_v51, 256  ;;  %4597 = vbcast.lane.b32.xlu0 %v4595_v18, 256 }
0x3b0b   :  { %4630 = vrot.lane.b32.xlu0 %v10900_v43, %s9581_s9 }
0x3b79   :  { %v4605_v53 = vpop.permute.xlu1 %4604  ;;  %v4598_v16 = vpop.permute.xlu0 %4597 }
0x3b7a   :  { %v4607_v25 = vmul.f32 %v11488_v44, %v4605_v53  ;;  %v4606_v9 = vmul.f32 %v10662_v30, %v4598_v16 }
0x3b7c   :  { %v4615_v2 = vsel %vm225_vm3, %v4607_v25, 0.0  ;;  %v4608_v47 = vsel %vm225_vm3, %v4606_v9, 0.0 }
0x3b7d   :  { %v4616_v60 = vrot.slane %v4615_v2, 4  ;;  %v4609_v57 = vrot.slane %v4608_v47, 4  ;;  %v4631_v53 = vpop.permute.xlu0 %4630 }
0x3b7f   :  { %v4617_v54 = vadd.f32 %v4616_v60, %v4615_v2  ;;  %v4610_v26 = vadd.f32 %v4609_v57, %v4608_v47  ;;  %v6546_v57 = vld [vmem:[%s11430_s0 + $0xc] sm:$0x3] }
0x3b80   :  { %8205 = vmatmul.mubr.msk.f32.vlgmr.msra.gmra.mrb[42].mxu0 %vm150_vm1, %v6546_v57 }
0x3b81   :  { %v4618_v41 = vrot.slane %v4617_v54, 2  ;;  %v4611_v51 = vrot.slane %v4610_v26, 2  ;;  %9149 = vmatpush3.bf16.msra.mxu0 %v9768_v27  ;;  %8242 = vmatprep.mubr.msk.f32.mxu0 %vm9576_vm0, %v11478_v0 }
0x3b82   :  { %9150 = vmatprep.subr.bf16.mxu0 %v11479_v4 }
0x3b83   :  { %v4619_v18 = vadd.f32 %v4618_v41, %v4617_v54  ;;  %v4612_v31 = vadd.f32 %v4611_v51, %v4610_v26 }
0x3b85   :  { %v4620_v13 = vrot.slane %v4619_v18, 1  ;;  %v4613_v43 = vrot.slane %v4612_v31, 1  ;;  %9152 = vmatpush3.bf16.msra.mxu0 %v9774_v29 }
0x3b86   :  { %9153 = vmatprep.subr.bf16.mxu0 %v11479_v4 }
0x3b87   :  { %v4614_v24 = vadd.f32 %v4613_v43, %v4612_v31  ;;  %v4621_v12 = vadd.f32 %v4620_v13, %v4619_v18 }
0x3b89   :  { %v4626_v44 = vsel %vm694_vm10, %v4621_v12, %v4614_v24  ;;  %9155 = vmatpush3.bf16.msra.mxu0 %v9784_v33 }
0x3b8a   :  { %4627 = vrot.lane.b32.xlu1 %v4626_v44, %s9578_s23  ;;  %9156 = vmatprep.subr.bf16.mxu0 %v11479_v4 }
0x3b8d   :  { %9158 = vmatpush3.bf16.msra.mxu0 %v9795_v37 }
0x3b8e   :  { %9159 = vmatprep.subr.bf16.mxu0 %v11479_v4 }
0x3b91   :  { %9161 = vmatpush3.bf16.msra.mxu0 %v9806_v40 }
0x3b92   :  { %9162 = vmatprep.subr.bf16.mxu0 %v11479_v4 }
0x3b95   :  { %9164 = vmatpush3.bf16.msra.mxu0 %v9820_v46 }
0x3b96   :  { %9198 = vmatprep.subr.bf16.mxu0 %v11479_v4 }
0x3bfc   :  { %v11031_v30 = vpop.permute.xlu1 %4627 }
0x3bfd   :  { %v4633_v16 = vsel %vm225_vm3, %v10978_v19, %v11031_v30 }
0x3bfe   :  { %v4634_v25 = vsel %vm309_vm4, %v4633_v16, %v4631_v53 }
0x3bff   :  { %8158 = vmatmul.mubr.msk.f32.vlgmr.msra.gmra.mrb[38].mxu1 %vm317_vm5, %v4634_v25 }
0x3c00   :  { %9116 = vmatpush3.bf16.msra.mxu1 %v10137_v34  ;;  %8176 = vmatprep.mubr.msk.f32.mxu1 %vm9576_vm0, %v11478_v0 }
0x3c01   :  { %9117 = vmatprep.subr.bf16.mxu1 %v11479_v4 }
0x3c04   :  { %9119 = vmatpush3.bf16.msra.mxu1 %v11480_v35 }
0x3c05   :  { %9120 = vmatprep.subr.bf16.mxu1 %v11479_v4 }
0x3c08   :  { %9122 = vmatpush3.bf16.msra.mxu1 %v11481_v38 }
0x3c09   :  { %9123 = vmatprep.subr.bf16.mxu1 %v11479_v4 }
0x3c0c   :  { %9125 = vmatpush3.bf16.msra.mxu1 %v11482_v48 }
0x3c0d   :  { %8179 = vmatprep.subr.mxu1 %v11478_v0 }
0x3c53   :  { %v4957_v43 = vpop.f32.mrb[42].mxu0 }
0x3c54   :  { %v8206_v53 = vpop.f32.mrb[43].mxu0 }
0x3cd2   :  { %v4704_v19 = vpop.f32.mrb[38].mxu1 }
0x3cd3   :  { %v4705_v12 = vadd.f32 %v10689_v11, %v4704_v19  ;;  %v8159_v24 = vpop.f32.mrb[39].mxu1 }
0x3cd5   :  { %9509 = vtanh.f32 %v4705_v12  ;;  %v6542_v31 = vmul.f32 -1.442695, %v4705_v12 }
0x3cd7   :  { %9511 = vpow2.f32 %v6542_v31 }
0x3cdf   :  { %v9510_v13 = vpop.eup %9509 }
0x3ce0   :  { %4717 = vrot.lane.b32.xlu1 %v9510_v13, %s9579_s22 }
0x3ce1   :  { %v9512_v41 = vpop.eup %9511 }
0x3ce2   :  { %v4711_v9 = vadd.f32 1.0, %v9512_v41 }
0x3ce4   :  { %9513 = vrcp.f32 %v4711_v9 }
0x3cee   :  { %v9514_v2 = vpop.eup %9513 }
0x3cef   :  { %v4715_v11 = vmul.f32 %v9514_v2, %v10894_v14 }
0x3d52   :  { %v4718_v47 = vpop.permute.xlu1 %4717 }
0x3d53   :  { %v4720_v60 = vmul.f32 %v9514_v2, %v4718_v47 }
0x3d55   :  { %4722 = vrot.lane.b32.xlu0 %v4720_v60, %s9578_s23 }
0x3dc7   :  { %v4723_v54 = vpop.permute.xlu0 %4722 }
0x3dc8   :  { %v11070_v26 = vadd.f32 %v4723_v54, %v4715_v11 }
0x3dca   :  { %9515 = vtanh.f32 %v11070_v26 }
0x3dd4   :  { %v9516_v51 = vpop.eup %9515 }
0x3dd5   :  { %4728 = vrot.lane.b32.xlu1 %v9516_v51, %s9579_s22 }
0x3dd9   :  { %5036 = vrot.lane.b32.xlu1 %v10974_v50, %s9581_s9  ;;  %v4961_v50 = vmax.f32 %v4957_v43, 0.0  ;;  %v11127_v43 = vadd.f32 %v11017_v32, %v10956_v3 }
0x3e47   :  { %v4729_v18 = vpop.permute.xlu1 %4728 }
0x3e48   :  { %v11076_v44 = vmul.f32 %v9514_v2, %v4729_v18 }
0x3e4a   :  { %4733 = vrot.lane.b32.xlu0 %v11076_v44, %s9578_s23 }
0x3e4b   :  { %v5037_v31 = vpop.permute.xlu1 %5036 }
0x3ebc   :  { %v4734_v14 = vpop.permute.xlu0 %4733 }
0x3ebd   :  { %v4736_v16 = vsel %vm225_vm3, %v4734_v14, %v11031_v30 }
0x3ebe   :  { %8177 = vmatmul.mubr.msk.f32.vlgmr.msra.gmra.mrb[40].mxu1 %vm309_vm4, %v4736_v16 }
0x3ebf   :  { %8180 = vmatpush3.msra.mxu1 %v10729_v63  ;;  %8181 = vmatprep.mubr.msk.f32.mxu1 %vm9576_vm0, %v11478_v0 }
0x3ec0   :  { %9141 = vmatprep.subr.bf16.mxu1 %v11479_v4 }
0x3ec6   :  { %8182 = vmatmul.mubr.msk.f32.vlgmr.msra.gmra.mrb[40].mxu1 %vm423_vm7, %v11017_v32 }
0x3ec7   :  { %9143 = vmatpush3.bf16.msra.mxu1 %v9731_v20  ;;  %8215 = vmatprep.mubr.msk.f32.mxu1 %vm9576_vm0, %v11478_v0 }
0x3ec8   :  { %9144 = vmatprep.subr.bf16.mxu1 %v11479_v4 }
0x3ecb   :  { %9146 = vmatpush3.bf16.msra.mxu1 %v9745_v23 }
0x3ecc   :  { %9165 = vmatprep.subr.bf16.mxu1 %v11479_v4 }
0x3ece   :  { %8216 = vmatmul.mubr.msk.f32.vlgmr.msra.gmra.mrb[42].mxu1 %vm225_vm3, %v4961_v50 }
0x3ecf   :  { %9167 = vmatpush3.bf16.msra.mxu1 %v9855_v15  ;;  %8249 = vmatprep.mubr.msk.f32.mxu1 %vm9576_vm0, %v11478_v0 }
0x3ed0   :  { %9168 = vmatprep.subr.bf16.mxu1 %v11479_v4 }
0x3f99   :  { %v4879_v63 = vpop.f32.mrb[40].mxu1 }
0x3f9a   :  { %v9341_v25 = vadd.f32 %v10751_v61, %v4879_v63  ;;  %v8183_v19 = vpop.f32.mrb[41].mxu1 }
0x3f9c   :  { %6545 = vst [vmem:[%s11444_s16 + $0xa] sm:$0x3] %v9341_v25 }
0x3fa1   :  { %v5031_v12 = vpop.f32.mrb[42].mxu1 }
0x3fa2   :  { %v5035_v24 = vmax.f32 %v5031_v12, 0.0  ;;  %v8217_v13 = vpop.f32.mrb[43].mxu1  ;;  %v11174_v12 = vld [vmem:[%s11436_s2] sm:$0x3] }
0x3fa4   :  { %v5039_v41 = vsel %vm225_vm3, %v5035_v24, %v11031_v30 }
0x3fa5   :  { %v5040_v9 = vsel %vm309_vm4, %v5039_v41, %v5037_v31  ;;  %v11494_v41 = vld [vmem:[#allocation9_spill] sm:$0xff] }
0x3fa6   :  { %8243 = vmatmul.mubr.msk.f32.vlgmr.msra.gmra.mrb[44].mxu0 %vm317_vm5, %v5040_v9  ;;  %v11495_v9 = vld [vmem:[#allocation10_spill] sm:$0xff] }
0x3fa7   :  { %9200 = vmatpush3.bf16.msra.mxu0 %v10022_v55  ;;  %8322 = vmatprep.mubr.msk.f32.mxu0 %vm9576_vm0, %v11478_v0 }
0x3fa8   :  { %9201 = vmatprep.subr.bf16.mxu0 %v11479_v4 }
0x3fab   :  { %9203 = vmatpush3.bf16.msra.mxu0 %v10028_v58 }
0x3fac   :  { %9204 = vmatprep.subr.bf16.mxu0 %v11479_v4 }
0x3faf   :  { %9206 = vmatpush3.bf16.msra.mxu0 %v10038_v1 }
0x3fb0   :  { %9207 = vmatprep.subr.bf16.mxu0 %v11479_v4 }
0x3fb3   :  { %9209 = vmatpush3.bf16.msra.mxu0 %v10048_v8 }
0x3fb4   :  { %9210 = vmatprep.subr.bf16.mxu0 %v11479_v4 }
0x3fb7   :  { %9212 = vmatpush3.bf16.msra.mxu0 %v10058_v17 }
0x3fb8   :  { %9213 = vmatprep.subr.bf16.mxu0 %v11479_v4 }
0x3fbb   :  { %9215 = vmatpush3.bf16.msra.mxu0 %v10068_v22 }
0x3fbc   :  { %9216 = vmatprep.subr.bf16.mxu0 %v11479_v4 }
0x4079   :  { %v5110_v61 = vpop.f32.mrb[44].mxu0 }
0x407a   :  { %v5111_v30 = vadd.f32 %v10949_v39, %v5110_v61  ;;  %v8244_v2 = vpop.f32.mrb[45].mxu0 }
0x407c   :  { %9517 = vtanh.f32 %v5111_v30  ;;  %v6550_v60 = vmul.f32 -1.442695, %v5111_v30 }
0x407e   :  { %9519 = vpow2.f32 %v6550_v60 }
0x4086   :  { %v9518_v47 = vpop.eup %9517 }
0x4087   :  { %5123 = vrot.lane.b32.xlu0 %v9518_v47, %s9579_s22 }
0x4088   :  { %v9520_v57 = vpop.eup %9519 }
0x4089   :  { %v5117_v11 = vadd.f32 1.0, %v9520_v57 }
0x408b   :  { %9521 = vrcp.f32 %v5117_v11 }
0x4095   :  { %v9522_v54 = vpop.eup %9521 }
0x4096   :  { %v5121_v53 = vmul.f32 %v9522_v54, %v10961_v6 }
0x40f9   :  { %v5124_v51 = vpop.permute.xlu0 %5123 }
0x40fa   :  { %v5126_v18 = vmul.f32 %v9522_v54, %v5124_v51 }
0x40fc   :  { %5128 = vrot.lane.b32.xlu1 %v5126_v18, %s9578_s23 }
0x4100   :  { %5139 = vrot.lane.b32.xlu1 %v11127_v43, %s9580_s18 }
0x416e   :  { %v5129_v14 = vpop.permute.xlu1 %5128 }
0x416f   :  { %v11132_v16 = vadd.f32 %v5129_v14, %v5121_v53  ;;  %v11497_v53 = vld [vmem:[#allocation12_spill] sm:$0xff] }
0x4171   :  { %9523 = vtanh.f32 %v11132_v16 }
0x4172   :  { %v5140_v50 = vpop.permute.xlu1 %5139 }
0x4173   :  { %v5142_v63 = vsel %vm423_vm7, %v11017_v32, %v5140_v50  ;;  %v11498_v50 = vld [vmem:[#allocation13_spill] sm:$0xff] }
0x4174   :  { %8250 = vmatmul.mubr.msk.f32.vlgmr.msra.gmra.mrb[44].mxu1 %vm425_vm8, %v5142_v63 }
0x4175   :  { %9170 = vmatpush3.bf16.msra.mxu1 %v9865_v21  ;;  %8260 = vmatprep.mubr.msk.f32.mxu1 %vm9576_vm0, %v11478_v0 }
0x4176   :  { %9171 = vmatprep.subr.bf16.mxu1 %v11479_v4 }
0x4179   :  { %9173 = vmatpush3.bf16.msra.mxu1 %v9876_v28 }
0x417a   :  { %9174 = vmatprep.subr.bf16.mxu1 %v11479_v4 }
0x417b   :  { %v9524_v3 = vpop.eup %9523 }
0x417c   :  { %5134 = vrot.lane.b32.xlu0 %v9524_v3, %s9579_s22 }
0x41ee   :  { %v5135_v6 = vpop.permute.xlu0 %5134 }
0x41ef   :  { %v11145_v25 = vmul.f32 %v9522_v54, %v5135_v6 }
0x41f1   :  { %5217 = vrot.lane.b32.xlu0 %v11145_v25, %s9578_s23 }
0x4263   :  { %v11149_v32 = vpop.permute.xlu0 %5217 }
0x4264   :  { %8261 = vmatmul.mubr.msk.f32.vlgmr.msra.gmra.mrb[44].mxu1 %vm225_vm3, %v11149_v32 }
0x4265   :  { %9176 = vmatpush3.bf16.msra.mxu1 %v9894_v36  ;;  %8295 = vmatprep.mubr.msk.f32.mxu1 %vm9576_vm0, %v11478_v0 }
0x4266   :  { %9177 = vmatprep.subr.bf16.mxu1 %v11479_v4 }
0x4269   :  { %9179 = vmatpush3.bf16.msra.mxu1 %v9907_v42 }
0x426a   :  { %9180 = vmatprep.subr.bf16.mxu1 %v11479_v4 }
0x426d   :  { %9182 = vmatpush3.bf16.msra.mxu1 %v9919_v45 }
0x426e   :  { %9183 = vmatprep.subr.bf16.mxu1 %v11479_v4 }
0x4271   :  { %9185 = vmatpush3.bf16.msra.mxu1 %v9929_v49 }
0x4272   :  { %9186 = vmatprep.subr.bf16.mxu1 %v11479_v4 }
0x4275   :  { %9188 = vmatpush3.bf16.msra.mxu1 %v9939_v52 }
0x4276   :  { %9189 = vmatprep.subr.bf16.mxu1 %v11479_v4 }
0x4279   :  { %9191 = vmatpush3.bf16.msra.mxu1 %v9950_v56 }
0x427a   :  { %9192 = vmatprep.subr.bf16.mxu1 %v11479_v4 }
0x427d   :  { %9194 = vmatpush3.bf16.msra.mxu1 %v9960_v59 }
0x427e   :  { %9195 = vmatprep.subr.bf16.mxu1 %v11479_v4 }
0x4281   :  { %9197 = vmatpush3.bf16.msra.mxu1 %v9969_v62 }
0x4282   :  { %9228 = vmatprep.subr.bf16.mxu1 %v11479_v4 }
0x4337   :  { %v5287_v19 = vpop.f32.mrb[44].mxu1 }
0x4338   :  { %v5288_v24 = vadd.f32 %v11174_v12, %v5287_v19  ;;  %v8262_v13 = vpop.f32.mrb[45].mxu1  ;;  %v11204_v19 = vld [vmem:[%s11439_s1 + $0x8] sm:$0xff] }
0x4339   :  { %v11210_v13 = vld [vmem:[%s11439_s1] sm:$0xff] }
0x433a   :  { %9525 = vtanh.f32 %v5288_v24 }
0x4344   :  { %v9526_v31 = vpop.eup %9525 }
0x4345   :  { %8296 = vmatmul.mubr.f32.vlgmr.msra.gmra.mrb[46].mxu1 %v9526_v31 }
0x4346   :  { %9230 = vmatpush3.bf16.msra.mxu1 %v9679_v5  ;;  %8369 = vmatprep.mubr.msk.f32.mxu1 %vm9576_vm0, %v11478_v0 }
0x4347   :  { %9231 = vmatprep.subr.bf16.mxu1 %v11479_v4 }
0x434a   :  { %9233 = vmatpush3.bf16.msra.mxu1 %v9688_v7 }
0x434b   :  { %9234 = vmatprep.subr.bf16.mxu1 %v11479_v4 }
0x434e   :  { %9236 = vmatpush3.bf16.msra.mxu1 %v9698_v10 }
0x434f   :  { %9237 = vmatprep.subr.bf16.mxu1 %v11479_v4 }
0x4352   :  { %9239 = vmatpush3.bf16.msra.mxu1 %v11494_v41 }
0x4353   :  { %9240 = vmatprep.subr.bf16.mxu1 %v11479_v4 }
0x4356   :  { %9242 = vmatpush3.bf16.msra.mxu1 %v11495_v9 }
0x4357   :  { %9249 = vmatprep.subr.bf16.mxu1 %v11479_v4 }
0x4418   :  { %v5359_v5 = vpop.f32.mrb[46].mxu1 }
0x4419   :  { %v5363_v30 = vsel %vm646_vm9, %v5359_v5, -1e+09  ;;  %v8297_v2 = vpop.f32.mrb[47].mxu1 }
0x441a   :  { %v5364_v7 = vsel %vm62_vm6, %v5363_v30, -inf }
0x441b   :  { %5365 = vmax.xlane.f32.xlu1 %v5364_v7 }
0x44a8   :  { %v5366_v47 = vpop.xlane.xlu1 %5365 }
0x44a9   :  { %v5367_v10 = vsub.f32 %v5363_v30, %v5366_v47 }
0x44ab   :  { %v5368_v60 = vmul.f32 1.442695, %v5367_v10 }
0x44ad   :  { %9527 = vpow2.f32 %v5368_v60 }
0x44b7   :  { %v9528_v57 = vpop.eup %9527 }
0x44b8   :  { %v5370_v11 = vsel %vm62_vm6, %v9528_v57, 0.0 }
0x44b9   :  { %5371 = vadd.xlane.f32.xlu0 %v5370_v11 }
0x4546   :  { %v5372_v54 = vpop.xlane.xlu0 %5371 }
0x4547   :  { %9529 = vrcp.f32 %v5372_v54 }
0x4551   :  { %v9530_v51 = vpop.eup %9529 }
0x4552   :  { %v11193_v18 = vmul.f32 %v9530_v51, %v9528_v57 }
0x4554   :  { %v5385_v14 = vrot.slane %v11193_v18, %v11497_v53  ;;  %v5378_v63 = vrot.slane %v11193_v18, %v11498_v50 }
0x4556   :  { %5387 = vbcast.lane.b32.xlu1 %v5385_v14, 256  ;;  %5380 = vbcast.lane.b32.xlu0 %v5378_v63, 256 }
0x455a   :  { %5413 = vrot.lane.b32.xlu0 %v11076_v44, %s9581_s9 }
0x45c8   :  { %v5388_v3 = vpop.permute.xlu1 %5387  ;;  %v5381_v6 = vpop.permute.xlu0 %5380 }
0x45c9   :  { %v5390_v24 = vmul.f32 %v11204_v19, %v5388_v3  ;;  %v5389_v31 = vmul.f32 %v11210_v13, %v5381_v6 }
0x45cb   :  { %v5398_v41 = vsel %vm225_vm3, %v5390_v24, 0.0  ;;  %v5391_v44 = vsel %vm225_vm3, %v5389_v31, 0.0  ;;  %v11237_v31 = vld [vmem:[%s11440_s12] ss:$0 sm:$0xff] }
0x45cc   :  { %v5399_v9 = vrot.slane %v5398_v41, 4  ;;  %v5392_v5 = vrot.slane %v5391_v44, 4  ;;  %v5414_v3 = vpop.permute.xlu0 %5413 }
0x45ce   :  { %v5400_v30 = vadd.f32 %v5399_v9, %v5398_v41  ;;  %v5393_v2 = vadd.f32 %v5392_v5, %v5391_v44 }
0x45d0   :  { %v5401_v7 = vrot.slane %v5400_v30, 2  ;;  %v5394_v47 = vrot.slane %v5393_v2, 2 }
0x45d2   :  { %v5402_v10 = vadd.f32 %v5401_v7, %v5400_v30  ;;  %v5395_v60 = vadd.f32 %v5394_v47, %v5393_v2 }
0x45d4   :  { %v5403_v57 = vrot.slane %v5402_v10, 1  ;;  %v5396_v11 = vrot.slane %v5395_v60, 1 }
0x45d6   :  { %v5404_v54 = vadd.f32 %v5403_v57, %v5402_v10  ;;  %v5397_v51 = vadd.f32 %v5396_v11, %v5395_v60  ;;  %v6558_v60 = vld [vmem:[%s11430_s0 + $0xe] sm:$0x3] }
0x45d7   :  { %8370 = vmatmul.mubr.msk.f32.vlgmr.msra.gmra.mrb[48].mxu1 %vm150_vm1, %v6558_v60 }
0x45d8   :  { %v5409_v14 = vsel %vm694_vm10, %v5404_v54, %v5397_v51  ;;  %9251 = vmatpush3.bf16.msra.mxu1 %v9768_v27  ;;  %8407 = vmatprep.mubr.msk.f32.mxu1 %vm9576_vm0, %v11478_v0  ;;  %v11277_v51 = vld [vmem:[%s11442_s15] sm:$0xff] }
0x45d9   :  { %5410 = vrot.lane.b32.xlu1 %v5409_v14, %s9578_s23  ;;  %9252 = vmatprep.subr.bf16.mxu1 %v11479_v4  ;;  %v11299_v14 = vld [vmem:[%s11443_s14] ss:$0 sm:$0xff] }
0x45dc   :  { %9254 = vmatpush3.bf16.msra.mxu1 %v9774_v29 }
0x45dd   :  { %9255 = vmatprep.subr.bf16.mxu1 %v11479_v4 }
0x45e0   :  { %9257 = vmatpush3.bf16.msra.mxu1 %v9784_v33 }
0x45e1   :  { %9258 = vmatprep.subr.bf16.mxu1 %v11479_v4 }
0x45e4   :  { %9260 = vmatpush3.bf16.msra.mxu1 %v9795_v37 }
0x45e5   :  { %9261 = vmatprep.subr.bf16.mxu1 %v11479_v4 }
0x45e8   :  { %9263 = vmatpush3.bf16.msra.mxu1 %v9806_v40 }
0x45e9   :  { %9264 = vmatprep.subr.bf16.mxu1 %v11479_v4 }
0x45ec   :  { %9266 = vmatpush3.bf16.msra.mxu1 %v9820_v46 }
0x45ed   :  { %9300 = vmatprep.subr.bf16.mxu1 %v11479_v4 }
0x464b   :  { %v11217_v63 = vpop.permute.xlu1 %5410 }
0x464c   :  { %v5416_v6 = vsel %vm225_vm3, %v11149_v32, %v11217_v63 }
0x464d   :  { %v5417_v24 = vsel %vm309_vm4, %v5416_v6, %v5414_v3 }
0x464e   :  { %8323 = vmatmul.mubr.msk.f32.vlgmr.msra.gmra.mrb[46].mxu0 %vm317_vm5, %v5417_v24 }
0x464f   :  { %9218 = vmatpush3.bf16.msra.mxu0 %v10137_v34  ;;  %8341 = vmatprep.mubr.msk.f32.mxu0 %vm9576_vm0, %v11478_v0 }
0x4650   :  { %9219 = vmatprep.subr.bf16.mxu0 %v11479_v4 }
0x4653   :  { %9221 = vmatpush3.bf16.msra.mxu0 %v11480_v35 }
0x4654   :  { %9222 = vmatprep.subr.bf16.mxu0 %v11479_v4 }
0x4657   :  { %9224 = vmatpush3.bf16.msra.mxu0 %v11481_v38 }
0x4658   :  { %9225 = vmatprep.subr.bf16.mxu0 %v11479_v4 }
0x465b   :  { %9227 = vmatpush3.bf16.msra.mxu0 %v11482_v48 }
0x465c   :  { %8344 = vmatprep.subr.mxu0 %v11478_v0 }
0x46aa   :  { %v5740_v40 = vpop.f32.mrb[48].mxu1 }
0x46ab   :  { %v8371_v46 = vpop.f32.mrb[49].mxu1 }
0x4721   :  { %v5487_v32 = vpop.f32.mrb[46].mxu0 }
0x4722   :  { %v5488_v41 = vadd.f32 %v11237_v31, %v5487_v32  ;;  %v8324_v44 = vpop.f32.mrb[47].mxu0 }
0x4724   :  { %9531 = vtanh.f32 %v5488_v41  ;;  %v6554_v5 = vmul.f32 -1.442695, %v5488_v41 }
0x4726   :  { %9533 = vpow2.f32 %v6554_v5 }
0x472e   :  { %v9532_v9 = vpop.eup %9531 }
0x472f   :  { %5500 = vrot.lane.b32.xlu1 %v9532_v9, %s9579_s22 }
0x4730   :  { %v9534_v30 = vpop.eup %9533 }
0x4731   :  { %v5494_v2 = vadd.f32 1.0, %v9534_v30 }
0x4733   :  { %9535 = vrcp.f32 %v5494_v2 }
0x473d   :  { %v9536_v7 = vpop.eup %9535 }
0x473e   :  { %v5498_v27 = vmul.f32 %v9536_v7, %v11070_v26 }
0x47a1   :  { %v5501_v47 = vpop.permute.xlu1 %5500 }
0x47a2   :  { %v5503_v10 = vmul.f32 %v9536_v7, %v5501_v47 }
0x47a4   :  { %5505 = vrot.lane.b32.xlu0 %v5503_v10, %s9578_s23 }
0x4816   :  { %v5506_v29 = vpop.permute.xlu0 %5505 }
0x4817   :  { %v11261_v57 = vadd.f32 %v5506_v29, %v5498_v27 }
0x4819   :  { %9537 = vtanh.f32 %v11261_v57 }
0x4823   :  { %v9538_v33 = vpop.eup %9537 }
0x4824   :  { %5511 = vrot.lane.b32.xlu1 %v9538_v33, %s9579_s22 }
0x4828   :  { %5819 = vrot.lane.b32.xlu1 %v11145_v25, %s9581_s9  ;;  %v5744_v25 = vmax.f32 %v5740_v40, 0.0 }
0x4896   :  { %v5512_v37 = vpop.permute.xlu1 %5511 }
0x4897   :  { %v11267_v11 = vmul.f32 %v9536_v7, %v5512_v37 }
0x4899   :  { %5516 = vrot.lane.b32.xlu0 %v11267_v11, %s9578_s23 }
0x489a   :  { %v5820_v32 = vpop.permute.xlu1 %5819 }
0x490b   :  { %v5517_v26 = vpop.permute.xlu0 %5516 }
0x490c   :  { %v5519_v54 = vsel %vm225_vm3, %v5517_v26, %v11217_v63 }
0x490d   :  { %8342 = vmatmul.mubr.msk.f32.vlgmr.msra.gmra.mrb[48].mxu0 %vm309_vm4, %v5519_v54 }
0x490e   :  { %8345 = vmatpush3.msra.mxu0 %v11277_v51  ;;  %8346 = vmatprep.mubr.msk.f32.mxu0 %vm9576_vm0, %v11478_v0 }
0x490f   :  { %9243 = vmatprep.subr.bf16.mxu0 %v11479_v4 }
0x4915   :  { %8347 = vmatmul.mubr.msk.f32.vlgmr.msra.gmra.mrb[48].mxu0 %vm423_vm7, %v11193_v18 }
0x4916   :  { %9245 = vmatpush3.bf16.msra.mxu0 %v9731_v20  ;;  %8380 = vmatprep.mubr.msk.f32.mxu0 %vm9576_vm0, %v11478_v0 }
0x4917   :  { %9246 = vmatprep.subr.bf16.mxu0 %v11479_v4 }
0x491a   :  { %9248 = vmatpush3.bf16.msra.mxu0 %v9745_v23 }
0x491b   :  { %9267 = vmatprep.subr.bf16.mxu0 %v11479_v4 }
0x491d   :  { %8381 = vmatmul.mubr.msk.f32.vlgmr.msra.gmra.mrb[50].mxu0 %vm225_vm3, %v5744_v25 }
0x491e   :  { %9269 = vmatpush3.bf16.msra.mxu0 %v9855_v15  ;;  %8414 = vmatprep.mubr.msk.f32.mxu0 %vm9576_vm0, %v11478_v0 }
0x491f   :  { %9270 = vmatprep.subr.bf16.mxu0 %v11479_v4 }
0x49e8   :  { %v5662_v20 = vpop.f32.mrb[48].mxu0 }
0x49e9   :  { %v9343_v3 = vadd.f32 %v11299_v14, %v5662_v20  ;;  %v8348_v23 = vpop.f32.mrb[49].mxu0 }
0x49eb   :  { %6557 = vst [vmem:[%s11444_s16 + $0xc] sm:$0x3] %v9343_v3 }
0x49f0   :  { %v5814_v6 = vpop.f32.mrb[50].mxu0 }
0x49f1   :  { %v5818_v15 = vmax.f32 %v5814_v6, 0.0  ;;  %v8382_v24 = vpop.f32.mrb[51].mxu0 }
0x49f3   :  { %v5822_v41 = vsel %vm225_vm3, %v5818_v15, %v11217_v63 }
0x49f4   :  { %v5823_v44 = vsel %vm309_vm4, %v5822_v41, %v5820_v32 }
0x49f5   :  { %8408 = vmatmul.mubr.msk.f32.vlgmr.msra.gmra.mrb[50].mxu1 %vm317_vm5, %v5823_v44 }
0x49f6   :  { %9302 = vmatpush3.bf16.msra.mxu1 %v10022_v55  ;;  %8487 = vmatprep.mubr.msk.f32.mxu1 %vm9576_vm0, %v11478_v0 }
0x49f7   :  { %9303 = vmatprep.subr.bf16.mxu1 %v11479_v4 }
0x49fa   :  { %9305 = vmatpush3.bf16.msra.mxu1 %v10028_v58 }
0x49fb   :  { %9306 = vmatprep.subr.bf16.mxu1 %v11479_v4 }
0x49fe   :  { %9308 = vmatpush3.bf16.msra.mxu1 %v10038_v1 }
0x49ff   :  { %9309 = vmatprep.subr.bf16.mxu1 %v11479_v4 }
0x4a02   :  { %9311 = vmatpush3.bf16.msra.mxu1 %v10048_v8 }
0x4a03   :  { %9312 = vmatprep.subr.bf16.mxu1 %v11479_v4 }
0x4a06   :  { %9314 = vmatpush3.bf16.msra.mxu1 %v10058_v17 }
0x4a07   :  { %9315 = vmatprep.subr.bf16.mxu1 %v11479_v4 }
0x4a0a   :  { %9317 = vmatpush3.bf16.msra.mxu1 %v10068_v22  ;;  %v5405_v22 = vadd.f32 %v11193_v18, %v11127_v43 }
0x4a0b   :  { %9318 = vmatprep.subr.bf16.mxu1 %v11479_v4 }
0x4ac8   :  { %v5893_v55 = vpop.f32.mrb[50].mxu1 }
0x4ac9   :  { %v5894_v58 = vadd.f32 %v10949_v39, %v5893_v55  ;;  %v8409_v63 = vpop.f32.mrb[51].mxu1 }
0x4acb   :  { %9539 = vtanh.f32 %v5894_v58  ;;  %v6562_v9 = vmul.f32 -1.442695, %v5894_v58 }
0x4acd   :  { %9541 = vpow2.f32 %v6562_v9 }
0x4ad5   :  { %v9540_v1 = vpop.eup %9539 }
0x4ad6   :  { %5906 = vrot.lane.b32.xlu0 %v9540_v1, %s9579_s22 }
0x4ad7   :  { %v9542_v8 = vpop.eup %9541 }
0x4ad8   :  { %v5900_v5 = vadd.f32 1.0, %v9542_v8 }
0x4ada   :  { %9543 = vrcp.f32 %v5900_v5 }
0x4ae4   :  { %v9544_v17 = vpop.eup %9543 }
0x4ae5   :  { %v5904_v39 = vmul.f32 %v9544_v17, %v11132_v16 }
0x4b48   :  { %v5907_v30 = vpop.permute.xlu0 %5906 }
0x4b49   :  { %v5909_v2 = vmul.f32 %v9544_v17, %v5907_v30 }
0x4b4b   :  { %5911 = vrot.lane.b32.xlu1 %v5909_v2, %s9578_s23 }
0x4b4f   :  { %5922 = vrot.lane.b32.xlu1 %v5405_v22, %s9580_s18 }
0x4bbd   :  { %v5912_v7 = vpop.permute.xlu1 %5911 }
0x4bbe   :  { %v11330_v47 = vadd.f32 %v5912_v7, %v5904_v39 }
0x4bc0   :  { %9545 = vtanh.f32 %v11330_v47 }
0x4bc1   :  { %v5923_v10 = vpop.permute.xlu1 %5922 }
0x4bc2   :  { %v5925_v60 = vsel %vm423_vm7, %v11193_v18, %v5923_v10 }
0x4bc3   :  { %8415 = vmatmul.mubr.msk.f32.vlgmr.msra.gmra.mrb[52].mxu0 %vm425_vm8, %v5925_v60 }
0x4bc4   :  { %9272 = vmatpush3.bf16.msra.mxu0 %v9865_v21  ;;  %8425 = vmatprep.mubr.msk.f32.mxu0 %vm9576_vm0, %v11478_v0 }
0x4bc5   :  { %9273 = vmatprep.subr.bf16.mxu0 %v11479_v4 }
0x4bc8   :  { %9275 = vmatpush3.bf16.msra.mxu0 %v9876_v28 }
0x4bc9   :  { %9276 = vmatprep.subr.bf16.mxu0 %v11479_v4 }
0x4bca   :  { %v9546_v43 = vpop.eup %9545 }
0x4bcb   :  { %5917 = vrot.lane.b32.xlu0 %v9546_v43, %s9579_s22 }
0x4c3d   :  { %v5918_v16 = vpop.permute.xlu0 %5917 }
0x4c3e   :  { %v5920_v27 = vmul.f32 %v9544_v17, %v5918_v16 }
0x4c40   :  { %6000 = vrot.lane.b32.xlu0 %v5920_v27, %s9578_s23 }
0x4cb2   :  { %v11344_v18 = vpop.permute.xlu0 %6000 }
0x4cb3   :  { %6453 = vst.msk [vmem:[#allocation2] sm:$0x3] %vm57_vm2, %v11344_v18  ;;  %8426 = vmatmul.mubr.msk.f32.vlgmr.msra.gmra.mrb[52].mxu0 %vm225_vm3, %v11344_v18 }
0x4cb4   :  { %9278 = vmatpush3.bf16.msra.mxu0 %v9894_v36  ;;  %8460 = vmatprep.mubr.msk.f32.mxu0 %vm9576_vm0, %v11478_v0 }
0x4cb5   :  { %9279 = vmatprep.subr.bf16.mxu0 %v11479_v4 }
0x4cb8   :  { %9281 = vmatpush3.bf16.msra.mxu0 %v9907_v42 }
0x4cb9   :  { %9282 = vmatprep.subr.bf16.mxu0 %v11479_v4 }
0x4cbc   :  { %9284 = vmatpush3.bf16.msra.mxu0 %v9919_v45 }
0x4cbd   :  { %9285 = vmatprep.subr.bf16.mxu0 %v11479_v4 }
0x4cc0   :  { %9287 = vmatpush3.bf16.msra.mxu0 %v9929_v49 }
0x4cc1   :  { %9288 = vmatprep.subr.bf16.mxu0 %v11479_v4 }
0x4cc4   :  { %9290 = vmatpush3.bf16.msra.mxu0 %v9939_v52 }
0x4cc5   :  { %9291 = vmatprep.subr.bf16.mxu0 %v11479_v4 }
0x4cc8   :  { %9293 = vmatpush3.bf16.msra.mxu0 %v9950_v56 }
0x4cc9   :  { %9294 = vmatprep.subr.bf16.mxu0 %v11479_v4 }
0x4ccc   :  { %9296 = vmatpush3.bf16.msra.mxu0 %v9960_v59 }
0x4ccd   :  { %9297 = vmatprep.subr.bf16.mxu0 %v11479_v4 }
0x4cd0   :  { %9299 = vmatpush3.bf16.msra.mxu0 %v9969_v62 }
0x4d86   :  { %v6070_v21 = vpop.f32.mrb[52].mxu0 }
0x4d87   :  { %v6071_v28 = vadd.f32 %v11174_v12, %v6070_v21  ;;  %v8427_v36 = vpop.f32.mrb[53].mxu0 }
0x4d89   :  { %9547 = vtanh.f32 %v6071_v28 }
0x4d93   :  { %v9548_v42 = vpop.eup %9547 }
0x4d94   :  { %8461 = vmatmul.mubr.f32.vlgmr.msra.gmra.mrb[54].mxu0 %v9548_v42 }
0x4e67   :  { %v6142_v45 = vpop.f32.mrb[54].mxu0 }
0x4e68   :  { %v6146_v49 = vsel %vm646_vm9, %v6142_v45, -1e+09  ;;  %v8462_v52 = vpop.f32.mrb[55].mxu0 }
0x4e69   :  { %v6147_v56 = vsel %vm62_vm6, %v6146_v49, -inf }
0x4e6a   :  { %6148 = vmax.xlane.f32.xlu1 %v6147_v56 }
0x4ef7   :  { %v6149_v59 = vpop.xlane.xlu1 %6148 }
0x4ef8   :  { %v6150_v29 = vsub.f32 %v6146_v49, %v6149_v59 }
0x4efa   :  { %v6151_v33 = vmul.f32 1.442695, %v6150_v29 }
0x4efc   :  { %9549 = vpow2.f32 %v6151_v33 }
0x4f06   :  { %v9550_v62 = vpop.eup %9549 }
0x4f07   :  { %v6153_v37 = vsel %vm62_vm6, %v9550_v62, 0.0 }
0x4f08   :  { %6154 = vadd.xlane.f32.xlu0 %v6153_v37 }
0x4f95   :  { %v6155_v12 = vpop.xlane.xlu0 %6154 }
0x4f96   :  { %9551 = vrcp.f32 %v6155_v12 }
0x4fa0   :  { %v9552_v40 = vpop.eup %9551 }
0x4fa1   :  { %v11372_v46 = vmul.f32 %v9552_v40, %v9550_v62 }
0x4fa3   :  { %v6188_v61 = vadd.f32 %v11372_v46, %v5405_v22  ;;  %6465 = vst.msk [vmem:[#allocation6] sm:$0x3] %vm62_vm6, %v11372_v46  ;;  %v6168_v26 = vrot.slane %v11372_v46, %v11497_v53  ;;  %v6161_v54 = vrot.slane %v11372_v46, %v11498_v50 }
0x4fa5   :  { %6466 = vst.msk [vmem:[#allocation7] sm:$0x3] %vm62_vm6, %v6188_v61  ;;  %6170 = vbcast.lane.b32.xlu1 %v6168_v26, 256  ;;  %6163 = vbcast.lane.b32.xlu0 %v6161_v54, 256 }
0x4fa9   :  { %6196 = vrot.lane.b32.xlu0 %v11267_v11, %s9581_s9 }
0x5017   :  { %v6171_v25 = vpop.permute.xlu1 %6170  ;;  %v6164_v20 = vpop.permute.xlu0 %6163 }
0x5018   :  { %v6173_v3 = vmul.f32 %v11204_v19, %v6171_v25  ;;  %v6172_v23 = vmul.f32 %v11210_v13, %v6164_v20 }
0x501a   :  { %v6181_v6 = vsel %vm225_vm3, %v6173_v3, 0.0  ;;  %v6174_v53 = vsel %vm225_vm3, %v6172_v23, 0.0 }
0x501b   :  { %v6182_v15 = vrot.slane %v6181_v6, 4  ;;  %v6175_v24 = vrot.slane %v6174_v53, 4  ;;  %v6197_v8 = vpop.permute.xlu0 %6196 }
0x501d   :  { %v6183_v50 = vadd.f32 %v6182_v15, %v6181_v6  ;;  %v6176_v32 = vadd.f32 %v6175_v24, %v6174_v53 }
0x501f   :  { %v6184_v41 = vrot.slane %v6183_v50, 2  ;;  %v6177_v44 = vrot.slane %v6176_v32, 2 }
0x5021   :  { %v6185_v55 = vadd.f32 %v6184_v41, %v6183_v50  ;;  %v6178_v58 = vadd.f32 %v6177_v44, %v6176_v32 }
0x5023   :  { %v6186_v63 = vrot.slane %v6185_v55, 1  ;;  %v6179_v11 = vrot.slane %v6178_v58, 1 }
0x5025   :  { %v6187_v1 = vadd.f32 %v6186_v63, %v6185_v55  ;;  %v6180_v9 = vadd.f32 %v6179_v11, %v6178_v58 }
0x5027   :  { %v6192_v19 = vsel %vm694_vm10, %v6187_v1, %v6180_v9 }
0x5028   :  { %6193 = vrot.lane.b32.xlu1 %v6192_v19, %s9578_s23  ;;  %6468 = vst.msk [vmem:[#allocation8] sm:$0x3] %vm57_vm2, %v6192_v19 }
0x509a   :  { %v6194_v13 = vpop.permute.xlu1 %6193 }
0x509b   :  { %v6199_v5 = vsel %vm225_vm3, %v11344_v18, %v6194_v13 }
0x509c   :  { %v6200_v17 = vsel %vm309_vm4, %v6199_v5, %v6197_v8 }
0x509d   :  { %8488 = vmatmul.mubr.msk.f32.vlgmr.msra.gmra.mrb[52].mxu1 %vm317_vm5, %v6200_v17 }
0x509e   :  { %9320 = vmatpush3.bf16.msra.mxu1 %v10137_v34  ;;  %8506 = vmatprep.mubr.msk.f32.mxu1 %vm9576_vm0, %v11478_v0 }
0x509f   :  { %9321 = vmatprep.subr.bf16.mxu1 %v11479_v4 }
0x50a2   :  { %9323 = vmatpush3.bf16.msra.mxu1 %v11480_v35 }
0x50a3   :  { %9324 = vmatprep.subr.bf16.mxu1 %v11479_v4 }
0x50a6   :  { %9326 = vmatpush3.bf16.msra.mxu1 %v11481_v38 }
0x50a7   :  { %9327 = vmatprep.subr.bf16.mxu1 %v11479_v4 }
0x50aa   :  { %9329 = vmatpush3.bf16.msra.mxu1 %v11482_v48 }
0x50ab   :  { %8509 = vmatprep.subr.mxu1 %v11478_v0 }
0x5170   :  { %v6270_v30 = vpop.f32.mrb[52].mxu1 }
0x5171   :  { %v6271_v34 = vadd.f32 %v11237_v31, %v6270_v30  ;;  %v8489_v2 = vpop.f32.mrb[53].mxu1 }
0x5173   :  { %9553 = vtanh.f32 %v6271_v34  ;;  %v6566_v39 = vmul.f32 -1.442695, %v6271_v34 }
0x5175   :  { %9555 = vpow2.f32 %v6566_v39 }
0x517d   :  { %v9554_v22 = vpop.eup %9553 }
0x517e   :  { %6283 = vrot.lane.b32.xlu1 %v9554_v22, %s9579_s22 }
0x517f   :  { %v9556_v35 = vpop.eup %9555 }
0x5180   :  { %v6277_v7 = vadd.f32 1.0, %v9556_v35 }
0x5182   :  { %9557 = vrcp.f32 %v6277_v7 }
0x518c   :  { %v9558_v38 = vpop.eup %9557 }
0x518d   :  { %v6281_v48 = vmul.f32 %v9558_v38, %v11261_v57 }
0x51f0   :  { %v6284_v10 = vpop.permute.xlu1 %6283 }
0x51f1   :  { %v6286_v4 = vmul.f32 %v9558_v38, %v6284_v10 }
0x51f3   :  { %6288 = vrot.lane.b32.xlu0 %v6286_v4, %s9578_s23 }
0x5265   :  { %v6289_v60 = vpop.permute.xlu0 %6288 }
0x5266   :  { %v6291_v43 = vadd.f32 %v6289_v60, %v6281_v48 }
0x5268   :  { %9559 = vtanh.f32 %v6291_v43 }
0x5272   :  { %v9560_v31 = vpop.eup %9559 }
0x5273   :  { %6294 = vrot.lane.b32.xlu1 %v9560_v31, %s9579_s22 }
0x5277   :  { %6455 = vrot.lane.b32.xlu1 %v11330_v47, %s9581_s9 }
0x52e5   :  { %v6295_v16 = vpop.permute.xlu1 %6294 }
0x52e6   :  { %v6297_v27 = vmul.f32 %v9558_v38, %v6295_v16 }
0x52e8   :  { %6299 = vrot.lane.b32.xlu0 %v6297_v27, %s9578_s23 }
0x52e9   :  { %v6456_v18 = vpop.permute.xlu1 %6455 }
0x52ea   :  { %6458 = vst.msk [vmem:[#allocation3] sm:$0x3] %vm57_vm2, %v6456_v18 }
0x52ec   :  { %6461 = vrot.lane.b32.xlu0 %v6291_v43, %s9581_s9 }
0x535a   :  { %v6300_v21 = vpop.permute.xlu0 %6299 }
0x535b   :  { %v6302_v57 = vsel %vm225_vm3, %v6300_v21, %v6194_v13  ;;  %6459 = vst.msk [vmem:[#allocation4] sm:$0x3] %vm57_vm2, %v6300_v21 }
0x535c   :  { %8507 = vmatmul.mubr.msk.f32.vlgmr.msra.gmra.mrb[54].mxu1 %vm309_vm4, %v6302_v57 }
0x535d   :  { %8510 = vmatpush3.msra.mxu1 %v11277_v51  ;;  %8511 = vmatprep.mubr.msk.f32.mxu1 %vm9576_vm0, %v11478_v0 }
0x535e   :  { %v6462_v47 = vpop.permute.xlu0 %6461 }
0x535f   :  { %6464 = vst.msk [vmem:[#allocation5] sm:$0x3] %vm57_vm2, %v6462_v47 }
0x5364   :  { %8512 = vmatmul.mubr.msk.f32.vlgmr.msra.gmra.mrb[54].mxu1 %vm423_vm7, %v11372_v46 }
0x5437   :  { %v6445_v28 = vpop.f32.mrb[54].mxu1 }
0x5438   :  { %v9345_v36 = vadd.f32 %v11299_v14, %v6445_v28  ;;  %v8513_v42 = vpop.f32.mrb[55].mxu1 }
0x543a   :  { %6569 = vst [vmem:[%s11444_s16 + $0xe] sm:$0x3] %v9345_v36 }

</bundles_post_ra>
